<compile_context>
chip_gen: v7x
topology: tpu7x:2x2x1
jax: 0.10.0
libtpu: 0.0.40
codegen_flags: <defaults>
</compile_context>

<pallas_src>
import functools

import numpy as np

import jax
import jax.numpy as jnp
from jax.experimental import pallas as pl
from jax.experimental.pallas import tpu as pltpu

C_MID = 64  # fixed by the module (conv1 output / conv2 input channels)


# ---------------------------------------------------------------------------
# Fused Pallas kernel
# ---------------------------------------------------------------------------

def _disc_kernel(patches_ref, w1_ref, b1_ref,
                 embw_ref, embb_ref, g1_ref, be1_ref,
                 fcw_hbm, fcb_ref, g2_ref, be2_ref,
                 w2_hbm, rtap_hbm, b2_ref,
                 out_ref, emb_ref,
                 fcw_v, rtap_v, w2_v, dma_sem,
                 h1_s, flat_s, ycs_s, nst_s,
                 *, batch, n_pos, n_mid):
    """Whole Discriminator forward in VMEM.

    patches_ref : (n_pos*batch, 9*Cin) conv1 im2col patches, rows ordered (p, b)
    fcw_hbm     : (32, down_dim) bf16   -- left in HBM, manual DMA
    w2_hbm      : (batch*Cout, 9*64*batch) bf16 block weight -- HBM, manual DMA
    rtap_hbm    : (9, n_pos, img*img) bf16 replicate/shift 0-1 taps -- HBM, manual DMA
    out_ref     : (batch*Cout, img*img) NCHW-flattened conv2 output (lane dense)
    emb_ref     : (batch, 32) embedding
    """
    # ---- kick off the big weight DMAs; they overlap conv1 + embedding ------
    cp_fcw = pltpu.make_async_copy(fcw_hbm, fcw_v, dma_sem.at[0])
    cp_rtap = pltpu.make_async_copy(rtap_hbm, rtap_v, dma_sem.at[1])
    cp_w2 = pltpu.make_async_copy(w2_hbm, w2_v, dma_sem.at[2])
    cp_fcw.start()
    cp_rtap.start()
    cp_w2.start()

    # ---- down: Conv2d(Cin, 64, 3, 2, 1) + ReLU (one matmul on patches) -----
    h1 = jnp.dot(patches_ref[...], w1_ref[...], preferred_element_type=jnp.float32)
    h1 = jnp.maximum(h1 + b1_ref[...], 0.0)            # (n_pos*batch, 64), rows (p, b)
    h1_s[...] = h1                                     # single full store

    # Relayout A (ref-to-ref): flat[b, p*64 + c] = h1[(p, b), c]  (NHWC flatten).
    for p in range(n_pos):
        flat_s[:, p * n_mid:(p + 1) * n_mid] = h1_s[p * batch:(p + 1) * batch, :]

    # ---- embedding: Linear(down_dim, 32) (weights pre-permuted to NHWC) ----
    emb = jnp.dot(flat_s[...].astype(jnp.bfloat16), embw_ref[...],
                  preferred_element_type=jnp.float32) + embb_ref[...]
    emb_ref[...] = emb

    # ---- fc: BN1d(32, eps=0.8) -> ReLU -> Linear(32, down_dim) -> BN1d -> ReLU
    m1 = jnp.mean(emb, axis=0, keepdims=True)
    v1 = jnp.mean((emb - m1) ** 2, axis=0, keepdims=True)
    h = (emb - m1) * jax.lax.rsqrt(v1 + 0.8) * g1_ref[...] + be1_ref[...]
    h = jnp.maximum(h, 0.0)

    cp_fcw.wait()                                      # fc_w needed only now
    y = jnp.dot(h.astype(jnp.bfloat16), fcw_v[...],
                preferred_element_type=jnp.float32) + fcb_ref[...]
    m2 = jnp.mean(y, axis=0, keepdims=True)
    v2 = jnp.mean((y - m2) ** 2, axis=0, keepdims=True)
    y = (y - m2) * jax.lax.rsqrt(v2 + 1e-5) * g2_ref[...] + be2_ref[...]
    y = jnp.maximum(y, 0.0)                            # (batch, down_dim)
    flat_s[...] = y                                    # reuse scratch; bound y's live range

    # Relayout B (ref-to-ref): ycs[(c, b), s] = y[b, c*n_pos + s]  (channels into rows).
    for c in range(n_mid):
        ycs_s[c * batch:(c + 1) * batch, :] = flat_s[:, c * n_pos:(c + 1) * n_pos]
    ycs = ycs_s[...].astype(jnp.bfloat16)              # (64*batch, n_pos)

    # ---- up: Upsample(x2, nearest) + Conv2d(64, Cout, 3, 1, 1) -------------
    # 9 full-height/full-width tap matmuls into a stacked scratch, then one
    # matmul whose K dimension performs the 9-way accumulation.
    cp_rtap.wait()
    cp_w2.wait()
    blk = n_mid * batch
    for t in range(9):
        nst_s[t * blk:(t + 1) * blk, :] = jnp.dot(
            ycs, rtap_v[t], preferred_element_type=jnp.float32)
    out_ref[...] = jnp.dot(w2_v[...].astype(jnp.float32), nst_s[...],
                           preferred_element_type=jnp.float32) + b2_ref[...]


# ---------------------------------------------------------------------------
# XLA glue: tiny conv1 im2col (18 KB), rows ordered (position, batch)
# ---------------------------------------------------------------------------

def _conv1_patches(img_nchw, ksize, stride, pad):
    B, C, H, W = img_nchw.shape
    x = jnp.transpose(img_nchw, (0, 2, 3, 1))                     # NHWC
    xp = jnp.pad(x, ((0, 0), (pad, pad), (pad, pad), (0, 0)))
    OH = (H + 2 * pad - ksize) // stride + 1
    OW = (W + 2 * pad - ksize) // stride + 1
    cols = []
    for kh in range(ksize):
        for kw in range(ksize):
            cols.append(xp[:, kh:kh + stride * OH:stride,
                           kw:kw + stride * OW:stride, :])
    p = jnp.stack(cols, axis=3)                                   # (B,OH,OW,9,C)
    p = jnp.transpose(p, (1, 2, 0, 3, 4))                         # (OH,OW,B,9,C)
    return p.reshape(OH * OW * B, ksize * ksize * C), OH, OW


# ---------------------------------------------------------------------------
# Parameters (logical, matching the PyTorch module) + one-time kernel prep
# ---------------------------------------------------------------------------

def make_params(channels, img_size, key):
    down_size = img_size // 2
    down_dim = C_MID * down_size ** 2
    ks = jax.random.split(key, 8)
    return {
        "conv1_w": 0.05 * jax.random.normal(ks[0], (3, 3, channels, C_MID), jnp.float32),
        "conv1_b": 0.05 * jax.random.normal(ks[1], (C_MID,), jnp.float32),
        "emb_w":   0.02 * jax.random.normal(ks[2], (down_dim, 32), jnp.float32),
        "emb_b":   0.02 * jax.random.normal(ks[3], (32,), jnp.float32),
        "bn1_g":   jnp.ones((32,), jnp.float32),
        "bn1_b":   jnp.zeros((32,), jnp.float32),
        "fc_w":    0.05 * jax.random.normal(ks[4], (32, down_dim), jnp.float32),
        "fc_b":    0.05 * jax.random.normal(ks[5], (down_dim,), jnp.float32),
        "bn2_g":   jnp.ones((down_dim,), jnp.float32),
        "bn2_b":   jnp.zeros((down_dim,), jnp.float32),
        "conv2_w": 0.05 * jax.random.normal(ks[6], (3, 3, C_MID, channels), jnp.float32),
        "conv2_b": 0.05 * jax.random.normal(ks[7], (channels,), jnp.float32),
    }


def _upsample_tap_matrices(down_size, img_size):
    """R[t, s, Y*img+X] = 1 iff low-res pixel s feeds output (Y, X) via tap t of the
    3x3 conv after 2x nearest upsampling (zero padding masked)."""
    n_pos = down_size * down_size
    R = np.zeros((9, n_pos, img_size * img_size), np.float32)
    for kh in range(3):
        for kw in range(3):
            t = kh * 3 + kw
            for Y in range(img_size):
                for X in range(img_size):
                    r = Y + kh - 1
                    c = X + kw - 1
                    if 0 <= r < img_size and 0 <= c < img_size:
                        s = (r // 2) * down_size + (c // 2)
                        R[t, s, Y * img_size + X] = 1.0
    return R


def prepare_params(params, channels, img_size, batch):
    """One-time host-side reorder of the weights into kernel-friendly form."""
    down_size = img_size // 2
    n_pos = down_size * down_size
    down_dim = C_MID * n_pos

    # conv1 as a (9*Cin, 64) matmul weight, rows ordered (kh, kw, ci).
    w1 = np.asarray(params["conv1_w"]).reshape(9 * channels, C_MID)
    b1 = np.asarray(params["conv1_b"]).reshape(1, C_MID)

    # embedding weight rows permuted from NCHW-flatten to NHWC-flatten order.
    ew = np.asarray(params["emb_w"]).reshape(C_MID, down_size, down_size, 32)
    ew = ew.transpose(1, 2, 0, 3).reshape(down_dim, 32)

    # conv2 per-tap block weight, flattened along lanes so the 9-way tap
    # accumulation becomes the K dim of one matmul:
    #   w2flat[b*Cout+co, t*128 + c*B + b] = conv2_w[kh, kw, c, co], t = kh*3+kw.
    w2 = np.asarray(params["conv2_w"])                            # (3,3,Cin,Cout)
    w2t = w2.transpose(0, 1, 3, 2).reshape(9, channels, C_MID)    # [t, co, ci]
    w2flat = np.zeros((batch * channels, 9 * C_MID * batch), np.float32)
    for t in range(9):
        for b in range(batch):
            w2flat[b * channels:(b + 1) * channels,
                   t * C_MID * batch + b:(t + 1) * C_MID * batch:batch] = w2t[t]

    rtap = _upsample_tap_matrices(down_size, img_size)
    b2rows = np.tile(np.asarray(params["conv2_b"]), batch).reshape(batch * channels, 1)

    f32, bf16 = jnp.float32, jnp.bfloat16
    return {
        "w1": jnp.asarray(w1, f32),
        "b1": jnp.asarray(b1, f32),
        # big static matmul operands stored bf16 (halves HBM->VMEM traffic);
        # rtap is 0/1 so the cast is exact, the rest are within tolerance.
        "emb_w": jnp.asarray(ew, bf16),
        "emb_b": jnp.asarray(np.asarray(params["emb_b"]).reshape(1, 32), f32),
        "bn1_g": jnp.asarray(np.asarray(params["bn1_g"]).reshape(1, 32), f32),
        "bn1_b": jnp.asarray(np.asarray(params["bn1_b"]).reshape(1, 32), f32),
        "fc_w": jnp.asarray(np.asarray(params["fc_w"]), bf16),
        "fc_b": jnp.asarray(np.asarray(params["fc_b"]).reshape(1, down_dim), f32),
        "bn2_g": jnp.asarray(np.asarray(params["bn2_g"]).reshape(1, down_dim), f32),
        "bn2_b": jnp.asarray(np.asarray(params["bn2_b"]).reshape(1, down_dim), f32),
        "w2flat": jnp.asarray(w2flat, bf16),
        "rtap": jnp.asarray(rtap, bf16),
        "b2rows": jnp.asarray(b2rows, f32),
    }


# ---------------------------------------------------------------------------
# Forward pass (single pallas_call)
# ---------------------------------------------------------------------------

def discriminator_forward(prep, img_nchw, *, channels, img_size):
    B = img_nchw.shape[0]
    ds = img_size // 2
    n_pos = ds * ds
    down_dim = C_MID * n_pos
    npix = img_size * img_size

    patches, _, _ = _conv1_patches(img_nchw, 3, 2, 1)      # (n_pos*B, 9*Cin)

    flops = 2 * ((n_pos * B) * (9 * channels) * C_MID
                 + B * down_dim * 32
                 + B * 32 * down_dim
                 + 9 * (C_MID * B) * n_pos * npix
                 + (B * channels) * (9 * C_MID * B) * npix)
    bytes_accessed = (4 * int(patches.size)
                      + sum(int(v.size) * int(v.dtype.itemsize) for v in prep.values())
                      + 4 * (B * channels * npix + B * 32))

    kernel = functools.partial(_disc_kernel, batch=B, n_pos=n_pos, n_mid=C_MID)

    vspec = pl.BlockSpec(memory_space=pltpu.MemorySpace.VMEM)
    aspec = pl.BlockSpec(memory_space=pl.ANY)               # stays in HBM, manual DMA
    in_specs = [vspec, vspec, vspec,                        # patches, w1, b1
                vspec, vspec, vspec, vspec,                 # emb_w, emb_b, bn1_g, bn1_b
                aspec, vspec, vspec, vspec,                 # fc_w(HBM), fc_b, bn2_g, bn2_b
                aspec, aspec, vspec]                        # w2flat(HBM), rtap(HBM), b2

    out2d, emb = pl.pallas_call(
        kernel,
        out_shape=(
            jax.ShapeDtypeStruct((B * channels, npix), jnp.float32),
            jax.ShapeDtypeStruct((B, 32), jnp.float32),
        ),
        in_specs=in_specs,
        out_specs=(vspec, vspec),
        scratch_shapes=[
            pltpu.VMEM((32, down_dim), jnp.bfloat16),            # fc_w landing buffer
            pltpu.VMEM((9, n_pos, npix), jnp.bfloat16),          # rtap landing buffer
            pltpu.VMEM((B * channels, 9 * C_MID * B), jnp.bfloat16),  # w2flat buffer
            pltpu.SemaphoreType.DMA((3,)),                       # one sem per weight DMA
            pltpu.VMEM((n_pos * B, C_MID), jnp.float32),         # conv1 output, rows (p,b)
            pltpu.VMEM((B, down_dim), jnp.float32),              # flat conv1 out / reused for y
            pltpu.VMEM((C_MID * B, n_pos), jnp.float32),         # fc output, channels in rows
            pltpu.VMEM((9 * C_MID * B, npix), jnp.float32),      # stacked tap outputs
        ],
        cost_estimate=pl.CostEstimate(
            flops=int(flops),
            transcendentals=int(32 + down_dim),
            bytes_accessed=int(bytes_accessed)),
    )(patches, prep["w1"], prep["b1"],
      prep["emb_w"], prep["emb_b"], prep["bn1_g"], prep["bn1_b"],
      prep["fc_w"], prep["fc_b"], prep["bn2_g"], prep["bn2_b"],
      prep["w2flat"], prep["rtap"], prep["b2rows"])

    out = out2d.reshape(B, channels, img_size, img_size)    # free: already NCHW
    return out, emb


# ---------------------------------------------------------------------------
# Pure-XLA reference (for a numerical self-check)
# ---------------------------------------------------------------------------

def _reference_forward(params, img, channels, img_size):
    prec = jax.lax.Precision.HIGHEST
    B = img.shape[0]
    ds = img_size // 2
    down_dim = C_MID * ds * ds

    def conv(x_nchw, w_kkio, b, stride, pad):
        Bx = x_nchw.shape[0]
        x = jnp.transpose(x_nchw, (0, 2, 3, 1))
        xp = jnp.pad(x, ((0, 0), (pad, pad), (pad, pad), (0, 0)))
        KH, KW, Cin, Cout = w_kkio.shape
        H, W = x.shape[1], x.shape[2]
        OH = (H + 2 * pad - KH) // stride + 1
        OW = (W + 2 * pad - KW) // stride + 1
        cols = []
        for kh in range(KH):
            for kw in range(KW):
                cols.append(xp[:, kh:kh + stride * OH:stride,
                               kw:kw + stride * OW:stride, :])
        p = jnp.stack(cols, axis=3).reshape(Bx * OH * OW, KH * KW * Cin)
        o = jnp.dot(p, w_kkio.reshape(KH * KW * Cin, Cout), precision=prec) + b
        return jnp.transpose(o.reshape(Bx, OH, OW, Cout), (0, 3, 1, 2))

    out = jnp.maximum(conv(img, params["conv1_w"], params["conv1_b"], 2, 1), 0.0)
    flat = out.reshape(B, down_dim)
    emb = jnp.dot(flat, params["emb_w"], precision=prec) + params["emb_b"]
    m1 = jnp.mean(emb, axis=0, keepdims=True)
    v1 = jnp.mean((emb - m1) ** 2, axis=0, keepdims=True)
    h = jnp.maximum((emb - m1) * jax.lax.rsqrt(v1 + 0.8)
                    * params["bn1_g"] + params["bn1_b"], 0.0)
    y = jnp.dot(h, params["fc_w"], precision=prec) + params["fc_b"]
    m2 = jnp.mean(y, axis=0, keepdims=True)
    v2 = jnp.mean((y - m2) ** 2, axis=0, keepdims=True)
    y = jnp.maximum((y - m2) * jax.lax.rsqrt(v2 + 1e-5)
                    * params["bn2_g"] + params["bn2_b"], 0.0)
    up = y.reshape(B, C_MID, ds, ds)
    up = jnp.repeat(jnp.repeat(up, 2, axis=2), 2, axis=3)
    out_img = conv(up, params["conv2_w"], params["conv2_b"], 1, 1)
    return out_img, emb


# ---------------------------------------------------------------------------

if __name__ == "__main__":
    channels, img_size, batch = 4, 16, 2

    key = jax.random.PRNGKey(0)
    pkey, xkey = jax.random.split(key)
    params = make_params(channels, img_size, pkey)
    prep = prepare_params(params, channels, img_size, batch)

    img = jax.random.normal(xkey, (batch, channels, img_size, img_size), jnp.float32)

    fwd = jax.jit(functools.partial(discriminator_forward,
                                    channels=channels, img_size=img_size))
    out, embedding = fwd(prep, img)
    jax.block_until_ready(out)
    jax.block_until_ready(embedding)

    assert out.shape == (batch, channels, img_size, img_size), out.shape
    assert embedding.shape == (batch, 32), embedding.shape

    # numerical self-check against a pure-XLA f32 reference of the same module
    # (kernel uses bf16-stored weights / bf16 MXU inputs with f32 accumulation).
    ref_out, ref_emb = jax.jit(functools.partial(
        _reference_forward, channels=channels, img_size=img_size))(params, img)
    np.testing.assert_allclose(np.asarray(embedding), np.asarray(ref_emb),
                               rtol=2e-2, atol=2e-2)
    np.testing.assert_allclose(np.asarray(out), np.asarray(ref_out),
                               rtol=2e-2, atol=2e-2)

    print("KERNEL_OK")
</pallas_src>

<mosaic_0001>
module attributes {stable_mosaic.version = 11 : i64} {
  func.func @_disc_kernel(%arg0: memref<128x36xf32, #tpu.memory_space<vmem>>, %arg1: memref<36x64xf32, #tpu.memory_space<vmem>>, %arg2: memref<1x64xf32, #tpu.memory_space<vmem>>, %arg3: memref<4096x32xbf16, #tpu.memory_space<vmem>>, %arg4: memref<1x32xf32, #tpu.memory_space<vmem>>, %arg5: memref<1x32xf32, #tpu.memory_space<vmem>>, %arg6: memref<1x32xf32, #tpu.memory_space<vmem>>, %arg7: memref<32x4096xbf16, #tpu.memory_space<any>>, %arg8: memref<1x4096xf32, #tpu.memory_space<vmem>>, %arg9: memref<1x4096xf32, #tpu.memory_space<vmem>>, %arg10: memref<1x4096xf32, #tpu.memory_space<vmem>>, %arg11: memref<8x1152xbf16, #tpu.memory_space<any>>, %arg12: memref<9x64x256xbf16, #tpu.memory_space<any>>, %arg13: memref<8x1xf32, #tpu.memory_space<vmem>>, %arg14: memref<8x256xf32, #tpu.memory_space<vmem>>, %arg15: memref<2x32xf32, #tpu.memory_space<vmem>>, %arg16: memref<32x4096xbf16, #tpu.memory_space<vmem>>, %arg17: memref<9x64x256xbf16, #tpu.memory_space<vmem>>, %arg18: memref<8x1152xbf16, #tpu.memory_space<vmem>>, %arg19: memref<3x!tpu.dma_semaphore, #tpu.memory_space<semaphore_mem>>, %arg20: memref<128x64xf32, #tpu.memory_space<vmem>>, %arg21: memref<2x4096xf32, #tpu.memory_space<vmem>>, %arg22: memref<128x64xf32, #tpu.memory_space<vmem>>, %arg23: memref<1152x256xf32, #tpu.memory_space<vmem>>) attributes {dimension_semantics = [], scalar_prefetch = 0 : i64, scratch_operands = 8 : i64, tpu.core_type = #tpu.core_type<tc>} {
    %c0_i32 = arith.constant 0 : i32
    %0 = tpu.memref_slice %arg19[%c0_i32] : memref<3x!tpu.dma_semaphore, #tpu.memory_space<semaphore_mem>> -> memref<1x!tpu.dma_semaphore, #tpu.memory_space<semaphore_mem>>
    %1 = tpu.memref_squeeze %0 : memref<1x!tpu.dma_semaphore, #tpu.memory_space<semaphore_mem>> -> memref<!tpu.dma_semaphore, #tpu.memory_space<semaphore_mem>>
    tpu.enqueue_dma source(%arg7 : memref<32x4096xbf16, #tpu.memory_space<any>>) target(%arg16 : memref<32x4096xbf16, #tpu.memory_space<vmem>>) target_semaphore(%1 : memref<!tpu.dma_semaphore, #tpu.memory_space<semaphore_mem>>)
    %c1_i32 = arith.constant 1 : i32
    %2 = tpu.memref_slice %arg19[%c1_i32] : memref<3x!tpu.dma_semaphore, #tpu.memory_space<semaphore_mem>> -> memref<1x!tpu.dma_semaphore, #tpu.memory_space<semaphore_mem>>
    %3 = tpu.memref_squeeze %2 : memref<1x!tpu.dma_semaphore, #tpu.memory_space<semaphore_mem>> -> memref<!tpu.dma_semaphore, #tpu.memory_space<semaphore_mem>>
    tpu.enqueue_dma source(%arg12 : memref<9x64x256xbf16, #tpu.memory_space<any>>) target(%arg17 : memref<9x64x256xbf16, #tpu.memory_space<vmem>>) target_semaphore(%3 : memref<!tpu.dma_semaphore, #tpu.memory_space<semaphore_mem>>)
    %c2_i32 = arith.constant 2 : i32
    %4 = tpu.memref_slice %arg19[%c2_i32] : memref<3x!tpu.dma_semaphore, #tpu.memory_space<semaphore_mem>> -> memref<1x!tpu.dma_semaphore, #tpu.memory_space<semaphore_mem>>
    %5 = tpu.memref_squeeze %4 : memref<1x!tpu.dma_semaphore, #tpu.memory_space<semaphore_mem>> -> memref<!tpu.dma_semaphore, #tpu.memory_space<semaphore_mem>>
    tpu.enqueue_dma source(%arg11 : memref<8x1152xbf16, #tpu.memory_space<any>>) target(%arg18 : memref<8x1152xbf16, #tpu.memory_space<vmem>>) target_semaphore(%5 : memref<!tpu.dma_semaphore, #tpu.memory_space<semaphore_mem>>)
    %c0 = arith.constant 0 : index
    %c0_0 = arith.constant 0 : index
    %6 = vector.load %arg0[%c0, %c0_0] : memref<128x36xf32, #tpu.memory_space<vmem>>, vector<128x36xf32>
    %c0_1 = arith.constant 0 : index
    %c0_2 = arith.constant 0 : index
    %7 = vector.load %arg1[%c0_1, %c0_2] : memref<36x64xf32, #tpu.memory_space<vmem>>, vector<36x64xf32>
    %cst = arith.constant dense<0.000000e+00> : vector<128x64xf32>
    %8 = tpu.matmul %6, %7, %cst {dimension_numbers = #tpu.dot_dimension_numbers<[1], [0], [0], [1], [0, 0, 1, 1], [], []>} : vector<128x36xf32>, vector<36x64xf32>, vector<128x64xf32> -> vector<128x64xf32>
    %c0_3 = arith.constant 0 : index
    %c0_4 = arith.constant 0 : index
    %9 = vector.load %arg2[%c0_3, %c0_4] : memref<1x64xf32, #tpu.memory_space<vmem>>, vector<1x64xf32>
    %10 = vector.broadcast %9 : vector<1x64xf32> to vector<128x64xf32>
    %11 = arith.addf %8, %10 : vector<128x64xf32>
    %cst_5 = arith.constant 0.000000e+00 : f32
    %12 = vector.broadcast %cst_5 : f32 to vector<128x64xf32>
    %13 = arith.maximumf %11, %12 : vector<128x64xf32>
    %c0_6 = arith.constant 0 : index
    %c0_7 = arith.constant 0 : index
    %14 = vector.load %arg20[%c0_6, %c0_7] : memref<128x64xf32, #tpu.memory_space<vmem>>, vector<128x64xf32>
    tpu.vector_store %arg20[%c0_6, %c0_7], %13 {strides = array<i32>} : memref<128x64xf32, #tpu.memory_space<vmem>>, vector<128x64xf32>,
    %c0_8 = arith.constant 0 : index
    %c0_9 = arith.constant 0 : index
    %15 = vector.load %arg20[%c0_8, %c0_9] : memref<128x64xf32, #tpu.memory_space<vmem>>, vector<2x64xf32>
    %c0_10 = arith.constant 0 : index
    %c0_11 = arith.constant 0 : index
    %16 = vector.load %arg21[%c0_10, %c0_11] : memref<2x4096xf32, #tpu.memory_space<vmem>>, vector<2x64xf32>
    tpu.vector_store %arg21[%c0_10, %c0_11], %15 {strides = array<i32>} : memref<2x4096xf32, #tpu.memory_space<vmem>>, vector<2x64xf32>,
    %c2 = arith.constant 2 : index
    %c0_12 = arith.constant 0 : index
    %17 = vector.load %arg20[%c2, %c0_12] : memref<128x64xf32, #tpu.memory_space<vmem>>, vector<2x64xf32>
    %c0_13 = arith.constant 0 : index
    %c64 = arith.constant 64 : index
    %18 = vector.load %arg21[%c0_13, %c64] : memref<2x4096xf32, #tpu.memory_space<vmem>>, vector<2x64xf32>
    tpu.vector_store %arg21[%c0_13, %c64], %17 {strides = array<i32>} : memref<2x4096xf32, #tpu.memory_space<vmem>>, vector<2x64xf32>,
    %c4 = arith.constant 4 : index
    %c0_14 = arith.constant 0 : index
    %19 = vector.load %arg20[%c4, %c0_14] : memref<128x64xf32, #tpu.memory_space<vmem>>, vector<2x64xf32>
    %c0_15 = arith.constant 0 : index
    %c128 = arith.constant 128 : index
    %20 = vector.load %arg21[%c0_15, %c128] : memref<2x4096xf32, #tpu.memory_space<vmem>>, vector<2x64xf32>
    tpu.vector_store %arg21[%c0_15, %c128], %19 {strides = array<i32>} : memref<2x4096xf32, #tpu.memory_space<vmem>>, vector<2x64xf32>,
    %c6 = arith.constant 6 : index
    %c0_16 = arith.constant 0 : index
    %21 = vector.load %arg20[%c6, %c0_16] : memref<128x64xf32, #tpu.memory_space<vmem>>, vector<2x64xf32>
    %c0_17 = arith.constant 0 : index
    %c192 = arith.constant 192 : index
    %22 = vector.load %arg21[%c0_17, %c192] : memref<2x4096xf32, #tpu.memory_space<vmem>>, vector<2x64xf32>
    tpu.vector_store %arg21[%c0_17, %c192], %21 {strides = array<i32>} : memref<2x4096xf32, #tpu.memory_space<vmem>>, vector<2x64xf32>,
    %c8 = arith.constant 8 : index
    %c0_18 = arith.constant 0 : index
    %23 = vector.load %arg20[%c8, %c0_18] : memref<128x64xf32, #tpu.memory_space<vmem>>, vector<2x64xf32>
    %c0_19 = arith.constant 0 : index
    %c256 = arith.constant 256 : index
    %24 = vector.load %arg21[%c0_19, %c256] : memref<2x4096xf32, #tpu.memory_space<vmem>>, vector<2x64xf32>
    tpu.vector_store %arg21[%c0_19, %c256], %23 {strides = array<i32>} : memref<2x4096xf32, #tpu.memory_space<vmem>>, vector<2x64xf32>,
    %c10 = arith.constant 10 : index
    %c0_20 = arith.constant 0 : index
    %25 = vector.load %arg20[%c10, %c0_20] : memref<128x64xf32, #tpu.memory_space<vmem>>, vector<2x64xf32>
    %c0_21 = arith.constant 0 : index
    %c320 = arith.constant 320 : index
    %26 = vector.load %arg21[%c0_21, %c320] : memref<2x4096xf32, #tpu.memory_space<vmem>>, vector<2x64xf32>
    tpu.vector_store %arg21[%c0_21, %c320], %25 {strides = array<i32>} : memref<2x4096xf32, #tpu.memory_space<vmem>>, vector<2x64xf32>,
    %c12 = arith.constant 12 : index
    %c0_22 = arith.constant 0 : index
    %27 = vector.load %arg20[%c12, %c0_22] : memref<128x64xf32, #tpu.memory_space<vmem>>, vector<2x64xf32>
    %c0_23 = arith.constant 0 : index
    %c384 = arith.constant 384 : index
    %28 = vector.load %arg21[%c0_23, %c384] : memref<2x4096xf32, #tpu.memory_space<vmem>>, vector<2x64xf32>
    tpu.vector_store %arg21[%c0_23, %c384], %27 {strides = array<i32>} : memref<2x4096xf32, #tpu.memory_space<vmem>>, vector<2x64xf32>,
    %c14 = arith.constant 14 : index
    %c0_24 = arith.constant 0 : index
    %29 = vector.load %arg20[%c14, %c0_24] : memref<128x64xf32, #tpu.memory_space<vmem>>, vector<2x64xf32>
    %c0_25 = arith.constant 0 : index
    %c448 = arith.constant 448 : index
    %30 = vector.load %arg21[%c0_25, %c448] : memref<2x4096xf32, #tpu.memory_space<vmem>>, vector<2x64xf32>
    tpu.vector_store %arg21[%c0_25, %c448], %29 {strides = array<i32>} : memref<2x4096xf32, #tpu.memory_space<vmem>>, vector<2x64xf32>,
    %c16 = arith.constant 16 : index
    %c0_26 = arith.constant 0 : index
    %31 = vector.load %arg20[%c16, %c0_26] : memref<128x64xf32, #tpu.memory_space<vmem>>, vector<2x64xf32>
    %c0_27 = arith.constant 0 : index
    %c512 = arith.constant 512 : index
    %32 = vector.load %arg21[%c0_27, %c512] : memref<2x4096xf32, #tpu.memory_space<vmem>>, vector<2x64xf32>
    tpu.vector_store %arg21[%c0_27, %c512], %31 {strides = array<i32>} : memref<2x4096xf32, #tpu.memory_space<vmem>>, vector<2x64xf32>,
    %c18 = arith.constant 18 : index
    %c0_28 = arith.constant 0 : index
    %33 = vector.load %arg20[%c18, %c0_28] : memref<128x64xf32, #tpu.memory_space<vmem>>, vector<2x64xf32>
    %c0_29 = arith.constant 0 : index
    %c576 = arith.constant 576 : index
    %34 = vector.load %arg21[%c0_29, %c576] : memref<2x4096xf32, #tpu.memory_space<vmem>>, vector<2x64xf32>
    tpu.vector_store %arg21[%c0_29, %c576], %33 {strides = array<i32>} : memref<2x4096xf32, #tpu.memory_space<vmem>>, vector<2x64xf32>,
    %c20 = arith.constant 20 : index
    %c0_30 = arith.constant 0 : index
    %35 = vector.load %arg20[%c20, %c0_30] : memref<128x64xf32, #tpu.memory_space<vmem>>, vector<2x64xf32>
    %c0_31 = arith.constant 0 : index
    %c640 = arith.constant 640 : index
    %36 = vector.load %arg21[%c0_31, %c640] : memref<2x4096xf32, #tpu.memory_space<vmem>>, vector<2x64xf32>
    tpu.vector_store %arg21[%c0_31, %c640], %35 {strides = array<i32>} : memref<2x4096xf32, #tpu.memory_space<vmem>>, vector<2x64xf32>,
    %c22 = arith.constant 22 : index
    %c0_32 = arith.constant 0 : index
    %37 = vector.load %arg20[%c22, %c0_32] : memref<128x64xf32, #tpu.memory_space<vmem>>, vector<2x64xf32>
    %c0_33 = arith.constant 0 : index
    %c704 = arith.constant 704 : index
    %38 = vector.load %arg21[%c0_33, %c704] : memref<2x4096xf32, #tpu.memory_space<vmem>>, vector<2x64xf32>
    tpu.vector_store %arg21[%c0_33, %c704], %37 {strides = array<i32>} : memref<2x4096xf32, #tpu.memory_space<vmem>>, vector<2x64xf32>,
    %c24 = arith.constant 24 : index
    %c0_34 = arith.constant 0 : index
    %39 = vector.load %arg20[%c24, %c0_34] : memref<128x64xf32, #tpu.memory_space<vmem>>, vector<2x64xf32>
    %c0_35 = arith.constant 0 : index
    %c768 = arith.constant 768 : index
    %40 = vector.load %arg21[%c0_35, %c768] : memref<2x4096xf32, #tpu.memory_space<vmem>>, vector<2x64xf32>
    tpu.vector_store %arg21[%c0_35, %c768], %39 {strides = array<i32>} : memref<2x4096xf32, #tpu.memory_space<vmem>>, vector<2x64xf32>,
    %c26 = arith.constant 26 : index
    %c0_36 = arith.constant 0 : index
    %41 = vector.load %arg20[%c26, %c0_36] : memref<128x64xf32, #tpu.memory_space<vmem>>, vector<2x64xf32>
    %c0_37 = arith.constant 0 : index
    %c832 = arith.constant 832 : index
    %42 = vector.load %arg21[%c0_37, %c832] : memref<2x4096xf32, #tpu.memory_space<vmem>>, vector<2x64xf32>
    tpu.vector_store %arg21[%c0_37, %c832], %41 {strides = array<i32>} : memref<2x4096xf32, #tpu.memory_space<vmem>>, vector<2x64xf32>,
    %c28 = arith.constant 28 : index
    %c0_38 = arith.constant 0 : index
    %43 = vector.load %arg20[%c28, %c0_38] : memref<128x64xf32, #tpu.memory_space<vmem>>, vector<2x64xf32>
    %c0_39 = arith.constant 0 : index
    %c896 = arith.constant 896 : index
    %44 = vector.load %arg21[%c0_39, %c896] : memref<2x4096xf32, #tpu.memory_space<vmem>>, vector<2x64xf32>
    tpu.vector_store %arg21[%c0_39, %c896], %43 {strides = array<i32>} : memref<2x4096xf32, #tpu.memory_space<vmem>>, vector<2x64xf32>,
    %c30 = arith.constant 30 : index
    %c0_40 = arith.constant 0 : index
    %45 = vector.load %arg20[%c30, %c0_40] : memref<128x64xf32, #tpu.memory_space<vmem>>, vector<2x64xf32>
    %c0_41 = arith.constant 0 : index
    %c960 = arith.constant 960 : index
    %46 = vector.load %arg21[%c0_41, %c960] : memref<2x4096xf32, #tpu.memory_space<vmem>>, vector<2x64xf32>
    tpu.vector_store %arg21[%c0_41, %c960], %45 {strides = array<i32>} : memref<2x4096xf32, #tpu.memory_space<vmem>>, vector<2x64xf32>,
    %c32 = arith.constant 32 : index
    %c0_42 = arith.constant 0 : index
    %47 = vector.load %arg20[%c32, %c0_42] : memref<128x64xf32, #tpu.memory_space<vmem>>, vector<2x64xf32>
    %c0_43 = arith.constant 0 : index
    %c1024 = arith.constant 1024 : index
    %48 = vector.load %arg21[%c0_43, %c1024] : memref<2x4096xf32, #tpu.memory_space<vmem>>, vector<2x64xf32>
    tpu.vector_store %arg21[%c0_43, %c1024], %47 {strides = array<i32>} : memref<2x4096xf32, #tpu.memory_space<vmem>>, vector<2x64xf32>,
    %c34 = arith.constant 34 : index
    %c0_44 = arith.constant 0 : index
    %49 = vector.load %arg20[%c34, %c0_44] : memref<128x64xf32, #tpu.memory_space<vmem>>, vector<2x64xf32>
    %c0_45 = arith.constant 0 : index
    %c1088 = arith.constant 1088 : index
    %50 = vector.load %arg21[%c0_45, %c1088] : memref<2x4096xf32, #tpu.memory_space<vmem>>, vector<2x64xf32>
    tpu.vector_store %arg21[%c0_45, %c1088], %49 {strides = array<i32>} : memref<2x4096xf32, #tpu.memory_space<vmem>>, vector<2x64xf32>,
    %c36 = arith.constant 36 : index
    %c0_46 = arith.constant 0 : index
    %51 = vector.load %arg20[%c36, %c0_46] : memref<128x64xf32, #tpu.memory_space<vmem>>, vector<2x64xf32>
    %c0_47 = arith.constant 0 : index
    %c1152 = arith.constant 1152 : index
    %52 = vector.load %arg21[%c0_47, %c1152] : memref<2x4096xf32, #tpu.memory_space<vmem>>, vector<2x64xf32>
    tpu.vector_store %arg21[%c0_47, %c1152], %51 {strides = array<i32>} : memref<2x4096xf32, #tpu.memory_space<vmem>>, vector<2x64xf32>,
    %c38 = arith.constant 38 : index
    %c0_48 = arith.constant 0 : index
    %53 = vector.load %arg20[%c38, %c0_48] : memref<128x64xf32, #tpu.memory_space<vmem>>, vector<2x64xf32>
    %c0_49 = arith.constant 0 : index
    %c1216 = arith.constant 1216 : index
    %54 = vector.load %arg21[%c0_49, %c1216] : memref<2x4096xf32, #tpu.memory_space<vmem>>, vector<2x64xf32>
    tpu.vector_store %arg21[%c0_49, %c1216], %53 {strides = array<i32>} : memref<2x4096xf32, #tpu.memory_space<vmem>>, vector<2x64xf32>,
    %c40 = arith.constant 40 : index
    %c0_50 = arith.constant 0 : index
    %55 = vector.load %arg20[%c40, %c0_50] : memref<128x64xf32, #tpu.memory_space<vmem>>, vector<2x64xf32>
    %c0_51 = arith.constant 0 : index
    %c1280 = arith.constant 1280 : index
    %56 = vector.load %arg21[%c0_51, %c1280] : memref<2x4096xf32, #tpu.memory_space<vmem>>, vector<2x64xf32>
    tpu.vector_store %arg21[%c0_51, %c1280], %55 {strides = array<i32>} : memref<2x4096xf32, #tpu.memory_space<vmem>>, vector<2x64xf32>,
    %c42 = arith.constant 42 : index
    %c0_52 = arith.constant 0 : index
    %57 = vector.load %arg20[%c42, %c0_52] : memref<128x64xf32, #tpu.memory_space<vmem>>, vector<2x64xf32>
    %c0_53 = arith.constant 0 : index
    %c1344 = arith.constant 1344 : index
    %58 = vector.load %arg21[%c0_53, %c1344] : memref<2x4096xf32, #tpu.memory_space<vmem>>, vector<2x64xf32>
    tpu.vector_store %arg21[%c0_53, %c1344], %57 {strides = array<i32>} : memref<2x4096xf32, #tpu.memory_space<vmem>>, vector<2x64xf32>,
    %c44 = arith.constant 44 : index
    %c0_54 = arith.constant 0 : index
    %59 = vector.load %arg20[%c44, %c0_54] : memref<128x64xf32, #tpu.memory_space<vmem>>, vector<2x64xf32>
    %c0_55 = arith.constant 0 : index
    %c1408 = arith.constant 1408 : index
    %60 = vector.load %arg21[%c0_55, %c1408] : memref<2x4096xf32, #tpu.memory_space<vmem>>, vector<2x64xf32>
    tpu.vector_store %arg21[%c0_55, %c1408], %59 {strides = array<i32>} : memref<2x4096xf32, #tpu.memory_space<vmem>>, vector<2x64xf32>,
    %c46 = arith.constant 46 : index
    %c0_56 = arith.constant 0 : index
    %61 = vector.load %arg20[%c46, %c0_56] : memref<128x64xf32, #tpu.memory_space<vmem>>, vector<2x64xf32>
    %c0_57 = arith.constant 0 : index
    %c1472 = arith.constant 1472 : index
    %62 = vector.load %arg21[%c0_57, %c1472] : memref<2x4096xf32, #tpu.memory_space<vmem>>, vector<2x64xf32>
    tpu.vector_store %arg21[%c0_57, %c1472], %61 {strides = array<i32>} : memref<2x4096xf32, #tpu.memory_space<vmem>>, vector<2x64xf32>,
    %c48 = arith.constant 48 : index
    %c0_58 = arith.constant 0 : index
    %63 = vector.load %arg20[%c48, %c0_58] : memref<128x64xf32, #tpu.memory_space<vmem>>, vector<2x64xf32>
    %c0_59 = arith.constant 0 : index
    %c1536 = arith.constant 1536 : index
    %64 = vector.load %arg21[%c0_59, %c1536] : memref<2x4096xf32, #tpu.memory_space<vmem>>, vector<2x64xf32>
    tpu.vector_store %arg21[%c0_59, %c1536], %63 {strides = array<i32>} : memref<2x4096xf32, #tpu.memory_space<vmem>>, vector<2x64xf32>,
    %c50 = arith.constant 50 : index
    %c0_60 = arith.constant 0 : index
    %65 = vector.load %arg20[%c50, %c0_60] : memref<128x64xf32, #tpu.memory_space<vmem>>, vector<2x64xf32>
    %c0_61 = arith.constant 0 : index
    %c1600 = arith.constant 1600 : index
    %66 = vector.load %arg21[%c0_61, %c1600] : memref<2x4096xf32, #tpu.memory_space<vmem>>, vector<2x64xf32>
    tpu.vector_store %arg21[%c0_61, %c1600], %65 {strides = array<i32>} : memref<2x4096xf32, #tpu.memory_space<vmem>>, vector<2x64xf32>,
    %c52 = arith.constant 52 : index
    %c0_62 = arith.constant 0 : index
    %67 = vector.load %arg20[%c52, %c0_62] : memref<128x64xf32, #tpu.memory_space<vmem>>, vector<2x64xf32>
    %c0_63 = arith.constant 0 : index
    %c1664 = arith.constant 1664 : index
    %68 = vector.load %arg21[%c0_63, %c1664] : memref<2x4096xf32, #tpu.memory_space<vmem>>, vector<2x64xf32>
    tpu.vector_store %arg21[%c0_63, %c1664], %67 {strides = array<i32>} : memref<2x4096xf32, #tpu.memory_space<vmem>>, vector<2x64xf32>,
    %c54 = arith.constant 54 : index
    %c0_64 = arith.constant 0 : index
    %69 = vector.load %arg20[%c54, %c0_64] : memref<128x64xf32, #tpu.memory_space<vmem>>, vector<2x64xf32>
    %c0_65 = arith.constant 0 : index
    %c1728 = arith.constant 1728 : index
    %70 = vector.load %arg21[%c0_65, %c1728] : memref<2x4096xf32, #tpu.memory_space<vmem>>, vector<2x64xf32>
    tpu.vector_store %arg21[%c0_65, %c1728], %69 {strides = array<i32>} : memref<2x4096xf32, #tpu.memory_space<vmem>>, vector<2x64xf32>,
    %c56 = arith.constant 56 : index
    %c0_66 = arith.constant 0 : index
    %71 = vector.load %arg20[%c56, %c0_66] : memref<128x64xf32, #tpu.memory_space<vmem>>, vector<2x64xf32>
    %c0_67 = arith.constant 0 : index
    %c1792 = arith.constant 1792 : index
    %72 = vector.load %arg21[%c0_67, %c1792] : memref<2x4096xf32, #tpu.memory_space<vmem>>, vector<2x64xf32>
    tpu.vector_store %arg21[%c0_67, %c1792], %71 {strides = array<i32>} : memref<2x4096xf32, #tpu.memory_space<vmem>>, vector<2x64xf32>,
    %c58 = arith.constant 58 : index
    %c0_68 = arith.constant 0 : index
    %73 = vector.load %arg20[%c58, %c0_68] : memref<128x64xf32, #tpu.memory_space<vmem>>, vector<2x64xf32>
    %c0_69 = arith.constant 0 : index
    %c1856 = arith.constant 1856 : index
    %74 = vector.load %arg21[%c0_69, %c1856] : memref<2x4096xf32, #tpu.memory_space<vmem>>, vector<2x64xf32>
    tpu.vector_store %arg21[%c0_69, %c1856], %73 {strides = array<i32>} : memref<2x4096xf32, #tpu.memory_space<vmem>>, vector<2x64xf32>,
    %c60 = arith.constant 60 : index
    %c0_70 = arith.constant 0 : index
    %75 = vector.load %arg20[%c60, %c0_70] : memref<128x64xf32, #tpu.memory_space<vmem>>, vector<2x64xf32>
    %c0_71 = arith.constant 0 : index
    %c1920 = arith.constant 1920 : index
    %76 = vector.load %arg21[%c0_71, %c1920] : memref<2x4096xf32, #tpu.memory_space<vmem>>, vector<2x64xf32>
    tpu.vector_store %arg21[%c0_71, %c1920], %75 {strides = array<i32>} : memref<2x4096xf32, #tpu.memory_space<vmem>>, vector<2x64xf32>,
    %c62 = arith.constant 62 : index
    %c0_72 = arith.constant 0 : index
    %77 = vector.load %arg20[%c62, %c0_72] : memref<128x64xf32, #tpu.memory_space<vmem>>, vector<2x64xf32>
    %c0_73 = arith.constant 0 : index
    %c1984 = arith.constant 1984 : index
    %78 = vector.load %arg21[%c0_73, %c1984] : memref<2x4096xf32, #tpu.memory_space<vmem>>, vector<2x64xf32>
    tpu.vector_store %arg21[%c0_73, %c1984], %77 {strides = array<i32>} : memref<2x4096xf32, #tpu.memory_space<vmem>>, vector<2x64xf32>,
    %c64_74 = arith.constant 64 : index
    %c0_75 = arith.constant 0 : index
    %79 = vector.load %arg20[%c64_74, %c0_75] : memref<128x64xf32, #tpu.memory_space<vmem>>, vector<2x64xf32>
    %c0_76 = arith.constant 0 : index
    %c2048 = arith.constant 2048 : index
    %80 = vector.load %arg21[%c0_76, %c2048] : memref<2x4096xf32, #tpu.memory_space<vmem>>, vector<2x64xf32>
    tpu.vector_store %arg21[%c0_76, %c2048], %79 {strides = array<i32>} : memref<2x4096xf32, #tpu.memory_space<vmem>>, vector<2x64xf32>,
    %c66 = arith.constant 66 : index
    %c0_77 = arith.constant 0 : index
    %81 = vector.load %arg20[%c66, %c0_77] : memref<128x64xf32, #tpu.memory_space<vmem>>, vector<2x64xf32>
    %c0_78 = arith.constant 0 : index
    %c2112 = arith.constant 2112 : index
    %82 = vector.load %arg21[%c0_78, %c2112] : memref<2x4096xf32, #tpu.memory_space<vmem>>, vector<2x64xf32>
    tpu.vector_store %arg21[%c0_78, %c2112], %81 {strides = array<i32>} : memref<2x4096xf32, #tpu.memory_space<vmem>>, vector<2x64xf32>,
    %c68 = arith.constant 68 : index
    %c0_79 = arith.constant 0 : index
    %83 = vector.load %arg20[%c68, %c0_79] : memref<128x64xf32, #tpu.memory_space<vmem>>, vector<2x64xf32>
    %c0_80 = arith.constant 0 : index
    %c2176 = arith.constant 2176 : index
    %84 = vector.load %arg21[%c0_80, %c2176] : memref<2x4096xf32, #tpu.memory_space<vmem>>, vector<2x64xf32>
    tpu.vector_store %arg21[%c0_80, %c2176], %83 {strides = array<i32>} : memref<2x4096xf32, #tpu.memory_space<vmem>>, vector<2x64xf32>,
    %c70 = arith.constant 70 : index
    %c0_81 = arith.constant 0 : index
    %85 = vector.load %arg20[%c70, %c0_81] : memref<128x64xf32, #tpu.memory_space<vmem>>, vector<2x64xf32>
    %c0_82 = arith.constant 0 : index
    %c2240 = arith.constant 2240 : index
    %86 = vector.load %arg21[%c0_82, %c2240] : memref<2x4096xf32, #tpu.memory_space<vmem>>, vector<2x64xf32>
    tpu.vector_store %arg21[%c0_82, %c2240], %85 {strides = array<i32>} : memref<2x4096xf32, #tpu.memory_space<vmem>>, vector<2x64xf32>,
    %c72 = arith.constant 72 : index
    %c0_83 = arith.constant 0 : index
    %87 = vector.load %arg20[%c72, %c0_83] : memref<128x64xf32, #tpu.memory_space<vmem>>, vector<2x64xf32>
    %c0_84 = arith.constant 0 : index
    %c2304 = arith.constant 2304 : index
    %88 = vector.load %arg21[%c0_84, %c2304] : memref<2x4096xf32, #tpu.memory_space<vmem>>, vector<2x64xf32>
    tpu.vector_store %arg21[%c0_84, %c2304], %87 {strides = array<i32>} : memref<2x4096xf32, #tpu.memory_space<vmem>>, vector<2x64xf32>,
    %c74 = arith.constant 74 : index
    %c0_85 = arith.constant 0 : index
    %89 = vector.load %arg20[%c74, %c0_85] : memref<128x64xf32, #tpu.memory_space<vmem>>, vector<2x64xf32>
    %c0_86 = arith.constant 0 : index
    %c2368 = arith.constant 2368 : index
    %90 = vector.load %arg21[%c0_86, %c2368] : memref<2x4096xf32, #tpu.memory_space<vmem>>, vector<2x64xf32>
    tpu.vector_store %arg21[%c0_86, %c2368], %89 {strides = array<i32>} : memref<2x4096xf32, #tpu.memory_space<vmem>>, vector<2x64xf32>,
    %c76 = arith.constant 76 : index
    %c0_87 = arith.constant 0 : index
    %91 = vector.load %arg20[%c76, %c0_87] : memref<128x64xf32, #tpu.memory_space<vmem>>, vector<2x64xf32>
    %c0_88 = arith.constant 0 : index
    %c2432 = arith.constant 2432 : index
    %92 = vector.load %arg21[%c0_88, %c2432] : memref<2x4096xf32, #tpu.memory_space<vmem>>, vector<2x64xf32>
    tpu.vector_store %arg21[%c0_88, %c2432], %91 {strides = array<i32>} : memref<2x4096xf32, #tpu.memory_space<vmem>>, vector<2x64xf32>,
    %c78 = arith.constant 78 : index
    %c0_89 = arith.constant 0 : index
    %93 = vector.load %arg20[%c78, %c0_89] : memref<128x64xf32, #tpu.memory_space<vmem>>, vector<2x64xf32>
    %c0_90 = arith.constant 0 : index
    %c2496 = arith.constant 2496 : index
    %94 = vector.load %arg21[%c0_90, %c2496] : memref<2x4096xf32, #tpu.memory_space<vmem>>, vector<2x64xf32>
    tpu.vector_store %arg21[%c0_90, %c2496], %93 {strides = array<i32>} : memref<2x4096xf32, #tpu.memory_space<vmem>>, vector<2x64xf32>,
    %c80 = arith.constant 80 : index
    %c0_91 = arith.constant 0 : index
    %95 = vector.load %arg20[%c80, %c0_91] : memref<128x64xf32, #tpu.memory_space<vmem>>, vector<2x64xf32>
    %c0_92 = arith.constant 0 : index
    %c2560 = arith.constant 2560 : index
    %96 = vector.load %arg21[%c0_92, %c2560] : memref<2x4096xf32, #tpu.memory_space<vmem>>, vector<2x64xf32>
    tpu.vector_store %arg21[%c0_92, %c2560], %95 {strides = array<i32>} : memref<2x4096xf32, #tpu.memory_space<vmem>>, vector<2x64xf32>,
    %c82 = arith.constant 82 : index
    %c0_93 = arith.constant 0 : index
    %97 = vector.load %arg20[%c82, %c0_93] : memref<128x64xf32, #tpu.memory_space<vmem>>, vector<2x64xf32>
    %c0_94 = arith.constant 0 : index
    %c2624 = arith.constant 2624 : index
    %98 = vector.load %arg21[%c0_94, %c2624] : memref<2x4096xf32, #tpu.memory_space<vmem>>, vector<2x64xf32>
    tpu.vector_store %arg21[%c0_94, %c2624], %97 {strides = array<i32>} : memref<2x4096xf32, #tpu.memory_space<vmem>>, vector<2x64xf32>,
    %c84 = arith.constant 84 : index
    %c0_95 = arith.constant 0 : index
    %99 = vector.load %arg20[%c84, %c0_95] : memref<128x64xf32, #tpu.memory_space<vmem>>, vector<2x64xf32>
    %c0_96 = arith.constant 0 : index
    %c2688 = arith.constant 2688 : index
    %100 = vector.load %arg21[%c0_96, %c2688] : memref<2x4096xf32, #tpu.memory_space<vmem>>, vector<2x64xf32>
    tpu.vector_store %arg21[%c0_96, %c2688], %99 {strides = array<i32>} : memref<2x4096xf32, #tpu.memory_space<vmem>>, vector<2x64xf32>,
    %c86 = arith.constant 86 : index
    %c0_97 = arith.constant 0 : index
    %101 = vector.load %arg20[%c86, %c0_97] : memref<128x64xf32, #tpu.memory_space<vmem>>, vector<2x64xf32>
    %c0_98 = arith.constant 0 : index
    %c2752 = arith.constant 2752 : index
    %102 = vector.load %arg21[%c0_98, %c2752] : memref<2x4096xf32, #tpu.memory_space<vmem>>, vector<2x64xf32>
    tpu.vector_store %arg21[%c0_98, %c2752], %101 {strides = array<i32>} : memref<2x4096xf32, #tpu.memory_space<vmem>>, vector<2x64xf32>,
    %c88 = arith.constant 88 : index
    %c0_99 = arith.constant 0 : index
    %103 = vector.load %arg20[%c88, %c0_99] : memref<128x64xf32, #tpu.memory_space<vmem>>, vector<2x64xf32>
    %c0_100 = arith.constant 0 : index
    %c2816 = arith.constant 2816 : index
    %104 = vector.load %arg21[%c0_100, %c2816] : memref<2x4096xf32, #tpu.memory_space<vmem>>, vector<2x64xf32>
    tpu.vector_store %arg21[%c0_100, %c2816], %103 {strides = array<i32>} : memref<2x4096xf32, #tpu.memory_space<vmem>>, vector<2x64xf32>,
    %c90 = arith.constant 90 : index
    %c0_101 = arith.constant 0 : index
    %105 = vector.load %arg20[%c90, %c0_101] : memref<128x64xf32, #tpu.memory_space<vmem>>, vector<2x64xf32>
    %c0_102 = arith.constant 0 : index
    %c2880 = arith.constant 2880 : index
    %106 = vector.load %arg21[%c0_102, %c2880] : memref<2x4096xf32, #tpu.memory_space<vmem>>, vector<2x64xf32>
    tpu.vector_store %arg21[%c0_102, %c2880], %105 {strides = array<i32>} : memref<2x4096xf32, #tpu.memory_space<vmem>>, vector<2x64xf32>,
    %c92 = arith.constant 92 : index
    %c0_103 = arith.constant 0 : index
    %107 = vector.load %arg20[%c92, %c0_103] : memref<128x64xf32, #tpu.memory_space<vmem>>, vector<2x64xf32>
    %c0_104 = arith.constant 0 : index
    %c2944 = arith.constant 2944 : index
    %108 = vector.load %arg21[%c0_104, %c2944] : memref<2x4096xf32, #tpu.memory_space<vmem>>, vector<2x64xf32>
    tpu.vector_store %arg21[%c0_104, %c2944], %107 {strides = array<i32>} : memref<2x4096xf32, #tpu.memory_space<vmem>>, vector<2x64xf32>,
    %c94 = arith.constant 94 : index
    %c0_105 = arith.constant 0 : index
    %109 = vector.load %arg20[%c94, %c0_105] : memref<128x64xf32, #tpu.memory_space<vmem>>, vector<2x64xf32>
    %c0_106 = arith.constant 0 : index
    %c3008 = arith.constant 3008 : index
    %110 = vector.load %arg21[%c0_106, %c3008] : memref<2x4096xf32, #tpu.memory_space<vmem>>, vector<2x64xf32>
    tpu.vector_store %arg21[%c0_106, %c3008], %109 {strides = array<i32>} : memref<2x4096xf32, #tpu.memory_space<vmem>>, vector<2x64xf32>,
    %c96 = arith.constant 96 : index
    %c0_107 = arith.constant 0 : index
    %111 = vector.load %arg20[%c96, %c0_107] : memref<128x64xf32, #tpu.memory_space<vmem>>, vector<2x64xf32>
    %c0_108 = arith.constant 0 : index
    %c3072 = arith.constant 3072 : index
    %112 = vector.load %arg21[%c0_108, %c3072] : memref<2x4096xf32, #tpu.memory_space<vmem>>, vector<2x64xf32>
    tpu.vector_store %arg21[%c0_108, %c3072], %111 {strides = array<i32>} : memref<2x4096xf32, #tpu.memory_space<vmem>>, vector<2x64xf32>,
    %c98 = arith.constant 98 : index
    %c0_109 = arith.constant 0 : index
    %113 = vector.load %arg20[%c98, %c0_109] : memref<128x64xf32, #tpu.memory_space<vmem>>, vector<2x64xf32>
    %c0_110 = arith.constant 0 : index
    %c3136 = arith.constant 3136 : index
    %114 = vector.load %arg21[%c0_110, %c3136] : memref<2x4096xf32, #tpu.memory_space<vmem>>, vector<2x64xf32>
    tpu.vector_store %arg21[%c0_110, %c3136], %113 {strides = array<i32>} : memref<2x4096xf32, #tpu.memory_space<vmem>>, vector<2x64xf32>,
    %c100 = arith.constant 100 : index
    %c0_111 = arith.constant 0 : index
    %115 = vector.load %arg20[%c100, %c0_111] : memref<128x64xf32, #tpu.memory_space<vmem>>, vector<2x64xf32>
    %c0_112 = arith.constant 0 : index
    %c3200 = arith.constant 3200 : index
    %116 = vector.load %arg21[%c0_112, %c3200] : memref<2x4096xf32, #tpu.memory_space<vmem>>, vector<2x64xf32>
    tpu.vector_store %arg21[%c0_112, %c3200], %115 {strides = array<i32>} : memref<2x4096xf32, #tpu.memory_space<vmem>>, vector<2x64xf32>,
    %c102 = arith.constant 102 : index
    %c0_113 = arith.constant 0 : index
    %117 = vector.load %arg20[%c102, %c0_113] : memref<128x64xf32, #tpu.memory_space<vmem>>, vector<2x64xf32>
    %c0_114 = arith.constant 0 : index
    %c3264 = arith.constant 3264 : index
    %118 = vector.load %arg21[%c0_114, %c3264] : memref<2x4096xf32, #tpu.memory_space<vmem>>, vector<2x64xf32>
    tpu.vector_store %arg21[%c0_114, %c3264], %117 {strides = array<i32>} : memref<2x4096xf32, #tpu.memory_space<vmem>>, vector<2x64xf32>,
    %c104 = arith.constant 104 : index
    %c0_115 = arith.constant 0 : index
    %119 = vector.load %arg20[%c104, %c0_115] : memref<128x64xf32, #tpu.memory_space<vmem>>, vector<2x64xf32>
    %c0_116 = arith.constant 0 : index
    %c3328 = arith.constant 3328 : index
    %120 = vector.load %arg21[%c0_116, %c3328] : memref<2x4096xf32, #tpu.memory_space<vmem>>, vector<2x64xf32>
    tpu.vector_store %arg21[%c0_116, %c3328], %119 {strides = array<i32>} : memref<2x4096xf32, #tpu.memory_space<vmem>>, vector<2x64xf32>,
    %c106 = arith.constant 106 : index
    %c0_117 = arith.constant 0 : index
    %121 = vector.load %arg20[%c106, %c0_117] : memref<128x64xf32, #tpu.memory_space<vmem>>, vector<2x64xf32>
    %c0_118 = arith.constant 0 : index
    %c3392 = arith.constant 3392 : index
    %122 = vector.load %arg21[%c0_118, %c3392] : memref<2x4096xf32, #tpu.memory_space<vmem>>, vector<2x64xf32>
    tpu.vector_store %arg21[%c0_118, %c3392], %121 {strides = array<i32>} : memref<2x4096xf32, #tpu.memory_space<vmem>>, vector<2x64xf32>,
    %c108 = arith.constant 108 : index
    %c0_119 = arith.constant 0 : index
    %123 = vector.load %arg20[%c108, %c0_119] : memref<128x64xf32, #tpu.memory_space<vmem>>, vector<2x64xf32>
    %c0_120 = arith.constant 0 : index
    %c3456 = arith.constant 3456 : index
    %124 = vector.load %arg21[%c0_120, %c3456] : memref<2x4096xf32, #tpu.memory_space<vmem>>, vector<2x64xf32>
    tpu.vector_store %arg21[%c0_120, %c3456], %123 {strides = array<i32>} : memref<2x4096xf32, #tpu.memory_space<vmem>>, vector<2x64xf32>,
    %c110 = arith.constant 110 : index
    %c0_121 = arith.constant 0 : index
    %125 = vector.load %arg20[%c110, %c0_121] : memref<128x64xf32, #tpu.memory_space<vmem>>, vector<2x64xf32>
    %c0_122 = arith.constant 0 : index
    %c3520 = arith.constant 3520 : index
    %126 = vector.load %arg21[%c0_122, %c3520] : memref<2x4096xf32, #tpu.memory_space<vmem>>, vector<2x64xf32>
    tpu.vector_store %arg21[%c0_122, %c3520], %125 {strides = array<i32>} : memref<2x4096xf32, #tpu.memory_space<vmem>>, vector<2x64xf32>,
    %c112 = arith.constant 112 : index
    %c0_123 = arith.constant 0 : index
    %127 = vector.load %arg20[%c112, %c0_123] : memref<128x64xf32, #tpu.memory_space<vmem>>, vector<2x64xf32>
    %c0_124 = arith.constant 0 : index
    %c3584 = arith.constant 3584 : index
    %128 = vector.load %arg21[%c0_124, %c3584] : memref<2x4096xf32, #tpu.memory_space<vmem>>, vector<2x64xf32>
    tpu.vector_store %arg21[%c0_124, %c3584], %127 {strides = array<i32>} : memref<2x4096xf32, #tpu.memory_space<vmem>>, vector<2x64xf32>,
    %c114 = arith.constant 114 : index
    %c0_125 = arith.constant 0 : index
    %129 = vector.load %arg20[%c114, %c0_125] : memref<128x64xf32, #tpu.memory_space<vmem>>, vector<2x64xf32>
    %c0_126 = arith.constant 0 : index
    %c3648 = arith.constant 3648 : index
    %130 = vector.load %arg21[%c0_126, %c3648] : memref<2x4096xf32, #tpu.memory_space<vmem>>, vector<2x64xf32>
    tpu.vector_store %arg21[%c0_126, %c3648], %129 {strides = array<i32>} : memref<2x4096xf32, #tpu.memory_space<vmem>>, vector<2x64xf32>,
    %c116 = arith.constant 116 : index
    %c0_127 = arith.constant 0 : index
    %131 = vector.load %arg20[%c116, %c0_127] : memref<128x64xf32, #tpu.memory_space<vmem>>, vector<2x64xf32>
    %c0_128 = arith.constant 0 : index
    %c3712 = arith.constant 3712 : index
    %132 = vector.load %arg21[%c0_128, %c3712] : memref<2x4096xf32, #tpu.memory_space<vmem>>, vector<2x64xf32>
    tpu.vector_store %arg21[%c0_128, %c3712], %131 {strides = array<i32>} : memref<2x4096xf32, #tpu.memory_space<vmem>>, vector<2x64xf32>,
    %c118 = arith.constant 118 : index
    %c0_129 = arith.constant 0 : index
    %133 = vector.load %arg20[%c118, %c0_129] : memref<128x64xf32, #tpu.memory_space<vmem>>, vector<2x64xf32>
    %c0_130 = arith.constant 0 : index
    %c3776 = arith.constant 3776 : index
    %134 = vector.load %arg21[%c0_130, %c3776] : memref<2x4096xf32, #tpu.memory_space<vmem>>, vector<2x64xf32>
    tpu.vector_store %arg21[%c0_130, %c3776], %133 {strides = array<i32>} : memref<2x4096xf32, #tpu.memory_space<vmem>>, vector<2x64xf32>,
    %c120 = arith.constant 120 : index
    %c0_131 = arith.constant 0 : index
    %135 = vector.load %arg20[%c120, %c0_131] : memref<128x64xf32, #tpu.memory_space<vmem>>, vector<2x64xf32>
    %c0_132 = arith.constant 0 : index
    %c3840 = arith.constant 3840 : index
    %136 = vector.load %arg21[%c0_132, %c3840] : memref<2x4096xf32, #tpu.memory_space<vmem>>, vector<2x64xf32>
    tpu.vector_store %arg21[%c0_132, %c3840], %135 {strides = array<i32>} : memref<2x4096xf32, #tpu.memory_space<vmem>>, vector<2x64xf32>,
    %c122 = arith.constant 122 : index
    %c0_133 = arith.constant 0 : index
    %137 = vector.load %arg20[%c122, %c0_133] : memref<128x64xf32, #tpu.memory_space<vmem>>, vector<2x64xf32>
    %c0_134 = arith.constant 0 : index
    %c3904 = arith.constant 3904 : index
    %138 = vector.load %arg21[%c0_134, %c3904] : memref<2x4096xf32, #tpu.memory_space<vmem>>, vector<2x64xf32>
    tpu.vector_store %arg21[%c0_134, %c3904], %137 {strides = array<i32>} : memref<2x4096xf32, #tpu.memory_space<vmem>>, vector<2x64xf32>,
    %c124 = arith.constant 124 : index
    %c0_135 = arith.constant 0 : index
    %139 = vector.load %arg20[%c124, %c0_135] : memref<128x64xf32, #tpu.memory_space<vmem>>, vector<2x64xf32>
    %c0_136 = arith.constant 0 : index
    %c3968 = arith.constant 3968 : index
    %140 = vector.load %arg21[%c0_136, %c3968] : memref<2x4096xf32, #tpu.memory_space<vmem>>, vector<2x64xf32>
    tpu.vector_store %arg21[%c0_136, %c3968], %139 {strides = array<i32>} : memref<2x4096xf32, #tpu.memory_space<vmem>>, vector<2x64xf32>,
    %c126 = arith.constant 126 : index
    %c0_137 = arith.constant 0 : index
    %141 = vector.load %arg20[%c126, %c0_137] : memref<128x64xf32, #tpu.memory_space<vmem>>, vector<2x64xf32>
    %c0_138 = arith.constant 0 : index
    %c4032 = arith.constant 4032 : index
    %142 = vector.load %arg21[%c0_138, %c4032] : memref<2x4096xf32, #tpu.memory_space<vmem>>, vector<2x64xf32>
    tpu.vector_store %arg21[%c0_138, %c4032], %141 {strides = array<i32>} : memref<2x4096xf32, #tpu.memory_space<vmem>>, vector<2x64xf32>,
    %c0_139 = arith.constant 0 : index
    %c0_140 = arith.constant 0 : index
    %143 = vector.load %arg21[%c0_139, %c0_140] : memref<2x4096xf32, #tpu.memory_space<vmem>>, vector<2x4096xf32>
    %144 = arith.truncf %143 : vector<2x4096xf32> to vector<2x4096xbf16>
    %c0_141 = arith.constant 0 : index
    %c0_142 = arith.constant 0 : index
    %145 = vector.load %arg3[%c0_141, %c0_142] : memref<4096x32xbf16, #tpu.memory_space<vmem>>, vector<4096x32xbf16>
    %cst_143 = arith.constant dense<0.000000e+00> : vector<2x32xf32>
    %146 = tpu.matmul %144, %145, %cst_143 {dimension_numbers = #tpu.dot_dimension_numbers<[1], [0], [0], [1], [0, 0, 1, 1], [], []>} : vector<2x4096xbf16>, vector<4096x32xbf16>, vector<2x32xf32> -> vector<2x32xf32>
    %c0_144 = arith.constant 0 : index
    %c0_145 = arith.constant 0 : index
    %147 = vector.load %arg4[%c0_144, %c0_145] : memref<1x32xf32, #tpu.memory_space<vmem>>, vector<1x32xf32>
    %148 = vector.broadcast %147 : vector<1x32xf32> to vector<2x32xf32>
    %149 = arith.addf %146, %148 : vector<2x32xf32>
    %c0_146 = arith.constant 0 : index
    %c0_147 = arith.constant 0 : index
    %150 = vector.load %arg15[%c0_146, %c0_147] : memref<2x32xf32, #tpu.memory_space<vmem>>, vector<2x32xf32>
    tpu.vector_store %arg15[%c0_146, %c0_147], %149 {strides = array<i32>} : memref<2x32xf32, #tpu.memory_space<vmem>>, vector<2x32xf32>,
    %cst_148 = arith.constant dense<0.000000e+00> : vector<32xf32>
    %151 = vector.multi_reduction <add>, %149, %cst_148 [0] : vector<2x32xf32> to vector<32xf32>
    %152 = vector.shape_cast %151 : vector<32xf32> to vector<1x32xf32>
    %cst_149 = arith.constant 2.000000e+00 : f32
    %153 = vector.broadcast %cst_149 : f32 to vector<1x32xf32>
    %154 = arith.divf %152, %153 : vector<1x32xf32>
    %155 = vector.broadcast %154 : vector<1x32xf32> to vector<2x32xf32>
    %156 = arith.subf %149, %155 : vector<2x32xf32>
    %157 = arith.mulf %156, %156 : vector<2x32xf32>
    %cst_150 = arith.constant dense<0.000000e+00> : vector<32xf32>
    %158 = vector.multi_reduction <add>, %157, %cst_150 [0] : vector<2x32xf32> to vector<32xf32>
    %159 = vector.shape_cast %158 : vector<32xf32> to vector<1x32xf32>
    %cst_151 = arith.constant 2.000000e+00 : f32
    %160 = vector.broadcast %cst_151 : f32 to vector<1x32xf32>
    %161 = arith.divf %159, %160 : vector<1x32xf32>
    %162 = vector.broadcast %154 : vector<1x32xf32> to vector<2x32xf32>
    %163 = arith.subf %149, %162 : vector<2x32xf32>
    %cst_152 = arith.constant 8.000000e-01 : f32
    %164 = vector.broadcast %cst_152 : f32 to vector<1x32xf32>
    %165 = arith.addf %161, %164 : vector<1x32xf32>
    %166 = math.rsqrt %165 : vector<1x32xf32>
    %167 = vector.broadcast %166 : vector<1x32xf32> to vector<2x32xf32>
    %168 = arith.mulf %163, %167 : vector<2x32xf32>
    %c0_153 = arith.constant 0 : index
    %c0_154 = arith.constant 0 : index
    %169 = vector.load %arg5[%c0_153, %c0_154] : memref<1x32xf32, #tpu.memory_space<vmem>>, vector<1x32xf32>
    %170 = vector.broadcast %169 : vector<1x32xf32> to vector<2x32xf32>
    %171 = arith.mulf %168, %170 : vector<2x32xf32>
    %c0_155 = arith.constant 0 : index
    %c0_156 = arith.constant 0 : index
    %172 = vector.load %arg6[%c0_155, %c0_156] : memref<1x32xf32, #tpu.memory_space<vmem>>, vector<1x32xf32>
    %173 = vector.broadcast %172 : vector<1x32xf32> to vector<2x32xf32>
    %174 = arith.addf %171, %173 : vector<2x32xf32>
    %cst_157 = arith.constant 0.000000e+00 : f32
    %175 = vector.broadcast %cst_157 : f32 to vector<2x32xf32>
    %176 = arith.maximumf %174, %175 : vector<2x32xf32>
    %c0_i32_158 = arith.constant 0 : i32
    %177 = tpu.memref_slice %arg19[%c0_i32_158] : memref<3x!tpu.dma_semaphore, #tpu.memory_space<semaphore_mem>> -> memref<1x!tpu.dma_semaphore, #tpu.memory_space<semaphore_mem>>
    %178 = tpu.memref_squeeze %177 : memref<1x!tpu.dma_semaphore, #tpu.memory_space<semaphore_mem>> -> memref<!tpu.dma_semaphore, #tpu.memory_space<semaphore_mem>>
    tpu.wait_dma2 semaphore(%178 : memref<!tpu.dma_semaphore, #tpu.memory_space<semaphore_mem>>) src(%arg7 : memref<32x4096xbf16, #tpu.memory_space<any>>) dst(%arg16 : memref<32x4096xbf16, #tpu.memory_space<vmem>>)
    %179 = arith.truncf %176 : vector<2x32xf32> to vector<2x32xbf16>
    %c0_159 = arith.constant 0 : index
    %c0_160 = arith.constant 0 : index
    %180 = vector.load %arg16[%c0_159, %c0_160] : memref<32x4096xbf16, #tpu.memory_space<vmem>>, vector<32x4096xbf16>
    %cst_161 = arith.constant dense<0.000000e+00> : vector<2x4096xf32>
    %181 = tpu.matmul %179, %180, %cst_161 {dimension_numbers = #tpu.dot_dimension_numbers<[1], [0], [0], [1], [0, 0, 1, 1], [], []>} : vector<2x32xbf16>, vector<32x4096xbf16>, vector<2x4096xf32> -> vector<2x4096xf32>
    %c0_162 = arith.constant 0 : index
    %c0_163 = arith.constant 0 : index
    %182 = vector.load %arg8[%c0_162, %c0_163] : memref<1x4096xf32, #tpu.memory_space<vmem>>, vector<1x4096xf32>
    %183 = vector.broadcast %182 : vector<1x4096xf32> to vector<2x4096xf32>
    %184 = arith.addf %181, %183 : vector<2x4096xf32>
    %cst_164 = arith.constant dense<0.000000e+00> : vector<4096xf32>
    %185 = vector.multi_reduction <add>, %184, %cst_164 [0] : vector<2x4096xf32> to vector<4096xf32>
    %186 = vector.shape_cast %185 : vector<4096xf32> to vector<1x4096xf32>
    %cst_165 = arith.constant 2.000000e+00 : f32
    %187 = vector.broadcast %cst_165 : f32 to vector<1x4096xf32>
    %188 = arith.divf %186, %187 : vector<1x4096xf32>
    %189 = vector.broadcast %188 : vector<1x4096xf32> to vector<2x4096xf32>
    %190 = arith.subf %184, %189 : vector<2x4096xf32>
    %191 = arith.mulf %190, %190 : vector<2x4096xf32>
    %cst_166 = arith.constant dense<0.000000e+00> : vector<4096xf32>
    %192 = vector.multi_reduction <add>, %191, %cst_166 [0] : vector<2x4096xf32> to vector<4096xf32>
    %193 = vector.shape_cast %192 : vector<4096xf32> to vector<1x4096xf32>
    %cst_167 = arith.constant 2.000000e+00 : f32
    %194 = vector.broadcast %cst_167 : f32 to vector<1x4096xf32>
    %195 = arith.divf %193, %194 : vector<1x4096xf32>
    %196 = vector.broadcast %188 : vector<1x4096xf32> to vector<2x4096xf32>
    %197 = arith.subf %184, %196 : vector<2x4096xf32>
    %cst_168 = arith.constant 9.99999974E-6 : f32
    %198 = vector.broadcast %cst_168 : f32 to vector<1x4096xf32>
    %199 = arith.addf %195, %198 : vector<1x4096xf32>
    %200 = math.rsqrt %199 : vector<1x4096xf32>
    %201 = vector.broadcast %200 : vector<1x4096xf32> to vector<2x4096xf32>
    %202 = arith.mulf %197, %201 : vector<2x4096xf32>
    %c0_169 = arith.constant 0 : index
    %c0_170 = arith.constant 0 : index
    %203 = vector.load %arg9[%c0_169, %c0_170] : memref<1x4096xf32, #tpu.memory_space<vmem>>, vector<1x4096xf32>
    %204 = vector.broadcast %203 : vector<1x4096xf32> to vector<2x4096xf32>
    %205 = arith.mulf %202, %204 : vector<2x4096xf32>
    %c0_171 = arith.constant 0 : index
    %c0_172 = arith.constant 0 : index
    %206 = vector.load %arg10[%c0_171, %c0_172] : memref<1x4096xf32, #tpu.memory_space<vmem>>, vector<1x4096xf32>
    %207 = vector.broadcast %206 : vector<1x4096xf32> to vector<2x4096xf32>
    %208 = arith.addf %205, %207 : vector<2x4096xf32>
    %cst_173 = arith.constant 0.000000e+00 : f32
    %209 = vector.broadcast %cst_173 : f32 to vector<2x4096xf32>
    %210 = arith.maximumf %208, %209 : vector<2x4096xf32>
    %c0_174 = arith.constant 0 : index
    %c0_175 = arith.constant 0 : index
    %211 = vector.load %arg21[%c0_174, %c0_175] : memref<2x4096xf32, #tpu.memory_space<vmem>>, vector<2x4096xf32>
    tpu.vector_store %arg21[%c0_174, %c0_175], %210 {strides = array<i32>} : memref<2x4096xf32, #tpu.memory_space<vmem>>, vector<2x4096xf32>,
    %c0_176 = arith.constant 0 : index
    %c0_177 = arith.constant 0 : index
    %212 = vector.load %arg21[%c0_176, %c0_177] : memref<2x4096xf32, #tpu.memory_space<vmem>>, vector<2x64xf32>
    %c0_178 = arith.constant 0 : index
    %c0_179 = arith.constant 0 : index
    %213 = vector.load %arg22[%c0_178, %c0_179] : memref<128x64xf32, #tpu.memory_space<vmem>>, vector<2x64xf32>
    tpu.vector_store %arg22[%c0_178, %c0_179], %212 {strides = array<i32>} : memref<128x64xf32, #tpu.memory_space<vmem>>, vector<2x64xf32>,
    %c0_180 = arith.constant 0 : index
    %c64_181 = arith.constant 64 : index
    %214 = vector.load %arg21[%c0_180, %c64_181] : memref<2x4096xf32, #tpu.memory_space<vmem>>, vector<2x64xf32>
    %c2_182 = arith.constant 2 : index
    %c0_183 = arith.constant 0 : index
    %215 = vector.load %arg22[%c2_182, %c0_183] : memref<128x64xf32, #tpu.memory_space<vmem>>, vector<2x64xf32>
    tpu.vector_store %arg22[%c2_182, %c0_183], %214 {strides = array<i32>} : memref<128x64xf32, #tpu.memory_space<vmem>>, vector<2x64xf32>,
    %c0_184 = arith.constant 0 : index
    %c128_185 = arith.constant 128 : index
    %216 = vector.load %arg21[%c0_184, %c128_185] : memref<2x4096xf32, #tpu.memory_space<vmem>>, vector<2x64xf32>
    %c4_186 = arith.constant 4 : index
    %c0_187 = arith.constant 0 : index
    %217 = vector.load %arg22[%c4_186, %c0_187] : memref<128x64xf32, #tpu.memory_space<vmem>>, vector<2x64xf32>
    tpu.vector_store %arg22[%c4_186, %c0_187], %216 {strides = array<i32>} : memref<128x64xf32, #tpu.memory_space<vmem>>, vector<2x64xf32>,
    %c0_188 = arith.constant 0 : index
    %c192_189 = arith.constant 192 : index
    %218 = vector.load %arg21[%c0_188, %c192_189] : memref<2x4096xf32, #tpu.memory_space<vmem>>, vector<2x64xf32>
    %c6_190 = arith.constant 6 : index
    %c0_191 = arith.constant 0 : index
    %219 = vector.load %arg22[%c6_190, %c0_191] : memref<128x64xf32, #tpu.memory_space<vmem>>, vector<2x64xf32>
    tpu.vector_store %arg22[%c6_190, %c0_191], %218 {strides = array<i32>} : memref<128x64xf32, #tpu.memory_space<vmem>>, vector<2x64xf32>,
    %c0_192 = arith.constant 0 : index
    %c256_193 = arith.constant 256 : index
    %220 = vector.load %arg21[%c0_192, %c256_193] : memref<2x4096xf32, #tpu.memory_space<vmem>>, vector<2x64xf32>
    %c8_194 = arith.constant 8 : index
    %c0_195 = arith.constant 0 : index
    %221 = vector.load %arg22[%c8_194, %c0_195] : memref<128x64xf32, #tpu.memory_space<vmem>>, vector<2x64xf32>
    tpu.vector_store %arg22[%c8_194, %c0_195], %220 {strides = array<i32>} : memref<128x64xf32, #tpu.memory_space<vmem>>, vector<2x64xf32>,
    %c0_196 = arith.constant 0 : index
    %c320_197 = arith.constant 320 : index
    %222 = vector.load %arg21[%c0_196, %c320_197] : memref<2x4096xf32, #tpu.memory_space<vmem>>, vector<2x64xf32>
    %c10_198 = arith.constant 10 : index
    %c0_199 = arith.constant 0 : index
    %223 = vector.load %arg22[%c10_198, %c0_199] : memref<128x64xf32, #tpu.memory_space<vmem>>, vector<2x64xf32>
    tpu.vector_store %arg22[%c10_198, %c0_199], %222 {strides = array<i32>} : memref<128x64xf32, #tpu.memory_space<vmem>>, vector<2x64xf32>,
    %c0_200 = arith.constant 0 : index
    %c384_201 = arith.constant 384 : index
    %224 = vector.load %arg21[%c0_200, %c384_201] : memref<2x4096xf32, #tpu.memory_space<vmem>>, vector<2x64xf32>
    %c12_202 = arith.constant 12 : index
    %c0_203 = arith.constant 0 : index
    %225 = vector.load %arg22[%c12_202, %c0_203] : memref<128x64xf32, #tpu.memory_space<vmem>>, vector<2x64xf32>
    tpu.vector_store %arg22[%c12_202, %c0_203], %224 {strides = array<i32>} : memref<128x64xf32, #tpu.memory_space<vmem>>, vector<2x64xf32>,
    %c0_204 = arith.constant 0 : index
    %c448_205 = arith.constant 448 : index
    %226 = vector.load %arg21[%c0_204, %c448_205] : memref<2x4096xf32, #tpu.memory_space<vmem>>, vector<2x64xf32>
    %c14_206 = arith.constant 14 : index
    %c0_207 = arith.constant 0 : index
    %227 = vector.load %arg22[%c14_206, %c0_207] : memref<128x64xf32, #tpu.memory_space<vmem>>, vector<2x64xf32>
    tpu.vector_store %arg22[%c14_206, %c0_207], %226 {strides = array<i32>} : memref<128x64xf32, #tpu.memory_space<vmem>>, vector<2x64xf32>,
    %c0_208 = arith.constant 0 : index
    %c512_209 = arith.constant 512 : index
    %228 = vector.load %arg21[%c0_208, %c512_209] : memref<2x4096xf32, #tpu.memory_space<vmem>>, vector<2x64xf32>
    %c16_210 = arith.constant 16 : index
    %c0_211 = arith.constant 0 : index
    %229 = vector.load %arg22[%c16_210, %c0_211] : memref<128x64xf32, #tpu.memory_space<vmem>>, vector<2x64xf32>
    tpu.vector_store %arg22[%c16_210, %c0_211], %228 {strides = array<i32>} : memref<128x64xf32, #tpu.memory_space<vmem>>, vector<2x64xf32>,
    %c0_212 = arith.constant 0 : index
    %c576_213 = arith.constant 576 : index
    %230 = vector.load %arg21[%c0_212, %c576_213] : memref<2x4096xf32, #tpu.memory_space<vmem>>, vector<2x64xf32>
    %c18_214 = arith.constant 18 : index
    %c0_215 = arith.constant 0 : index
    %231 = vector.load %arg22[%c18_214, %c0_215] : memref<128x64xf32, #tpu.memory_space<vmem>>, vector<2x64xf32>
    tpu.vector_store %arg22[%c18_214, %c0_215], %230 {strides = array<i32>} : memref<128x64xf32, #tpu.memory_space<vmem>>, vector<2x64xf32>,
    %c0_216 = arith.constant 0 : index
    %c640_217 = arith.constant 640 : index
    %232 = vector.load %arg21[%c0_216, %c640_217] : memref<2x4096xf32, #tpu.memory_space<vmem>>, vector<2x64xf32>
    %c20_218 = arith.constant 20 : index
    %c0_219 = arith.constant 0 : index
    %233 = vector.load %arg22[%c20_218, %c0_219] : memref<128x64xf32, #tpu.memory_space<vmem>>, vector<2x64xf32>
    tpu.vector_store %arg22[%c20_218, %c0_219], %232 {strides = array<i32>} : memref<128x64xf32, #tpu.memory_space<vmem>>, vector<2x64xf32>,
    %c0_220 = arith.constant 0 : index
    %c704_221 = arith.constant 704 : index
    %234 = vector.load %arg21[%c0_220, %c704_221] : memref<2x4096xf32, #tpu.memory_space<vmem>>, vector<2x64xf32>
    %c22_222 = arith.constant 22 : index
    %c0_223 = arith.constant 0 : index
    %235 = vector.load %arg22[%c22_222, %c0_223] : memref<128x64xf32, #tpu.memory_space<vmem>>, vector<2x64xf32>
    tpu.vector_store %arg22[%c22_222, %c0_223], %234 {strides = array<i32>} : memref<128x64xf32, #tpu.memory_space<vmem>>, vector<2x64xf32>,
    %c0_224 = arith.constant 0 : index
    %c768_225 = arith.constant 768 : index
    %236 = vector.load %arg21[%c0_224, %c768_225] : memref<2x4096xf32, #tpu.memory_space<vmem>>, vector<2x64xf32>
    %c24_226 = arith.constant 24 : index
    %c0_227 = arith.constant 0 : index
    %237 = vector.load %arg22[%c24_226, %c0_227] : memref<128x64xf32, #tpu.memory_space<vmem>>, vector<2x64xf32>
    tpu.vector_store %arg22[%c24_226, %c0_227], %236 {strides = array<i32>} : memref<128x64xf32, #tpu.memory_space<vmem>>, vector<2x64xf32>,
    %c0_228 = arith.constant 0 : index
    %c832_229 = arith.constant 832 : index
    %238 = vector.load %arg21[%c0_228, %c832_229] : memref<2x4096xf32, #tpu.memory_space<vmem>>, vector<2x64xf32>
    %c26_230 = arith.constant 26 : index
    %c0_231 = arith.constant 0 : index
    %239 = vector.load %arg22[%c26_230, %c0_231] : memref<128x64xf32, #tpu.memory_space<vmem>>, vector<2x64xf32>
    tpu.vector_store %arg22[%c26_230, %c0_231], %238 {strides = array<i32>} : memref<128x64xf32, #tpu.memory_space<vmem>>, vector<2x64xf32>,
    %c0_232 = arith.constant 0 : index
    %c896_233 = arith.constant 896 : index
    %240 = vector.load %arg21[%c0_232, %c896_233] : memref<2x4096xf32, #tpu.memory_space<vmem>>, vector<2x64xf32>
    %c28_234 = arith.constant 28 : index
    %c0_235 = arith.constant 0 : index
    %241 = vector.load %arg22[%c28_234, %c0_235] : memref<128x64xf32, #tpu.memory_space<vmem>>, vector<2x64xf32>
    tpu.vector_store %arg22[%c28_234, %c0_235], %240 {strides = array<i32>} : memref<128x64xf32, #tpu.memory_space<vmem>>, vector<2x64xf32>,
    %c0_236 = arith.constant 0 : index
    %c960_237 = arith.constant 960 : index
    %242 = vector.load %arg21[%c0_236, %c960_237] : memref<2x4096xf32, #tpu.memory_space<vmem>>, vector<2x64xf32>
    %c30_238 = arith.constant 30 : index
    %c0_239 = arith.constant 0 : index
    %243 = vector.load %arg22[%c30_238, %c0_239] : memref<128x64xf32, #tpu.memory_space<vmem>>, vector<2x64xf32>
    tpu.vector_store %arg22[%c30_238, %c0_239], %242 {strides = array<i32>} : memref<128x64xf32, #tpu.memory_space<vmem>>, vector<2x64xf32>,
    %c0_240 = arith.constant 0 : index
    %c1024_241 = arith.constant 1024 : index
    %244 = vector.load %arg21[%c0_240, %c1024_241] : memref<2x4096xf32, #tpu.memory_space<vmem>>, vector<2x64xf32>
    %c32_242 = arith.constant 32 : index
    %c0_243 = arith.constant 0 : index
    %245 = vector.load %arg22[%c32_242, %c0_243] : memref<128x64xf32, #tpu.memory_space<vmem>>, vector<2x64xf32>
    tpu.vector_store %arg22[%c32_242, %c0_243], %244 {strides = array<i32>} : memref<128x64xf32, #tpu.memory_space<vmem>>, vector<2x64xf32>,
    %c0_244 = arith.constant 0 : index
    %c1088_245 = arith.constant 1088 : index
    %246 = vector.load %arg21[%c0_244, %c1088_245] : memref<2x4096xf32, #tpu.memory_space<vmem>>, vector<2x64xf32>
    %c34_246 = arith.constant 34 : index
    %c0_247 = arith.constant 0 : index
    %247 = vector.load %arg22[%c34_246, %c0_247] : memref<128x64xf32, #tpu.memory_space<vmem>>, vector<2x64xf32>
    tpu.vector_store %arg22[%c34_246, %c0_247], %246 {strides = array<i32>} : memref<128x64xf32, #tpu.memory_space<vmem>>, vector<2x64xf32>,
    %c0_248 = arith.constant 0 : index
    %c1152_249 = arith.constant 1152 : index
    %248 = vector.load %arg21[%c0_248, %c1152_249] : memref<2x4096xf32, #tpu.memory_space<vmem>>, vector<2x64xf32>
    %c36_250 = arith.constant 36 : index
    %c0_251 = arith.constant 0 : index
    %249 = vector.load %arg22[%c36_250, %c0_251] : memref<128x64xf32, #tpu.memory_space<vmem>>, vector<2x64xf32>
    tpu.vector_store %arg22[%c36_250, %c0_251], %248 {strides = array<i32>} : memref<128x64xf32, #tpu.memory_space<vmem>>, vector<2x64xf32>,
    %c0_252 = arith.constant 0 : index
    %c1216_253 = arith.constant 1216 : index
    %250 = vector.load %arg21[%c0_252, %c1216_253] : memref<2x4096xf32, #tpu.memory_space<vmem>>, vector<2x64xf32>
    %c38_254 = arith.constant 38 : index
    %c0_255 = arith.constant 0 : index
    %251 = vector.load %arg22[%c38_254, %c0_255] : memref<128x64xf32, #tpu.memory_space<vmem>>, vector<2x64xf32>
    tpu.vector_store %arg22[%c38_254, %c0_255], %250 {strides = array<i32>} : memref<128x64xf32, #tpu.memory_space<vmem>>, vector<2x64xf32>,
    %c0_256 = arith.constant 0 : index
    %c1280_257 = arith.constant 1280 : index
    %252 = vector.load %arg21[%c0_256, %c1280_257] : memref<2x4096xf32, #tpu.memory_space<vmem>>, vector<2x64xf32>
    %c40_258 = arith.constant 40 : index
    %c0_259 = arith.constant 0 : index
    %253 = vector.load %arg22[%c40_258, %c0_259] : memref<128x64xf32, #tpu.memory_space<vmem>>, vector<2x64xf32>
    tpu.vector_store %arg22[%c40_258, %c0_259], %252 {strides = array<i32>} : memref<128x64xf32, #tpu.memory_space<vmem>>, vector<2x64xf32>,
    %c0_260 = arith.constant 0 : index
    %c1344_261 = arith.constant 1344 : index
    %254 = vector.load %arg21[%c0_260, %c1344_261] : memref<2x4096xf32, #tpu.memory_space<vmem>>, vector<2x64xf32>
    %c42_262 = arith.constant 42 : index
    %c0_263 = arith.constant 0 : index
    %255 = vector.load %arg22[%c42_262, %c0_263] : memref<128x64xf32, #tpu.memory_space<vmem>>, vector<2x64xf32>
    tpu.vector_store %arg22[%c42_262, %c0_263], %254 {strides = array<i32>} : memref<128x64xf32, #tpu.memory_space<vmem>>, vector<2x64xf32>,
    %c0_264 = arith.constant 0 : index
    %c1408_265 = arith.constant 1408 : index
    %256 = vector.load %arg21[%c0_264, %c1408_265] : memref<2x4096xf32, #tpu.memory_space<vmem>>, vector<2x64xf32>
    %c44_266 = arith.constant 44 : index
    %c0_267 = arith.constant 0 : index
    %257 = vector.load %arg22[%c44_266, %c0_267] : memref<128x64xf32, #tpu.memory_space<vmem>>, vector<2x64xf32>
    tpu.vector_store %arg22[%c44_266, %c0_267], %256 {strides = array<i32>} : memref<128x64xf32, #tpu.memory_space<vmem>>, vector<2x64xf32>,
    %c0_268 = arith.constant 0 : index
    %c1472_269 = arith.constant 1472 : index
    %258 = vector.load %arg21[%c0_268, %c1472_269] : memref<2x4096xf32, #tpu.memory_space<vmem>>, vector<2x64xf32>
    %c46_270 = arith.constant 46 : index
    %c0_271 = arith.constant 0 : index
    %259 = vector.load %arg22[%c46_270, %c0_271] : memref<128x64xf32, #tpu.memory_space<vmem>>, vector<2x64xf32>
    tpu.vector_store %arg22[%c46_270, %c0_271], %258 {strides = array<i32>} : memref<128x64xf32, #tpu.memory_space<vmem>>, vector<2x64xf32>,
    %c0_272 = arith.constant 0 : index
    %c1536_273 = arith.constant 1536 : index
    %260 = vector.load %arg21[%c0_272, %c1536_273] : memref<2x4096xf32, #tpu.memory_space<vmem>>, vector<2x64xf32>
    %c48_274 = arith.constant 48 : index
    %c0_275 = arith.constant 0 : index
    %261 = vector.load %arg22[%c48_274, %c0_275] : memref<128x64xf32, #tpu.memory_space<vmem>>, vector<2x64xf32>
    tpu.vector_store %arg22[%c48_274, %c0_275], %260 {strides = array<i32>} : memref<128x64xf32, #tpu.memory_space<vmem>>, vector<2x64xf32>,
    %c0_276 = arith.constant 0 : index
    %c1600_277 = arith.constant 1600 : index
    %262 = vector.load %arg21[%c0_276, %c1600_277] : memref<2x4096xf32, #tpu.memory_space<vmem>>, vector<2x64xf32>
    %c50_278 = arith.constant 50 : index
    %c0_279 = arith.constant 0 : index
    %263 = vector.load %arg22[%c50_278, %c0_279] : memref<128x64xf32, #tpu.memory_space<vmem>>, vector<2x64xf32>
    tpu.vector_store %arg22[%c50_278, %c0_279], %262 {strides = array<i32>} : memref<128x64xf32, #tpu.memory_space<vmem>>, vector<2x64xf32>,
    %c0_280 = arith.constant 0 : index
    %c1664_281 = arith.constant 1664 : index
    %264 = vector.load %arg21[%c0_280, %c1664_281] : memref<2x4096xf32, #tpu.memory_space<vmem>>, vector<2x64xf32>
    %c52_282 = arith.constant 52 : index
    %c0_283 = arith.constant 0 : index
    %265 = vector.load %arg22[%c52_282, %c0_283] : memref<128x64xf32, #tpu.memory_space<vmem>>, vector<2x64xf32>
    tpu.vector_store %arg22[%c52_282, %c0_283], %264 {strides = array<i32>} : memref<128x64xf32, #tpu.memory_space<vmem>>, vector<2x64xf32>,
    %c0_284 = arith.constant 0 : index
    %c1728_285 = arith.constant 1728 : index
    %266 = vector.load %arg21[%c0_284, %c1728_285] : memref<2x4096xf32, #tpu.memory_space<vmem>>, vector<2x64xf32>
    %c54_286 = arith.constant 54 : index
    %c0_287 = arith.constant 0 : index
    %267 = vector.load %arg22[%c54_286, %c0_287] : memref<128x64xf32, #tpu.memory_space<vmem>>, vector<2x64xf32>
    tpu.vector_store %arg22[%c54_286, %c0_287], %266 {strides = array<i32>} : memref<128x64xf32, #tpu.memory_space<vmem>>, vector<2x64xf32>,
    %c0_288 = arith.constant 0 : index
    %c1792_289 = arith.constant 1792 : index
    %268 = vector.load %arg21[%c0_288, %c1792_289] : memref<2x4096xf32, #tpu.memory_space<vmem>>, vector<2x64xf32>
    %c56_290 = arith.constant 56 : index
    %c0_291 = arith.constant 0 : index
    %269 = vector.load %arg22[%c56_290, %c0_291] : memref<128x64xf32, #tpu.memory_space<vmem>>, vector<2x64xf32>
    tpu.vector_store %arg22[%c56_290, %c0_291], %268 {strides = array<i32>} : memref<128x64xf32, #tpu.memory_space<vmem>>, vector<2x64xf32>,
    %c0_292 = arith.constant 0 : index
    %c1856_293 = arith.constant 1856 : index
    %270 = vector.load %arg21[%c0_292, %c1856_293] : memref<2x4096xf32, #tpu.memory_space<vmem>>, vector<2x64xf32>
    %c58_294 = arith.constant 58 : index
    %c0_295 = arith.constant 0 : index
    %271 = vector.load %arg22[%c58_294, %c0_295] : memref<128x64xf32, #tpu.memory_space<vmem>>, vector<2x64xf32>
    tpu.vector_store %arg22[%c58_294, %c0_295], %270 {strides = array<i32>} : memref<128x64xf32, #tpu.memory_space<vmem>>, vector<2x64xf32>,
    %c0_296 = arith.constant 0 : index
    %c1920_297 = arith.constant 1920 : index
    %272 = vector.load %arg21[%c0_296, %c1920_297] : memref<2x4096xf32, #tpu.memory_space<vmem>>, vector<2x64xf32>
    %c60_298 = arith.constant 60 : index
    %c0_299 = arith.constant 0 : index
    %273 = vector.load %arg22[%c60_298, %c0_299] : memref<128x64xf32, #tpu.memory_space<vmem>>, vector<2x64xf32>
    tpu.vector_store %arg22[%c60_298, %c0_299], %272 {strides = array<i32>} : memref<128x64xf32, #tpu.memory_space<vmem>>, vector<2x64xf32>,
    %c0_300 = arith.constant 0 : index
    %c1984_301 = arith.constant 1984 : index
    %274 = vector.load %arg21[%c0_300, %c1984_301] : memref<2x4096xf32, #tpu.memory_space<vmem>>, vector<2x64xf32>
    %c62_302 = arith.constant 62 : index
    %c0_303 = arith.constant 0 : index
    %275 = vector.load %arg22[%c62_302, %c0_303] : memref<128x64xf32, #tpu.memory_space<vmem>>, vector<2x64xf32>
    tpu.vector_store %arg22[%c62_302, %c0_303], %274 {strides = array<i32>} : memref<128x64xf32, #tpu.memory_space<vmem>>, vector<2x64xf32>,
    %c0_304 = arith.constant 0 : index
    %c2048_305 = arith.constant 2048 : index
    %276 = vector.load %arg21[%c0_304, %c2048_305] : memref<2x4096xf32, #tpu.memory_space<vmem>>, vector<2x64xf32>
    %c64_306 = arith.constant 64 : index
    %c0_307 = arith.constant 0 : index
    %277 = vector.load %arg22[%c64_306, %c0_307] : memref<128x64xf32, #tpu.memory_space<vmem>>, vector<2x64xf32>
    tpu.vector_store %arg22[%c64_306, %c0_307], %276 {strides = array<i32>} : memref<128x64xf32, #tpu.memory_space<vmem>>, vector<2x64xf32>,
    %c0_308 = arith.constant 0 : index
    %c2112_309 = arith.constant 2112 : index
    %278 = vector.load %arg21[%c0_308, %c2112_309] : memref<2x4096xf32, #tpu.memory_space<vmem>>, vector<2x64xf32>
    %c66_310 = arith.constant 66 : index
    %c0_311 = arith.constant 0 : index
    %279 = vector.load %arg22[%c66_310, %c0_311] : memref<128x64xf32, #tpu.memory_space<vmem>>, vector<2x64xf32>
    tpu.vector_store %arg22[%c66_310, %c0_311], %278 {strides = array<i32>} : memref<128x64xf32, #tpu.memory_space<vmem>>, vector<2x64xf32>,
    %c0_312 = arith.constant 0 : index
    %c2176_313 = arith.constant 2176 : index
    %280 = vector.load %arg21[%c0_312, %c2176_313] : memref<2x4096xf32, #tpu.memory_space<vmem>>, vector<2x64xf32>
    %c68_314 = arith.constant 68 : index
    %c0_315 = arith.constant 0 : index
    %281 = vector.load %arg22[%c68_314, %c0_315] : memref<128x64xf32, #tpu.memory_space<vmem>>, vector<2x64xf32>
    tpu.vector_store %arg22[%c68_314, %c0_315], %280 {strides = array<i32>} : memref<128x64xf32, #tpu.memory_space<vmem>>, vector<2x64xf32>,
    %c0_316 = arith.constant 0 : index
    %c2240_317 = arith.constant 2240 : index
    %282 = vector.load %arg21[%c0_316, %c2240_317] : memref<2x4096xf32, #tpu.memory_space<vmem>>, vector<2x64xf32>
    %c70_318 = arith.constant 70 : index
    %c0_319 = arith.constant 0 : index
    %283 = vector.load %arg22[%c70_318, %c0_319] : memref<128x64xf32, #tpu.memory_space<vmem>>, vector<2x64xf32>
    tpu.vector_store %arg22[%c70_318, %c0_319], %282 {strides = array<i32>} : memref<128x64xf32, #tpu.memory_space<vmem>>, vector<2x64xf32>,
    %c0_320 = arith.constant 0 : index
    %c2304_321 = arith.constant 2304 : index
    %284 = vector.load %arg21[%c0_320, %c2304_321] : memref<2x4096xf32, #tpu.memory_space<vmem>>, vector<2x64xf32>
    %c72_322 = arith.constant 72 : index
    %c0_323 = arith.constant 0 : index
    %285 = vector.load %arg22[%c72_322, %c0_323] : memref<128x64xf32, #tpu.memory_space<vmem>>, vector<2x64xf32>
    tpu.vector_store %arg22[%c72_322, %c0_323], %284 {strides = array<i32>} : memref<128x64xf32, #tpu.memory_space<vmem>>, vector<2x64xf32>,
    %c0_324 = arith.constant 0 : index
    %c2368_325 = arith.constant 2368 : index
    %286 = vector.load %arg21[%c0_324, %c2368_325] : memref<2x4096xf32, #tpu.memory_space<vmem>>, vector<2x64xf32>
    %c74_326 = arith.constant 74 : index
    %c0_327 = arith.constant 0 : index
    %287 = vector.load %arg22[%c74_326, %c0_327] : memref<128x64xf32, #tpu.memory_space<vmem>>, vector<2x64xf32>
    tpu.vector_store %arg22[%c74_326, %c0_327], %286 {strides = array<i32>} : memref<128x64xf32, #tpu.memory_space<vmem>>, vector<2x64xf32>,
    %c0_328 = arith.constant 0 : index
    %c2432_329 = arith.constant 2432 : index
    %288 = vector.load %arg21[%c0_328, %c2432_329] : memref<2x4096xf32, #tpu.memory_space<vmem>>, vector<2x64xf32>
    %c76_330 = arith.constant 76 : index
    %c0_331 = arith.constant 0 : index
    %289 = vector.load %arg22[%c76_330, %c0_331] : memref<128x64xf32, #tpu.memory_space<vmem>>, vector<2x64xf32>
    tpu.vector_store %arg22[%c76_330, %c0_331], %288 {strides = array<i32>} : memref<128x64xf32, #tpu.memory_space<vmem>>, vector<2x64xf32>,
    %c0_332 = arith.constant 0 : index
    %c2496_333 = arith.constant 2496 : index
    %290 = vector.load %arg21[%c0_332, %c2496_333] : memref<2x4096xf32, #tpu.memory_space<vmem>>, vector<2x64xf32>
    %c78_334 = arith.constant 78 : index
    %c0_335 = arith.constant 0 : index
    %291 = vector.load %arg22[%c78_334, %c0_335] : memref<128x64xf32, #tpu.memory_space<vmem>>, vector<2x64xf32>
    tpu.vector_store %arg22[%c78_334, %c0_335], %290 {strides = array<i32>} : memref<128x64xf32, #tpu.memory_space<vmem>>, vector<2x64xf32>,
    %c0_336 = arith.constant 0 : index
    %c2560_337 = arith.constant 2560 : index
    %292 = vector.load %arg21[%c0_336, %c2560_337] : memref<2x4096xf32, #tpu.memory_space<vmem>>, vector<2x64xf32>
    %c80_338 = arith.constant 80 : index
    %c0_339 = arith.constant 0 : index
    %293 = vector.load %arg22[%c80_338, %c0_339] : memref<128x64xf32, #tpu.memory_space<vmem>>, vector<2x64xf32>
    tpu.vector_store %arg22[%c80_338, %c0_339], %292 {strides = array<i32>} : memref<128x64xf32, #tpu.memory_space<vmem>>, vector<2x64xf32>,
    %c0_340 = arith.constant 0 : index
    %c2624_341 = arith.constant 2624 : index
    %294 = vector.load %arg21[%c0_340, %c2624_341] : memref<2x4096xf32, #tpu.memory_space<vmem>>, vector<2x64xf32>
    %c82_342 = arith.constant 82 : index
    %c0_343 = arith.constant 0 : index
    %295 = vector.load %arg22[%c82_342, %c0_343] : memref<128x64xf32, #tpu.memory_space<vmem>>, vector<2x64xf32>
    tpu.vector_store %arg22[%c82_342, %c0_343], %294 {strides = array<i32>} : memref<128x64xf32, #tpu.memory_space<vmem>>, vector<2x64xf32>,
    %c0_344 = arith.constant 0 : index
    %c2688_345 = arith.constant 2688 : index
    %296 = vector.load %arg21[%c0_344, %c2688_345] : memref<2x4096xf32, #tpu.memory_space<vmem>>, vector<2x64xf32>
    %c84_346 = arith.constant 84 : index
    %c0_347 = arith.constant 0 : index
    %297 = vector.load %arg22[%c84_346, %c0_347] : memref<128x64xf32, #tpu.memory_space<vmem>>, vector<2x64xf32>
    tpu.vector_store %arg22[%c84_346, %c0_347], %296 {strides = array<i32>} : memref<128x64xf32, #tpu.memory_space<vmem>>, vector<2x64xf32>,
    %c0_348 = arith.constant 0 : index
    %c2752_349 = arith.constant 2752 : index
    %298 = vector.load %arg21[%c0_348, %c2752_349] : memref<2x4096xf32, #tpu.memory_space<vmem>>, vector<2x64xf32>
    %c86_350 = arith.constant 86 : index
    %c0_351 = arith.constant 0 : index
    %299 = vector.load %arg22[%c86_350, %c0_351] : memref<128x64xf32, #tpu.memory_space<vmem>>, vector<2x64xf32>
    tpu.vector_store %arg22[%c86_350, %c0_351], %298 {strides = array<i32>} : memref<128x64xf32, #tpu.memory_space<vmem>>, vector<2x64xf32>,
    %c0_352 = arith.constant 0 : index
    %c2816_353 = arith.constant 2816 : index
    %300 = vector.load %arg21[%c0_352, %c2816_353] : memref<2x4096xf32, #tpu.memory_space<vmem>>, vector<2x64xf32>
    %c88_354 = arith.constant 88 : index
    %c0_355 = arith.constant 0 : index
    %301 = vector.load %arg22[%c88_354, %c0_355] : memref<128x64xf32, #tpu.memory_space<vmem>>, vector<2x64xf32>
    tpu.vector_store %arg22[%c88_354, %c0_355], %300 {strides = array<i32>} : memref<128x64xf32, #tpu.memory_space<vmem>>, vector<2x64xf32>,
    %c0_356 = arith.constant 0 : index
    %c2880_357 = arith.constant 2880 : index
    %302 = vector.load %arg21[%c0_356, %c2880_357] : memref<2x4096xf32, #tpu.memory_space<vmem>>, vector<2x64xf32>
    %c90_358 = arith.constant 90 : index
    %c0_359 = arith.constant 0 : index
    %303 = vector.load %arg22[%c90_358, %c0_359] : memref<128x64xf32, #tpu.memory_space<vmem>>, vector<2x64xf32>
    tpu.vector_store %arg22[%c90_358, %c0_359], %302 {strides = array<i32>} : memref<128x64xf32, #tpu.memory_space<vmem>>, vector<2x64xf32>,
    %c0_360 = arith.constant 0 : index
    %c2944_361 = arith.constant 2944 : index
    %304 = vector.load %arg21[%c0_360, %c2944_361] : memref<2x4096xf32, #tpu.memory_space<vmem>>, vector<2x64xf32>
    %c92_362 = arith.constant 92 : index
    %c0_363 = arith.constant 0 : index
    %305 = vector.load %arg22[%c92_362, %c0_363] : memref<128x64xf32, #tpu.memory_space<vmem>>, vector<2x64xf32>
    tpu.vector_store %arg22[%c92_362, %c0_363], %304 {strides = array<i32>} : memref<128x64xf32, #tpu.memory_space<vmem>>, vector<2x64xf32>,
    %c0_364 = arith.constant 0 : index
    %c3008_365 = arith.constant 3008 : index
    %306 = vector.load %arg21[%c0_364, %c3008_365] : memref<2x4096xf32, #tpu.memory_space<vmem>>, vector<2x64xf32>
    %c94_366 = arith.constant 94 : index
    %c0_367 = arith.constant 0 : index
    %307 = vector.load %arg22[%c94_366, %c0_367] : memref<128x64xf32, #tpu.memory_space<vmem>>, vector<2x64xf32>
    tpu.vector_store %arg22[%c94_366, %c0_367], %306 {strides = array<i32>} : memref<128x64xf32, #tpu.memory_space<vmem>>, vector<2x64xf32>,
    %c0_368 = arith.constant 0 : index
    %c3072_369 = arith.constant 3072 : index
    %308 = vector.load %arg21[%c0_368, %c3072_369] : memref<2x4096xf32, #tpu.memory_space<vmem>>, vector<2x64xf32>
    %c96_370 = arith.constant 96 : index
    %c0_371 = arith.constant 0 : index
    %309 = vector.load %arg22[%c96_370, %c0_371] : memref<128x64xf32, #tpu.memory_space<vmem>>, vector<2x64xf32>
    tpu.vector_store %arg22[%c96_370, %c0_371], %308 {strides = array<i32>} : memref<128x64xf32, #tpu.memory_space<vmem>>, vector<2x64xf32>,
    %c0_372 = arith.constant 0 : index
    %c3136_373 = arith.constant 3136 : index
    %310 = vector.load %arg21[%c0_372, %c3136_373] : memref<2x4096xf32, #tpu.memory_space<vmem>>, vector<2x64xf32>
    %c98_374 = arith.constant 98 : index
    %c0_375 = arith.constant 0 : index
    %311 = vector.load %arg22[%c98_374, %c0_375] : memref<128x64xf32, #tpu.memory_space<vmem>>, vector<2x64xf32>
    tpu.vector_store %arg22[%c98_374, %c0_375], %310 {strides = array<i32>} : memref<128x64xf32, #tpu.memory_space<vmem>>, vector<2x64xf32>,
    %c0_376 = arith.constant 0 : index
    %c3200_377 = arith.constant 3200 : index
    %312 = vector.load %arg21[%c0_376, %c3200_377] : memref<2x4096xf32, #tpu.memory_space<vmem>>, vector<2x64xf32>
    %c100_378 = arith.constant 100 : index
    %c0_379 = arith.constant 0 : index
    %313 = vector.load %arg22[%c100_378, %c0_379] : memref<128x64xf32, #tpu.memory_space<vmem>>, vector<2x64xf32>
    tpu.vector_store %arg22[%c100_378, %c0_379], %312 {strides = array<i32>} : memref<128x64xf32, #tpu.memory_space<vmem>>, vector<2x64xf32>,
    %c0_380 = arith.constant 0 : index
    %c3264_381 = arith.constant 3264 : index
    %314 = vector.load %arg21[%c0_380, %c3264_381] : memref<2x4096xf32, #tpu.memory_space<vmem>>, vector<2x64xf32>
    %c102_382 = arith.constant 102 : index
    %c0_383 = arith.constant 0 : index
    %315 = vector.load %arg22[%c102_382, %c0_383] : memref<128x64xf32, #tpu.memory_space<vmem>>, vector<2x64xf32>
    tpu.vector_store %arg22[%c102_382, %c0_383], %314 {strides = array<i32>} : memref<128x64xf32, #tpu.memory_space<vmem>>, vector<2x64xf32>,
    %c0_384 = arith.constant 0 : index
    %c3328_385 = arith.constant 3328 : index
    %316 = vector.load %arg21[%c0_384, %c3328_385] : memref<2x4096xf32, #tpu.memory_space<vmem>>, vector<2x64xf32>
    %c104_386 = arith.constant 104 : index
    %c0_387 = arith.constant 0 : index
    %317 = vector.load %arg22[%c104_386, %c0_387] : memref<128x64xf32, #tpu.memory_space<vmem>>, vector<2x64xf32>
    tpu.vector_store %arg22[%c104_386, %c0_387], %316 {strides = array<i32>} : memref<128x64xf32, #tpu.memory_space<vmem>>, vector<2x64xf32>,
    %c0_388 = arith.constant 0 : index
    %c3392_389 = arith.constant 3392 : index
    %318 = vector.load %arg21[%c0_388, %c3392_389] : memref<2x4096xf32, #tpu.memory_space<vmem>>, vector<2x64xf32>
    %c106_390 = arith.constant 106 : index
    %c0_391 = arith.constant 0 : index
    %319 = vector.load %arg22[%c106_390, %c0_391] : memref<128x64xf32, #tpu.memory_space<vmem>>, vector<2x64xf32>
    tpu.vector_store %arg22[%c106_390, %c0_391], %318 {strides = array<i32>} : memref<128x64xf32, #tpu.memory_space<vmem>>, vector<2x64xf32>,
    %c0_392 = arith.constant 0 : index
    %c3456_393 = arith.constant 3456 : index
    %320 = vector.load %arg21[%c0_392, %c3456_393] : memref<2x4096xf32, #tpu.memory_space<vmem>>, vector<2x64xf32>
    %c108_394 = arith.constant 108 : index
    %c0_395 = arith.constant 0 : index
    %321 = vector.load %arg22[%c108_394, %c0_395] : memref<128x64xf32, #tpu.memory_space<vmem>>, vector<2x64xf32>
    tpu.vector_store %arg22[%c108_394, %c0_395], %320 {strides = array<i32>} : memref<128x64xf32, #tpu.memory_space<vmem>>, vector<2x64xf32>,
    %c0_396 = arith.constant 0 : index
    %c3520_397 = arith.constant 3520 : index
    %322 = vector.load %arg21[%c0_396, %c3520_397] : memref<2x4096xf32, #tpu.memory_space<vmem>>, vector<2x64xf32>
    %c110_398 = arith.constant 110 : index
    %c0_399 = arith.constant 0 : index
    %323 = vector.load %arg22[%c110_398, %c0_399] : memref<128x64xf32, #tpu.memory_space<vmem>>, vector<2x64xf32>
    tpu.vector_store %arg22[%c110_398, %c0_399], %322 {strides = array<i32>} : memref<128x64xf32, #tpu.memory_space<vmem>>, vector<2x64xf32>,
    %c0_400 = arith.constant 0 : index
    %c3584_401 = arith.constant 3584 : index
    %324 = vector.load %arg21[%c0_400, %c3584_401] : memref<2x4096xf32, #tpu.memory_space<vmem>>, vector<2x64xf32>
    %c112_402 = arith.constant 112 : index
    %c0_403 = arith.constant 0 : index
    %325 = vector.load %arg22[%c112_402, %c0_403] : memref<128x64xf32, #tpu.memory_space<vmem>>, vector<2x64xf32>
    tpu.vector_store %arg22[%c112_402, %c0_403], %324 {strides = array<i32>} : memref<128x64xf32, #tpu.memory_space<vmem>>, vector<2x64xf32>,
    %c0_404 = arith.constant 0 : index
    %c3648_405 = arith.constant 3648 : index
    %326 = vector.load %arg21[%c0_404, %c3648_405] : memref<2x4096xf32, #tpu.memory_space<vmem>>, vector<2x64xf32>
    %c114_406 = arith.constant 114 : index
    %c0_407 = arith.constant 0 : index
    %327 = vector.load %arg22[%c114_406, %c0_407] : memref<128x64xf32, #tpu.memory_space<vmem>>, vector<2x64xf32>
    tpu.vector_store %arg22[%c114_406, %c0_407], %326 {strides = array<i32>} : memref<128x64xf32, #tpu.memory_space<vmem>>, vector<2x64xf32>,
    %c0_408 = arith.constant 0 : index
    %c3712_409 = arith.constant 3712 : index
    %328 = vector.load %arg21[%c0_408, %c3712_409] : memref<2x4096xf32, #tpu.memory_space<vmem>>, vector<2x64xf32>
    %c116_410 = arith.constant 116 : index
    %c0_411 = arith.constant 0 : index
    %329 = vector.load %arg22[%c116_410, %c0_411] : memref<128x64xf32, #tpu.memory_space<vmem>>, vector<2x64xf32>
    tpu.vector_store %arg22[%c116_410, %c0_411], %328 {strides = array<i32>} : memref<128x64xf32, #tpu.memory_space<vmem>>, vector<2x64xf32>,
    %c0_412 = arith.constant 0 : index
    %c3776_413 = arith.constant 3776 : index
    %330 = vector.load %arg21[%c0_412, %c3776_413] : memref<2x4096xf32, #tpu.memory_space<vmem>>, vector<2x64xf32>
    %c118_414 = arith.constant 118 : index
    %c0_415 = arith.constant 0 : index
    %331 = vector.load %arg22[%c118_414, %c0_415] : memref<128x64xf32, #tpu.memory_space<vmem>>, vector<2x64xf32>
    tpu.vector_store %arg22[%c118_414, %c0_415], %330 {strides = array<i32>} : memref<128x64xf32, #tpu.memory_space<vmem>>, vector<2x64xf32>,
    %c0_416 = arith.constant 0 : index
    %c3840_417 = arith.constant 3840 : index
    %332 = vector.load %arg21[%c0_416, %c3840_417] : memref<2x4096xf32, #tpu.memory_space<vmem>>, vector<2x64xf32>
    %c120_418 = arith.constant 120 : index
    %c0_419 = arith.constant 0 : index
    %333 = vector.load %arg22[%c120_418, %c0_419] : memref<128x64xf32, #tpu.memory_space<vmem>>, vector<2x64xf32>
    tpu.vector_store %arg22[%c120_418, %c0_419], %332 {strides = array<i32>} : memref<128x64xf32, #tpu.memory_space<vmem>>, vector<2x64xf32>,
    %c0_420 = arith.constant 0 : index
    %c3904_421 = arith.constant 3904 : index
    %334 = vector.load %arg21[%c0_420, %c3904_421] : memref<2x4096xf32, #tpu.memory_space<vmem>>, vector<2x64xf32>
    %c122_422 = arith.constant 122 : index
    %c0_423 = arith.constant 0 : index
    %335 = vector.load %arg22[%c122_422, %c0_423] : memref<128x64xf32, #tpu.memory_space<vmem>>, vector<2x64xf32>
    tpu.vector_store %arg22[%c122_422, %c0_423], %334 {strides = array<i32>} : memref<128x64xf32, #tpu.memory_space<vmem>>, vector<2x64xf32>,
    %c0_424 = arith.constant 0 : index
    %c3968_425 = arith.constant 3968 : index
    %336 = vector.load %arg21[%c0_424, %c3968_425] : memref<2x4096xf32, #tpu.memory_space<vmem>>, vector<2x64xf32>
    %c124_426 = arith.constant 124 : index
    %c0_427 = arith.constant 0 : index
    %337 = vector.load %arg22[%c124_426, %c0_427] : memref<128x64xf32, #tpu.memory_space<vmem>>, vector<2x64xf32>
    tpu.vector_store %arg22[%c124_426, %c0_427], %336 {strides = array<i32>} : memref<128x64xf32, #tpu.memory_space<vmem>>, vector<2x64xf32>,
    %c0_428 = arith.constant 0 : index
    %c4032_429 = arith.constant 4032 : index
    %338 = vector.load %arg21[%c0_428, %c4032_429] : memref<2x4096xf32, #tpu.memory_space<vmem>>, vector<2x64xf32>
    %c126_430 = arith.constant 126 : index
    %c0_431 = arith.constant 0 : index
    %339 = vector.load %arg22[%c126_430, %c0_431] : memref<128x64xf32, #tpu.memory_space<vmem>>, vector<2x64xf32>
    tpu.vector_store %arg22[%c126_430, %c0_431], %338 {strides = array<i32>} : memref<128x64xf32, #tpu.memory_space<vmem>>, vector<2x64xf32>,
    %c0_432 = arith.constant 0 : index
    %c0_433 = arith.constant 0 : index
    %340 = vector.load %arg22[%c0_432, %c0_433] : memref<128x64xf32, #tpu.memory_space<vmem>>, vector<128x64xf32>
    %341 = arith.truncf %340 : vector<128x64xf32> to vector<128x64xbf16>
    %c1_i32_434 = arith.constant 1 : i32
    %342 = tpu.memref_slice %arg19[%c1_i32_434] : memref<3x!tpu.dma_semaphore, #tpu.memory_space<semaphore_mem>> -> memref<1x!tpu.dma_semaphore, #tpu.memory_space<semaphore_mem>>
    %343 = tpu.memref_squeeze %342 : memref<1x!tpu.dma_semaphore, #tpu.memory_space<semaphore_mem>> -> memref<!tpu.dma_semaphore, #tpu.memory_space<semaphore_mem>>
    tpu.wait_dma2 semaphore(%343 : memref<!tpu.dma_semaphore, #tpu.memory_space<semaphore_mem>>) src(%arg12 : memref<9x64x256xbf16, #tpu.memory_space<any>>) dst(%arg17 : memref<9x64x256xbf16, #tpu.memory_space<vmem>>)
    %c2_i32_435 = arith.constant 2 : i32
    %344 = tpu.memref_slice %arg19[%c2_i32_435] : memref<3x!tpu.dma_semaphore, #tpu.memory_space<semaphore_mem>> -> memref<1x!tpu.dma_semaphore, #tpu.memory_space<semaphore_mem>>
    %345 = tpu.memref_squeeze %344 : memref<1x!tpu.dma_semaphore, #tpu.memory_space<semaphore_mem>> -> memref<!tpu.dma_semaphore, #tpu.memory_space<semaphore_mem>>
    tpu.wait_dma2 semaphore(%345 : memref<!tpu.dma_semaphore, #tpu.memory_space<semaphore_mem>>) src(%arg11 : memref<8x1152xbf16, #tpu.memory_space<any>>) dst(%arg18 : memref<8x1152xbf16, #tpu.memory_space<vmem>>)
    %c0_436 = arith.constant 0 : index
    %c0_437 = arith.constant 0 : index
    %c0_438 = arith.constant 0 : index
    %346 = vector.load %arg17[%c0_436, %c0_437, %c0_438] : memref<9x64x256xbf16, #tpu.memory_space<vmem>>, vector<1x64x256xbf16>
    %347 = vector.shape_cast %346 : vector<1x64x256xbf16> to vector<64x256xbf16>
    %cst_439 = arith.constant dense<0.000000e+00> : vector<128x256xf32>
    %348 = tpu.matmul %341, %347, %cst_439 {dimension_numbers = #tpu.dot_dimension_numbers<[1], [0], [0], [1], [0, 0, 1, 1], [], []>} : vector<128x64xbf16>, vector<64x256xbf16>, vector<128x256xf32> -> vector<128x256xf32>
    %c0_440 = arith.constant 0 : index
    %c0_441 = arith.constant 0 : index
    %349 = vector.load %arg23[%c0_440, %c0_441] : memref<1152x256xf32, #tpu.memory_space<vmem>>, vector<128x256xf32>
    tpu.vector_store %arg23[%c0_440, %c0_441], %348 {strides = array<i32>} : memref<1152x256xf32, #tpu.memory_space<vmem>>, vector<128x256xf32>,
    %c1 = arith.constant 1 : index
    %c0_442 = arith.constant 0 : index
    %c0_443 = arith.constant 0 : index
    %350 = vector.load %arg17[%c1, %c0_442, %c0_443] : memref<9x64x256xbf16, #tpu.memory_space<vmem>>, vector<1x64x256xbf16>
    %351 = vector.shape_cast %350 : vector<1x64x256xbf16> to vector<64x256xbf16>
    %cst_444 = arith.constant dense<0.000000e+00> : vector<128x256xf32>
    %352 = tpu.matmul %341, %351, %cst_444 {dimension_numbers = #tpu.dot_dimension_numbers<[1], [0], [0], [1], [0, 0, 1, 1], [], []>} : vector<128x64xbf16>, vector<64x256xbf16>, vector<128x256xf32> -> vector<128x256xf32>
    %c128_445 = arith.constant 128 : index
    %c0_446 = arith.constant 0 : index
    %353 = vector.load %arg23[%c128_445, %c0_446] : memref<1152x256xf32, #tpu.memory_space<vmem>>, vector<128x256xf32>
    tpu.vector_store %arg23[%c128_445, %c0_446], %352 {strides = array<i32>} : memref<1152x256xf32, #tpu.memory_space<vmem>>, vector<128x256xf32>,
    %c2_447 = arith.constant 2 : index
    %c0_448 = arith.constant 0 : index
    %c0_449 = arith.constant 0 : index
    %354 = vector.load %arg17[%c2_447, %c0_448, %c0_449] : memref<9x64x256xbf16, #tpu.memory_space<vmem>>, vector<1x64x256xbf16>
    %355 = vector.shape_cast %354 : vector<1x64x256xbf16> to vector<64x256xbf16>
    %cst_450 = arith.constant dense<0.000000e+00> : vector<128x256xf32>
    %356 = tpu.matmul %341, %355, %cst_450 {dimension_numbers = #tpu.dot_dimension_numbers<[1], [0], [0], [1], [0, 0, 1, 1], [], []>} : vector<128x64xbf16>, vector<64x256xbf16>, vector<128x256xf32> -> vector<128x256xf32>
    %c256_451 = arith.constant 256 : index
    %c0_452 = arith.constant 0 : index
    %357 = vector.load %arg23[%c256_451, %c0_452] : memref<1152x256xf32, #tpu.memory_space<vmem>>, vector<128x256xf32>
    tpu.vector_store %arg23[%c256_451, %c0_452], %356 {strides = array<i32>} : memref<1152x256xf32, #tpu.memory_space<vmem>>, vector<128x256xf32>,
    %c3 = arith.constant 3 : index
    %c0_453 = arith.constant 0 : index
    %c0_454 = arith.constant 0 : index
    %358 = vector.load %arg17[%c3, %c0_453, %c0_454] : memref<9x64x256xbf16, #tpu.memory_space<vmem>>, vector<1x64x256xbf16>
    %359 = vector.shape_cast %358 : vector<1x64x256xbf16> to vector<64x256xbf16>
    %cst_455 = arith.constant dense<0.000000e+00> : vector<128x256xf32>
    %360 = tpu.matmul %341, %359, %cst_455 {dimension_numbers = #tpu.dot_dimension_numbers<[1], [0], [0], [1], [0, 0, 1, 1], [], []>} : vector<128x64xbf16>, vector<64x256xbf16>, vector<128x256xf32> -> vector<128x256xf32>
    %c384_456 = arith.constant 384 : index
    %c0_457 = arith.constant 0 : index
    %361 = vector.load %arg23[%c384_456, %c0_457] : memref<1152x256xf32, #tpu.memory_space<vmem>>, vector<128x256xf32>
    tpu.vector_store %arg23[%c384_456, %c0_457], %360 {strides = array<i32>} : memref<1152x256xf32, #tpu.memory_space<vmem>>, vector<128x256xf32>,
    %c4_458 = arith.constant 4 : index
    %c0_459 = arith.constant 0 : index
    %c0_460 = arith.constant 0 : index
    %362 = vector.load %arg17[%c4_458, %c0_459, %c0_460] : memref<9x64x256xbf16, #tpu.memory_space<vmem>>, vector<1x64x256xbf16>
    %363 = vector.shape_cast %362 : vector<1x64x256xbf16> to vector<64x256xbf16>
    %cst_461 = arith.constant dense<0.000000e+00> : vector<128x256xf32>
    %364 = tpu.matmul %341, %363, %cst_461 {dimension_numbers = #tpu.dot_dimension_numbers<[1], [0], [0], [1], [0, 0, 1, 1], [], []>} : vector<128x64xbf16>, vector<64x256xbf16>, vector<128x256xf32> -> vector<128x256xf32>
    %c512_462 = arith.constant 512 : index
    %c0_463 = arith.constant 0 : index
    %365 = vector.load %arg23[%c512_462, %c0_463] : memref<1152x256xf32, #tpu.memory_space<vmem>>, vector<128x256xf32>
    tpu.vector_store %arg23[%c512_462, %c0_463], %364 {strides = array<i32>} : memref<1152x256xf32, #tpu.memory_space<vmem>>, vector<128x256xf32>,
    %c5 = arith.constant 5 : index
    %c0_464 = arith.constant 0 : index
    %c0_465 = arith.constant 0 : index
    %366 = vector.load %arg17[%c5, %c0_464, %c0_465] : memref<9x64x256xbf16, #tpu.memory_space<vmem>>, vector<1x64x256xbf16>
    %367 = vector.shape_cast %366 : vector<1x64x256xbf16> to vector<64x256xbf16>
    %cst_466 = arith.constant dense<0.000000e+00> : vector<128x256xf32>
    %368 = tpu.matmul %341, %367, %cst_466 {dimension_numbers = #tpu.dot_dimension_numbers<[1], [0], [0], [1], [0, 0, 1, 1], [], []>} : vector<128x64xbf16>, vector<64x256xbf16>, vector<128x256xf32> -> vector<128x256xf32>
    %c640_467 = arith.constant 640 : index
    %c0_468 = arith.constant 0 : index
    %369 = vector.load %arg23[%c640_467, %c0_468] : memref<1152x256xf32, #tpu.memory_space<vmem>>, vector<128x256xf32>
    tpu.vector_store %arg23[%c640_467, %c0_468], %368 {strides = array<i32>} : memref<1152x256xf32, #tpu.memory_space<vmem>>, vector<128x256xf32>,
    %c6_469 = arith.constant 6 : index
    %c0_470 = arith.constant 0 : index
    %c0_471 = arith.constant 0 : index
    %370 = vector.load %arg17[%c6_469, %c0_470, %c0_471] : memref<9x64x256xbf16, #tpu.memory_space<vmem>>, vector<1x64x256xbf16>
    %371 = vector.shape_cast %370 : vector<1x64x256xbf16> to vector<64x256xbf16>
    %cst_472 = arith.constant dense<0.000000e+00> : vector<128x256xf32>
    %372 = tpu.matmul %341, %371, %cst_472 {dimension_numbers = #tpu.dot_dimension_numbers<[1], [0], [0], [1], [0, 0, 1, 1], [], []>} : vector<128x64xbf16>, vector<64x256xbf16>, vector<128x256xf32> -> vector<128x256xf32>
    %c768_473 = arith.constant 768 : index
    %c0_474 = arith.constant 0 : index
    %373 = vector.load %arg23[%c768_473, %c0_474] : memref<1152x256xf32, #tpu.memory_space<vmem>>, vector<128x256xf32>
    tpu.vector_store %arg23[%c768_473, %c0_474], %372 {strides = array<i32>} : memref<1152x256xf32, #tpu.memory_space<vmem>>, vector<128x256xf32>,
    %c7 = arith.constant 7 : index
    %c0_475 = arith.constant 0 : index
    %c0_476 = arith.constant 0 : index
    %374 = vector.load %arg17[%c7, %c0_475, %c0_476] : memref<9x64x256xbf16, #tpu.memory_space<vmem>>, vector<1x64x256xbf16>
    %375 = vector.shape_cast %374 : vector<1x64x256xbf16> to vector<64x256xbf16>
    %cst_477 = arith.constant dense<0.000000e+00> : vector<128x256xf32>
    %376 = tpu.matmul %341, %375, %cst_477 {dimension_numbers = #tpu.dot_dimension_numbers<[1], [0], [0], [1], [0, 0, 1, 1], [], []>} : vector<128x64xbf16>, vector<64x256xbf16>, vector<128x256xf32> -> vector<128x256xf32>
    %c896_478 = arith.constant 896 : index
    %c0_479 = arith.constant 0 : index
    %377 = vector.load %arg23[%c896_478, %c0_479] : memref<1152x256xf32, #tpu.memory_space<vmem>>, vector<128x256xf32>
    tpu.vector_store %arg23[%c896_478, %c0_479], %376 {strides = array<i32>} : memref<1152x256xf32, #tpu.memory_space<vmem>>, vector<128x256xf32>,
    %c8_480 = arith.constant 8 : index
    %c0_481 = arith.constant 0 : index
    %c0_482 = arith.constant 0 : index
    %378 = vector.load %arg17[%c8_480, %c0_481, %c0_482] : memref<9x64x256xbf16, #tpu.memory_space<vmem>>, vector<1x64x256xbf16>
    %379 = vector.shape_cast %378 : vector<1x64x256xbf16> to vector<64x256xbf16>
    %cst_483 = arith.constant dense<0.000000e+00> : vector<128x256xf32>
    %380 = tpu.matmul %341, %379, %cst_483 {dimension_numbers = #tpu.dot_dimension_numbers<[1], [0], [0], [1], [0, 0, 1, 1], [], []>} : vector<128x64xbf16>, vector<64x256xbf16>, vector<128x256xf32> -> vector<128x256xf32>
    %c1024_484 = arith.constant 1024 : index
    %c0_485 = arith.constant 0 : index
    %381 = vector.load %arg23[%c1024_484, %c0_485] : memref<1152x256xf32, #tpu.memory_space<vmem>>, vector<128x256xf32>
    tpu.vector_store %arg23[%c1024_484, %c0_485], %380 {strides = array<i32>} : memref<1152x256xf32, #tpu.memory_space<vmem>>, vector<128x256xf32>,
    %c0_486 = arith.constant 0 : index
    %c0_487 = arith.constant 0 : index
    %382 = vector.load %arg18[%c0_486, %c0_487] : memref<8x1152xbf16, #tpu.memory_space<vmem>>, vector<8x1152xbf16>
    %383 = arith.extf %382 : vector<8x1152xbf16> to vector<8x1152xf32>
    %c0_488 = arith.constant 0 : index
    %c0_489 = arith.constant 0 : index
    %384 = vector.load %arg23[%c0_488, %c0_489] : memref<1152x256xf32, #tpu.memory_space<vmem>>, vector<1152x256xf32>
    %cst_490 = arith.constant dense<0.000000e+00> : vector<8x256xf32>
    %385 = tpu.matmul %383, %384, %cst_490 {dimension_numbers = #tpu.dot_dimension_numbers<[1], [0], [0], [1], [0, 0, 1, 1], [], []>} : vector<8x1152xf32>, vector<1152x256xf32>, vector<8x256xf32> -> vector<8x256xf32>
    %c0_491 = arith.constant 0 : index
    %c0_492 = arith.constant 0 : index
    %386 = vector.load %arg13[%c0_491, %c0_492] : memref<8x1xf32, #tpu.memory_space<vmem>>, vector<8x1xf32>
    %387 = vector.broadcast %386 : vector<8x1xf32> to vector<8x256xf32>
    %388 = arith.addf %385, %387 : vector<8x256xf32>
    %c0_493 = arith.constant 0 : index
    %c0_494 = arith.constant 0 : index
    %389 = vector.load %arg14[%c0_493, %c0_494] : memref<8x256xf32, #tpu.memory_space<vmem>>, vector<8x256xf32>
    tpu.vector_store %arg14[%c0_493, %c0_494], %388 {strides = array<i32>} : memref<8x256xf32, #tpu.memory_space<vmem>>, vector<8x256xf32>,
    return
  }
}

</mosaic_0001>

<bundles_post_ra>
// kernel: discriminator_forward.1
= control target key start
LH: loop header
LB: loop body
LE: loop exit
PB: predicated region body
PF: predicated region fallthrough
CT: control target
= control target key end

     0   :  { %21 = vsyncpa [#allocation11], 0  ;;  %s15343_s0 = inlined_call_operand.vmem [shape: f32[128,36], index: 0, kind: input, shape index: {}]   ;;  %s15344_s1 = inlined_call_operand.vmem [shape: f32[36,64], index: 1, kind: input, shape index: {}]   ;;  %s15345_s2 = inlined_call_operand.vmem [shape: f32[1,64], index: 2, kind: input, shape index: {}]   ;;  %s15346_s3 = inlined_call_operand.vmem [shape: bf16[4096,32], index: 3, kind: input, shape index: {}]   ;;  %s15347_s4 = inlined_call_operand.vmem [shape: f32[1,32], index: 4, kind: input, shape index: {}]   ;;  %s15348_s5 = inlined_call_operand.vmem [shape: f32[1,32], index: 5, kind: input, shape index: {}]   ;;  %s15349_s6 = inlined_call_operand.vmem [shape: f32[1,32], index: 6, kind: input, shape index: {}]   ;;  %s15350_s7 = inlined_call_operand.vmem [shape: bf16[32,4096], index: 7, kind: input, shape index: {}]   ;;  %s15351_s8 = inlined_call_operand.vmem [shape: f32[1,4096], index: 8, kind: input, shape index: {}]   ;;  %s15352_s9 = inlined_call_operand.vmem [shape: f32[1,4096], index: 9, kind: input, shape index: {}]   ;;  %s15353_s10 = inlined_call_operand.vmem [shape: f32[1,4096], index: 10, kind: input, shape index: {}]   ;;  %s15354_s11 = inlined_call_operand.vmem [shape: bf16[8,1152], index: 11, kind: input, shape index: {}]   ;;  %s15355_s12 = inlined_call_operand.vmem [shape: bf16[9,64,256], index: 12, kind: input, shape index: {}]   ;;  %s15356_s13 = inlined_call_operand.vmem [shape: f32[8,1], index: 13, kind: input, shape index: {}]   ;;  %s15357_s14 = inlined_call_operand.vmem [shape: f32[8,256], index: 14, kind: output, shape index: {0}]   ;;  %s15358_s15 = inlined_call_operand.hbm [shape: f32[2,32], index: 15, kind: output, shape index: {1}]  }
   0x1   :  { %v62_v0 = vld [vmem:[%s15350_s7] sm:$0xf]  ;;  %v66_v2 = vld [vmem:[%s15350_s7 + $0x4] sm:$0xf]  ;;  %v70_v4 = vld [vmem:[%s15350_s7 + $0x8] sm:$0xf] }
   0x2   :  { %v64_v1 = vld [vmem:[%s15350_s7 + $0x80] sm:$0xf]  ;;  %63 = vst [vmem:[#allocation2] sm:$0xf] %v62_v0  ;;  %v68_v3 = vld [vmem:[%s15350_s7 + $0x84] sm:$0xf] }
   0x3   :  { %65 = vst [vmem:[#allocation2 + $0x4] sm:$0xf] %v64_v1  ;;  %67 = vst [vmem:[#allocation2 + $0x8] sm:$0xf] %v66_v2  ;;  %v72_v5 = vld [vmem:[%s15350_s7 + $0x88] sm:$0xf] }
   0x4   :  { %69 = vst [vmem:[#allocation2 + $0xc] sm:$0xf] %v68_v3  ;;  %71 = vst [vmem:[#allocation2 + $0x10] sm:$0xf] %v70_v4  ;;  %v74_v6 = vld [vmem:[%s15350_s7 + $0xc] sm:$0xf] }
   0x5   :  { %v76_v7 = vld [vmem:[%s15350_s7 + $0x8c] sm:$0xf]  ;;  %73 = vst [vmem:[#allocation2 + $0x14] sm:$0xf] %v72_v5  ;;  %75 = vst [vmem:[#allocation2 + $0x18] sm:$0xf] %v74_v6 }
   0x6   :  { %77 = vst [vmem:[#allocation2 + $0x1c] sm:$0xf] %v76_v7  ;;  %v78_v8 = vld [vmem:[%s15350_s7 + $0x10] sm:$0xf]  ;;  %v82_v10 = vld [vmem:[%s15350_s7 + $0x14] sm:$0xf] }
   0x7   :  { %v80_v9 = vld [vmem:[%s15350_s7 + $0x90] sm:$0xf]  ;;  %79 = vst [vmem:[#allocation2 + $0x20] sm:$0xf] %v78_v8  ;;  %83 = vst [vmem:[#allocation2 + $0x28] sm:$0xf] %v82_v10 }
   0x8   :  { %81 = vst [vmem:[#allocation2 + $0x24] sm:$0xf] %v80_v9  ;;  %v84_v11 = vld [vmem:[%s15350_s7 + $0x94] sm:$0xf]  ;;  %v86_v12 = vld [vmem:[%s15350_s7 + $0x18] sm:$0xf] }
   0x9   :  { %v88_v13 = vld [vmem:[%s15350_s7 + $0x98] sm:$0xf]  ;;  %85 = vst [vmem:[#allocation2 + $0x2c] sm:$0xf] %v84_v11  ;;  %87 = vst [vmem:[#allocation2 + $0x30] sm:$0xf] %v86_v12 }
   0xa   :  { %89 = vst [vmem:[#allocation2 + $0x34] sm:$0xf] %v88_v13  ;;  %v90_v14 = vld [vmem:[%s15350_s7 + $0x1c] sm:$0xf]  ;;  %v94_v16 = vld [vmem:[%s15350_s7 + $0x20] sm:$0xf] }
   0xb   :  { %v92_v15 = vld [vmem:[%s15350_s7 + $0x9c] sm:$0xf]  ;;  %91 = vst [vmem:[#allocation2 + $0x38] sm:$0xf] %v90_v14  ;;  %95 = vst [vmem:[#allocation2 + $0x40] sm:$0xf] %v94_v16 }
   0xc   :  { %93 = vst [vmem:[#allocation2 + $0x3c] sm:$0xf] %v92_v15  ;;  %v96_v17 = vld [vmem:[%s15350_s7 + $0xa0] sm:$0xf]  ;;  %v98_v18 = vld [vmem:[%s15350_s7 + $0x24] sm:$0xf] }
   0xd   :  { %v100_v19 = vld [vmem:[%s15350_s7 + $0xa4] sm:$0xf]  ;;  %97 = vst [vmem:[#allocation2 + $0x44] sm:$0xf] %v96_v17  ;;  %99 = vst [vmem:[#allocation2 + $0x48] sm:$0xf] %v98_v18 }
   0xe   :  { %101 = vst [vmem:[#allocation2 + $0x4c] sm:$0xf] %v100_v19  ;;  %v102_v20 = vld [vmem:[%s15350_s7 + $0x28] sm:$0xf]  ;;  %v106_v22 = vld [vmem:[%s15350_s7 + $0x2c] sm:$0xf] }
   0xf   :  { %v104_v21 = vld [vmem:[%s15350_s7 + $0xa8] sm:$0xf]  ;;  %103 = vst [vmem:[#allocation2 + $0x50] sm:$0xf] %v102_v20  ;;  %107 = vst [vmem:[#allocation2 + $0x58] sm:$0xf] %v106_v22 }
  0x10   :  { %105 = vst [vmem:[#allocation2 + $0x54] sm:$0xf] %v104_v21  ;;  %v108_v23 = vld [vmem:[%s15350_s7 + $0xac] sm:$0xf]  ;;  %v110_v24 = vld [vmem:[%s15350_s7 + $0x30] sm:$0xf] }
  0x11   :  { %v112_v25 = vld [vmem:[%s15350_s7 + $0xb0] sm:$0xf]  ;;  %109 = vst [vmem:[#allocation2 + $0x5c] sm:$0xf] %v108_v23  ;;  %111 = vst [vmem:[#allocation2 + $0x60] sm:$0xf] %v110_v24 }
  0x12   :  { %113 = vst [vmem:[#allocation2 + $0x64] sm:$0xf] %v112_v25  ;;  %v114_v26 = vld [vmem:[%s15350_s7 + $0x34] sm:$0xf]  ;;  %v118_v28 = vld [vmem:[%s15350_s7 + $0x38] sm:$0xf] }
  0x13   :  { %v116_v27 = vld [vmem:[%s15350_s7 + $0xb4] sm:$0xf]  ;;  %115 = vst [vmem:[#allocation2 + $0x68] sm:$0xf] %v114_v26  ;;  %119 = vst [vmem:[#allocation2 + $0x70] sm:$0xf] %v118_v28 }
  0x14   :  { %117 = vst [vmem:[#allocation2 + $0x6c] sm:$0xf] %v116_v27  ;;  %v120_v29 = vld [vmem:[%s15350_s7 + $0xb8] sm:$0xf]  ;;  %v122_v30 = vld [vmem:[%s15350_s7 + $0x3c] sm:$0xf] }
  0x15   :  { %v124_v31 = vld [vmem:[%s15350_s7 + $0xbc] sm:$0xf]  ;;  %121 = vst [vmem:[#allocation2 + $0x74] sm:$0xf] %v120_v29  ;;  %123 = vst [vmem:[#allocation2 + $0x78] sm:$0xf] %v122_v30 }
  0x16   :  { %125 = vst [vmem:[#allocation2 + $0x7c] sm:$0xf] %v124_v31  ;;  %v126_v32 = vld [vmem:[%s15350_s7 + $0x40] sm:$0xf]  ;;  %v130_v34 = vld [vmem:[%s15350_s7 + $0x44] sm:$0xf] }
  0x17   :  { %v128_v33 = vld [vmem:[%s15350_s7 + $0xc0] sm:$0xf]  ;;  %127 = vst [vmem:[#allocation2 + $0x80] sm:$0xf] %v126_v32  ;;  %131 = vst [vmem:[#allocation2 + $0x88] sm:$0xf] %v130_v34 }
  0x18   :  { %129 = vst [vmem:[#allocation2 + $0x84] sm:$0xf] %v128_v33  ;;  %v132_v35 = vld [vmem:[%s15350_s7 + $0xc4] sm:$0xf]  ;;  %v134_v36 = vld [vmem:[%s15350_s7 + $0x48] sm:$0xf] }
  0x19   :  { %v136_v37 = vld [vmem:[%s15350_s7 + $0xc8] sm:$0xf]  ;;  %133 = vst [vmem:[#allocation2 + $0x8c] sm:$0xf] %v132_v35  ;;  %135 = vst [vmem:[#allocation2 + $0x90] sm:$0xf] %v134_v36 }
  0x1a   :  { %137 = vst [vmem:[#allocation2 + $0x94] sm:$0xf] %v136_v37  ;;  %v138_v38 = vld [vmem:[%s15350_s7 + $0x4c] sm:$0xf]  ;;  %v142_v40 = vld [vmem:[%s15350_s7 + $0x50] sm:$0xf] }
  0x1b   :  { %v140_v39 = vld [vmem:[%s15350_s7 + $0xcc] sm:$0xf]  ;;  %139 = vst [vmem:[#allocation2 + $0x98] sm:$0xf] %v138_v38  ;;  %143 = vst [vmem:[#allocation2 + $0xa0] sm:$0xf] %v142_v40 }
  0x1c   :  { %141 = vst [vmem:[#allocation2 + $0x9c] sm:$0xf] %v140_v39  ;;  %v144_v41 = vld [vmem:[%s15350_s7 + $0xd0] sm:$0xf]  ;;  %v146_v42 = vld [vmem:[%s15350_s7 + $0x54] sm:$0xf] }
  0x1d   :  { %v148_v43 = vld [vmem:[%s15350_s7 + $0xd4] sm:$0xf]  ;;  %145 = vst [vmem:[#allocation2 + $0xa4] sm:$0xf] %v144_v41  ;;  %147 = vst [vmem:[#allocation2 + $0xa8] sm:$0xf] %v146_v42 }
  0x1e   :  { %149 = vst [vmem:[#allocation2 + $0xac] sm:$0xf] %v148_v43  ;;  %v150_v44 = vld [vmem:[%s15350_s7 + $0x58] sm:$0xf]  ;;  %v154_v46 = vld [vmem:[%s15350_s7 + $0x5c] sm:$0xf] }
  0x1f   :  { %v152_v45 = vld [vmem:[%s15350_s7 + $0xd8] sm:$0xf]  ;;  %151 = vst [vmem:[#allocation2 + $0xb0] sm:$0xf] %v150_v44  ;;  %155 = vst [vmem:[#allocation2 + $0xb8] sm:$0xf] %v154_v46 }
  0x20   :  { %153 = vst [vmem:[#allocation2 + $0xb4] sm:$0xf] %v152_v45  ;;  %v156_v47 = vld [vmem:[%s15350_s7 + $0xdc] sm:$0xf]  ;;  %v158_v48 = vld [vmem:[%s15350_s7 + $0x60] sm:$0xf] }
  0x21   :  { %v160_v49 = vld [vmem:[%s15350_s7 + $0xe0] sm:$0xf]  ;;  %157 = vst [vmem:[#allocation2 + $0xbc] sm:$0xf] %v156_v47  ;;  %159 = vst [vmem:[#allocation2 + $0xc0] sm:$0xf] %v158_v48 }
  0x22   :  { %161 = vst [vmem:[#allocation2 + $0xc4] sm:$0xf] %v160_v49  ;;  %v162_v50 = vld [vmem:[%s15350_s7 + $0x64] sm:$0xf]  ;;  %v166_v52 = vld [vmem:[%s15350_s7 + $0x68] sm:$0xf] }
  0x23   :  { %v164_v51 = vld [vmem:[%s15350_s7 + $0xe4] sm:$0xf]  ;;  %163 = vst [vmem:[#allocation2 + $0xc8] sm:$0xf] %v162_v50  ;;  %167 = vst [vmem:[#allocation2 + $0xd0] sm:$0xf] %v166_v52 }
  0x24   :  { %165 = vst [vmem:[#allocation2 + $0xcc] sm:$0xf] %v164_v51  ;;  %v168_v53 = vld [vmem:[%s15350_s7 + $0xe8] sm:$0xf]  ;;  %v170_v54 = vld [vmem:[%s15350_s7 + $0x6c] sm:$0xf] }
  0x25   :  { %v172_v55 = vld [vmem:[%s15350_s7 + $0xec] sm:$0xf]  ;;  %169 = vst [vmem:[#allocation2 + $0xd4] sm:$0xf] %v168_v53  ;;  %171 = vst [vmem:[#allocation2 + $0xd8] sm:$0xf] %v170_v54 }
  0x26   :  { %173 = vst [vmem:[#allocation2 + $0xdc] sm:$0xf] %v172_v55  ;;  %v174_v56 = vld [vmem:[%s15350_s7 + $0x70] sm:$0xf]  ;;  %v178_v58 = vld [vmem:[%s15350_s7 + $0x74] sm:$0xf] }
  0x27   :  { %v176_v57 = vld [vmem:[%s15350_s7 + $0xf0] sm:$0xf]  ;;  %175 = vst [vmem:[#allocation2 + $0xe0] sm:$0xf] %v174_v56  ;;  %179 = vst [vmem:[#allocation2 + $0xe8] sm:$0xf] %v178_v58 }
  0x28   :  { %177 = vst [vmem:[#allocation2 + $0xe4] sm:$0xf] %v176_v57  ;;  %v180_v59 = vld [vmem:[%s15350_s7 + $0xf4] sm:$0xf]  ;;  %v182_v60 = vld [vmem:[%s15350_s7 + $0x78] sm:$0xf] }
  0x29   :  { %v184_v61 = vld [vmem:[%s15350_s7 + $0xf8] sm:$0xf]  ;;  %181 = vst [vmem:[#allocation2 + $0xec] sm:$0xf] %v180_v59  ;;  %183 = vst [vmem:[#allocation2 + $0xf0] sm:$0xf] %v182_v60 }
  0x2a   :  { %185 = vst [vmem:[#allocation2 + $0xf4] sm:$0xf] %v184_v61  ;;  %v186_v62 = vld [vmem:[%s15350_s7 + $0x7c] sm:$0xf]  ;;  %v192_v0 = vld [vmem:[%s15350_s7 + $0x180] sm:$0xf] }
  0x2b   :  { %v188_v63 = vld [vmem:[%s15350_s7 + $0xfc] sm:$0xff]   ;;  %187 = vst [vmem:[#allocation2 + $0xf8] sm:$0xf] %v186_v62  ;;  %193 = vst [vmem:[#allocation2 + $0x104] sm:$0xf] %v192_v0 }
  0x2c   :  { %189 = vst [vmem:[#allocation2 + $0xfc] sm:$0xff] %v188_v63   ;;  %v194_v1 = vld [vmem:[%s15350_s7 + $0x104] sm:$0xf]  ;;  %v198_v3 = vld [vmem:[%s15350_s7 + $0x108] sm:$0xf] }
  0x2d   :  { %v196_v2 = vld [vmem:[%s15350_s7 + $0x184] sm:$0xf]  ;;  %195 = vst [vmem:[#allocation2 + $0x108] sm:$0xf] %v194_v1  ;;  %199 = vst [vmem:[#allocation2 + $0x110] sm:$0xf] %v198_v3 }
  0x2e   :  { %197 = vst [vmem:[#allocation2 + $0x10c] sm:$0xf] %v196_v2  ;;  %v200_v4 = vld [vmem:[%s15350_s7 + $0x188] sm:$0xf]  ;;  %v202_v5 = vld [vmem:[%s15350_s7 + $0x10c] sm:$0xf] }
  0x2f   :  { %v204_v6 = vld [vmem:[%s15350_s7 + $0x18c] sm:$0xf]  ;;  %201 = vst [vmem:[#allocation2 + $0x114] sm:$0xf] %v200_v4  ;;  %203 = vst [vmem:[#allocation2 + $0x118] sm:$0xf] %v202_v5 }
  0x30   :  { %205 = vst [vmem:[#allocation2 + $0x11c] sm:$0xf] %v204_v6  ;;  %v206_v7 = vld [vmem:[%s15350_s7 + $0x110] sm:$0xf]  ;;  %v210_v9 = vld [vmem:[%s15350_s7 + $0x114] sm:$0xf] }
  0x31   :  { %v208_v8 = vld [vmem:[%s15350_s7 + $0x190] sm:$0xf]  ;;  %207 = vst [vmem:[#allocation2 + $0x120] sm:$0xf] %v206_v7  ;;  %211 = vst [vmem:[#allocation2 + $0x128] sm:$0xf] %v210_v9 }
  0x32   :  { %209 = vst [vmem:[#allocation2 + $0x124] sm:$0xf] %v208_v8  ;;  %v212_v10 = vld [vmem:[%s15350_s7 + $0x194] sm:$0xf]  ;;  %v214_v11 = vld [vmem:[%s15350_s7 + $0x118] sm:$0xf] }
  0x33   :  { %v216_v12 = vld [vmem:[%s15350_s7 + $0x198] sm:$0xf]  ;;  %213 = vst [vmem:[#allocation2 + $0x12c] sm:$0xf] %v212_v10  ;;  %215 = vst [vmem:[#allocation2 + $0x130] sm:$0xf] %v214_v11 }
  0x34   :  { %217 = vst [vmem:[#allocation2 + $0x134] sm:$0xf] %v216_v12  ;;  %v218_v13 = vld [vmem:[%s15350_s7 + $0x11c] sm:$0xf]  ;;  %v222_v15 = vld [vmem:[%s15350_s7 + $0x120] sm:$0xf] }
  0x35   :  { %v220_v14 = vld [vmem:[%s15350_s7 + $0x19c] sm:$0xf]  ;;  %219 = vst [vmem:[#allocation2 + $0x138] sm:$0xf] %v218_v13  ;;  %223 = vst [vmem:[#allocation2 + $0x140] sm:$0xf] %v222_v15 }
  0x36   :  { %221 = vst [vmem:[#allocation2 + $0x13c] sm:$0xf] %v220_v14  ;;  %v224_v16 = vld [vmem:[%s15350_s7 + $0x1a0] sm:$0xf]  ;;  %v226_v17 = vld [vmem:[%s15350_s7 + $0x124] sm:$0xf] }
  0x37   :  { %v228_v18 = vld [vmem:[%s15350_s7 + $0x1a4] sm:$0xf]  ;;  %225 = vst [vmem:[#allocation2 + $0x144] sm:$0xf] %v224_v16  ;;  %227 = vst [vmem:[#allocation2 + $0x148] sm:$0xf] %v226_v17 }
  0x38   :  { %229 = vst [vmem:[#allocation2 + $0x14c] sm:$0xf] %v228_v18  ;;  %v230_v19 = vld [vmem:[%s15350_s7 + $0x128] sm:$0xf]  ;;  %v234_v21 = vld [vmem:[%s15350_s7 + $0x12c] sm:$0xf] }
  0x39   :  { %v232_v20 = vld [vmem:[%s15350_s7 + $0x1a8] sm:$0xf]  ;;  %231 = vst [vmem:[#allocation2 + $0x150] sm:$0xf] %v230_v19  ;;  %235 = vst [vmem:[#allocation2 + $0x158] sm:$0xf] %v234_v21 }
  0x3a   :  { %233 = vst [vmem:[#allocation2 + $0x154] sm:$0xf] %v232_v20  ;;  %v236_v22 = vld [vmem:[%s15350_s7 + $0x1ac] sm:$0xf]  ;;  %v238_v23 = vld [vmem:[%s15350_s7 + $0x130] sm:$0xf] }
  0x3b   :  { %v240_v24 = vld [vmem:[%s15350_s7 + $0x1b0] sm:$0xf]  ;;  %237 = vst [vmem:[#allocation2 + $0x15c] sm:$0xf] %v236_v22  ;;  %239 = vst [vmem:[#allocation2 + $0x160] sm:$0xf] %v238_v23 }
  0x3c   :  { %241 = vst [vmem:[#allocation2 + $0x164] sm:$0xf] %v240_v24  ;;  %v242_v25 = vld [vmem:[%s15350_s7 + $0x134] sm:$0xf]  ;;  %v246_v27 = vld [vmem:[%s15350_s7 + $0x138] sm:$0xf] }
  0x3d   :  { %v244_v26 = vld [vmem:[%s15350_s7 + $0x1b4] sm:$0xf]  ;;  %243 = vst [vmem:[#allocation2 + $0x168] sm:$0xf] %v242_v25  ;;  %247 = vst [vmem:[#allocation2 + $0x170] sm:$0xf] %v246_v27 }
  0x3e   :  { %245 = vst [vmem:[#allocation2 + $0x16c] sm:$0xf] %v244_v26  ;;  %v248_v28 = vld [vmem:[%s15350_s7 + $0x1b8] sm:$0xf]  ;;  %v250_v29 = vld [vmem:[%s15350_s7 + $0x13c] sm:$0xf] }
  0x3f   :  { %v252_v30 = vld [vmem:[%s15350_s7 + $0x1bc] sm:$0xf]  ;;  %249 = vst [vmem:[#allocation2 + $0x174] sm:$0xf] %v248_v28  ;;  %251 = vst [vmem:[#allocation2 + $0x178] sm:$0xf] %v250_v29 }
  0x40   :  { %253 = vst [vmem:[#allocation2 + $0x17c] sm:$0xf] %v252_v30  ;;  %v254_v31 = vld [vmem:[%s15350_s7 + $0x140] sm:$0xf]  ;;  %v258_v33 = vld [vmem:[%s15350_s7 + $0x144] sm:$0xf] }
  0x41   :  { %v256_v32 = vld [vmem:[%s15350_s7 + $0x1c0] sm:$0xf]  ;;  %255 = vst [vmem:[#allocation2 + $0x180] sm:$0xf] %v254_v31  ;;  %259 = vst [vmem:[#allocation2 + $0x188] sm:$0xf] %v258_v33 }
  0x42   :  { %257 = vst [vmem:[#allocation2 + $0x184] sm:$0xf] %v256_v32  ;;  %v260_v34 = vld [vmem:[%s15350_s7 + $0x1c4] sm:$0xf]  ;;  %v262_v35 = vld [vmem:[%s15350_s7 + $0x148] sm:$0xf] }
  0x43   :  { %v264_v36 = vld [vmem:[%s15350_s7 + $0x1c8] sm:$0xf]  ;;  %261 = vst [vmem:[#allocation2 + $0x18c] sm:$0xf] %v260_v34  ;;  %263 = vst [vmem:[#allocation2 + $0x190] sm:$0xf] %v262_v35 }
  0x44   :  { %265 = vst [vmem:[#allocation2 + $0x194] sm:$0xf] %v264_v36  ;;  %v266_v37 = vld [vmem:[%s15350_s7 + $0x14c] sm:$0xf]  ;;  %v270_v39 = vld [vmem:[%s15350_s7 + $0x150] sm:$0xf] }
  0x45   :  { %v268_v38 = vld [vmem:[%s15350_s7 + $0x1cc] sm:$0xf]  ;;  %267 = vst [vmem:[#allocation2 + $0x198] sm:$0xf] %v266_v37  ;;  %271 = vst [vmem:[#allocation2 + $0x1a0] sm:$0xf] %v270_v39 }
  0x46   :  { %269 = vst [vmem:[#allocation2 + $0x19c] sm:$0xf] %v268_v38  ;;  %v272_v40 = vld [vmem:[%s15350_s7 + $0x1d0] sm:$0xf]  ;;  %v274_v41 = vld [vmem:[%s15350_s7 + $0x154] sm:$0xf] }
  0x47   :  { %v276_v42 = vld [vmem:[%s15350_s7 + $0x1d4] sm:$0xf]  ;;  %273 = vst [vmem:[#allocation2 + $0x1a4] sm:$0xf] %v272_v40  ;;  %275 = vst [vmem:[#allocation2 + $0x1a8] sm:$0xf] %v274_v41 }
  0x48   :  { %277 = vst [vmem:[#allocation2 + $0x1ac] sm:$0xf] %v276_v42  ;;  %v278_v43 = vld [vmem:[%s15350_s7 + $0x158] sm:$0xf]  ;;  %v282_v45 = vld [vmem:[%s15350_s7 + $0x15c] sm:$0xf] }
  0x49   :  { %v280_v44 = vld [vmem:[%s15350_s7 + $0x1d8] sm:$0xf]  ;;  %279 = vst [vmem:[#allocation2 + $0x1b0] sm:$0xf] %v278_v43  ;;  %283 = vst [vmem:[#allocation2 + $0x1b8] sm:$0xf] %v282_v45 }
  0x4a   :  { %281 = vst [vmem:[#allocation2 + $0x1b4] sm:$0xf] %v280_v44  ;;  %v284_v46 = vld [vmem:[%s15350_s7 + $0x1dc] sm:$0xf]  ;;  %v286_v47 = vld [vmem:[%s15350_s7 + $0x160] sm:$0xf] }
  0x4b   :  { %v288_v48 = vld [vmem:[%s15350_s7 + $0x1e0] sm:$0xf]  ;;  %285 = vst [vmem:[#allocation2 + $0x1bc] sm:$0xf] %v284_v46  ;;  %287 = vst [vmem:[#allocation2 + $0x1c0] sm:$0xf] %v286_v47 }
  0x4c   :  { %289 = vst [vmem:[#allocation2 + $0x1c4] sm:$0xf] %v288_v48  ;;  %v290_v49 = vld [vmem:[%s15350_s7 + $0x164] sm:$0xf]  ;;  %v294_v51 = vld [vmem:[%s15350_s7 + $0x168] sm:$0xf] }
  0x4d   :  { %v292_v50 = vld [vmem:[%s15350_s7 + $0x1e4] sm:$0xf]  ;;  %291 = vst [vmem:[#allocation2 + $0x1c8] sm:$0xf] %v290_v49  ;;  %295 = vst [vmem:[#allocation2 + $0x1d0] sm:$0xf] %v294_v51 }
  0x4e   :  { %293 = vst [vmem:[#allocation2 + $0x1cc] sm:$0xf] %v292_v50  ;;  %v296_v52 = vld [vmem:[%s15350_s7 + $0x1e8] sm:$0xf]  ;;  %v298_v53 = vld [vmem:[%s15350_s7 + $0x16c] sm:$0xf] }
  0x4f   :  { %v300_v54 = vld [vmem:[%s15350_s7 + $0x1ec] sm:$0xf]  ;;  %297 = vst [vmem:[#allocation2 + $0x1d4] sm:$0xf] %v296_v52  ;;  %299 = vst [vmem:[#allocation2 + $0x1d8] sm:$0xf] %v298_v53 }
  0x50   :  { %301 = vst [vmem:[#allocation2 + $0x1dc] sm:$0xf] %v300_v54  ;;  %v302_v55 = vld [vmem:[%s15350_s7 + $0x170] sm:$0xf]  ;;  %v306_v57 = vld [vmem:[%s15350_s7 + $0x174] sm:$0xf] }
  0x51   :  { %v304_v56 = vld [vmem:[%s15350_s7 + $0x1f0] sm:$0xf]  ;;  %303 = vst [vmem:[#allocation2 + $0x1e0] sm:$0xf] %v302_v55  ;;  %307 = vst [vmem:[#allocation2 + $0x1e8] sm:$0xf] %v306_v57 }
  0x52   :  { %305 = vst [vmem:[#allocation2 + $0x1e4] sm:$0xf] %v304_v56  ;;  %v308_v58 = vld [vmem:[%s15350_s7 + $0x1f4] sm:$0xf]  ;;  %v310_v59 = vld [vmem:[%s15350_s7 + $0x178] sm:$0xf] }
  0x53   :  { %v312_v60 = vld [vmem:[%s15350_s7 + $0x1f8] sm:$0xf]  ;;  %309 = vst [vmem:[#allocation2 + $0x1ec] sm:$0xf] %v308_v58  ;;  %311 = vst [vmem:[#allocation2 + $0x1f0] sm:$0xf] %v310_v59 }
  0x54   :  { %313 = vst [vmem:[#allocation2 + $0x1f4] sm:$0xf] %v312_v60  ;;  %v314_v61 = vld [vmem:[%s15350_s7 + $0x17c] sm:$0xf] }
  0x55   :  { %v316_v62 = vld [vmem:[%s15350_s7 + $0x1fc] sm:$0xf]  ;;  %315 = vst [vmem:[#allocation2 + $0x1f8] sm:$0xf] %v314_v61 }
  0x56   :  { %317 = vst [vmem:[#allocation2 + $0x1fc] sm:$0xf] %v316_v62 }
  0x57   :  { %604 = vsyncadd [#allocation5], 8192  ;;  %v623_v63 = vld [vmem:[%s15355_s12] sm:$0xf]  ;;  %v625_v0 = vld [vmem:[%s15355_s12 + $0x8] sm:$0xf] }
  0x58   :  { %624 = vst [vmem:[#allocation3] sm:$0xf] %v623_v63  ;;  %626 = vst [vmem:[#allocation3 + $0x4] sm:$0xf] %v625_v0  ;;  %v627_v1 = vld [vmem:[%s15355_s12 + $0x4] sm:$0xf] }
  0x59   :  { %v629_v2 = vld [vmem:[%s15355_s12 + $0xc] sm:$0xff]   ;;  %v633_v3 = vld [vmem:[%s15355_s12 + $0x18] sm:$0xf]  ;;  %628 = vst [vmem:[#allocation3 + $0x8] sm:$0xf] %v627_v1  ;;  %v637_v5 = vld [vmem:[%s15355_s12 + $0x1c] sm:$0xff]  }
  0x5a   :  { %630 = vst [vmem:[#allocation3 + $0xc] sm:$0xff] %v629_v2   ;;  %634 = vst [vmem:[#allocation3 + $0x14] sm:$0xf] %v633_v3  ;;  %v635_v4 = vld [vmem:[%s15355_s12 + $0x14] sm:$0xf]  ;;  %v645_v8 = vld [vmem:[%s15355_s12 + $0x2c] sm:$0xff]  }
  0x5b   :  { %v641_v6 = vld [vmem:[%s15355_s12 + $0x28] sm:$0xf]  ;;  %636 = vst [vmem:[#allocation3 + $0x18] sm:$0xf] %v635_v4  ;;  %638 = vst [vmem:[#allocation3 + $0x1c] sm:$0xff] %v637_v5   ;;  %v653_v11 = vld [vmem:[%s15355_s12 + $0x3c] sm:$0xff]  }
  0x5c   :  { %642 = vst [vmem:[#allocation3 + $0x24] sm:$0xf] %v641_v6  ;;  %v643_v7 = vld [vmem:[%s15355_s12 + $0x24] sm:$0xf]  ;;  %v649_v9 = vld [vmem:[%s15355_s12 + $0x38] sm:$0xf] }
  0x5d   :  { %644 = vst [vmem:[#allocation3 + $0x28] sm:$0xf] %v643_v7  ;;  %646 = vst [vmem:[#allocation3 + $0x2c] sm:$0xff] %v645_v8   ;;  %v651_v10 = vld [vmem:[%s15355_s12 + $0x34] sm:$0xf]  ;;  %v661_v14 = vld [vmem:[%s15355_s12 + $0x4c] sm:$0xff]  }
  0x5e   :  { %650 = vst [vmem:[#allocation3 + $0x34] sm:$0xf] %v649_v9  ;;  %v657_v12 = vld [vmem:[%s15355_s12 + $0x48] sm:$0xf]  ;;  %652 = vst [vmem:[#allocation3 + $0x38] sm:$0xf] %v651_v10 }
  0x5f   :  { %654 = vst [vmem:[#allocation3 + $0x3c] sm:$0xff] %v653_v11   ;;  %658 = vst [vmem:[#allocation3 + $0x44] sm:$0xf] %v657_v12  ;;  %v659_v13 = vld [vmem:[%s15355_s12 + $0x44] sm:$0xf]  ;;  %v669_v17 = vld [vmem:[%s15355_s12 + $0x5c] sm:$0xff]  }
  0x60   :  { %v665_v15 = vld [vmem:[%s15355_s12 + $0x58] sm:$0xf]  ;;  %660 = vst [vmem:[#allocation3 + $0x48] sm:$0xf] %v659_v13  ;;  %662 = vst [vmem:[#allocation3 + $0x4c] sm:$0xff] %v661_v14   ;;  %v677_v20 = vld [vmem:[%s15355_s12 + $0x6c] sm:$0xff]  }
  0x61   :  { %666 = vst [vmem:[#allocation3 + $0x54] sm:$0xf] %v665_v15  ;;  %v667_v16 = vld [vmem:[%s15355_s12 + $0x54] sm:$0xf]  ;;  %v673_v18 = vld [vmem:[%s15355_s12 + $0x68] sm:$0xf] }
  0x62   :  { %668 = vst [vmem:[#allocation3 + $0x58] sm:$0xf] %v667_v16  ;;  %670 = vst [vmem:[#allocation3 + $0x5c] sm:$0xff] %v669_v17   ;;  %v675_v19 = vld [vmem:[%s15355_s12 + $0x64] sm:$0xf]  ;;  %v685_v23 = vld [vmem:[%s15355_s12 + $0x7c] sm:$0xff]  }
  0x63   :  { %674 = vst [vmem:[#allocation3 + $0x64] sm:$0xf] %v673_v18  ;;  %v681_v21 = vld [vmem:[%s15355_s12 + $0x78] sm:$0xf]  ;;  %676 = vst [vmem:[#allocation3 + $0x68] sm:$0xf] %v675_v19 }
  0x64   :  { %678 = vst [vmem:[#allocation3 + $0x6c] sm:$0xff] %v677_v20   ;;  %682 = vst [vmem:[#allocation3 + $0x74] sm:$0xf] %v681_v21  ;;  %v683_v22 = vld [vmem:[%s15355_s12 + $0x74] sm:$0xf]  ;;  %v693_v26 = vld [vmem:[%s15355_s12 + $0x8c] sm:$0xff]  }
  0x65   :  { %v689_v24 = vld [vmem:[%s15355_s12 + $0x88] sm:$0xf]  ;;  %684 = vst [vmem:[#allocation3 + $0x78] sm:$0xf] %v683_v22  ;;  %686 = vst [vmem:[#allocation3 + $0x7c] sm:$0xff] %v685_v23   ;;  %v701_v29 = vld [vmem:[%s15355_s12 + $0x9c] sm:$0xff]  }
  0x66   :  { %690 = vst [vmem:[#allocation3 + $0x84] sm:$0xf] %v689_v24  ;;  %v691_v25 = vld [vmem:[%s15355_s12 + $0x84] sm:$0xf]  ;;  %v697_v27 = vld [vmem:[%s15355_s12 + $0x98] sm:$0xf] }
  0x67   :  { %692 = vst [vmem:[#allocation3 + $0x88] sm:$0xf] %v691_v25  ;;  %694 = vst [vmem:[#allocation3 + $0x8c] sm:$0xff] %v693_v26   ;;  %v699_v28 = vld [vmem:[%s15355_s12 + $0x94] sm:$0xf]  ;;  %v709_v32 = vld [vmem:[%s15355_s12 + $0xac] sm:$0xff]  }
  0x68   :  { %698 = vst [vmem:[#allocation3 + $0x94] sm:$0xf] %v697_v27  ;;  %v705_v30 = vld [vmem:[%s15355_s12 + $0xa8] sm:$0xf]  ;;  %700 = vst [vmem:[#allocation3 + $0x98] sm:$0xf] %v699_v28 }
  0x69   :  { %702 = vst [vmem:[#allocation3 + $0x9c] sm:$0xff] %v701_v29   ;;  %706 = vst [vmem:[#allocation3 + $0xa4] sm:$0xf] %v705_v30  ;;  %v707_v31 = vld [vmem:[%s15355_s12 + $0xa4] sm:$0xf]  ;;  %v717_v35 = vld [vmem:[%s15355_s12 + $0xbc] sm:$0xff]  }
  0x6a   :  { %v713_v33 = vld [vmem:[%s15355_s12 + $0xb8] sm:$0xf]  ;;  %708 = vst [vmem:[#allocation3 + $0xa8] sm:$0xf] %v707_v31  ;;  %710 = vst [vmem:[#allocation3 + $0xac] sm:$0xff] %v709_v32   ;;  %v725_v38 = vld [vmem:[%s15355_s12 + $0xcc] sm:$0xff]  }
  0x6b   :  { %714 = vst [vmem:[#allocation3 + $0xb4] sm:$0xf] %v713_v33  ;;  %v715_v34 = vld [vmem:[%s15355_s12 + $0xb4] sm:$0xf]  ;;  %v721_v36 = vld [vmem:[%s15355_s12 + $0xc8] sm:$0xf] }
  0x6c   :  { %716 = vst [vmem:[#allocation3 + $0xb8] sm:$0xf] %v715_v34  ;;  %718 = vst [vmem:[#allocation3 + $0xbc] sm:$0xff] %v717_v35   ;;  %v723_v37 = vld [vmem:[%s15355_s12 + $0xc4] sm:$0xf]  ;;  %v733_v41 = vld [vmem:[%s15355_s12 + $0xdc] sm:$0xff]  }
  0x6d   :  { %722 = vst [vmem:[#allocation3 + $0xc4] sm:$0xf] %v721_v36  ;;  %v729_v39 = vld [vmem:[%s15355_s12 + $0xd8] sm:$0xf]  ;;  %724 = vst [vmem:[#allocation3 + $0xc8] sm:$0xf] %v723_v37 }
  0x6e   :  { %726 = vst [vmem:[#allocation3 + $0xcc] sm:$0xff] %v725_v38   ;;  %730 = vst [vmem:[#allocation3 + $0xd4] sm:$0xf] %v729_v39  ;;  %v731_v40 = vld [vmem:[%s15355_s12 + $0xd4] sm:$0xf]  ;;  %v741_v44 = vld [vmem:[%s15355_s12 + $0xec] sm:$0xff]  }
  0x6f   :  { %v737_v42 = vld [vmem:[%s15355_s12 + $0xe8] sm:$0xf]  ;;  %732 = vst [vmem:[#allocation3 + $0xd8] sm:$0xf] %v731_v40  ;;  %734 = vst [vmem:[#allocation3 + $0xdc] sm:$0xff] %v733_v41   ;;  %v749_v47 = vld [vmem:[%s15355_s12 + $0xfc] sm:$0xff]  }
  0x70   :  { %738 = vst [vmem:[#allocation3 + $0xe4] sm:$0xf] %v737_v42  ;;  %v739_v43 = vld [vmem:[%s15355_s12 + $0xe4] sm:$0xf]  ;;  %v745_v45 = vld [vmem:[%s15355_s12 + $0xf8] sm:$0xf] }
  0x71   :  { %740 = vst [vmem:[#allocation3 + $0xe8] sm:$0xf] %v739_v43  ;;  %742 = vst [vmem:[#allocation3 + $0xec] sm:$0xff] %v741_v44   ;;  %v747_v46 = vld [vmem:[%s15355_s12 + $0xf4] sm:$0xf]  ;;  %v757_v50 = vld [vmem:[%s15355_s12 + $0x10c] sm:$0xff]  }
  0x72   :  { %746 = vst [vmem:[#allocation3 + $0xf4] sm:$0xf] %v745_v45  ;;  %v753_v48 = vld [vmem:[%s15355_s12 + $0x108] sm:$0xf]  ;;  %748 = vst [vmem:[#allocation3 + $0xf8] sm:$0xf] %v747_v46 }
  0x73   :  { %750 = vst [vmem:[#allocation3 + $0xfc] sm:$0xff] %v749_v47   ;;  %754 = vst [vmem:[#allocation3 + $0x104] sm:$0xf] %v753_v48  ;;  %v755_v49 = vld [vmem:[%s15355_s12 + $0x104] sm:$0xf]  ;;  %v765_v53 = vld [vmem:[%s15355_s12 + $0x11c] sm:$0xff]  }
  0x74   :  { %v761_v51 = vld [vmem:[%s15355_s12 + $0x118] sm:$0xf]  ;;  %756 = vst [vmem:[#allocation3 + $0x108] sm:$0xf] %v755_v49  ;;  %758 = vst [vmem:[#allocation3 + $0x10c] sm:$0xff] %v757_v50   ;;  %v773_v56 = vld [vmem:[%s15355_s12 + $0x12c] sm:$0xff]  }
  0x75   :  { %762 = vst [vmem:[#allocation3 + $0x114] sm:$0xf] %v761_v51  ;;  %v763_v52 = vld [vmem:[%s15355_s12 + $0x114] sm:$0xf]  ;;  %v769_v54 = vld [vmem:[%s15355_s12 + $0x128] sm:$0xf] }
  0x76   :  { %764 = vst [vmem:[#allocation3 + $0x118] sm:$0xf] %v763_v52  ;;  %766 = vst [vmem:[#allocation3 + $0x11c] sm:$0xff] %v765_v53   ;;  %v771_v55 = vld [vmem:[%s15355_s12 + $0x124] sm:$0xf]  ;;  %v781_v59 = vld [vmem:[%s15355_s12 + $0x13c] sm:$0xff]  }
  0x77   :  { %770 = vst [vmem:[#allocation3 + $0x124] sm:$0xf] %v769_v54  ;;  %v777_v57 = vld [vmem:[%s15355_s12 + $0x138] sm:$0xf]  ;;  %772 = vst [vmem:[#allocation3 + $0x128] sm:$0xf] %v771_v55 }
  0x78   :  { %774 = vst [vmem:[#allocation3 + $0x12c] sm:$0xff] %v773_v56   ;;  %778 = vst [vmem:[#allocation3 + $0x134] sm:$0xf] %v777_v57  ;;  %v779_v58 = vld [vmem:[%s15355_s12 + $0x134] sm:$0xf]  ;;  %v789_v62 = vld [vmem:[%s15355_s12 + $0x14c] sm:$0xff]  }
  0x79   :  { %v785_v60 = vld [vmem:[%s15355_s12 + $0x148] sm:$0xf]  ;;  %780 = vst [vmem:[#allocation3 + $0x138] sm:$0xf] %v779_v58  ;;  %782 = vst [vmem:[#allocation3 + $0x13c] sm:$0xff] %v781_v59   ;;  %v797_v1 = vld [vmem:[%s15355_s12 + $0x15c] sm:$0xff]  }
  0x7a   :  { %786 = vst [vmem:[#allocation3 + $0x144] sm:$0xf] %v785_v60  ;;  %v787_v61 = vld [vmem:[%s15355_s12 + $0x144] sm:$0xf]  ;;  %v793_v63 = vld [vmem:[%s15355_s12 + $0x158] sm:$0xf] }
  0x7b   :  { %788 = vst [vmem:[#allocation3 + $0x148] sm:$0xf] %v787_v61  ;;  %790 = vst [vmem:[#allocation3 + $0x14c] sm:$0xff] %v789_v62   ;;  %v795_v0 = vld [vmem:[%s15355_s12 + $0x154] sm:$0xf]  ;;  %v805_v4 = vld [vmem:[%s15355_s12 + $0x16c] sm:$0xff]  }
  0x7c   :  { %794 = vst [vmem:[#allocation3 + $0x154] sm:$0xf] %v793_v63  ;;  %v801_v2 = vld [vmem:[%s15355_s12 + $0x168] sm:$0xf]  ;;  %796 = vst [vmem:[#allocation3 + $0x158] sm:$0xf] %v795_v0 }
  0x7d   :  { %798 = vst [vmem:[#allocation3 + $0x15c] sm:$0xff] %v797_v1   ;;  %802 = vst [vmem:[#allocation3 + $0x164] sm:$0xf] %v801_v2  ;;  %v803_v3 = vld [vmem:[%s15355_s12 + $0x164] sm:$0xf]  ;;  %v813_v7 = vld [vmem:[%s15355_s12 + $0x17c] sm:$0xff]  }
  0x7e   :  { %v809_v5 = vld [vmem:[%s15355_s12 + $0x178] sm:$0xf]  ;;  %804 = vst [vmem:[#allocation3 + $0x168] sm:$0xf] %v803_v3  ;;  %806 = vst [vmem:[#allocation3 + $0x16c] sm:$0xff] %v805_v4   ;;  %v821_v10 = vld [vmem:[%s15355_s12 + $0x18c] sm:$0xff]  }
  0x7f   :  { %810 = vst [vmem:[#allocation3 + $0x174] sm:$0xf] %v809_v5  ;;  %v811_v6 = vld [vmem:[%s15355_s12 + $0x174] sm:$0xf]  ;;  %v817_v8 = vld [vmem:[%s15355_s12 + $0x188] sm:$0xf] }
  0x80   :  { %812 = vst [vmem:[#allocation3 + $0x178] sm:$0xf] %v811_v6  ;;  %814 = vst [vmem:[#allocation3 + $0x17c] sm:$0xff] %v813_v7   ;;  %v819_v9 = vld [vmem:[%s15355_s12 + $0x184] sm:$0xf]  ;;  %v829_v13 = vld [vmem:[%s15355_s12 + $0x19c] sm:$0xff]  }
  0x81   :  { %818 = vst [vmem:[#allocation3 + $0x184] sm:$0xf] %v817_v8  ;;  %v825_v11 = vld [vmem:[%s15355_s12 + $0x198] sm:$0xf]  ;;  %820 = vst [vmem:[#allocation3 + $0x188] sm:$0xf] %v819_v9 }
  0x82   :  { %822 = vst [vmem:[#allocation3 + $0x18c] sm:$0xff] %v821_v10   ;;  %826 = vst [vmem:[#allocation3 + $0x194] sm:$0xf] %v825_v11  ;;  %v827_v12 = vld [vmem:[%s15355_s12 + $0x194] sm:$0xf]  ;;  %v837_v16 = vld [vmem:[%s15355_s12 + $0x1ac] sm:$0xff]  }
  0x83   :  { %v833_v14 = vld [vmem:[%s15355_s12 + $0x1a8] sm:$0xf]  ;;  %828 = vst [vmem:[#allocation3 + $0x198] sm:$0xf] %v827_v12  ;;  %830 = vst [vmem:[#allocation3 + $0x19c] sm:$0xff] %v829_v13   ;;  %v845_v19 = vld [vmem:[%s15355_s12 + $0x1bc] sm:$0xff]  }
  0x84   :  { %834 = vst [vmem:[#allocation3 + $0x1a4] sm:$0xf] %v833_v14  ;;  %v835_v15 = vld [vmem:[%s15355_s12 + $0x1a4] sm:$0xf]  ;;  %v841_v17 = vld [vmem:[%s15355_s12 + $0x1b8] sm:$0xf] }
  0x85   :  { %836 = vst [vmem:[#allocation3 + $0x1a8] sm:$0xf] %v835_v15  ;;  %838 = vst [vmem:[#allocation3 + $0x1ac] sm:$0xff] %v837_v16   ;;  %v843_v18 = vld [vmem:[%s15355_s12 + $0x1b4] sm:$0xf]  ;;  %v853_v22 = vld [vmem:[%s15355_s12 + $0x1cc] sm:$0xff]  }
  0x86   :  { %842 = vst [vmem:[#allocation3 + $0x1b4] sm:$0xf] %v841_v17  ;;  %v849_v20 = vld [vmem:[%s15355_s12 + $0x1c8] sm:$0xf]  ;;  %844 = vst [vmem:[#allocation3 + $0x1b8] sm:$0xf] %v843_v18 }
  0x87   :  { %846 = vst [vmem:[#allocation3 + $0x1bc] sm:$0xff] %v845_v19   ;;  %850 = vst [vmem:[#allocation3 + $0x1c4] sm:$0xf] %v849_v20  ;;  %v851_v21 = vld [vmem:[%s15355_s12 + $0x1c4] sm:$0xf]  ;;  %v861_v25 = vld [vmem:[%s15355_s12 + $0x1dc] sm:$0xff]  }
  0x88   :  { %v857_v23 = vld [vmem:[%s15355_s12 + $0x1d8] sm:$0xf]  ;;  %852 = vst [vmem:[#allocation3 + $0x1c8] sm:$0xf] %v851_v21  ;;  %854 = vst [vmem:[#allocation3 + $0x1cc] sm:$0xff] %v853_v22   ;;  %v869_v28 = vld [vmem:[%s15355_s12 + $0x1ec] sm:$0xff]  }
  0x89   :  { %858 = vst [vmem:[#allocation3 + $0x1d4] sm:$0xf] %v857_v23  ;;  %v859_v24 = vld [vmem:[%s15355_s12 + $0x1d4] sm:$0xf]  ;;  %v865_v26 = vld [vmem:[%s15355_s12 + $0x1e8] sm:$0xf] }
  0x8a   :  { %860 = vst [vmem:[#allocation3 + $0x1d8] sm:$0xf] %v859_v24  ;;  %862 = vst [vmem:[#allocation3 + $0x1dc] sm:$0xff] %v861_v25   ;;  %v867_v27 = vld [vmem:[%s15355_s12 + $0x1e4] sm:$0xf]  ;;  %v877_v31 = vld [vmem:[%s15355_s12 + $0x1fc] sm:$0xff]  }
  0x8b   :  { %866 = vst [vmem:[#allocation3 + $0x1e4] sm:$0xf] %v865_v26  ;;  %v873_v29 = vld [vmem:[%s15355_s12 + $0x1f8] sm:$0xf]  ;;  %868 = vst [vmem:[#allocation3 + $0x1e8] sm:$0xf] %v867_v27 }
  0x8c   :  { %870 = vst [vmem:[#allocation3 + $0x1ec] sm:$0xff] %v869_v28   ;;  %874 = vst [vmem:[#allocation3 + $0x1f4] sm:$0xf] %v873_v29  ;;  %v875_v30 = vld [vmem:[%s15355_s12 + $0x1f4] sm:$0xf]  ;;  %v885_v34 = vld [vmem:[%s15355_s12 + $0x20c] sm:$0xff]  }
  0x8d   :  { %v881_v32 = vld [vmem:[%s15355_s12 + $0x208] sm:$0xf]  ;;  %876 = vst [vmem:[#allocation3 + $0x1f8] sm:$0xf] %v875_v30  ;;  %878 = vst [vmem:[#allocation3 + $0x1fc] sm:$0xff] %v877_v31   ;;  %v893_v37 = vld [vmem:[%s15355_s12 + $0x21c] sm:$0xff]  }
  0x8e   :  { %882 = vst [vmem:[#allocation3 + $0x204] sm:$0xf] %v881_v32  ;;  %v883_v33 = vld [vmem:[%s15355_s12 + $0x204] sm:$0xf]  ;;  %v889_v35 = vld [vmem:[%s15355_s12 + $0x218] sm:$0xf] }
  0x8f   :  { %884 = vst [vmem:[#allocation3 + $0x208] sm:$0xf] %v883_v33  ;;  %886 = vst [vmem:[#allocation3 + $0x20c] sm:$0xff] %v885_v34   ;;  %v891_v36 = vld [vmem:[%s15355_s12 + $0x214] sm:$0xf]  ;;  %v901_v40 = vld [vmem:[%s15355_s12 + $0x22c] sm:$0xff]  }
  0x90   :  { %890 = vst [vmem:[#allocation3 + $0x214] sm:$0xf] %v889_v35  ;;  %v897_v38 = vld [vmem:[%s15355_s12 + $0x228] sm:$0xf]  ;;  %892 = vst [vmem:[#allocation3 + $0x218] sm:$0xf] %v891_v36 }
  0x91   :  { %894 = vst [vmem:[#allocation3 + $0x21c] sm:$0xff] %v893_v37   ;;  %898 = vst [vmem:[#allocation3 + $0x224] sm:$0xf] %v897_v38  ;;  %v899_v39 = vld [vmem:[%s15355_s12 + $0x224] sm:$0xf] }
  0x92   :  { %v905_v41 = vld [vmem:[%s15355_s12 + $0x238] sm:$0xf]  ;;  %900 = vst [vmem:[#allocation3 + $0x228] sm:$0xf] %v899_v39  ;;  %902 = vst [vmem:[#allocation3 + $0x22c] sm:$0xff] %v901_v40  }
  0x93   :  { %906 = vst [vmem:[#allocation3 + $0x234] sm:$0xf] %v905_v41  ;;  %v907_v42 = vld [vmem:[%s15355_s12 + $0x234] sm:$0xf]  ;;  %v909_v43 = vld [vmem:[%s15355_s12 + $0x23c] sm:$0xf] }
  0x94   :  { %908 = vst [vmem:[#allocation3 + $0x238] sm:$0xf] %v907_v42  ;;  %910 = vst [vmem:[#allocation3 + $0x23c] sm:$0xf] %v909_v43 }
  0x95   :  { %1229 = vsyncadd [#allocation5 + $0x1], 9216  ;;  %v1268_v44 = vld [vmem:[%s15354_s11] sm:$0xff]  ;;  %v1270_v45 = vld [vmem:[%s15354_s11 + $0x8] sm:$0xff] }
  0x96   :  { %1269 = vst [vmem:[#allocation4] sm:$0xff] %v1268_v44  ;;  %1271 = vst [vmem:[#allocation4 + $0x8] sm:$0xff] %v1270_v45  ;;  %v1272_v46 = vld [vmem:[%s15354_s11 + $0x10] sm:$0xff]  ;;  %v1274_v47 = vld [vmem:[%s15354_s11 + $0x18] sm:$0xff] }
  0x97   :  { %v9837_v48 = vld [vmem:[%s15354_s11 + $0x20] sm:$0xf]  ;;  %1273 = vst [vmem:[#allocation4 + $0x10] sm:$0xff] %v1272_v46  ;;  %1275 = vst [vmem:[#allocation4 + $0x18] sm:$0xff] %v1274_v47 }
  0x98   :  { %1286 = vst [vmem:[#allocation4 + $0x20] sm:$0xf] %v9837_v48 }
  0x99   :  { %1290 = vsyncadd [#allocation5 + $0x2], 576  ;;  %v1307_v49 = vld [vmem:[%s15344_s1] sm:$0xff]  ;;  %v1308_v50 = vld [vmem:[%s15344_s1 + $0x8] sm:$0xff]  ;;  %vm1319_vm0 = vcmask 293888   ;;  %vm1368_vm1 = vcmask 1043456  }
  0x9a   :  { %v10677_v51 = vpack.c.bf16 %v1308_v50, %v1307_v49  ;;  %v1309_v52 = vld [vmem:[%s15344_s1 + $0x10] sm:$0xff]  ;;  %v1310_v53 = vld [vmem:[%s15344_s1 + $0x18] sm:$0xff]  ;;  %v1291_v55 = vld [vmem:[%s15343_s0] sm:$0xff]  ;;  %vm1533_vm2 = vcmask 523264   ;;  %vm1551_vm3 = vcmask 517120   ;;  %s11352_s22 = smov 64  }
  0x9b   :  { %v10681_v54 = vpack.c.bf16 %v1310_v53, %v1309_v52  ;;  %10653 = vmatprep.mubr.msk.f32.mxu1 %vm1319_vm0, %v1291_v55  ;;  %v1311_v56 = vld [vmem:[%s15344_s1 + $0x20] sm:$0xf]  ;;  %v1292_v57 = vld [vmem:[%s15343_s0 + $0x8] sm:$0xff]  ;;  %v1293_v58 = vld [vmem:[%s15343_s0 + $0x10] sm:$0xff]  ;;  %vm1565_vm4 = vcmask 1041920   ;;  %vm4943_vm5 = vcmask 254976  }
  0x9c   :  { %10678 = vmatprep.subr.bf16.mxu1 %v10677_v51  ;;  %v1294_v59 = vld [vmem:[%s15343_s0 + $0x18] sm:$0xff]  ;;  %v1295_v60 = vld [vmem:[%s15343_s0 + $0x20] sm:$0xff]  ;;  %v1296_v61 = vld [vmem:[%s15343_s0 + $0x28] sm:$0xff] }
  0x9d   :  { %10680 = vmatpush3.bf16.msra.mxu1 %v10677_v51  ;;  %v1297_v62 = vld [vmem:[%s15343_s0 + $0x30] sm:$0xff]  ;;  %v1298_v63 = vld [vmem:[%s15343_s0 + $0x38] sm:$0xff]  ;;  %v1299_v0 = vld [vmem:[%s15343_s0 + $0x40] sm:$0xff] }
  0x9e   :  { %10682 = vmatprep.subr.bf16.mxu1 %v10681_v54  ;;  %v1300_v1 = vld [vmem:[%s15343_s0 + $0x48] sm:$0xff]  ;;  %v1301_v2 = vld [vmem:[%s15343_s0 + $0x50] sm:$0xff]  ;;  %v1302_v3 = vld [vmem:[%s15343_s0 + $0x58] sm:$0xff] }
  0x9f   :  { %v1303_v4 = vld [vmem:[%s15343_s0 + $0x60] sm:$0xff]  ;;  %v1304_v5 = vld [vmem:[%s15343_s0 + $0x68] sm:$0xff]  ;;  %v1305_v6 = vld [vmem:[%s15343_s0 + $0x70] sm:$0xff] }
  0xa0   :  { %v1306_v7 = vld [vmem:[%s15343_s0 + $0x78] sm:$0xff]  ;;  %v10988_v8 = vld [vmem:[%s15346_s3 + $0x40] sm:$0xff]   ;;  %v10992_v12 = vld [vmem:[%s15346_s3 + $0x48] sm:$0xff]  }
  0xa1   :  { %10684 = vmatpush3.bf16.msra.mxu1 %v10681_v54  ;;  %v10989_v9 = vld [vmem:[%s15346_s3] sm:$0xff]   ;;  %v10994_v13 = vld [vmem:[%s15346_s3 + $0xc8] sm:$0xff]   ;;  %v10996_v16 = vld [vmem:[%s15346_s3 + $0x50] sm:$0xff]  }
  0xa2   :  { %10651 = vmatprep.subr.msk.mxu1 %vm1368_vm1, %v1311_v56  ;;  %v10990_v10 = vld [vmem:[%s15346_s3 + $0xc0] sm:$0xff]   ;;  %v10993_v14 = vld [vmem:[%s15346_s3 + $0x8] sm:$0xff]   ;;  %v10998_v17 = vld [vmem:[%s15346_s3 + $0xd0] sm:$0xff]  }
  0xa3   :  { %v10991_v11 = vld [vmem:[%s15346_s3 + $0x80] sm:$0xff]   ;;  %10313 = vmatprep.subr.bf16.mxu0 %v10990_v10  ;;  %v10995_v15 = vld [vmem:[%s15346_s3 + $0x88] sm:$0xff]   ;;  %v10997_v18 = vld [vmem:[%s15346_s3 + $0x10] sm:$0xff]  }
  0xa4   :  { %10314 = vmatpush3.bf16.msra.mxu0 %v10991_v11  ;;  %v10999_v19 = vld [vmem:[%s15346_s3 + $0x90] sm:$0xff]   ;;  %v11000_v20 = vld [vmem:[%s15346_s3 + $0x58] sm:$0xff]   ;;  %v12281_v21 = vld [vmem:[%s15345_s2] ss:$0 sm:$0xff] }
  0xa5   :  { %10652 = vmatpush3.msk.msra.mxu1 %vm1368_vm1, %v1311_v56  ;;  %10315 = vmatprep.subr.bf16.mxu0 %v10994_v13  ;;  %v11001_v23 = vld [vmem:[%s15346_s3 + $0x18] sm:$0xff]   ;;  %v11004_v28 = vld [vmem:[%s15346_s3 + $0x60] sm:$0xff]   ;;  %v11008_v38 = vld [vmem:[%s15346_s3 + $0x68] sm:$0xff]  }
  0xa6   :  { %10654 = vmatmul.mubr.msk.f32.vlgmr.msra.gmra.mrb[0].mxu1 %vm1319_vm0, %v1292_v57  ;;  %10291 = vmatprep.subr.bf16.mxu1 %v10988_v8  ;;  %v11002_v26 = vld [vmem:[%s15346_s3 + $0xd8] sm:$0xff]   ;;  %v11005_v33 = vld [vmem:[%s15346_s3 + $0x20] sm:$0xff]   ;;  %v11009_v40 = vld [vmem:[%s15346_s3 + $0x28] sm:$0xff]  }
  0xa7   :  { %10656 = vmatprep.mubr.msk.f32.mxu1 %vm1319_vm0, %v1293_v58  ;;  %10292 = vmatpush3.bf16.msra.mxu1 %v10989_v9  ;;  %v11003_v27 = vld [vmem:[%s15346_s3 + $0x98] sm:$0xff]   ;;  %v11006_v36 = vld [vmem:[%s15346_s3 + $0xe0] sm:$0xff]   ;;  %v11010_v41 = vld [vmem:[%s15346_s3 + $0xe8] sm:$0xff]  }
  0xa8   :  { %10293 = vmatprep.subr.bf16.mxu1 %v10992_v12  ;;  %10316 = vmatpush3.bf16.msra.mxu0 %v10995_v15  ;;  %v11007_v37 = vld [vmem:[%s15346_s3 + $0xa0] sm:$0xff]   ;;  %v11012_v43 = vld [vmem:[%s15346_s3 + $0x70] sm:$0xff]   ;;  %v11011_v46 = vld [vmem:[%s15346_s3 + $0xa8] sm:$0xff]  }
  0xa9   :  { %10317 = vmatprep.subr.bf16.mxu0 %v10998_v17  ;;  %v11014_v49 = vld [vmem:[%s15346_s3 + $0xf0] sm:$0xff]   ;;  %v11016_v54 = vld [vmem:[%s15346_s3 + $0x78] sm:$0xff]  }
  0xaa   :  { %10657 = vmatmul.mubr.msk.f32.gmra.mrb[2].mxu1 %vm1319_vm0, %v1294_v59  ;;  %v11013_v51 = vld [vmem:[%s15346_s3 + $0x30] sm:$0xff]  }
  0xab   :  { %10659 = vmatprep.mubr.msk.f32.mxu1 %vm1319_vm0, %v1295_v60  ;;  %10294 = vmatpush3.bf16.msra.mxu1 %v10993_v14  ;;  %v11015_v53 = vld [vmem:[%s15346_s3 + $0xb0] sm:$0xff]   ;;  %v11020_v14 = vld [vmem:[%s15346_s3 + $0x140] sm:$0xff]  }
  0xac   :  { %10295 = vmatprep.subr.bf16.mxu1 %v10996_v16  ;;  %10318 = vmatpush3.bf16.msra.mxu0 %v10999_v19 }
  0xad   :  { %10319 = vmatprep.subr.bf16.mxu0 %v11002_v26 }
  0xae   :  { %10660 = vmatmul.mubr.msk.f32.gmra.mrb[4].mxu1 %vm1319_vm0, %v1296_v61  ;;  %v11018_v61 = vld [vmem:[%s15346_s3 + $0xf8] sm:$0xff]  }
  0xaf   :  { %10662 = vmatprep.mubr.msk.f32.mxu1 %vm1319_vm0, %v1297_v62  ;;  %10296 = vmatpush3.bf16.msra.mxu1 %v10997_v18 }
  0xb0   :  { %10297 = vmatprep.subr.bf16.mxu1 %v11000_v20  ;;  %10320 = vmatpush3.bf16.msra.mxu0 %v11003_v27  ;;  %v11023_v20 = vld [vmem:[%s15346_s3 + $0x1c0] sm:$0xff]  }
  0xb1   :  { %10321 = vmatprep.subr.bf16.mxu0 %v11006_v36 }
  0xb2   :  { %10663 = vmatmul.mubr.msk.f32.gmra.mrb[6].mxu1 %vm1319_vm0, %v1298_v63 }
  0xb3   :  { %10665 = vmatprep.mubr.msk.f32.mxu1 %vm1319_vm0, %v1299_v0  ;;  %10298 = vmatpush3.bf16.msra.mxu1 %v11001_v23  ;;  %v11017_v0 = vld [vmem:[%s15346_s3 + $0x38] sm:$0xff]  }
  0xb4   :  { %10299 = vmatprep.subr.bf16.mxu1 %v11004_v28  ;;  %10322 = vmatpush3.bf16.msra.mxu0 %v11007_v37 }
  0xb5   :  { %10323 = vmatprep.subr.bf16.mxu0 %v11010_v41 }
  0xb6   :  { %10666 = vmatmul.mubr.msk.f32.gmra.mrb[8].mxu1 %vm1319_vm0, %v1300_v1 }
  0xb7   :  { %10668 = vmatprep.mubr.msk.f32.mxu1 %vm1319_vm0, %v1301_v2  ;;  %10300 = vmatpush3.bf16.msra.mxu1 %v11005_v33  ;;  %v11019_v2 = vld [vmem:[%s15346_s3 + $0xb8] sm:$0xff]  }
  0xb8   :  { %10301 = vmatprep.subr.bf16.mxu1 %v11008_v38  ;;  %10324 = vmatpush3.bf16.msra.mxu0 %v11011_v46 }
  0xb9   :  { %10325 = vmatprep.subr.bf16.mxu0 %v11014_v49 }
  0xba   :  { %10669 = vmatmul.mubr.msk.f32.gmra.mrb[10].mxu1 %vm1319_vm0, %v1302_v3 }
  0xbb   :  { %10671 = vmatprep.mubr.msk.f32.mxu1 %vm1319_vm0, %v1303_v4  ;;  %10302 = vmatpush3.bf16.msra.mxu1 %v11009_v40 }
  0xbc   :  { %10303 = vmatprep.subr.bf16.mxu1 %v11012_v43  ;;  %10326 = vmatpush3.bf16.msra.mxu0 %v11015_v53 }
  0xbd   :  { %10327 = vmatprep.subr.bf16.mxu0 %v11018_v61 }
  0xbe   :  { %10672 = vmatmul.mubr.msk.f32.gmra.mrb[12].mxu1 %vm1319_vm0, %v1304_v5 }
  0xbf   :  { %10674 = vmatprep.mubr.msk.f32.mxu1 %vm1319_vm0, %v1305_v6  ;;  %10304 = vmatpush3.bf16.msra.mxu1 %v11013_v51 }
  0xc0   :  { %10305 = vmatprep.subr.bf16.mxu1 %v11016_v54  ;;  %10328 = vmatpush3.bf16.msra.mxu0 %v11019_v2 }
  0xc1   :  { %10357 = vmatprep.subr.bf16.mxu0 %v11023_v20 }
  0xc2   :  { %10675 = vmatmul.mubr.msk.f32.gmra.mrb[14].mxu1 %vm1319_vm0, %v1306_v7 }
  0xc3   :  { %10306 = vmatpush3.bf16.msra.mxu1 %v11017_v0 }
  0xc4   :  { %10335 = vmatprep.subr.bf16.mxu1 %v11020_v14 }
 0x179   :  { %v10655_v22 = vpop.f32.mrb[0].mxu1 }
 0x17a   :  { %v1444_v24 = vadd.f32 %v10655_v22, %v12281_v21  ;;  %v1438_v25 = vpop.f32.mrb[1].mxu1 }
 0x17b   :  { %v1439_v29 = vadd.f32 %v12281_v21, %v1438_v25 }
 0x17c   :  { %v1518_v30 = vmax.f32 %v1444_v24, 0.0 }
 0x17d   :  { %v1517_v31 = vmax.f32 %v1439_v29, 0.0  ;;  %v10658_v32 = vpop.f32.mrb[2].mxu1 }
 0x17e   :  { %1535 = vst.msk [vmem:[#allocation6 + $0x8] sm:$0xff] %vm1533_vm2, %v1518_v30  ;;  %v1454_v34 = vadd.f32 %v10658_v32, %v12281_v21  ;;  %v1448_v35 = vpop.f32.mrb[3].mxu1 }
 0x17f   :  { %1534 = vst.msk [vmem:[#allocation6] sm:$0xff] %vm1533_vm2, %v1517_v31  ;;  %v1449_v39 = vadd.f32 %v12281_v21, %v1448_v35 }
 0x180   :  { %v1520_v42 = vmax.f32 %v1454_v34, 0.0 }
 0x181   :  { %v1519_v44 = vmax.f32 %v1449_v39, 0.0  ;;  %v10661_v45 = vpop.f32.mrb[4].mxu1 }
 0x182   :  { %1537 = vst.msk [vmem:[#allocation6 + $0x18] sm:$0xff] %vm1533_vm2, %v1520_v42  ;;  %v1464_v47 = vadd.f32 %v10661_v45, %v12281_v21  ;;  %v1458_v48 = vpop.f32.mrb[5].mxu1 }
 0x183   :  { %1536 = vst.msk [vmem:[#allocation6 + $0x10] sm:$0xff] %vm1533_vm2, %v1519_v44  ;;  %v1459_v50 = vadd.f32 %v12281_v21, %v1458_v48 }
 0x184   :  { %v1522_v52 = vmax.f32 %v1464_v47, 0.0 }
 0x185   :  { %v9858_v55 = vld.sshfl [vmem:[#allocation6 + $0xa] sm:$0x3 pattern:$0x76325410]  ;;  %v1521_v56 = vmax.f32 %v1459_v50, 0.0  ;;  %v10664_v57 = vpop.f32.mrb[6].mxu1 }
 0x186   :  { %1593 = vrot.lane.b32.xlu1 %v9858_v55, %s11352_s22  ;;  %v9856_v58 = vld.sshfl [vmem:[#allocation6 + $0x2] sm:$0x3 pattern:$0x76325410]  ;;  %1539 = vst.msk [vmem:[#allocation6 + $0x28] sm:$0xff] %vm1533_vm2, %v1522_v52  ;;  %v1474_v59 = vadd.f32 %v10664_v57, %v12281_v21  ;;  %v1468_v60 = vpop.f32.mrb[7].mxu1 }
 0x187   :  { %1562 = vrot.lane.b32.xlu0 %v9856_v58, %s11352_s22  ;;  %1538 = vst.msk [vmem:[#allocation6 + $0x20] sm:$0xff] %vm1533_vm2, %v1521_v56  ;;  %v1469_v62 = vadd.f32 %v12281_v21, %v1468_v60  ;;  %v1582_v63 = vld [vmem:[#allocation6 + $0x8] sm:$0x3]  ;;  %v1550_v11 = vld [vmem:[#allocation6] sm:$0x3] }
 0x188   :  { %v1524_v1 = vmax.f32 %v1474_v59, 0.0  ;;  %1583 = vst.msk [vmem:[#allocation7 + $0x4] sm:$0x3] %vm1551_vm3, %v1582_v63  ;;  %1552 = vst.msk [vmem:[#allocation7] sm:$0x3] %vm1551_vm3, %v1550_v11 }
 0x189   :  { %v9859_v3 = vld.sshfl [vmem:[#allocation6 + $0xe] sm:$0x3 pattern:$0x76325410]  ;;  %v1523_v4 = vmax.f32 %v1469_v62, 0.0  ;;  %v10667_v5 = vpop.f32.mrb[8].mxu1 }
 0x18a   :  { %1608 = vrot.lane.b32.xlu1 %v9859_v3, %s11352_s22  ;;  %v9857_v6 = vld.sshfl [vmem:[#allocation6 + $0x6] sm:$0x3 pattern:$0x76325410]  ;;  %1541 = vst.msk [vmem:[#allocation6 + $0x38] sm:$0xff] %vm1533_vm2, %v1524_v1  ;;  %v1484_v7 = vadd.f32 %v10667_v5, %v12281_v21  ;;  %v1478_v8 = vpop.f32.mrb[9].mxu1 }
 0x18b   :  { %1578 = vrot.lane.b32.xlu0 %v9857_v6, %s11352_s22  ;;  %v9861_v9 = vld.sshfl [vmem:[#allocation6 + $0x16] sm:$0x3 pattern:$0x76325410]  ;;  %1540 = vst.msk [vmem:[#allocation6 + $0x30] sm:$0xff] %vm1533_vm2, %v1523_v4  ;;  %v1479_v10 = vadd.f32 %v12281_v21, %v1478_v8 }
 0x18c   :  { %v9860_v12 = vld.sshfl [vmem:[#allocation6 + $0x12] sm:$0x3 pattern:$0x76325410]  ;;  %v1526_v13 = vmax.f32 %v1484_v7, 0.0 }
 0x18d   :  { %v1525_v15 = vmax.f32 %v1479_v10, 0.0  ;;  %v1597_v16 = vld [vmem:[#allocation6 + $0xc] sm:$0x3]  ;;  %v1567_v18 = vld [vmem:[#allocation6 + $0x4] sm:$0x3]  ;;  %v10670_v24 = vpop.f32.mrb[10].mxu1 }
 0x18e   :  { %1638 = vrot.lane.b32.xlu1 %v9861_v9, %s11352_s22  ;;  %1543 = vst.msk [vmem:[#allocation6 + $0x48] sm:$0xff] %vm1533_vm2, %v1526_v13  ;;  %v9863_v17 = vld.sshfl [vmem:[#allocation6 + $0x1e] sm:$0x3 pattern:$0x76325410]  ;;  %v1494_v25 = vadd.f32 %v10670_v24, %v12281_v21  ;;  %v1488_v30 = vpop.f32.mrb[11].mxu1 }
 0x18f   :  { %1623 = vrot.lane.b32.xlu0 %v9860_v12, %s11352_s22  ;;  %1542 = vst.msk [vmem:[#allocation6 + $0x40] sm:$0xff] %vm1533_vm2, %v1525_v15  ;;  %v9862_v19 = vld.sshfl [vmem:[#allocation6 + $0x1a] sm:$0x3 pattern:$0x76325410]  ;;  %v1489_v32 = vadd.f32 %v12281_v21, %v1488_v30 }
 0x190   :  { %1598 = vst.msk [vmem:[#allocation7 + $0x6] sm:$0x3] %vm1551_vm3, %v1597_v16  ;;  %1568 = vst.msk [vmem:[#allocation7 + $0x2] sm:$0x3] %vm1551_vm3, %v1567_v18  ;;  %v1627_v26 = vld [vmem:[#allocation6 + $0x14] sm:$0x3] }
 0x191   :  { %v9865_v22 = vld.sshfl [vmem:[#allocation6 + $0x26] sm:$0x3 pattern:$0x76325410]  ;;  %1628 = vst.msk [vmem:[#allocation7 + $0xa] sm:$0x3] %vm1551_vm3, %v1627_v26 }
 0x192   :  { %1668 = vrot.lane.b32.xlu1 %v9863_v17, %s11352_s22  ;;  %v9864_v23 = vld.sshfl [vmem:[#allocation6 + $0x22] sm:$0x3 pattern:$0x76325410]  ;;  %v1612_v27 = vld [vmem:[#allocation6 + $0x10] sm:$0x3] }
 0x193   :  { %1653 = vrot.lane.b32.xlu0 %v9862_v19, %s11352_s22  ;;  %v9867_v28 = vld.sshfl [vmem:[#allocation6 + $0x2e] sm:$0x3 pattern:$0x76325410]  ;;  %v1528_v29 = vmax.f32 %v1494_v25, 0.0  ;;  %v1527_v36 = vmax.f32 %v1489_v32, 0.0  ;;  %v2052_v32 = vlaneseq }
 0x194   :  { %1613 = vst.msk [vmem:[#allocation7 + $0x8] sm:$0x3] %vm1551_vm3, %v1612_v27  ;;  %v9866_v31 = vld.sshfl [vmem:[#allocation6 + $0x2a] sm:$0x3 pattern:$0x76325410] }
 0x195   :  { %1545 = vst.msk [vmem:[#allocation6 + $0x58] sm:$0xff] %vm1533_vm2, %v1528_v29  ;;  %v1657_v33 = vld [vmem:[#allocation6 + $0x1c] sm:$0x3]  ;;  %v1642_v34 = vld [vmem:[#allocation6 + $0x18] sm:$0x3]  ;;  %1544 = vst.msk [vmem:[#allocation6 + $0x50] sm:$0xff] %vm1533_vm2, %v1527_v36 }
 0x196   :  { %1698 = vrot.lane.b32.xlu1 %v9865_v22, %s11352_s22  ;;  %v9869_v35 = vld.sshfl [vmem:[#allocation6 + $0x36] sm:$0x3 pattern:$0x76325410]  ;;  %1658 = vst.msk [vmem:[#allocation7 + $0xe] sm:$0x3] %vm1551_vm3, %v1657_v33 }
 0x197   :  { %1683 = vrot.lane.b32.xlu0 %v9864_v23, %s11352_s22  ;;  %1643 = vst.msk [vmem:[#allocation7 + $0xc] sm:$0x3] %vm1551_vm3, %v1642_v34  ;;  %v1687_v37 = vld [vmem:[#allocation6 + $0x24] sm:$0x3]  ;;  %v1672_v38 = vld [vmem:[#allocation6 + $0x20] sm:$0x3] }
 0x198   :  { %v9868_v39 = vld.sshfl [vmem:[#allocation6 + $0x32] sm:$0x3 pattern:$0x76325410]  ;;  %1688 = vst.msk [vmem:[#allocation7 + $0x12] sm:$0x3] %vm1551_vm3, %v1687_v37 }
 0x199   :  { %1673 = vst.msk [vmem:[#allocation7 + $0x10] sm:$0x3] %vm1551_vm3, %v1672_v38  ;;  %v1717_v40 = vld [vmem:[#allocation6 + $0x2c] sm:$0x3]  ;;  %v1702_v41 = vld [vmem:[#allocation6 + $0x28] sm:$0x3] }
 0x19a   :  { %1728 = vrot.lane.b32.xlu1 %v9867_v28, %s11352_s22  ;;  %1718 = vst.msk [vmem:[#allocation7 + $0x16] sm:$0x3] %vm1551_vm3, %v1717_v40  ;;  %v1747_v42 = vld [vmem:[#allocation6 + $0x34] sm:$0x3]  ;;  %v1732_v43 = vld [vmem:[#allocation6 + $0x30] sm:$0x3] }
 0x19b   :  { %1713 = vrot.lane.b32.xlu0 %v9866_v31, %s11352_s22  ;;  %v9871_v44 = vld.sshfl [vmem:[#allocation6 + $0x3e] sm:$0x3 pattern:$0x76325410]  ;;  %1703 = vst.msk [vmem:[#allocation7 + $0x14] sm:$0x3] %vm1551_vm3, %v1702_v41 }
 0x19c   :  { %1748 = vst.msk [vmem:[#allocation7 + $0x1a] sm:$0x3] %vm1551_vm3, %v1747_v42  ;;  %1733 = vst.msk [vmem:[#allocation7 + $0x18] sm:$0x3] %vm1551_vm3, %v1732_v43  ;;  %v1777_v45 = vld [vmem:[#allocation6 + $0x3c] sm:$0x3] }
 0x19d   :  { %1778 = vst.msk [vmem:[#allocation7 + $0x1e] sm:$0x3] %vm1551_vm3, %v1777_v45  ;;  %v1762_v46 = vld [vmem:[#allocation6 + $0x38] sm:$0x3]  ;;  %v1807_v47 = vld [vmem:[#allocation6 + $0x44] sm:$0x3] }
 0x19e   :  { %1758 = vrot.lane.b32.xlu1 %v9869_v35, %s11352_s22  ;;  %v1792_v48 = vld [vmem:[#allocation6 + $0x40] sm:$0x3]  ;;  %v9870_v49 = vld.sshfl [vmem:[#allocation6 + $0x3a] sm:$0x3 pattern:$0x76325410] }
 0x19f   :  { %1743 = vrot.lane.b32.xlu0 %v9868_v39, %s11352_s22  ;;  %1763 = vst.msk [vmem:[#allocation7 + $0x1c] sm:$0x3] %vm1551_vm3, %v1762_v46  ;;  %1808 = vst.msk [vmem:[#allocation7 + $0x22] sm:$0x3] %vm1551_vm3, %v1807_v47  ;;  %v1837_v50 = vld [vmem:[#allocation6 + $0x4c] sm:$0x3] }
 0x1a0   :  { %1793 = vst.msk [vmem:[#allocation7 + $0x20] sm:$0x3] %vm1551_vm3, %v1792_v48  ;;  %1838 = vst.msk [vmem:[#allocation7 + $0x26] sm:$0x3] %vm1551_vm3, %v1837_v50  ;;  %v1822_v51 = vld [vmem:[#allocation6 + $0x48] sm:$0x3] }
 0x1a1   :  { %1823 = vst.msk [vmem:[#allocation7 + $0x24] sm:$0x3] %vm1551_vm3, %v1822_v51  ;;  %v9873_v52 = vld.sshfl [vmem:[#allocation6 + $0x46] sm:$0x3 pattern:$0x76325410] }
 0x1a2   :  { %1788 = vrot.lane.b32.xlu1 %v9871_v44, %s11352_s22  ;;  %v9872_v53 = vld.sshfl [vmem:[#allocation6 + $0x42] sm:$0x3 pattern:$0x76325410]  ;;  %v1867_v58 = vld [vmem:[#allocation6 + $0x54] sm:$0x3] }
 0x1a3   :  { %1773 = vrot.lane.b32.xlu0 %v9870_v49, %s11352_s22  ;;  %v9875_v54 = vld.sshfl [vmem:[#allocation6 + $0x4e] sm:$0x3 pattern:$0x76325410]  ;;  %v1852_v59 = vld [vmem:[#allocation6 + $0x50] sm:$0x3] }
 0x1a4   :  { %v9874_v55 = vld.sshfl [vmem:[#allocation6 + $0x4a] sm:$0x3 pattern:$0x76325410]  ;;  %v1897_v60 = vld [vmem:[#allocation6 + $0x5c] sm:$0x3] }
 0x1a5   :  { %v9877_v56 = vld.sshfl [vmem:[#allocation6 + $0x56] sm:$0x3 pattern:$0x76325410]  ;;  %1868 = vst.msk [vmem:[#allocation7 + $0x2a] sm:$0x3] %vm1551_vm3, %v1867_v58 }
 0x1a6   :  { %1818 = vrot.lane.b32.xlu1 %v9873_v52, %s11352_s22  ;;  %v9876_v57 = vld.sshfl [vmem:[#allocation6 + $0x52] sm:$0x3 pattern:$0x76325410]  ;;  %1853 = vst.msk [vmem:[#allocation7 + $0x28] sm:$0x3] %vm1551_vm3, %v1852_v59 }
 0x1a7   :  { %1803 = vrot.lane.b32.xlu0 %v9872_v53, %s11352_s22  ;;  %v9879_v61 = vld.sshfl [vmem:[#allocation6 + $0x5e] sm:$0x3 pattern:$0x76325410]  ;;  %1898 = vst.msk [vmem:[#allocation7 + $0x2e] sm:$0x3] %vm1551_vm3, %v1897_v60 }
 0x1a8   :  { %v1882_v62 = vld [vmem:[#allocation6 + $0x58] sm:$0x3]  ;;  %v9878_v63 = vld.sshfl [vmem:[#allocation6 + $0x5a] sm:$0x3 pattern:$0x76325410] }
 0x1a9   :  { %1883 = vst.msk [vmem:[#allocation7 + $0x2c] sm:$0x3] %vm1551_vm3, %v1882_v62  ;;  %v10673_v0 = vpop.f32.mrb[12].mxu1  ;;  %v11353_v30 = vmov 1983009808   ;;  %v12446_v36 = vshrl.u32 %v2052_v32, 7 }
 0x1aa   :  { %1848 = vrot.lane.b32.xlu1 %v9875_v54, %s11352_s22  ;;  %v1504_v1 = vadd.f32 %v10673_v0, %v12281_v21  ;;  %v1498_v2 = vpop.f32.mrb[13].mxu1  ;;  %v2050_v31 = vunpack.c.l.s4 %v11353_v30  ;;  %v11021_v50 = vld [vmem:[%s15346_s3 + $0x100] sm:$0xff]   ;;  %v11025_v53 = vld [vmem:[%s15346_s3 + $0x148] sm:$0xff]   ;;  %v11029_v0 = vld [vmem:[%s15346_s3 + $0x150] sm:$0xff]  }
 0x1ab   :  { %1833 = vrot.lane.b32.xlu0 %v9874_v55, %s11352_s22  ;;  %v1499_v3 = vadd.f32 %v12281_v21, %v1498_v2  ;;  %v10676_v14 = vpop.f32.mrb[14].mxu1  ;;  %v11024_v55 = vld [vmem:[%s15346_s3 + $0x180] sm:$0xff]   ;;  %v11027_v58 = vld [vmem:[%s15346_s3 + $0x1c8] sm:$0xff]   ;;  %v11045_v30 = vld [vmem:[%s15346_s3 + $0x170] sm:$0xff]  }
 0x1ac   :  { %v1530_v4 = vmax.f32 %v1504_v1, 0.0  ;;  %v1514_v15 = vadd.f32 %v10676_v14, %v12281_v21  ;;  %v1508_v16 = vpop.f32.mrb[15].mxu1  ;;  %v2051_v35 = vunpack.c.0.s8 %v2050_v31  ;;  %v11028_v1 = vld [vmem:[%s15346_s3 + $0x188] sm:$0xff]   ;;  %v11035_v14 = vld [vmem:[%s15346_s3 + $0x1d8] sm:$0xff]  }
 0x1ad   :  { %v1529_v5 = vmax.f32 %v1499_v3, 0.0  ;;  %v1509_v17 = vadd.f32 %v12281_v21, %v1508_v16  ;;  %v11034_v16 = vld [vmem:[%s15346_s3 + $0x118] sm:$0xff]   ;;  %v11044_v31 = vld [vmem:[%s15346_s3 + $0x1a8] sm:$0xff]  }
 0x1ae   :  { %1878 = vrot.lane.b32.xlu1 %v9877_v56, %s11352_s22  ;;  %1547 = vst.msk [vmem:[#allocation6 + $0x68] sm:$0xff] %vm1533_vm2, %v1530_v4  ;;  %v1532_v18 = vmax.f32 %v1514_v15, 0.0  ;;  %v12450_v39 = vsub.s32 %v2051_v35, %v12446_v36 }
 0x1af   :  { %1863 = vrot.lane.b32.xlu0 %v9876_v57, %s11352_s22  ;;  %1546 = vst.msk [vmem:[#allocation6 + $0x60] sm:$0xff] %vm1533_vm2, %v1529_v5  ;;  %v1531_v19 = vmax.f32 %v1509_v17, 0.0  ;;  %v11031_v5 = vld [vmem:[%s15346_s3 + $0x1d0] sm:$0xff]   ;;  %v11037_v17 = vld [vmem:[%s15346_s3 + $0x160] sm:$0xff]  }
 0x1b0   :  { %1549 = vst.msk [vmem:[#allocation6 + $0x78] sm:$0xff] %vm1533_vm2, %v1532_v18  ;;  %v11036_v18 = vld [vmem:[%s15346_s3 + $0x198] sm:$0xff]  }
 0x1b1   :  { %1548 = vst.msk [vmem:[#allocation6 + $0x70] sm:$0xff] %vm1533_vm2, %v1531_v19 }
 0x1b2   :  { %1908 = vrot.lane.b32.xlu1 %v9879_v61, %s11352_s22  ;;  %v11026_v61 = vld [vmem:[%s15346_s3 + $0x108] sm:$0xff]  }
 0x1b3   :  { %1893 = vrot.lane.b32.xlu0 %v9878_v63, %s11352_s22 }
 0x1b5   :  { %v9883_v8 = vld.sshfl [vmem:[#allocation6 + $0x6e] sm:$0x3 pattern:$0x76325410]  ;;  %v1957_v12 = vld [vmem:[#allocation6 + $0x6c] sm:$0x3] }
 0x1b6   :  { %v9881_v6 = vld.sshfl [vmem:[#allocation6 + $0x66] sm:$0x3 pattern:$0x76325410]  ;;  %v1927_v10 = vld [vmem:[#allocation6 + $0x64] sm:$0x3] }
 0x1b7   :  { %1938 = vrot.lane.b32.xlu1 %v9881_v6, %s11352_s22  ;;  %v9880_v7 = vld.sshfl [vmem:[#allocation6 + $0x62] sm:$0x3 pattern:$0x76325410]  ;;  %v1912_v11 = vld [vmem:[#allocation6 + $0x60] sm:$0x3] }
 0x1b8   :  { %1923 = vrot.lane.b32.xlu0 %v9880_v7, %s11352_s22  ;;  %v9882_v9 = vld.sshfl [vmem:[#allocation6 + $0x6a] sm:$0x3 pattern:$0x76325410]  ;;  %1928 = vst.msk [vmem:[#allocation7 + $0x32] sm:$0x3] %vm1551_vm3, %v1927_v10 }
 0x1b9   :  { %1913 = vst.msk [vmem:[#allocation7 + $0x30] sm:$0x3] %vm1551_vm3, %v1912_v11  ;;  %1958 = vst.msk [vmem:[#allocation7 + $0x36] sm:$0x3] %vm1551_vm3, %v1957_v12  ;;  %v1942_v13 = vld [vmem:[#allocation6 + $0x68] sm:$0x3] }
 0x1ba   :  { %1943 = vst.msk [vmem:[#allocation7 + $0x34] sm:$0x3] %vm1551_vm3, %v1942_v13  ;;  %v9885_v20 = vld.sshfl [vmem:[#allocation6 + $0x76] sm:$0x3 pattern:$0x76325410] }
 0x1bb   :  { %1968 = vrot.lane.b32.xlu1 %v9883_v8, %s11352_s22  ;;  %v9884_v22 = vld.sshfl [vmem:[#allocation6 + $0x72] sm:$0x3 pattern:$0x76325410]  ;;  %v1987_v25 = vld [vmem:[#allocation6 + $0x74] sm:$0x3] }
 0x1bc   :  { %1953 = vrot.lane.b32.xlu0 %v9882_v9, %s11352_s22  ;;  %v9887_v23 = vld.sshfl [vmem:[#allocation6 + $0x7e] sm:$0x3 pattern:$0x76325410]  ;;  %1988 = vst.msk [vmem:[#allocation7 + $0x3a] sm:$0x3] %vm1551_vm3, %v1987_v25 }
 0x1bd   :  { %v9886_v24 = vld.sshfl [vmem:[#allocation6 + $0x7a] sm:$0x3 pattern:$0x76325410]  ;;  %v1972_v21 = vld [vmem:[#allocation6 + $0x70] sm:$0x3] }
 0x1be   :  { %v2017_v26 = vld [vmem:[#allocation6 + $0x7c] sm:$0x3]  ;;  %v2002_v27 = vld [vmem:[#allocation6 + $0x78] sm:$0x3]  ;;  %1973 = vst.msk [vmem:[#allocation7 + $0x38] sm:$0x3] %vm1551_vm3, %v1972_v21 }
 0x1bf   :  { %1998 = vrot.lane.b32.xlu1 %v9885_v20, %s11352_s22  ;;  %2018 = vst.msk [vmem:[#allocation7 + $0x3e] sm:$0x3] %vm1551_vm3, %v2017_v26  ;;  %2003 = vst.msk [vmem:[#allocation7 + $0x3c] sm:$0x3] %vm1551_vm3, %v2002_v27  ;;  %v11030_v7 = vld [vmem:[%s15346_s3 + $0x110] sm:$0xff]   ;;  %v11033_v10 = vld [vmem:[%s15346_s3 + $0x158] sm:$0xff]  }
 0x1c0   :  { %1983 = vrot.lane.b32.xlu0 %v9884_v22, %s11352_s22  ;;  %v11032_v11 = vld [vmem:[%s15346_s3 + $0x190] sm:$0xff]   ;;  %v11039_v20 = vld [vmem:[%s15346_s3 + $0x1e0] sm:$0xff]   ;;  %v11043_v26 = vld [vmem:[%s15346_s3 + $0x1e8] sm:$0xff]  }
 0x1c1   :  { %v11040_v25 = vld [vmem:[%s15346_s3 + $0x1a0] sm:$0xff]  }
 0x1c3   :  { %2028 = vrot.lane.b32.xlu1 %v9887_v23, %s11352_s22  ;;  %v11038_v23 = vld [vmem:[%s15346_s3 + $0x120] sm:$0xff]  }
 0x1c4   :  { %2013 = vrot.lane.b32.xlu0 %v9886_v24, %s11352_s22  ;;  %v11041_v24 = vld [vmem:[%s15346_s3 + $0x168] sm:$0xff]  }
 0x1f8   :  { %v1594_v28 = vpop.permute.xlu1 %1593 }
 0x1f9   :  { %1596 = vst.msk [vmem:[#allocation7 + $0x4] sm:$0x3] %vm1565_vm4, %v1594_v28  ;;  %v1563_v29 = vpop.permute.xlu0 %1562 }
 0x1fa   :  { %1566 = vst.msk [vmem:[#allocation7] sm:$0x3] %vm1565_vm4, %v1563_v29  ;;  %v11042_v29 = vld [vmem:[%s15346_s3 + $0x128] sm:$0xff]  }
 0x1fc   :  { %v1609_v33 = vpop.permute.xlu1 %1608 }
 0x1fd   :  { %1611 = vst.msk [vmem:[#allocation7 + $0x6] sm:$0x3] %vm1565_vm4, %v1609_v33  ;;  %v1579_v34 = vpop.permute.xlu0 %1578 }
 0x1fe   :  { %1581 = vst.msk [vmem:[#allocation7 + $0x2] sm:$0x3] %vm1565_vm4, %v1579_v34  ;;  %v11047_v34 = vld [vmem:[%s15346_s3 + $0x1f0] sm:$0xff]  }
 0x200   :  { %v1639_v37 = vpop.permute.xlu1 %1638 }
 0x201   :  { %1641 = vst.msk [vmem:[#allocation7 + $0xa] sm:$0x3] %vm1565_vm4, %v1639_v37  ;;  %v1624_v38 = vpop.permute.xlu0 %1623  ;;  %v11046_v37 = vld [vmem:[%s15346_s3 + $0x130] sm:$0xff]  }
 0x202   :  { %1626 = vst.msk [vmem:[#allocation7 + $0x8] sm:$0x3] %vm1565_vm4, %v1624_v38 }
 0x204   :  { %v1669_v40 = vpop.permute.xlu1 %1668 }
 0x205   :  { %v2032_v41 = vld [vmem:[#allocation7] sm:$0xff]  ;;  %1671 = vst.msk [vmem:[#allocation7 + $0xe] sm:$0x3] %vm1565_vm4, %v1669_v40  ;;  %v1654_v42 = vpop.permute.xlu0 %1653  ;;  %v11049_v40 = vld [vmem:[%s15346_s3 + $0x178] sm:$0xff]  }
 0x206   :  { %v2055_v43 = vrot.slane %v2032_v41, %v12450_v39  ;;  %v2048_v44 = vcombine.high %v2032_v41, %v2032_v41  ;;  %1656 = vst.msk [vmem:[#allocation7 + $0xc] sm:$0x3] %vm1565_vm4, %v1654_v42  ;;  %v11048_v41 = vld [vmem:[%s15346_s3 + $0x1b0] sm:$0xff]  }
 0x208   :  { %v2063_v45 = vcombine.high %v2055_v43, %v2055_v43  ;;  %v2062_v46 = vrot.slane %v2048_v44, %v12450_v39  ;;  %v1699_v47 = vpop.permute.xlu1 %1698  ;;  %v2216_v52 = vpack.c.bf16 %v2055_v43, %v2055_v43  ;;  %v11052_v44 = vld [vmem:[%s15346_s3 + $0x1f8] sm:$0xff]  }
 0x209   :  { %1701 = vst.msk [vmem:[#allocation7 + $0x12] sm:$0x3] %vm1565_vm4, %v1699_v47  ;;  %v1684_v48 = vpop.permute.xlu0 %1683 }
 0x20a   :  { %v2217_v49 = vpack.c.bf16 %v2063_v45, %v2063_v45  ;;  %v2064_v51 = vcombine.high %v2062_v46, %v2062_v46  ;;  %1686 = vst.msk [vmem:[#allocation7 + $0x10] sm:$0x3] %vm1565_vm4, %v1684_v48  ;;  %v2218_v57 = vpack.c.bf16 %v2062_v46, %v2062_v46  ;;  %v11050_v46 = vld [vmem:[%s15346_s3 + $0x138] sm:$0xff]   ;;  %v11054_v48 = vld [vmem:[%s15346_s3 + $0x240] sm:$0xff]  }
 0x20c   :  { %4335 = vmatprep.mubr.bf16.mxu1 %v2217_v49  ;;  %v2219_v54 = vpack.c.bf16 %v2064_v51, %v2064_v51  ;;  %v1729_v56 = vpop.permute.xlu1 %1728  ;;  %v11053_v49 = vld [vmem:[%s15346_s3 + $0x1b8] sm:$0xff]   ;;  %v11056_v51 = vld [vmem:[%s15346_s3 + $0x2c0] sm:$0xff]  }
 0x20d   :  { %4336 = vmatmul.mubr.bf16.vlgmr.msra.gmra.mrb[16].mxu1 %v2216_v52  ;;  %v2033_v59 = vld [vmem:[#allocation7 + $0x8] sm:$0xff]  ;;  %1731 = vst.msk [vmem:[#allocation7 + $0x16] sm:$0x3] %vm1565_vm4, %v1729_v56  ;;  %v1714_v60 = vpop.permute.xlu0 %1713  ;;  %v11055_v52 = vld [vmem:[%s15346_s3 + $0x200] sm:$0xff]  }
 0x20e   :  { %10336 = vmatpush3.bf16.msra.mxu1 %v11021_v50  ;;  %4375 = vmatprep.mubr.bf16.mxu0 %v2219_v54  ;;  %v12476_v62 = vrot.slane %v2033_v59, %v12450_v39  ;;  %v2065_v63 = vcombine.high %v2033_v59, %v2033_v59  ;;  %1716 = vst.msk [vmem:[#allocation7 + $0x14] sm:$0x3] %vm1565_vm4, %v1714_v60  ;;  %v11057_v56 = vld [vmem:[%s15346_s3 + $0x280] sm:$0xff]   ;;  %v11060_v59 = vld [vmem:[%s15346_s3 + $0x2c8] sm:$0xff]  }
 0x20f   :  { %4376 = vmatmul.mubr.bf16.vlgmr.msra.gmra.mrb[0].mxu0 %v2218_v57  ;;  %10337 = vmatprep.subr.bf16.mxu1 %v11025_v53  ;;  %v11059_v60 = vld [vmem:[%s15346_s3 + $0x208] sm:$0xff]  }
 0x210   :  { %10358 = vmatpush3.bf16.msra.mxu0 %v11024_v55  ;;  %v2080_v2 = vcombine.high %v12476_v62, %v12476_v62  ;;  %v12488_v3 = vrot.slane %v2065_v63, %v12450_v39  ;;  %v1759_v4 = vpop.permute.xlu1 %1758  ;;  %v2220_v54 = vpack.c.bf16 %v12476_v62, %v12476_v62  ;;  %v11058_v55 = vld [vmem:[%s15346_s3 + $0x248] sm:$0xff]   ;;  %v11064_v63 = vld [vmem:[%s15346_s3 + $0x2d0] sm:$0xff]  }
 0x211   :  { %10359 = vmatprep.subr.bf16.mxu0 %v11027_v58  ;;  %1761 = vst.msk [vmem:[#allocation7 + $0x1a] sm:$0x3] %vm1565_vm4, %v1759_v4  ;;  %v1744_v6 = vpop.permute.xlu0 %1743  ;;  %v11061_v62 = vld [vmem:[%s15346_s3 + $0x288] sm:$0xff]  }
 0x212   :  { %10338 = vmatpush3.bf16.msra.mxu1 %v11026_v61  ;;  %v2221_v8 = vpack.c.bf16 %v2080_v2, %v2080_v2  ;;  %v2081_v9 = vcombine.high %v12488_v3, %v12488_v3  ;;  %1746 = vst.msk [vmem:[#allocation7 + $0x18] sm:$0x3] %vm1565_vm4, %v1744_v6  ;;  %v2222_v58 = vpack.c.bf16 %v12488_v3, %v12488_v3  ;;  %v11062_v61 = vld [vmem:[%s15346_s3 + $0x250] sm:$0xff]   ;;  %v11068_v3 = vld [vmem:[%s15346_s3 + $0x2d8] sm:$0xff]  }
 0x213   :  { %10339 = vmatprep.subr.bf16.mxu1 %v11029_v0  ;;  %v11063_v0 = vld [vmem:[%s15346_s3 + $0x210] sm:$0xff]  }
 0x214   :  { %10360 = vmatpush3.bf16.msra.mxu0 %v11028_v1  ;;  %4415 = vmatprep.mubr.bf16.mxu1 %v2221_v8  ;;  %v2223_v12 = vpack.c.bf16 %v2081_v9, %v2081_v9  ;;  %v1789_v13 = vpop.permute.xlu1 %1788  ;;  %v11066_v1 = vld [vmem:[%s15346_s3 + $0x258] sm:$0xff]   ;;  %v11065_v2 = vld [vmem:[%s15346_s3 + $0x290] sm:$0xff]   ;;  %v11072_v9 = vld [vmem:[%s15346_s3 + $0x2e0] sm:$0xff]  }
 0x215   :  { %10361 = vmatprep.subr.bf16.mxu0 %v11031_v5  ;;  %1791 = vst.msk [vmem:[#allocation7 + $0x1e] sm:$0x3] %vm1565_vm4, %v1789_v13  ;;  %v1774_v15 = vpop.permute.xlu0 %1773  ;;  %v2034_v27 = vld [vmem:[#allocation7 + $0x10] sm:$0xff]  ;;  %v11074_v13 = vld [vmem:[%s15346_s3 + $0x268] sm:$0xff]  }
 0x216   :  { %10340 = vmatpush3.bf16.msra.mxu1 %v11030_v7  ;;  %4455 = vmatprep.mubr.bf16.mxu0 %v2223_v12  ;;  %1776 = vst.msk [vmem:[#allocation7 + $0x1c] sm:$0x3] %vm1565_vm4, %v1774_v15  ;;  %v2082_v32 = vcombine.high %v2034_v27, %v2034_v27  ;;  %v12556_v38 = vrot.slane %v2034_v27, %v12450_v39  ;;  %v11067_v5 = vld [vmem:[%s15346_s3 + $0x218] sm:$0xff]   ;;  %v11070_v7 = vld [vmem:[%s15346_s3 + $0x260] sm:$0xff]   ;;  %v11076_v15 = vld [vmem:[%s15346_s3 + $0x2e8] sm:$0xff]  }
 0x217   :  { %10341 = vmatprep.subr.bf16.mxu1 %v11033_v10  ;;  %v11069_v8 = vld [vmem:[%s15346_s3 + $0x298] sm:$0xff]  }
 0x218   :  { %10362 = vmatpush3.bf16.msra.mxu0 %v11032_v11  ;;  %v1819_v19 = vpop.permute.xlu1 %1818  ;;  %v12566_v42 = vrot.slane %v2082_v32, %v12450_v39  ;;  %v2097_v47 = vcombine.high %v12556_v38, %v12556_v38  ;;  %v11071_v11 = vld [vmem:[%s15346_s3 + $0x220] sm:$0xff]   ;;  %v11085_v27 = vld [vmem:[%s15346_s3 + $0x2f8] sm:$0xff]  }
 0x219   :  { %10363 = vmatprep.subr.bf16.mxu0 %v11035_v14  ;;  %1821 = vst.msk [vmem:[#allocation7 + $0x22] sm:$0x3] %vm1565_vm4, %v1819_v19  ;;  %v1804_v22 = vpop.permute.xlu0 %1803  ;;  %v11073_v14 = vld [vmem:[%s15346_s3 + $0x2a0] sm:$0xff]   ;;  %v11077_v19 = vld [vmem:[%s15346_s3 + $0x2a8] sm:$0xff]  }
 0x21a   :  { %10342 = vmatpush3.bf16.msra.mxu1 %v11034_v16  ;;  %1806 = vst.msk [vmem:[#allocation7 + $0x20] sm:$0x3] %vm1565_vm4, %v1804_v22  ;;  %v2098_v50 = vcombine.high %v12566_v42, %v12566_v42  ;;  %v2225_v53 = vpack.c.bf16 %v2097_v47, %v2097_v47  ;;  %v11080_v22 = vld [vmem:[%s15346_s3 + $0x2f0] sm:$0xff]  }
 0x21b   :  { %10343 = vmatprep.subr.bf16.mxu1 %v11037_v17  ;;  %v11075_v17 = vld [vmem:[%s15346_s3 + $0x228] sm:$0xff]   ;;  %v11097_v47 = vld [vmem:[%s15346_s3 + $0x3d0] sm:$0xff]  }
 0x21c   :  { %10364 = vmatpush3.bf16.msra.mxu0 %v11036_v18  ;;  %v1849_v21 = vpop.permute.xlu1 %1848  ;;  %v2227_v57 = vpack.c.bf16 %v2098_v50, %v2098_v50  ;;  %v11078_v18 = vld [vmem:[%s15346_s3 + $0x270] sm:$0xff]  }
 0x21d   :  { %10365 = vmatprep.subr.bf16.mxu0 %v11039_v20  ;;  %1851 = vst.msk [vmem:[#allocation7 + $0x26] sm:$0x3] %vm1565_vm4, %v1849_v21  ;;  %v1834_v28 = vpop.permute.xlu0 %1833  ;;  %v2035_v16 = vld [vmem:[#allocation7 + $0x18] sm:$0xff]  ;;  %v11081_v21 = vld [vmem:[%s15346_s3 + $0x2b0] sm:$0xff]  }
 0x21e   :  { %10344 = vmatpush3.bf16.msra.mxu1 %v11038_v23  ;;  %1836 = vst.msk [vmem:[#allocation7 + $0x24] sm:$0x3] %vm1565_vm4, %v1834_v28  ;;  %v2099_v20 = vcombine.high %v2035_v16, %v2035_v16  ;;  %v11079_v23 = vld [vmem:[%s15346_s3 + $0x230] sm:$0xff]   ;;  %v11083_v28 = vld [vmem:[%s15346_s3 + $0x238] sm:$0xff]  }
 0x21f   :  { %10345 = vmatprep.subr.bf16.mxu1 %v11041_v24  ;;  %v12673_v24 = vrot.slane %v2035_v16, %v12450_v39 }
 0x220   :  { %10366 = vmatpush3.bf16.msra.mxu0 %v11040_v25  ;;  %v1879_v33 = vpop.permute.xlu1 %1878  ;;  %v11082_v25 = vld [vmem:[%s15346_s3 + $0x278] sm:$0xff]  }
 0x221   :  { %10367 = vmatprep.subr.bf16.mxu0 %v11043_v26  ;;  %1881 = vst.msk [vmem:[#allocation7 + $0x2a] sm:$0x3] %vm1565_vm4, %v1879_v33  ;;  %v1864_v35 = vpop.permute.xlu0 %1863  ;;  %v12682_v26 = vrot.slane %v2099_v20, %v12450_v39  ;;  %v11089_v33 = vld [vmem:[%s15346_s3 + $0x3c0] sm:$0xff]   ;;  %v2228_v20 = vpack.c.bf16 %v12673_v24, %v12673_v24 }
 0x222   :  { %10346 = vmatpush3.bf16.msra.mxu1 %v11042_v29  ;;  %1866 = vst.msk [vmem:[#allocation7 + $0x28] sm:$0x3] %vm1565_vm4, %v1864_v35  ;;  %v2114_v29 = vcombine.high %v12673_v24, %v12673_v24  ;;  %v11126_v24 = vld [vmem:[%s15346_s3 + $0x4c8] sm:$0xff]  }
 0x223   :  { %10347 = vmatprep.subr.bf16.mxu1 %v11045_v30  ;;  %v11087_v30 = vld [vmem:[%s15346_s3 + $0x340] sm:$0xff]   ;;  %v2115_v32 = vcombine.high %v12682_v26, %v12682_v26 }
 0x224   :  { %10368 = vmatpush3.bf16.msra.mxu0 %v11044_v31  ;;  %v1909_v43 = vpop.permute.xlu1 %1908  ;;  %v11086_v31 = vld [vmem:[%s15346_s3 + $0x2b8] sm:$0xff]   ;;  %v2229_v35 = vpack.c.bf16 %v2114_v29, %v2114_v29  ;;  %v11130_v29 = vld [vmem:[%s15346_s3 + $0x4d0] sm:$0xff]  }
 0x225   :  { %10369 = vmatprep.subr.bf16.mxu0 %v11047_v34  ;;  %1911 = vst.msk [vmem:[#allocation7 + $0x2e] sm:$0x3] %vm1565_vm4, %v1909_v43  ;;  %v1894_v45 = vpop.permute.xlu0 %1893  ;;  %v11088_v34 = vld [vmem:[%s15346_s3 + $0x300] sm:$0xff]   ;;  %v2231_v43 = vpack.c.bf16 %v2115_v32, %v2115_v32  ;;  %v11131_v32 = vld [vmem:[%s15346_s3 + $0x490] sm:$0xff]  }
 0x226   :  { %10348 = vmatpush3.bf16.msra.mxu1 %v11046_v37  ;;  %1896 = vst.msk [vmem:[#allocation7 + $0x2c] sm:$0x3] %vm1565_vm4, %v1894_v45  ;;  %v2224_v37 = vpack.c.bf16 %v12556_v38, %v12556_v38  ;;  %v11093_v38 = vld [vmem:[%s15346_s3 + $0x3c8] sm:$0xff]  }
 0x227   :  { %10349 = vmatprep.subr.bf16.mxu1 %v11049_v40  ;;  %v11091_v40 = vld [vmem:[%s15346_s3 + $0x348] sm:$0xff]  }
 0x228   :  { %10370 = vmatpush3.bf16.msra.mxu0 %v11048_v41  ;;  %v11090_v41 = vld [vmem:[%s15346_s3 + $0x380] sm:$0xff]   ;;  %v11092_v45 = vld [vmem:[%s15346_s3 + $0x308] sm:$0xff]  }
 0x229   :  { %10371 = vmatprep.subr.bf16.mxu0 %v11052_v44  ;;  %v1939_v4 = vpop.permute.xlu1 %1938  ;;  %v2226_v44 = vpack.c.bf16 %v12566_v42, %v12566_v42  ;;  %v11094_v42 = vld [vmem:[%s15346_s3 + $0x388] sm:$0xff]  }
 0x22a   :  { %10350 = vmatpush3.bf16.msra.mxu1 %v11050_v46  ;;  %1941 = vst.msk [vmem:[#allocation7 + $0x32] sm:$0x3] %vm1565_vm4, %v1939_v4  ;;  %v1924_v6 = vpop.permute.xlu0 %1923  ;;  %v11095_v46 = vld [vmem:[%s15346_s3 + $0x350] sm:$0xff]  }
 0x22b   :  { %10379 = vmatprep.subr.bf16.mxu1 %v11054_v48  ;;  %1926 = vst.msk [vmem:[#allocation7 + $0x30] sm:$0x3] %vm1565_vm4, %v1924_v6  ;;  %v11096_v48 = vld [vmem:[%s15346_s3 + $0x310] sm:$0xff]  }
 0x22c   :  { %10372 = vmatpush3.bf16.msra.mxu0 %v11053_v49  ;;  %v11099_v49 = vld [vmem:[%s15346_s3 + $0x358] sm:$0xff]   ;;  %v11112_v6 = vld [vmem:[%s15346_s3 + $0x330] sm:$0xff]  }
 0x22d   :  { %4416 = vmatmul.mubr.bf16.vlgmr.msra.gmra.mrb[20].mxu1 %v2220_v54  ;;  %10401 = vmatprep.subr.bf16.mxu0 %v11056_v51  ;;  %v1969_v10 = vpop.permute.xlu1 %1968  ;;  %v11098_v51 = vld [vmem:[%s15346_s3 + $0x390] sm:$0xff]   ;;  %v11100_v54 = vld [vmem:[%s15346_s3 + $0x318] sm:$0xff]  }
 0x22e   :  { %10380 = vmatpush3.bf16.msra.mxu1 %v11055_v52  ;;  %4495 = vmatprep.mubr.bf16.mxu1 %v2225_v53  ;;  %1971 = vst.msk [vmem:[#allocation7 + $0x36] sm:$0x3] %vm1565_vm4, %v1969_v10  ;;  %v1954_v12 = vpop.permute.xlu0 %1953  ;;  %v11101_v53 = vld [vmem:[%s15346_s3 + $0x3d8] sm:$0xff]  }
 0x22f   :  { %4456 = vmatmul.mubr.bf16.vlgmr.msra.gmra.mrb[4].mxu0 %v2222_v58  ;;  %10381 = vmatprep.subr.bf16.mxu1 %v11058_v55  ;;  %1956 = vst.msk [vmem:[#allocation7 + $0x34] sm:$0x3] %vm1565_vm4, %v1954_v12  ;;  %v11103_v55 = vld [vmem:[%s15346_s3 + $0x360] sm:$0xff]   ;;  %v11116_v12 = vld [vmem:[%s15346_s3 + $0x338] sm:$0xff]  }
 0x230   :  { %10402 = vmatpush3.bf16.msra.mxu0 %v11057_v56  ;;  %4535 = vmatprep.mubr.bf16.mxu0 %v2227_v57  ;;  %v11102_v57 = vld [vmem:[%s15346_s3 + $0x398] sm:$0xff]  }
 0x231   :  { %10403 = vmatprep.subr.bf16.mxu0 %v11060_v59  ;;  %v1999_v50 = vpop.permute.xlu1 %1998  ;;  %v11105_v59 = vld [vmem:[%s15346_s3 + $0x3e0] sm:$0xff]  }
 0x232   :  { %10382 = vmatpush3.bf16.msra.mxu1 %v11059_v60  ;;  %2001 = vst.msk [vmem:[#allocation7 + $0x3a] sm:$0x3] %vm1565_vm4, %v1999_v50  ;;  %v1984_v52 = vpop.permute.xlu0 %1983  ;;  %v11104_v60 = vld [vmem:[%s15346_s3 + $0x320] sm:$0xff]   ;;  %v11145_v50 = vld [vmem:[%s15346_s3 + $0x430] sm:$0xff]  }
 0x233   :  { %10383 = vmatprep.subr.bf16.mxu1 %v11062_v61  ;;  %1986 = vst.msk [vmem:[#allocation7 + $0x38] sm:$0x3] %vm1565_vm4, %v1984_v52  ;;  %v11107_v61 = vld [vmem:[%s15346_s3 + $0x368] sm:$0xff]   ;;  %v11148_v52 = vld [vmem:[%s15346_s3 + $0x478] sm:$0xff]  }
 0x234   :  { %10404 = vmatpush3.bf16.msra.mxu0 %v11061_v62  ;;  %v11106_v62 = vld [vmem:[%s15346_s3 + $0x3a0] sm:$0xff]  }
 0x235   :  { %10405 = vmatprep.subr.bf16.mxu0 %v11064_v63  ;;  %v2029_v56 = vpop.permute.xlu1 %2028  ;;  %v11109_v63 = vld [vmem:[%s15346_s3 + $0x3e8] sm:$0xff]  }
 0x236   :  { %10384 = vmatpush3.bf16.msra.mxu1 %v11063_v0  ;;  %2031 = vst.msk [vmem:[#allocation7 + $0x3e] sm:$0x3] %vm1565_vm4, %v2029_v56  ;;  %v2014_v58 = vpop.permute.xlu0 %2013  ;;  %v2036_v0 = vld [vmem:[#allocation7 + $0x20] sm:$0xff]  ;;  %v11149_v56 = vld [vmem:[%s15346_s3 + $0x438] sm:$0xff]  }
 0x237   :  { %10385 = vmatprep.subr.bf16.mxu1 %v11066_v1  ;;  %2016 = vst.msk [vmem:[#allocation7 + $0x3c] sm:$0x3] %vm1565_vm4, %v2014_v58  ;;  %v11108_v1 = vld [vmem:[%s15346_s3 + $0x328] sm:$0xff]   ;;  %v2116_v4 = vcombine.high %v2036_v0, %v2036_v0  ;;  %v11153_v58 = vld [vmem:[%s15346_s3 + $0x540] sm:$0xff]  }
 0x238   :  { %10406 = vmatpush3.bf16.msra.mxu0 %v11065_v2  ;;  %v11111_v2 = vld [vmem:[%s15346_s3 + $0x370] sm:$0xff]  }
 0x239   :  { %10407 = vmatprep.subr.bf16.mxu0 %v11068_v3  ;;  %v11110_v3 = vld [vmem:[%s15346_s3 + $0x3a8] sm:$0xff]   ;;  %v12796_v10 = vrot.slane %v2116_v4, %v12450_v39 }
 0x23a   :  { %10386 = vmatpush3.bf16.msra.mxu1 %v11067_v5  ;;  %v11113_v5 = vld [vmem:[%s15346_s3 + $0x3f0] sm:$0xff]  }
 0x23b   :  { %10387 = vmatprep.subr.bf16.mxu1 %v11070_v7  ;;  %v12787_v7 = vrot.slane %v2036_v0, %v12450_v39  ;;  %v2132_v16 = vcombine.high %v12796_v10, %v12796_v10  ;;  %v2234_v4 = vpack.c.bf16 %v12796_v10, %v12796_v10  ;;  %v11162_v10 = vld [vmem:[%s15346_s3 + $0x510] sm:$0xff]  }
 0x23c   :  { %10408 = vmatpush3.bf16.msra.mxu0 %v11069_v8  ;;  %v11115_v8 = vld [vmem:[%s15346_s3 + $0x378] sm:$0xff]  }
 0x23d   :  { %10409 = vmatprep.subr.bf16.mxu0 %v11072_v9  ;;  %v11114_v9 = vld [vmem:[%s15346_s3 + $0x3b0] sm:$0xff]   ;;  %v2232_v0 = vpack.c.bf16 %v12787_v7, %v12787_v7 }
 0x23e   :  { %10388 = vmatpush3.bf16.msra.mxu1 %v11071_v11  ;;  %v11118_v11 = vld [vmem:[%s15346_s3 + $0x3f8] sm:$0xff]  }
 0x23f   :  { %10389 = vmatprep.subr.bf16.mxu1 %v11074_v13  ;;  %v2131_v13 = vcombine.high %v12787_v7, %v12787_v7  ;;  %v11161_v7 = vld [vmem:[%s15346_s3 + $0x550] sm:$0xff]  }
 0x240   :  { %10410 = vmatpush3.bf16.msra.mxu0 %v11073_v14  ;;  %v11120_v14 = vld [vmem:[%s15346_s3 + $0x440] sm:$0xff]  }
 0x241   :  { %10411 = vmatprep.subr.bf16.mxu0 %v11076_v15  ;;  %v11119_v15 = vld [vmem:[%s15346_s3 + $0x3b8] sm:$0xff]  }
 0x242   :  { %10390 = vmatpush3.bf16.msra.mxu1 %v11075_v17  ;;  %v11122_v17 = vld [vmem:[%s15346_s3 + $0x4c0] sm:$0xff]  }
 0x243   :  { %10391 = vmatprep.subr.bf16.mxu1 %v11078_v18  ;;  %v11121_v18 = vld [vmem:[%s15346_s3 + $0x400] sm:$0xff]  }
 0x244   :  { %10412 = vmatpush3.bf16.msra.mxu0 %v11077_v19  ;;  %v2233_v19 = vpack.c.bf16 %v2131_v13, %v2131_v13  ;;  %v11167_v13 = vld [vmem:[%s15346_s3 + $0x5d8] sm:$0xff]  }
 0x245   :  { %10413 = vmatprep.subr.bf16.mxu0 %v11080_v22  ;;  %v11124_v22 = vld [vmem:[%s15346_s3 + $0x448] sm:$0xff]  }
 0x246   :  { %10392 = vmatpush3.bf16.msra.mxu1 %v11079_v23  ;;  %v11123_v23 = vld [vmem:[%s15346_s3 + $0x480] sm:$0xff]  }
 0x247   :  { %10393 = vmatprep.subr.bf16.mxu1 %v11082_v25  ;;  %v2235_v25 = vpack.c.bf16 %v2132_v16, %v2132_v16  ;;  %v11168_v16 = vld [vmem:[%s15346_s3 + $0x598] sm:$0xff]  }
 0x248   :  { %10414 = vmatpush3.bf16.msra.mxu0 %v11081_v21  ;;  %v2230_v21 = vpack.c.bf16 %v12682_v26, %v12682_v26  ;;  %v11127_v26 = vld [vmem:[%s15346_s3 + $0x488] sm:$0xff]  }
 0x249   :  { %10415 = vmatprep.subr.bf16.mxu0 %v11085_v27  ;;  %v11125_v27 = vld [vmem:[%s15346_s3 + $0x408] sm:$0xff]  }
 0x24a   :  { %10394 = vmatpush3.bf16.msra.mxu1 %v11083_v28  ;;  %v11128_v28 = vld [vmem:[%s15346_s3 + $0x450] sm:$0xff]  }
 0x24b   :  { %10423 = vmatprep.subr.bf16.mxu1 %v11087_v30  ;;  %v11129_v30 = vld [vmem:[%s15346_s3 + $0x410] sm:$0xff]  }
 0x24c   :  { %10416 = vmatpush3.bf16.msra.mxu0 %v11086_v31  ;;  %v11132_v31 = vld [vmem:[%s15346_s3 + $0x458] sm:$0xff]  }
 0x24d   :  { %4496 = vmatmul.mubr.bf16.vlgmr.msra.gmra.mrb[24].mxu1 %v2224_v37  ;;  %10445 = vmatprep.subr.bf16.mxu0 %v11089_v33  ;;  %v11134_v33 = vld [vmem:[%s15346_s3 + $0x4d8] sm:$0xff]  }
 0x24e   :  { %10424 = vmatpush3.bf16.msra.mxu1 %v11088_v34  ;;  %4575 = vmatprep.mubr.bf16.mxu1 %v2229_v35  ;;  %v11133_v34 = vld [vmem:[%s15346_s3 + $0x418] sm:$0xff]   ;;  %v11136_v35 = vld [vmem:[%s15346_s3 + $0x460] sm:$0xff]  }
 0x24f   :  { %4536 = vmatmul.mubr.bf16.vlgmr.msra.gmra.mrb[8].mxu0 %v2226_v44  ;;  %10425 = vmatprep.subr.bf16.mxu1 %v11091_v40  ;;  %v11135_v37 = vld [vmem:[%s15346_s3 + $0x498] sm:$0xff]   ;;  %v11138_v40 = vld [vmem:[%s15346_s3 + $0x4e0] sm:$0xff]  }
 0x250   :  { %10446 = vmatpush3.bf16.msra.mxu0 %v11090_v41  ;;  %4615 = vmatprep.mubr.bf16.mxu0 %v2231_v43  ;;  %v11137_v41 = vld [vmem:[%s15346_s3 + $0x420] sm:$0xff]   ;;  %v11140_v43 = vld [vmem:[%s15346_s3 + $0x468] sm:$0xff]  }
 0x251   :  { %10447 = vmatprep.subr.bf16.mxu0 %v11093_v38  ;;  %v11139_v44 = vld [vmem:[%s15346_s3 + $0x4a0] sm:$0xff]   ;;  %v11142_v38 = vld [vmem:[%s15346_s3 + $0x4e8] sm:$0xff]  }
 0x252   :  { %10426 = vmatpush3.bf16.msra.mxu1 %v11092_v45  ;;  %v2037_v45 = vld [vmem:[#allocation7 + $0x28] sm:$0xff] }
 0x253   :  { %10427 = vmatprep.subr.bf16.mxu1 %v11095_v46  ;;  %v11141_v46 = vld [vmem:[%s15346_s3 + $0x428] sm:$0xff]  }
 0x254   :  { %10448 = vmatpush3.bf16.msra.mxu0 %v11094_v42  ;;  %v11144_v42 = vld [vmem:[%s15346_s3 + $0x470] sm:$0xff]  }
 0x255   :  { %10449 = vmatprep.subr.bf16.mxu0 %v11097_v47  ;;  %v11143_v47 = vld [vmem:[%s15346_s3 + $0x4a8] sm:$0xff]  }
 0x256   :  { %10428 = vmatpush3.bf16.msra.mxu1 %v11096_v48  ;;  %v2133_v48 = vcombine.high %v2037_v45, %v2037_v45 }
 0x257   :  { %10429 = vmatprep.subr.bf16.mxu1 %v11099_v49  ;;  %v11146_v49 = vld [vmem:[%s15346_s3 + $0x4f0] sm:$0xff]  }
 0x258   :  { %10450 = vmatpush3.bf16.msra.mxu0 %v11098_v51  ;;  %v12897_v51 = vrot.slane %v2037_v45, %v12450_v39 }
 0x259   :  { %10451 = vmatprep.subr.bf16.mxu0 %v11101_v53  ;;  %v11147_v53 = vld [vmem:[%s15346_s3 + $0x4b0] sm:$0xff]  }
 0x25a   :  { %10430 = vmatpush3.bf16.msra.mxu1 %v11100_v54  ;;  %v12906_v54 = vrot.slane %v2133_v48, %v12450_v39  ;;  %v2236_v45 = vpack.c.bf16 %v12897_v51, %v12897_v51 }
 0x25b   :  { %10431 = vmatprep.subr.bf16.mxu1 %v11103_v55  ;;  %v11151_v55 = vld [vmem:[%s15346_s3 + $0x4f8] sm:$0xff]  }
 0x25c   :  { %10452 = vmatpush3.bf16.msra.mxu0 %v11102_v57  ;;  %v2148_v57 = vcombine.high %v12897_v51, %v12897_v51  ;;  %v2238_v48 = vpack.c.bf16 %v12906_v54, %v12906_v54  ;;  %v11194_v51 = vld [vmem:[%s15346_s3 + $0x650] sm:$0xff]  }
 0x25d   :  { %10453 = vmatprep.subr.bf16.mxu0 %v11105_v59  ;;  %v11152_v59 = vld [vmem:[%s15346_s3 + $0x4b8] sm:$0xff]  }
 0x25e   :  { %10432 = vmatpush3.bf16.msra.mxu1 %v11104_v60  ;;  %v2149_v60 = vcombine.high %v12906_v54, %v12906_v54  ;;  %v11195_v54 = vld [vmem:[%s15346_s3 + $0x610] sm:$0xff]  }
 0x25f   :  { %10433 = vmatprep.subr.bf16.mxu1 %v11107_v61  ;;  %v11155_v61 = vld [vmem:[%s15346_s3 + $0x5c0] sm:$0xff]  }
 0x260   :  { %10454 = vmatpush3.bf16.msra.mxu0 %v11106_v62  ;;  %v11154_v62 = vld [vmem:[%s15346_s3 + $0x500] sm:$0xff]  }
 0x261   :  { %10455 = vmatprep.subr.bf16.mxu0 %v11109_v63  ;;  %v2237_v63 = vpack.c.bf16 %v2148_v57, %v2148_v57  ;;  %v11200_v57 = vld [vmem:[%s15346_s3 + $0x6d8] sm:$0xff]  }
 0x262   :  { %10434 = vmatpush3.bf16.msra.mxu1 %v11108_v1  ;;  %v11157_v1 = vld [vmem:[%s15346_s3 + $0x548] sm:$0xff]  }
 0x263   :  { %10435 = vmatprep.subr.bf16.mxu1 %v11111_v2  ;;  %v11156_v2 = vld [vmem:[%s15346_s3 + $0x580] sm:$0xff]  }
 0x264   :  { %10456 = vmatpush3.bf16.msra.mxu0 %v11110_v3  ;;  %v2239_v3 = vpack.c.bf16 %v2149_v60, %v2149_v60  ;;  %v11201_v60 = vld [vmem:[%s15346_s3 + $0x698] sm:$0xff]  }
 0x265   :  { %10457 = vmatprep.subr.bf16.mxu0 %v11113_v5  ;;  %v11159_v5 = vld [vmem:[%s15346_s3 + $0x5c8] sm:$0xff]  }
 0x266   :  { %10436 = vmatpush3.bf16.msra.mxu1 %v11112_v6  ;;  %v11158_v6 = vld [vmem:[%s15346_s3 + $0x508] sm:$0xff]  }
 0x267   :  { %10437 = vmatprep.subr.bf16.mxu1 %v11115_v8  ;;  %v11160_v8 = vld [vmem:[%s15346_s3 + $0x588] sm:$0xff]  }
 0x268   :  { %10458 = vmatpush3.bf16.msra.mxu0 %v11114_v9  ;;  %v11163_v9 = vld [vmem:[%s15346_s3 + $0x5d0] sm:$0xff]  }
 0x269   :  { %10459 = vmatprep.subr.bf16.mxu0 %v11118_v11  ;;  %v11165_v11 = vld [vmem:[%s15346_s3 + $0x558] sm:$0xff]  }
 0x26a   :  { %10438 = vmatpush3.bf16.msra.mxu1 %v11116_v12  ;;  %v11164_v12 = vld [vmem:[%s15346_s3 + $0x590] sm:$0xff]  }
 0x26b   :  { %10467 = vmatprep.subr.bf16.mxu1 %v11120_v14  ;;  %v11166_v14 = vld [vmem:[%s15346_s3 + $0x518] sm:$0xff]  }
 0x26c   :  { %10460 = vmatpush3.bf16.msra.mxu0 %v11119_v15  ;;  %v11169_v15 = vld [vmem:[%s15346_s3 + $0x560] sm:$0xff]  }
 0x26d   :  { %4576 = vmatmul.mubr.bf16.vlgmr.msra.gmra.mrb[28].mxu1 %v2228_v20  ;;  %10489 = vmatprep.subr.bf16.mxu0 %v11122_v17  ;;  %v11171_v17 = vld [vmem:[%s15346_s3 + $0x5e0] sm:$0xff]  }
 0x26e   :  { %10468 = vmatpush3.bf16.msra.mxu1 %v11121_v18  ;;  %4655 = vmatprep.mubr.bf16.mxu1 %v2233_v19  ;;  %v11170_v18 = vld [vmem:[%s15346_s3 + $0x520] sm:$0xff]   ;;  %v11173_v19 = vld [vmem:[%s15346_s3 + $0x568] sm:$0xff]  }
 0x26f   :  { %4616 = vmatmul.mubr.bf16.vlgmr.msra.gmra.mrb[12].mxu0 %v2230_v21  ;;  %10469 = vmatprep.subr.bf16.mxu1 %v11124_v22  ;;  %v11172_v20 = vld [vmem:[%s15346_s3 + $0x5a0] sm:$0xff]   ;;  %v11175_v22 = vld [vmem:[%s15346_s3 + $0x5e8] sm:$0xff]   ;;  %v11177_v21 = vld [vmem:[%s15346_s3 + $0x570] sm:$0xff]  }
 0x270   :  { %10490 = vmatpush3.bf16.msra.mxu0 %v11123_v23  ;;  %4695 = vmatprep.mubr.bf16.mxu0 %v2235_v25  ;;  %v2038_v23 = vld [vmem:[#allocation7 + $0x30] sm:$0xff]  ;;  %v11174_v25 = vld [vmem:[%s15346_s3 + $0x528] sm:$0xff]  }
 0x271   :  { %10491 = vmatprep.subr.bf16.mxu0 %v11126_v24  ;;  %v11176_v24 = vld [vmem:[%s15346_s3 + $0x5a8] sm:$0xff]  }
 0x272   :  { %10470 = vmatpush3.bf16.msra.mxu1 %v11125_v27  ;;  %v2150_v27 = vcombine.high %v2038_v23, %v2038_v23 }
 0x273   :  { %10471 = vmatprep.subr.bf16.mxu1 %v11128_v28  ;;  %v11179_v28 = vld [vmem:[%s15346_s3 + $0x5f0] sm:$0xff]  }
 0x274   :  { %10492 = vmatpush3.bf16.msra.mxu0 %v11127_v26  ;;  %v11178_v26 = vld [vmem:[%s15346_s3 + $0x530] sm:$0xff]  }
 0x275   :  { %10493 = vmatprep.subr.bf16.mxu0 %v11130_v29  ;;  %v13007_v29 = vrot.slane %v2038_v23, %v12450_v39 }
 0x276   :  { %10472 = vmatpush3.bf16.msra.mxu1 %v11129_v30  ;;  %v11181_v30 = vld [vmem:[%s15346_s3 + $0x578] sm:$0xff]  }
 0x277   :  { %10473 = vmatprep.subr.bf16.mxu1 %v11132_v31  ;;  %v11180_v31 = vld [vmem:[%s15346_s3 + $0x5b0] sm:$0xff]   ;;  %v2240_v23 = vpack.c.bf16 %v13007_v29, %v13007_v29 }
 0x278   :  { %10494 = vmatpush3.bf16.msra.mxu0 %v11131_v32  ;;  %v13016_v32 = vrot.slane %v2150_v27, %v12450_v39 }
 0x279   :  { %10495 = vmatprep.subr.bf16.mxu0 %v11134_v33  ;;  %v11184_v33 = vld [vmem:[%s15346_s3 + $0x5f8] sm:$0xff]  }
 0x27a   :  { %10474 = vmatpush3.bf16.msra.mxu1 %v11133_v34  ;;  %v11182_v34 = vld [vmem:[%s15346_s3 + $0x538] sm:$0xff]   ;;  %v2242_v27 = vpack.c.bf16 %v13016_v32, %v13016_v32 }
 0x27b   :  { %10475 = vmatprep.subr.bf16.mxu1 %v11136_v35  ;;  %v2165_v35 = vcombine.high %v13007_v29, %v13007_v29  ;;  %v11227_v29 = vld [vmem:[%s15346_s3 + $0x750] sm:$0xff]  }
 0x27c   :  { %10496 = vmatpush3.bf16.msra.mxu0 %v11135_v37  ;;  %v11186_v37 = vld [vmem:[%s15346_s3 + $0x640] sm:$0xff]  }
 0x27d   :  { %10497 = vmatprep.subr.bf16.mxu0 %v11138_v40  ;;  %v11185_v40 = vld [vmem:[%s15346_s3 + $0x5b8] sm:$0xff]  }
 0x27e   :  { %10476 = vmatpush3.bf16.msra.mxu1 %v11137_v41  ;;  %v2166_v41 = vcombine.high %v13016_v32, %v13016_v32  ;;  %v11228_v32 = vld [vmem:[%s15346_s3 + $0x710] sm:$0xff]  }
 0x27f   :  { %10477 = vmatprep.subr.bf16.mxu1 %v11140_v43  ;;  %v11188_v43 = vld [vmem:[%s15346_s3 + $0x6c0] sm:$0xff]  }
 0x280   :  { %10498 = vmatpush3.bf16.msra.mxu0 %v11139_v44  ;;  %v11187_v44 = vld [vmem:[%s15346_s3 + $0x600] sm:$0xff]  }
 0x281   :  { %10499 = vmatprep.subr.bf16.mxu0 %v11142_v38  ;;  %v2241_v38 = vpack.c.bf16 %v2165_v35, %v2165_v35  ;;  %v11233_v35 = vld [vmem:[%s15346_s3 + $0x7d8] sm:$0xff]  }
 0x282   :  { %10478 = vmatpush3.bf16.msra.mxu1 %v11141_v46  ;;  %v11190_v46 = vld [vmem:[%s15346_s3 + $0x648] sm:$0xff]  }
 0x283   :  { %10479 = vmatprep.subr.bf16.mxu1 %v11144_v42  ;;  %v11189_v42 = vld [vmem:[%s15346_s3 + $0x680] sm:$0xff]  }
 0x284   :  { %10500 = vmatpush3.bf16.msra.mxu0 %v11143_v47  ;;  %v2243_v47 = vpack.c.bf16 %v2166_v41, %v2166_v41  ;;  %v11234_v41 = vld [vmem:[%s15346_s3 + $0x798] sm:$0xff]  }
 0x285   :  { %10501 = vmatprep.subr.bf16.mxu0 %v11146_v49  ;;  %v11192_v49 = vld [vmem:[%s15346_s3 + $0x6c8] sm:$0xff]  }
 0x286   :  { %10480 = vmatpush3.bf16.msra.mxu1 %v11145_v50  ;;  %v11191_v50 = vld [vmem:[%s15346_s3 + $0x608] sm:$0xff]  }
 0x287   :  { %10481 = vmatprep.subr.bf16.mxu1 %v11148_v52  ;;  %v11193_v52 = vld [vmem:[%s15346_s3 + $0x688] sm:$0xff]  }
 0x288   :  { %10502 = vmatpush3.bf16.msra.mxu0 %v11147_v53  ;;  %v11196_v53 = vld [vmem:[%s15346_s3 + $0x6d0] sm:$0xff]  }
 0x289   :  { %10503 = vmatprep.subr.bf16.mxu0 %v11151_v55  ;;  %v11198_v55 = vld [vmem:[%s15346_s3 + $0x658] sm:$0xff]  }
 0x28a   :  { %10482 = vmatpush3.bf16.msra.mxu1 %v11149_v56  ;;  %v11197_v56 = vld [vmem:[%s15346_s3 + $0x690] sm:$0xff]  }
 0x28b   :  { %10511 = vmatprep.subr.bf16.mxu1 %v11153_v58  ;;  %v11199_v58 = vld [vmem:[%s15346_s3 + $0x618] sm:$0xff]  }
 0x28c   :  { %10504 = vmatpush3.bf16.msra.mxu0 %v11152_v59  ;;  %v11202_v59 = vld [vmem:[%s15346_s3 + $0x660] sm:$0xff]  }
 0x28d   :  { %4656 = vmatmul.mubr.bf16.vlgmr.msra.gmra.mrb[32].mxu1 %v2232_v0  ;;  %10533 = vmatprep.subr.bf16.mxu0 %v11155_v61  ;;  %v11204_v61 = vld [vmem:[%s15346_s3 + $0x6e0] sm:$0xff]  }
 0x28e   :  { %10512 = vmatpush3.bf16.msra.mxu1 %v11154_v62  ;;  %4735 = vmatprep.mubr.bf16.mxu1 %v2237_v63  ;;  %v11203_v62 = vld [vmem:[%s15346_s3 + $0x620] sm:$0xff]   ;;  %v11206_v63 = vld [vmem:[%s15346_s3 + $0x668] sm:$0xff]  }
 0x28f   :  { %4696 = vmatmul.mubr.bf16.vlgmr.msra.gmra.mrb[16].mxu0 %v2234_v4  ;;  %10513 = vmatprep.subr.bf16.mxu1 %v11157_v1  ;;  %v11205_v0 = vld [vmem:[%s15346_s3 + $0x6a0] sm:$0xff]   ;;  %v11208_v1 = vld [vmem:[%s15346_s3 + $0x6e8] sm:$0xff]   ;;  %v11210_v4 = vld [vmem:[%s15346_s3 + $0x670] sm:$0xff]  }
 0x290   :  { %10534 = vmatpush3.bf16.msra.mxu0 %v11156_v2  ;;  %4775 = vmatprep.mubr.bf16.mxu0 %v2239_v3  ;;  %v2039_v2 = vld [vmem:[#allocation7 + $0x38] sm:$0xff]  ;;  %v11207_v3 = vld [vmem:[%s15346_s3 + $0x628] sm:$0xff]  }
 0x291   :  { %10535 = vmatprep.subr.bf16.mxu0 %v11159_v5  ;;  %v11209_v5 = vld [vmem:[%s15346_s3 + $0x6a8] sm:$0xff]  }
 0x292   :  { %10514 = vmatpush3.bf16.msra.mxu1 %v11158_v6  ;;  %v2167_v6 = vcombine.high %v2039_v2, %v2039_v2 }
 0x293   :  { %10515 = vmatprep.subr.bf16.mxu1 %v11161_v7  ;;  %v11212_v7 = vld [vmem:[%s15346_s3 + $0x6f0] sm:$0xff]  }
 0x294   :  { %10536 = vmatpush3.bf16.msra.mxu0 %v11160_v8  ;;  %v11211_v8 = vld [vmem:[%s15346_s3 + $0x630] sm:$0xff]  }
 0x295   :  { %10537 = vmatprep.subr.bf16.mxu0 %v11163_v9  ;;  %v13117_v9 = vrot.slane %v2039_v2, %v12450_v39 }
 0x296   :  { %10516 = vmatpush3.bf16.msra.mxu1 %v11162_v10  ;;  %v11214_v10 = vld [vmem:[%s15346_s3 + $0x678] sm:$0xff]  }
 0x297   :  { %10517 = vmatprep.subr.bf16.mxu1 %v11165_v11  ;;  %v11213_v11 = vld [vmem:[%s15346_s3 + $0x6b0] sm:$0xff]  }
 0x298   :  { %10538 = vmatpush3.bf16.msra.mxu0 %v11164_v12  ;;  %v13126_v12 = vrot.slane %v2167_v6, %v12450_v39 }
 0x299   :  { %10539 = vmatprep.subr.bf16.mxu0 %v11167_v13  ;;  %v11217_v13 = vld [vmem:[%s15346_s3 + $0x6f8] sm:$0xff]  }
 0x29a   :  { %10518 = vmatpush3.bf16.msra.mxu1 %v11166_v14  ;;  %v11215_v14 = vld [vmem:[%s15346_s3 + $0x638] sm:$0xff]   ;;  %v2246_v6 = vpack.c.bf16 %v13126_v12, %v13126_v12 }
 0x29b   :  { %10519 = vmatprep.subr.bf16.mxu1 %v11169_v15  ;;  %v2182_v15 = vcombine.high %v13117_v9, %v13117_v9 }
 0x29c   :  { %10540 = vmatpush3.bf16.msra.mxu0 %v11168_v16  ;;  %v11219_v16 = vld [vmem:[%s15346_s3 + $0x740] sm:$0xff]  }
 0x29d   :  { %10541 = vmatprep.subr.bf16.mxu0 %v11171_v17  ;;  %v11218_v17 = vld [vmem:[%s15346_s3 + $0x6b8] sm:$0xff]  }
 0x29e   :  { %10520 = vmatpush3.bf16.msra.mxu1 %v11170_v18  ;;  %v2183_v18 = vcombine.high %v13126_v12, %v13126_v12 }
 0x29f   :  { %10521 = vmatprep.subr.bf16.mxu1 %v11173_v19  ;;  %v11221_v19 = vld [vmem:[%s15346_s3 + $0x7c0] sm:$0xff]  }
 0x2a0   :  { %10542 = vmatpush3.bf16.msra.mxu0 %v11172_v20  ;;  %v11220_v20 = vld [vmem:[%s15346_s3 + $0x700] sm:$0xff]  }
 0x2a1   :  { %10543 = vmatprep.subr.bf16.mxu0 %v11175_v22  ;;  %v2245_v22 = vpack.c.bf16 %v2182_v15, %v2182_v15 }
 0x2a2   :  { %10522 = vmatpush3.bf16.msra.mxu1 %v11174_v25  ;;  %v11223_v25 = vld [vmem:[%s15346_s3 + $0x748] sm:$0xff]  }
 0x2a3   :  { %10523 = vmatprep.subr.bf16.mxu1 %v11177_v21  ;;  %v11222_v21 = vld [vmem:[%s15346_s3 + $0x780] sm:$0xff]  }
 0x2a4   :  { %10544 = vmatpush3.bf16.msra.mxu0 %v11176_v24  ;;  %v2247_v24 = vpack.c.bf16 %v2183_v18, %v2183_v18 }
 0x2a5   :  { %10545 = vmatprep.subr.bf16.mxu0 %v11179_v28  ;;  %v11225_v28 = vld [vmem:[%s15346_s3 + $0x7c8] sm:$0xff]  }
 0x2a6   :  { %10524 = vmatpush3.bf16.msra.mxu1 %v11178_v26  ;;  %v11224_v26 = vld [vmem:[%s15346_s3 + $0x708] sm:$0xff]  }
 0x2a7   :  { %10525 = vmatprep.subr.bf16.mxu1 %v11181_v30  ;;  %v11226_v30 = vld [vmem:[%s15346_s3 + $0x788] sm:$0xff]  }
 0x2a8   :  { %10546 = vmatpush3.bf16.msra.mxu0 %v11180_v31  ;;  %v11229_v31 = vld [vmem:[%s15346_s3 + $0x7d0] sm:$0xff]  }
 0x2a9   :  { %10547 = vmatprep.subr.bf16.mxu0 %v11184_v33  ;;  %v11231_v33 = vld [vmem:[%s15346_s3 + $0x758] sm:$0xff]  }
 0x2aa   :  { %10526 = vmatpush3.bf16.msra.mxu1 %v11182_v34  ;;  %v11230_v34 = vld [vmem:[%s15346_s3 + $0x790] sm:$0xff]  }
 0x2ab   :  { %10555 = vmatprep.subr.bf16.mxu1 %v11186_v37  ;;  %v11232_v37 = vld [vmem:[%s15346_s3 + $0x718] sm:$0xff]  }
 0x2ac   :  { %10548 = vmatpush3.bf16.msra.mxu0 %v11185_v40  ;;  %v11235_v40 = vld [vmem:[%s15346_s3 + $0x760] sm:$0xff]  }
 0x2ad   :  { %4736 = vmatmul.mubr.bf16.vlgmr.msra.gmra.mrb[36].mxu1 %v2236_v45  ;;  %10577 = vmatprep.subr.bf16.mxu0 %v11188_v43  ;;  %v11237_v43 = vld [vmem:[%s15346_s3 + $0x7e0] sm:$0xff]  }
 0x2ae   :  { %10556 = vmatpush3.bf16.msra.mxu1 %v11187_v44  ;;  %4815 = vmatprep.mubr.bf16.mxu1 %v2241_v38  ;;  %v11236_v44 = vld [vmem:[%s15346_s3 + $0x720] sm:$0xff]   ;;  %v11239_v38 = vld [vmem:[%s15346_s3 + $0x768] sm:$0xff]  }
 0x2af   :  { %4776 = vmatmul.mubr.bf16.vlgmr.msra.gmra.mrb[20].mxu0 %v2238_v48  ;;  %10557 = vmatprep.subr.bf16.mxu1 %v11190_v46  ;;  %v11238_v45 = vld [vmem:[%s15346_s3 + $0x7a0] sm:$0xff]   ;;  %v11241_v46 = vld [vmem:[%s15346_s3 + $0x7e8] sm:$0xff]  }
 0x2b0   :  { %10578 = vmatpush3.bf16.msra.mxu0 %v11189_v42  ;;  %4855 = vmatprep.mubr.bf16.mxu0 %v2243_v47  ;;  %v11240_v42 = vld [vmem:[%s15346_s3 + $0x728] sm:$0xff]   ;;  %v11243_v47 = vld [vmem:[%s15346_s3 + $0x770] sm:$0xff]  }
 0x2b1   :  { %10579 = vmatprep.subr.bf16.mxu0 %v11192_v49  ;;  %v11242_v49 = vld [vmem:[%s15346_s3 + $0x7a8] sm:$0xff]  }
 0x2b2   :  { %10558 = vmatpush3.bf16.msra.mxu1 %v11191_v50  ;;  %v9888_v50 = vld [vmem:[%s15347_s4] ss:$0 sm:$0xff] }
 0x2b3   :  { %10559 = vmatprep.subr.bf16.mxu1 %v11194_v51 }
 0x2b4   :  { %10580 = vmatpush3.bf16.msra.mxu0 %v11193_v52  ;;  %v11245_v52 = vld [vmem:[%s15346_s3 + $0x7f0] sm:$0xff]  }
 0x2b5   :  { %10581 = vmatprep.subr.bf16.mxu0 %v11196_v53 }
 0x2b6   :  { %10560 = vmatpush3.bf16.msra.mxu1 %v11195_v54 }
 0x2b7   :  { %10561 = vmatprep.subr.bf16.mxu1 %v11198_v55 }
 0x2b8   :  { %10582 = vmatpush3.bf16.msra.mxu0 %v11197_v56  ;;  %v11244_v56 = vld [vmem:[%s15346_s3 + $0x730] sm:$0xff]  }
 0x2b9   :  { %10583 = vmatprep.subr.bf16.mxu0 %v11200_v57 }
 0x2ba   :  { %10562 = vmatpush3.bf16.msra.mxu1 %v11199_v58 }
 0x2bb   :  { %10563 = vmatprep.subr.bf16.mxu1 %v11202_v59  ;;  %v11247_v59 = vld [vmem:[%s15346_s3 + $0x778] sm:$0xff]  }
 0x2bc   :  { %10584 = vmatpush3.bf16.msra.mxu0 %v11201_v60 }
 0x2bd   :  { %10585 = vmatprep.subr.bf16.mxu0 %v11204_v61 }
 0x2be   :  { %10564 = vmatpush3.bf16.msra.mxu1 %v11203_v62 }
 0x2bf   :  { %10565 = vmatprep.subr.bf16.mxu1 %v11206_v63  ;;  %v11246_v63 = vld [vmem:[%s15346_s3 + $0x7b0] sm:$0xff]  }
 0x2c0   :  { %10586 = vmatpush3.bf16.msra.mxu0 %v11205_v0 }
 0x2c1   :  { %10587 = vmatprep.subr.bf16.mxu0 %v11208_v1  ;;  %v11250_v1 = vld [vmem:[%s15346_s3 + $0x7f8] sm:$0xff]  }
 0x2c2   :  { %10566 = vmatpush3.bf16.msra.mxu1 %v11207_v3  ;;  %v11249_v3 = vld [vmem:[%s15346_s3 + $0x738] sm:$0xff]  }
 0x2c3   :  { %10567 = vmatprep.subr.bf16.mxu1 %v11210_v4  ;;  %v11251_v4 = vld [vmem:[%s15346_s3 + $0x7b8] sm:$0xff]  }
 0x2c4   :  { %10588 = vmatpush3.bf16.msra.mxu0 %v11209_v5  ;;  %v2244_v5 = vpack.c.bf16 %v13117_v9, %v13117_v9 }
 0x2c5   :  { %10589 = vmatprep.subr.bf16.mxu0 %v11212_v7 }
 0x2c6   :  { %10568 = vmatpush3.bf16.msra.mxu1 %v11211_v8 }
 0x2c7   :  { %10569 = vmatprep.subr.bf16.mxu1 %v11214_v10 }
 0x2c8   :  { %10590 = vmatpush3.bf16.msra.mxu0 %v11213_v11 }
 0x2c9   :  { %10591 = vmatprep.subr.bf16.mxu0 %v11217_v13 }
 0x2ca   :  { %10570 = vmatpush3.bf16.msra.mxu1 %v11215_v14 }
 0x2cb   :  { %10599 = vmatprep.subr.bf16.mxu1 %v11219_v16 }
 0x2cc   :  { %10592 = vmatpush3.bf16.msra.mxu0 %v11218_v17 }
 0x2cd   :  { %4816 = vmatmul.mubr.bf16.vlgmr.msra.gmra.mrb[40].mxu1 %v2240_v23  ;;  %10621 = vmatprep.subr.bf16.mxu0 %v11221_v19 }
 0x2ce   :  { %10600 = vmatpush3.bf16.msra.mxu1 %v11220_v20  ;;  %4895 = vmatprep.mubr.bf16.mxu1 %v2245_v22 }
 0x2cf   :  { %4856 = vmatmul.mubr.bf16.vlgmr.msra.gmra.mrb[24].mxu0 %v2242_v27  ;;  %10601 = vmatprep.subr.bf16.mxu1 %v11223_v25 }
 0x2d0   :  { %10622 = vmatpush3.bf16.msra.mxu0 %v11222_v21  ;;  %4935 = vmatprep.mubr.bf16.mxu0 %v2247_v24 }
 0x2d1   :  { %10623 = vmatprep.subr.bf16.mxu0 %v11225_v28 }
 0x2d2   :  { %10602 = vmatpush3.bf16.msra.mxu1 %v11224_v26 }
 0x2d3   :  { %10603 = vmatprep.subr.bf16.mxu1 %v11227_v29 }
 0x2d4   :  { %10624 = vmatpush3.bf16.msra.mxu0 %v11226_v30 }
 0x2d5   :  { %10625 = vmatprep.subr.bf16.mxu0 %v11229_v31 }
 0x2d6   :  { %10604 = vmatpush3.bf16.msra.mxu1 %v11228_v32 }
 0x2d7   :  { %10605 = vmatprep.subr.bf16.mxu1 %v11231_v33 }
 0x2d8   :  { %10626 = vmatpush3.bf16.msra.mxu0 %v11230_v34 }
 0x2d9   :  { %10627 = vmatprep.subr.bf16.mxu0 %v11233_v35 }
 0x2da   :  { %10606 = vmatpush3.bf16.msra.mxu1 %v11232_v37 }
 0x2db   :  { %10607 = vmatprep.subr.bf16.mxu1 %v11235_v40 }
 0x2dc   :  { %10628 = vmatpush3.bf16.msra.mxu0 %v11234_v41 }
 0x2dd   :  { %10629 = vmatprep.subr.bf16.mxu0 %v11237_v43 }
 0x2de   :  { %10608 = vmatpush3.bf16.msra.mxu1 %v11236_v44 }
 0x2df   :  { %10609 = vmatprep.subr.bf16.mxu1 %v11239_v38 }
 0x2e0   :  { %10630 = vmatpush3.bf16.msra.mxu0 %v11238_v45  ;;  %v10307_v48 = vpop.f32.mrb[16].mxu1 }
 0x2e1   :  { %v10308_v51 = vpop.f32.mrb[17].mxu1  ;;  %10631 = vmatprep.subr.bf16.mxu0 %v11241_v46 }
 0x2e2   :  { %v10309_v53 = vadd.f32 %v10308_v51, %v10307_v48  ;;  %10610 = vmatpush3.bf16.msra.mxu1 %v11240_v42  ;;  %v10310_v54 = vpop.f32.mrb[18].mxu1  ;;  %v10329_v55 = vpop.f32.mrb[0].mxu0 }
 0x2e3   :  { %v10311_v57 = vpop.f32.mrb[19].mxu1  ;;  %v10330_v58 = vpop.f32.mrb[1].mxu0  ;;  %10611 = vmatprep.subr.bf16.mxu1 %v11243_v47 }
 0x2e4   :  { %v4338_v60 = vadd.f32 %v10309_v53, %v9888_v50  ;;  %v10331_v61 = vadd.f32 %v10330_v58, %v10329_v55  ;;  %10632 = vmatpush3.bf16.msra.mxu0 %v11242_v49  ;;  %v10332_v62 = vpop.f32.mrb[2].mxu0 }
 0x2e5   :  { %v10333_v0 = vpop.f32.mrb[3].mxu0  ;;  %10633 = vmatprep.subr.bf16.mxu0 %v11245_v52 }
 0x2e6   :  { %v4378_v2 = vadd.f32 %v10331_v61, %v4338_v60  ;;  %10612 = vmatpush3.bf16.msra.mxu1 %v11244_v56 }
 0x2e7   :  { %10613 = vmatprep.subr.bf16.mxu1 %v11247_v59 }
 0x2e8   :  { %10634 = vmatpush3.bf16.msra.mxu0 %v11246_v63 }
 0x2e9   :  { %10635 = vmatprep.subr.bf16.mxu0 %v11250_v1 }
 0x2ea   :  { %10614 = vmatpush3.bf16.msra.mxu1 %v11249_v3 }
 0x2ec   :  { %10636 = vmatpush3.bf16.msra.mxu0 %v11251_v4 }
 0x2ed   :  { %4896 = vmatmul.mubr.bf16.vlgmr.msra.gmra.mrb[44].mxu1 %v2244_v5 }
 0x2ef   :  { %4936 = vmatmul.mubr.bf16.vlgmr.msra.gmra.mrb[28].mxu0 %v2246_v6 }
 0x300   :  { %v10351_v7 = vpop.f32.mrb[20].mxu1 }
 0x301   :  { %v10352_v8 = vpop.f32.mrb[21].mxu1 }
 0x302   :  { %v10353_v10 = vadd.f32 %v10352_v8, %v10351_v7  ;;  %v10354_v11 = vpop.f32.mrb[22].mxu1  ;;  %v10373_v13 = vpop.f32.mrb[4].mxu0 }
 0x303   :  { %v10355_v14 = vpop.f32.mrb[23].mxu1  ;;  %v10374_v15 = vpop.f32.mrb[5].mxu0 }
 0x304   :  { %v4418_v16 = vadd.f32 %v10353_v10, %v4378_v2  ;;  %v10375_v17 = vadd.f32 %v10374_v15, %v10373_v13  ;;  %v10376_v18 = vpop.f32.mrb[6].mxu0 }
 0x305   :  { %v10377_v19 = vpop.f32.mrb[7].mxu0 }
 0x306   :  { %v4458_v20 = vadd.f32 %v10375_v17, %v4418_v16 }
 0x320   :  { %v10395_v22 = vpop.f32.mrb[24].mxu1 }
 0x321   :  { %v10396_v9 = vpop.f32.mrb[25].mxu1 }
 0x322   :  { %v10397_v23 = vadd.f32 %v10396_v9, %v10395_v22  ;;  %v10398_v25 = vpop.f32.mrb[26].mxu1  ;;  %v10417_v21 = vpop.f32.mrb[8].mxu0 }
 0x323   :  { %v10399_v24 = vpop.f32.mrb[27].mxu1  ;;  %v10418_v12 = vpop.f32.mrb[9].mxu0 }
 0x324   :  { %v4498_v27 = vadd.f32 %v10397_v23, %v4458_v20  ;;  %v10419_v28 = vadd.f32 %v10418_v12, %v10417_v21  ;;  %v10420_v26 = vpop.f32.mrb[10].mxu0 }
 0x325   :  { %v10421_v29 = vpop.f32.mrb[11].mxu0 }
 0x326   :  { %v4538_v30 = vadd.f32 %v10419_v28, %v4498_v27 }
 0x340   :  { %v10439_v31 = vpop.f32.mrb[28].mxu1 }
 0x341   :  { %v10440_v32 = vpop.f32.mrb[29].mxu1 }
 0x342   :  { %v10441_v33 = vadd.f32 %v10440_v32, %v10439_v31  ;;  %v10442_v34 = vpop.f32.mrb[30].mxu1  ;;  %v10461_v35 = vpop.f32.mrb[12].mxu0 }
 0x343   :  { %v10443_v37 = vpop.f32.mrb[31].mxu1  ;;  %v10462_v40 = vpop.f32.mrb[13].mxu0 }
 0x344   :  { %v4578_v41 = vadd.f32 %v10441_v33, %v4538_v30  ;;  %v10463_v43 = vadd.f32 %v10462_v40, %v10461_v35  ;;  %v10464_v44 = vpop.f32.mrb[14].mxu0 }
 0x345   :  { %v10465_v38 = vpop.f32.mrb[15].mxu0 }
 0x346   :  { %v4618_v45 = vadd.f32 %v10463_v43, %v4578_v41 }
 0x360   :  { %v10483_v46 = vpop.f32.mrb[32].mxu1 }
 0x361   :  { %v10484_v42 = vpop.f32.mrb[33].mxu1 }
 0x362   :  { %v10485_v47 = vadd.f32 %v10484_v42, %v10483_v46  ;;  %v10486_v48 = vpop.f32.mrb[34].mxu1  ;;  %v10505_v49 = vpop.f32.mrb[16].mxu0 }
 0x363   :  { %v10487_v50 = vpop.f32.mrb[35].mxu1  ;;  %v10506_v51 = vpop.f32.mrb[17].mxu0 }
 0x364   :  { %v4658_v52 = vadd.f32 %v10485_v47, %v4618_v45  ;;  %v10507_v53 = vadd.f32 %v10506_v51, %v10505_v49  ;;  %v10508_v54 = vpop.f32.mrb[18].mxu0  ;;  %v10145_v51 = vld [vmem:[%s15348_s5] ss:$0 sm:$0xff] }
 0x365   :  { %v10509_v55 = vpop.f32.mrb[19].mxu0 }
 0x366   :  { %v4698_v56 = vadd.f32 %v10507_v53, %v4658_v52  ;;  %v10146_v53 = vld [vmem:[%s15349_s6] ss:$0 sm:$0xff] }
 0x380   :  { %v10527_v57 = vpop.f32.mrb[36].mxu1 }
 0x381   :  { %v10528_v58 = vpop.f32.mrb[37].mxu1 }
 0x382   :  { %v10529_v59 = vadd.f32 %v10528_v58, %v10527_v57  ;;  %v10530_v60 = vpop.f32.mrb[38].mxu1  ;;  %v10549_v61 = vpop.f32.mrb[20].mxu0 }
 0x383   :  { %v10531_v62 = vpop.f32.mrb[39].mxu1  ;;  %v10550_v63 = vpop.f32.mrb[21].mxu0 }
 0x384   :  { %v4738_v0 = vadd.f32 %v10529_v59, %v4698_v56  ;;  %v10551_v1 = vadd.f32 %v10550_v63, %v10549_v61  ;;  %v10552_v2 = vpop.f32.mrb[22].mxu0 }
 0x385   :  { %v10553_v3 = vpop.f32.mrb[23].mxu0 }
 0x386   :  { %v4778_v4 = vadd.f32 %v10551_v1, %v4738_v0 }
 0x3a0   :  { %v10571_v5 = vpop.f32.mrb[40].mxu1 }
 0x3a1   :  { %v10572_v6 = vpop.f32.mrb[41].mxu1 }
 0x3a2   :  { %v10573_v7 = vadd.f32 %v10572_v6, %v10571_v5  ;;  %v10574_v8 = vpop.f32.mrb[42].mxu1  ;;  %v10593_v10 = vpop.f32.mrb[24].mxu0 }
 0x3a3   :  { %v10575_v11 = vpop.f32.mrb[43].mxu1  ;;  %v10594_v13 = vpop.f32.mrb[25].mxu0 }
 0x3a4   :  { %v4818_v14 = vadd.f32 %v10573_v7, %v4778_v4  ;;  %v10595_v15 = vadd.f32 %v10594_v13, %v10593_v10  ;;  %v10596_v16 = vpop.f32.mrb[26].mxu0 }
 0x3a5   :  { %v10597_v17 = vpop.f32.mrb[27].mxu0 }
 0x3a6   :  { %v4858_v18 = vadd.f32 %v10595_v15, %v4818_v14 }
 0x3c0   :  { %v10615_v19 = vpop.f32.mrb[44].mxu1 }
 0x3c1   :  { %v10616_v20 = vpop.f32.mrb[45].mxu1 }
 0x3c2   :  { %v10617_v22 = vadd.f32 %v10616_v20, %v10615_v19  ;;  %v10618_v9 = vpop.f32.mrb[46].mxu1  ;;  %v10637_v23 = vpop.f32.mrb[28].mxu0 }
 0x3c3   :  { %v10619_v25 = vpop.f32.mrb[47].mxu1  ;;  %v10638_v21 = vpop.f32.mrb[29].mxu0 }
 0x3c4   :  { %v4898_v24 = vadd.f32 %v10617_v22, %v4858_v18  ;;  %v10639_v12 = vadd.f32 %v10638_v21, %v10637_v23  ;;  %v10640_v27 = vpop.f32.mrb[30].mxu0 }
 0x3c5   :  { %v10641_v28 = vpop.f32.mrb[31].mxu0 }
 0x3c6   :  { %v4938_v26 = vadd.f32 %v10639_v12, %v4898_v24 }
 0x3c8   :  { %4944 = vst.msk [vmem:[#allocation10] sm:$0x3] %vm4943_vm5, %v4938_v26  ;;  %v4945_v29 = vsel %vm4943_vm5, %v4938_v26, 0.0 }
 0x3c9   :  { %v4946_v30 = vrot.slane %v4945_v29, 4 }
 0x3cb   :  { %v4947_v31 = vadd.f32 %v4946_v30, %v4945_v29 }
 0x3cd   :  { %v4948_v32 = vrot.slane %v4947_v31, 2 }
 0x3cf   :  { %v4949_v33 = vadd.f32 %v4948_v32, %v4947_v31 }
 0x3d1   :  { %v4950_v34 = vrot.slane %v4949_v33, 1 }
 0x3d3   :  { %v4951_v35 = vadd.f32 %v4950_v34, %v4949_v33 }
 0x3d5   :  { %v4953_v37 = vmul.f32 0.5, %v4951_v35 }
 0x3d7   :  { %v4954_v40 = vsub.f32 %v4938_v26, %v4953_v37 }
 0x3d9   :  { %v4955_v41 = vmul.f32 %v4954_v40, %v4954_v40 }
 0x3db   :  { %v4956_v43 = vsel %vm4943_vm5, %v4955_v41, 0.0 }
 0x3dc   :  { %v4957_v44 = vrot.slane %v4956_v43, 4 }
 0x3de   :  { %v4958_v38 = vadd.f32 %v4957_v44, %v4956_v43 }
 0x3e0   :  { %v4959_v45 = vrot.slane %v4958_v38, 2 }
 0x3e2   :  { %v4960_v46 = vadd.f32 %v4959_v45, %v4958_v38 }
 0x3e4   :  { %v4961_v42 = vrot.slane %v4960_v46, 1 }
 0x3e6   :  { %v4962_v47 = vadd.f32 %v4961_v42, %v4960_v46 }
 0x3e8   :  { %v4963_v48 = vmul.f32 0.5, %v4962_v47 }
 0x3ea   :  { %v4964_v49 = vadd.f32 0.8, %v4963_v48 }
 0x3ec   :  { %11252 = vrsqrt.f32 %v4964_v49 }
 0x3f6   :  { %v11253_v50 = vpop.eup %11252 }
 0x3f7   :  { %v4966_v52 = vmul.f32 %v11253_v50, %v4954_v40 }
 0x3f9   :  { %v4974_v54 = vmul.f32 %v10145_v51, %v4966_v52 }
 0x3fb   :  { %v4982_v55 = vadd.f32 %v10146_v53, %v4974_v54 }
 0x3fd   :  { %v4983_v56 = vmax.f32 %v4982_v55, 0.0 }
 0x3fe   :  { %11344 = dma.done.wait [#allocation5], 8192 }
 0x3ff   :  { %11345 = vsyncadd [#allocation5], 4294959104  ;;  %v15359_v57 = vmov 0   ;;  %v4990_v58 = vld [vmem:[#allocation2 + $0x8] sm:$0xff]  ;;  %v4989_v60 = vld [vmem:[#allocation2] sm:$0xff]  ;;  %v13256_v4 = vpack.c.bf16 %v4983_v56, %v4983_v56  ;;  %vm5221_vm6 = vcmask 261120  }
 0x400   :  { %5257 = vmatprep.mubr.bf16.mxu1 %v15359_v57  ;;  %5339 = vmatprep.mubr.bf16.mxu0 %v15359_v57  ;;  %v4994_v59 = vld [vmem:[#allocation2 + $0x28] sm:$0xff]  ;;  %v4993_v61 = vld [vmem:[#allocation2 + $0x20] sm:$0xff]  ;;  %v4992_v2 = vld [vmem:[#allocation2 + $0x18] sm:$0xff]  ;;  %vm5881_vm7 = vcmask 1041408  }
 0x401   :  { %5225 = vmatprep.subr.bf16.mxu1 %v4990_v58  ;;  %5307 = vmatprep.subr.bf16.mxu0 %v4994_v59  ;;  %v5022_v62 = vld [vmem:[#allocation2 + $0x108] sm:$0xff]  ;;  %v5021_v0 = vld [vmem:[#allocation2 + $0x100] sm:$0xff]  ;;  %v4991_v5 = vld [vmem:[#allocation2 + $0x10] sm:$0xff] }
 0x402   :  { %v5026_v63 = vld [vmem:[#allocation2 + $0x128] sm:$0xff]  ;;  %5226 = vmatpush1.bf16.msra.mxu1 %v4989_v60  ;;  %5308 = vmatpush1.bf16.msra.mxu0 %v4993_v61  ;;  %v5025_v1 = vld [vmem:[#allocation2 + $0x120] sm:$0xff]  ;;  %v5024_v7 = vld [vmem:[#allocation2 + $0x118] sm:$0xff] }
 0x403   :  { %5227 = vmatprep.subr.bf16.mxu1 %v5022_v62  ;;  %5309 = vmatprep.subr.bf16.mxu0 %v5026_v63  ;;  %v4998_v3 = vld [vmem:[#allocation2 + $0x48] sm:$0xff]  ;;  %v4997_v6 = vld [vmem:[#allocation2 + $0x40] sm:$0xff]  ;;  %v5023_v10 = vld [vmem:[#allocation2 + $0x110] sm:$0xff]  ;;  %v13305_v62 = vsub.s32 0, %v12446_v36  ;;  %v13308_v63 = vsub.s32 4, %v12446_v36 }
 0x404   :  { %v5030_v8 = vld [vmem:[#allocation2 + $0x148] sm:$0xff]  ;;  %v5029_v11 = vld [vmem:[#allocation2 + $0x140] sm:$0xff]  ;;  %v4996_v13 = vld [vmem:[#allocation2 + $0x38] sm:$0xff] }
 0x405   :  { %v5002_v14 = vld [vmem:[#allocation2 + $0x68] sm:$0xff]  ;;  %v4995_v15 = vld [vmem:[#allocation2 + $0x30] sm:$0xff]  ;;  %v5001_v16 = vld [vmem:[#allocation2 + $0x60] sm:$0xff] }
 0x406   :  { %5228 = vmatpush1.bf16.msra.mxu1 %v5021_v0  ;;  %5310 = vmatpush1.bf16.msra.mxu0 %v5025_v1  ;;  %v5028_v17 = vld [vmem:[#allocation2 + $0x138] sm:$0xff]  ;;  %v5034_v18 = vld [vmem:[#allocation2 + $0x168] sm:$0xff]  ;;  %v5027_v19 = vld [vmem:[#allocation2 + $0x130] sm:$0xff]  ;;  %v13316_v1 = vsub.s32 1, %v12446_v36 }
 0x407   :  { %5266 = vmatprep.subr.bf16.mxu1 %v4992_v2  ;;  %5389 = vmatprep.subr.bf16.mxu0 %v4998_v3  ;;  %v5033_v20 = vld [vmem:[#allocation2 + $0x160] sm:$0xff]  ;;  %v5000_v22 = vld [vmem:[#allocation2 + $0x58] sm:$0xff]  ;;  %v5006_v9 = vld [vmem:[#allocation2 + $0x88] sm:$0xff]  ;;  %v13319_v2 = vsub.s32 5, %v12446_v36  ;;  %v13322_v3 = vsub.s32 2, %v12446_v36 }
 0x408   :  { %v4999_v23 = vld [vmem:[#allocation2 + $0x50] sm:$0xff]  ;;  %v5005_v25 = vld [vmem:[#allocation2 + $0x80] sm:$0xff]  ;;  %v5032_v21 = vld [vmem:[#allocation2 + $0x158] sm:$0xff] }
 0x409   :  { %10147 = vmatmul.mubr.msk.bf16.vlgmr.msra.gmra.mrb[48].mxu1 %vm5221_vm6, %v13256_v4  ;;  %10149 = vmatmul.mubr.msk.bf16.vlgmr.msra.gmra.mrb[32].mxu0 %vm5221_vm6, %v13256_v4  ;;  %v5038_v24 = vld [vmem:[#allocation2 + $0x188] sm:$0xff]  ;;  %v5031_v12 = vld [vmem:[#allocation2 + $0x150] sm:$0xff]  ;;  %v5037_v27 = vld [vmem:[#allocation2 + $0x180] sm:$0xff] }
 0x40a   :  { %5267 = vmatpush1.bf16.msra.mxu1 %v4991_v5  ;;  %5390 = vmatpush1.bf16.msra.mxu0 %v4997_v6  ;;  %v5004_v28 = vld [vmem:[#allocation2 + $0x78] sm:$0xff]  ;;  %v5010_v26 = vld [vmem:[#allocation2 + $0xa8] sm:$0xff]  ;;  %v5003_v29 = vld [vmem:[#allocation2 + $0x70] sm:$0xff]  ;;  %v13330_v5 = vsub.s32 3, %v12446_v36  ;;  %v13333_v6 = vsub.s32 6, %v12446_v36 }
 0x40b   :  { %5268 = vmatprep.subr.bf16.mxu1 %v5024_v7  ;;  %5391 = vmatprep.subr.bf16.mxu0 %v5030_v8  ;;  %v5009_v30 = vld [vmem:[#allocation2 + $0xa0] sm:$0xff]  ;;  %v5036_v31 = vld [vmem:[#allocation2 + $0x178] sm:$0xff]  ;;  %v5042_v32 = vld [vmem:[#allocation2 + $0x1a8] sm:$0xff]  ;;  %v13336_v7 = vsub.s32 7, %v12446_v36 }
 0x40c   :  { %5298 = vmatprep.mubr.bf16.mxu1 %v15359_v57  ;;  %5421 = vmatprep.mubr.bf16.mxu0 %v15359_v57  ;;  %v5035_v33 = vld [vmem:[#allocation2 + $0x170] sm:$0xff]  ;;  %v5041_v34 = vld [vmem:[#allocation2 + $0x1a0] sm:$0xff]  ;;  %v5008_v35 = vld [vmem:[#allocation2 + $0x98] sm:$0xff] }
 0x40d   :  { %v5014_v37 = vld [vmem:[#allocation2 + $0xc8] sm:$0xff]  ;;  %v5007_v40 = vld [vmem:[#allocation2 + $0x90] sm:$0xff]  ;;  %v5013_v41 = vld [vmem:[#allocation2 + $0xc0] sm:$0xff] }
 0x40e   :  { %5269 = vmatpush1.bf16.msra.mxu1 %v5023_v10  ;;  %5392 = vmatpush1.bf16.msra.mxu0 %v5029_v11  ;;  %v5040_v43 = vld [vmem:[#allocation2 + $0x198] sm:$0xff]  ;;  %v5046_v44 = vld [vmem:[#allocation2 + $0x1c8] sm:$0xff]  ;;  %v5039_v38 = vld [vmem:[#allocation2 + $0x190] sm:$0xff] }
 0x40f   :  { %5348 = vmatprep.subr.bf16.mxu1 %v4996_v13  ;;  %5471 = vmatprep.subr.bf16.mxu0 %v5002_v14  ;;  %v5045_v45 = vld [vmem:[#allocation2 + $0x1c0] sm:$0xff]  ;;  %v5012_v46 = vld [vmem:[#allocation2 + $0xb8] sm:$0xff]  ;;  %v5018_v42 = vld [vmem:[#allocation2 + $0xe8] sm:$0xff] }
 0x410   :  { %v5011_v47 = vld [vmem:[#allocation2 + $0xb0] sm:$0xff]  ;;  %v5017_v48 = vld [vmem:[#allocation2 + $0xe0] sm:$0xff]  ;;  %v5044_v49 = vld [vmem:[#allocation2 + $0x1b8] sm:$0xff] }
 0x411   :  { %10148 = vmatmul.mubr.msk.bf16.vlgmr.msra.gmra.mrb[52].mxu1 %vm5221_vm6, %v13256_v4  ;;  %10151 = vmatmul.mubr.msk.bf16.vlgmr.msra.gmra.mrb[36].mxu0 %vm5221_vm6, %v13256_v4  ;;  %v5050_v50 = vld [vmem:[#allocation2 + $0x1e8] sm:$0xff]  ;;  %v5043_v51 = vld [vmem:[#allocation2 + $0x1b0] sm:$0xff]  ;;  %v5049_v52 = vld [vmem:[#allocation2 + $0x1e0] sm:$0xff] }
 0x412   :  { %5349 = vmatpush1.bf16.msra.mxu1 %v4995_v15  ;;  %5472 = vmatpush1.bf16.msra.mxu0 %v5001_v16  ;;  %v5016_v53 = vld [vmem:[#allocation2 + $0xd8] sm:$0xff]  ;;  %v5015_v54 = vld [vmem:[#allocation2 + $0xd0] sm:$0xff]  ;;  %v13313_v0 = vld [vmem:[%s15351_s8] sm:$0xff] }
 0x413   :  { %5350 = vmatprep.subr.bf16.mxu1 %v5028_v17  ;;  %5473 = vmatprep.subr.bf16.mxu0 %v5034_v18  ;;  %v5048_v55 = vld [vmem:[#allocation2 + $0x1d8] sm:$0xff]  ;;  %v5047_v56 = vld [vmem:[#allocation2 + $0x1d0] sm:$0xff]  ;;  %v5064_v8 = vrot.slane %v13313_v0, %v13305_v62  ;;  %v13343_v10 = vld [vmem:[%s15352_s9] sm:$0xff]  ;;  %v5080_v11 = vrot.slane %v13313_v0, %v13308_v63  ;;  %v5068_v36 = vrot.slane %v13313_v0, %v13316_v1 }
 0x414   :  { %5380 = vmatprep.mubr.bf16.mxu1 %v15359_v57  ;;  %5503 = vmatprep.mubr.bf16.mxu0 %v15359_v57  ;;  %v5020_v58 = vld [vmem:[#allocation2 + $0xf8] sm:$0xff]  ;;  %v5019_v59 = vld [vmem:[#allocation2 + $0xf0] sm:$0xff]  ;;  %v13350_v13 = vld [vmem:[%s15353_s10] sm:$0xff]  ;;  %v5084_v14 = vrot.slane %v13313_v0, %v13319_v2  ;;  %v5072_v15 = vrot.slane %v13313_v0, %v13322_v3  ;;  %v5076_v17 = vrot.slane %v13313_v0, %v13330_v5 }
 0x415   :  { %v5052_v60 = vld [vmem:[#allocation2 + $0x1f8] sm:$0xff]  ;;  %v5051_v61 = vld [vmem:[#allocation2 + $0x1f0] sm:$0xff] }
 0x416   :  { %5351 = vmatpush1.bf16.msra.mxu1 %v5027_v19  ;;  %5474 = vmatpush1.bf16.msra.mxu0 %v5033_v20  ;;  %v5088_v19 = vrot.slane %v13313_v0, %v13333_v6 }
 0x417   :  { %5430 = vmatprep.subr.bf16.mxu1 %v5000_v22  ;;  %5553 = vmatprep.subr.bf16.mxu0 %v5006_v9 }
 0x419   :  { %10150 = vmatmul.mubr.msk.bf16.vlgmr.msra.gmra.mrb[56].mxu1 %vm5221_vm6, %v13256_v4  ;;  %10153 = vmatmul.mubr.msk.bf16.vlgmr.msra.gmra.mrb[40].mxu0 %vm5221_vm6, %v13256_v4 }
 0x41a   :  { %5431 = vmatpush1.bf16.msra.mxu1 %v4999_v23  ;;  %5554 = vmatpush1.bf16.msra.mxu0 %v5005_v25  ;;  %v13375_v23 = vld [vmem:[%s15352_s9 + $0x8] sm:$0xff] }
 0x41b   :  { %5432 = vmatprep.subr.bf16.mxu1 %v5032_v21  ;;  %5555 = vmatprep.subr.bf16.mxu0 %v5038_v24  ;;  %v13380_v25 = vld [vmem:[%s15353_s10 + $0x8] sm:$0xff] }
 0x41c   :  { %5462 = vmatprep.mubr.bf16.mxu1 %v15359_v57  ;;  %5585 = vmatprep.mubr.bf16.mxu0 %v15359_v57 }
 0x41e   :  { %5433 = vmatpush1.bf16.msra.mxu1 %v5031_v12  ;;  %5556 = vmatpush1.bf16.msra.mxu0 %v5037_v27  ;;  %v13389_v12 = vld [vmem:[%s15351_s8 + $0x10] sm:$0xff] }
 0x41f   :  { %5512 = vmatprep.subr.bf16.mxu1 %v5004_v28  ;;  %5635 = vmatprep.subr.bf16.mxu0 %v5010_v26 }
 0x421   :  { %10152 = vmatmul.mubr.msk.bf16.vlgmr.msra.gmra.mrb[60].mxu1 %vm5221_vm6, %v13256_v4  ;;  %10155 = vmatmul.mubr.msk.bf16.vlgmr.msra.gmra.mrb[44].mxu0 %vm5221_vm6, %v13256_v4 }
 0x422   :  { %5513 = vmatpush1.bf16.msra.mxu1 %v5003_v29  ;;  %5636 = vmatpush1.bf16.msra.mxu0 %v5009_v30 }
 0x423   :  { %5514 = vmatprep.subr.bf16.mxu1 %v5036_v31  ;;  %5637 = vmatprep.subr.bf16.mxu0 %v5042_v32 }
 0x424   :  { %5544 = vmatprep.mubr.bf16.mxu1 %v15359_v57  ;;  %5667 = vmatprep.mubr.bf16.mxu0 %v15359_v57 }
 0x426   :  { %5515 = vmatpush1.bf16.msra.mxu1 %v5035_v33  ;;  %5638 = vmatpush1.bf16.msra.mxu0 %v5041_v34 }
 0x427   :  { %5594 = vmatprep.subr.bf16.mxu1 %v5008_v35  ;;  %5717 = vmatprep.subr.bf16.mxu0 %v5014_v37 }
 0x429   :  { %10154 = vmatmul.mubr.msk.bf16.vlgmr.msra.gmra.mrb[64].mxu1 %vm5221_vm6, %v13256_v4  ;;  %10157 = vmatmul.mubr.msk.bf16.vlgmr.msra.gmra.mrb[48].mxu0 %vm5221_vm6, %v13256_v4 }
 0x42a   :  { %5595 = vmatpush1.bf16.msra.mxu1 %v5007_v40  ;;  %5718 = vmatpush1.bf16.msra.mxu0 %v5013_v41 }
 0x42b   :  { %5596 = vmatprep.subr.bf16.mxu1 %v5040_v43  ;;  %5719 = vmatprep.subr.bf16.mxu0 %v5046_v44 }
 0x42c   :  { %5626 = vmatprep.mubr.bf16.mxu1 %v15359_v57  ;;  %5749 = vmatprep.mubr.bf16.mxu0 %v15359_v57 }
 0x42e   :  { %5597 = vmatpush1.bf16.msra.mxu1 %v5039_v38  ;;  %5720 = vmatpush1.bf16.msra.mxu0 %v5045_v45 }
 0x42f   :  { %5676 = vmatprep.subr.bf16.mxu1 %v5012_v46  ;;  %5799 = vmatprep.subr.bf16.mxu0 %v5018_v42 }
 0x431   :  { %10156 = vmatmul.mubr.msk.bf16.vlgmr.msra.gmra.mrb[68].mxu1 %vm5221_vm6, %v13256_v4  ;;  %10159 = vmatmul.mubr.msk.bf16.vlgmr.msra.gmra.mrb[52].mxu0 %vm5221_vm6, %v13256_v4 }
 0x432   :  { %5677 = vmatpush1.bf16.msra.mxu1 %v5011_v47  ;;  %5800 = vmatpush1.bf16.msra.mxu0 %v5017_v48 }
 0x433   :  { %5678 = vmatprep.subr.bf16.mxu1 %v5044_v49  ;;  %5801 = vmatprep.subr.bf16.mxu0 %v5050_v50 }
 0x434   :  { %5708 = vmatprep.mubr.bf16.mxu1 %v15359_v57  ;;  %5831 = vmatprep.mubr.bf16.mxu0 %v15359_v57 }
 0x436   :  { %5679 = vmatpush1.bf16.msra.mxu1 %v5043_v51  ;;  %5802 = vmatpush1.bf16.msra.mxu0 %v5049_v52 }
 0x437   :  { %5758 = vmatprep.subr.bf16.mxu1 %v5016_v53 }
 0x439   :  { %10158 = vmatmul.mubr.msk.bf16.vlgmr.msra.gmra.mrb[72].mxu1 %vm5221_vm6, %v13256_v4  ;;  %10161 = vmatmul.mubr.msk.bf16.vlgmr.msra.gmra.mrb[56].mxu0 %vm5221_vm6, %v13256_v4 }
 0x43a   :  { %5759 = vmatpush1.bf16.msra.mxu1 %v5015_v54  ;;  %5790 = vmatprep.mubr.bf16.mxu1 %v15359_v57 }
 0x43b   :  { %5760 = vmatprep.subr.bf16.mxu1 %v5048_v55 }
 0x43e   :  { %5761 = vmatpush1.bf16.msra.mxu1 %v5047_v56 }
 0x43f   :  { %5840 = vmatprep.subr.bf16.mxu1 %v5020_v58 }
 0x441   :  { %10160 = vmatmul.mubr.msk.bf16.vlgmr.msra.gmra.mrb[76].mxu1 %vm5221_vm6, %v13256_v4 }
 0x442   :  { %5841 = vmatpush1.bf16.msra.mxu1 %v5019_v59  ;;  %5872 = vmatprep.mubr.bf16.mxu1 %v15359_v57 }
 0x443   :  { %5842 = vmatprep.subr.bf16.mxu1 %v5052_v60 }
 0x446   :  { %5843 = vmatpush1.bf16.msra.mxu1 %v5051_v61 }
 0x449   :  { %10162 = vmatmul.mubr.msk.bf16.vlgmr.msra.gmra.mrb[80].mxu1 %vm5221_vm6, %v13256_v4  ;;  %v13327_v4 = vld [vmem:[%s15351_s8 + $0x8] sm:$0xff] }
 0x44a   :  { %v5096_v16 = vrot.slane %v13327_v4, %v13305_v62  ;;  %v5100_v18 = vrot.slane %v13327_v4, %v13316_v1  ;;  %v5112_v20 = vrot.slane %v13327_v4, %v13308_v63 }
 0x4dc   :  { %v5259_v34 = vpop.f32.mrb[48].mxu1  ;;  %v5341_v35 = vpop.f32.mrb[32].mxu0 }
 0x4dd   :  { %v13415_v44 = vadd.f32 %v5259_v34, %v5064_v8  ;;  %v13417_v38 = vadd.f32 %v5341_v35, %v5080_v11  ;;  %v5261_v45 = vpop.f32.mrb[49].mxu1  ;;  %v5343_v46 = vpop.f32.mrb[33].mxu0 }
 0x4de   :  { %v13423_v48 = vadd.f32 %v5261_v45, %v5068_v36  ;;  %v13425_v49 = vadd.f32 %v5343_v46, %v5084_v14  ;;  %v5263_v50 = vpop.f32.mrb[50].mxu1  ;;  %v5345_v51 = vpop.f32.mrb[34].mxu0 }
 0x4df   :  { %v5882_v54 = vsel %vm5881_vm7, %v13415_v44, 0.0  ;;  %v5910_v55 = vsel %vm5881_vm7, %v13417_v38, 0.0  ;;  %v5264_v56 = vpop.f32.mrb[51].mxu1  ;;  %v5346_v58 = vpop.f32.mrb[35].mxu0 }
 0x4e0   :  { %v5883_v61 = vrot.slane %v5882_v54, 4  ;;  %v5911_v8 = vrot.slane %v5910_v55, 4  ;;  %v5889_v11 = vsel %vm5881_vm7, %v13423_v48, 0.0  ;;  %v5917_v36 = vsel %vm5881_vm7, %v13425_v49, 0.0 }
 0x4e1   :  { %v5890_v14 = vrot.slane %v5889_v11, 4  ;;  %v5918_v34 = vrot.slane %v5917_v36, 4 }
 0x4e2   :  { %v5884_v46 = vadd.f32 %v5883_v61, %v5882_v54  ;;  %v5912_v50 = vadd.f32 %v5911_v8, %v5910_v55 }
 0x4e3   :  { %v5891_v58 = vadd.f32 %v5890_v14, %v5889_v11  ;;  %v5919_v57 = vadd.f32 %v5918_v34, %v5917_v36 }
 0x4e4   :  { %v5885_v35 = vrot.slane %v5884_v46, 2  ;;  %v5913_v53 = vrot.slane %v5912_v50, 2  ;;  %v5300_v52 = vpop.f32.mrb[52].mxu1  ;;  %v5423_v45 = vpop.f32.mrb[36].mxu0 }
 0x4e5   :  { %v5892_v61 = vrot.slane %v5891_v58, 2  ;;  %v5920_v8 = vrot.slane %v5919_v57, 2  ;;  %v13462_v11 = vadd.f32 %v5300_v52, %v5072_v15  ;;  %v13467_v36 = vadd.f32 %v5423_v45, %v5096_v16  ;;  %v5302_v14 = vpop.f32.mrb[53].mxu1  ;;  %v5425_v34 = vpop.f32.mrb[37].mxu0 }
 0x4e6   :  { %v5886_v59 = vadd.f32 %v5885_v35, %v5884_v46  ;;  %v5914_v60 = vadd.f32 %v5913_v53, %v5912_v50  ;;  %v13472_v54 = vadd.f32 %v5302_v14, %v5076_v17  ;;  %v13477_v55 = vadd.f32 %v5425_v34, %v5100_v18  ;;  %v5304_v15 = vpop.f32.mrb[54].mxu1  ;;  %v5427_v52 = vpop.f32.mrb[38].mxu0 }
 0x4e7   :  { %v5893_v56 = vadd.f32 %v5892_v61, %v5891_v58  ;;  %v5921_v51 = vadd.f32 %v5920_v8, %v5919_v57  ;;  %v5896_v16 = vsel %vm5881_vm7, %v13462_v11, 0.0  ;;  %v5938_v53 = vsel %vm5881_vm7, %v13467_v36, 0.0  ;;  %v5305_v35 = vpop.f32.mrb[55].mxu1  ;;  %v5428_v45 = vpop.f32.mrb[39].mxu0 }
 0x4e8   :  { %v5887_v46 = vrot.slane %v5886_v59, 1  ;;  %v5915_v17 = vrot.slane %v5914_v60, 1  ;;  %v5897_v50 = vrot.slane %v5896_v16, 4  ;;  %v5939_v14 = vrot.slane %v5938_v53, 4 }
 0x4e9   :  { %v5894_v47 = vrot.slane %v5893_v56, 1  ;;  %v5922_v43 = vrot.slane %v5921_v51, 1  ;;  %v5903_v18 = vsel %vm5881_vm7, %v13472_v54, 0.0  ;;  %v5945_v57 = vsel %vm5881_vm7, %v13477_v55, 0.0 }
 0x4ea   :  { %v5888_v58 = vadd.f32 %v5887_v46, %v5886_v59  ;;  %v5916_v61 = vadd.f32 %v5915_v17, %v5914_v60  ;;  %v5898_v8 = vadd.f32 %v5897_v50, %v5896_v16  ;;  %v5940_v34 = vadd.f32 %v5939_v14, %v5938_v53 }
 0x4eb   :  { %v5895_v15 = vadd.f32 %v5894_v47, %v5893_v56  ;;  %v5923_v52 = vadd.f32 %v5922_v43, %v5921_v51  ;;  %v5904_v35 = vrot.slane %v5903_v18, 4  ;;  %v5946_v45 = vrot.slane %v5945_v57, 4 }
 0x4ec   :  { %v6106_v42 = vmul.f32 0.5, %v5888_v58  ;;  %v6110_v41 = vmul.f32 0.5, %v5916_v61  ;;  %v5899_v37 = vrot.slane %v5898_v8, 2  ;;  %v5941_v40 = vrot.slane %v5940_v34, 2  ;;  %v13487_v32 = vpop.f32.mrb[56].mxu1  ;;  %v13489_v31 = vpop.f32.mrb[40].mxu0 }
 0x4ed   :  { %v6107_v30 = vmul.f32 0.5, %v5895_v15  ;;  %v6111_v29 = vmul.f32 0.5, %v5923_v52  ;;  %v5905_v28 = vadd.f32 %v5904_v35, %v5903_v18  ;;  %v5947_v26 = vadd.f32 %v5946_v45, %v5945_v57  ;;  %v13491_v59 = vpop.f32.mrb[57].mxu1  ;;  %v13493_v60 = vpop.f32.mrb[41].mxu0 }
 0x4ee   :  { %v13496_v43 = vsub.f32 %v13415_v44, %v6106_v42  ;;  %v13499_v47 = vsub.f32 %v13417_v38, %v6110_v41  ;;  %v5900_v51 = vadd.f32 %v5899_v37, %v5898_v8  ;;  %v5942_v56 = vadd.f32 %v5941_v40, %v5940_v34  ;;  %v5386_v16 = vpop.f32.mrb[58].mxu1  ;;  %v5509_v53 = vpop.f32.mrb[42].mxu0 }
 0x4ef   :  { %v13502_v46 = vsub.f32 %v13423_v48, %v6107_v30  ;;  %v13505_v17 = vsub.f32 %v13425_v49, %v6111_v29  ;;  %v5906_v50 = vrot.slane %v5905_v28, 2  ;;  %v5948_v14 = vrot.slane %v5947_v26, 2  ;;  %v5387_v18 = vpop.f32.mrb[59].mxu1  ;;  %v5510_v57 = vpop.f32.mrb[43].mxu0 }
 0x4f0   :  { %v6170_v44 = vmul.f32 %v13496_v43, %v13496_v43  ;;  %v6174_v41 = vmul.f32 %v13499_v47, %v13499_v47  ;;  %v5901_v37 = vrot.slane %v5900_v51, 1  ;;  %v5943_v40 = vrot.slane %v5942_v56, 1 }
 0x4f1   :  { %v6171_v38 = vmul.f32 %v13502_v46, %v13502_v46  ;;  %v6175_v30 = vmul.f32 %v13505_v17, %v13505_v17  ;;  %v5907_v29 = vadd.f32 %v5906_v50, %v5905_v28  ;;  %v5949_v42 = vadd.f32 %v5948_v14, %v5947_v26 }
 0x4f2   :  { %v6202_v48 = vsel %vm5881_vm7, %v6170_v44, 0.0  ;;  %v6230_v49 = vsel %vm5881_vm7, %v6174_v41, 0.0  ;;  %v5902_v58 = vadd.f32 %v5901_v37, %v5900_v51  ;;  %v5944_v61 = vadd.f32 %v5943_v40, %v5942_v56 }
 0x4f3   :  { %v6203_v8 = vrot.slane %v6202_v48, 4  ;;  %v6231_v34 = vrot.slane %v6230_v49, 4  ;;  %v6209_v15 = vsel %vm5881_vm7, %v6171_v38, 0.0  ;;  %v6237_v52 = vsel %vm5881_vm7, %v6175_v30, 0.0 }
 0x4f4   :  { %v6210_v35 = vrot.slane %v6209_v15, 4  ;;  %v6238_v45 = vrot.slane %v6237_v52, 4  ;;  %v6108_v16 = vmul.f32 0.5, %v5902_v58  ;;  %v6114_v53 = vmul.f32 0.5, %v5944_v61  ;;  %v13519_v18 = vpop.f32.mrb[60].mxu1  ;;  %v13521_v28 = vpop.f32.mrb[44].mxu0 }
 0x4f5   :  { %v6204_v26 = vadd.f32 %v6203_v8, %v6202_v48  ;;  %v6232_v50 = vadd.f32 %v6231_v34, %v6230_v49  ;;  %v5908_v14 = vrot.slane %v5907_v29, 1  ;;  %v5950_v57 = vrot.slane %v5949_v42, 1  ;;  %v13523_v51 = vpop.f32.mrb[61].mxu1  ;;  %v13525_v56 = vpop.f32.mrb[45].mxu0 }
 0x4f6   :  { %v6211_v44 = vadd.f32 %v6210_v35, %v6209_v15  ;;  %v6239_v41 = vadd.f32 %v6238_v45, %v6237_v52  ;;  %v13528_v37 = vsub.f32 %v13462_v11, %v6108_v16  ;;  %v13531_v40 = vsub.f32 %v13467_v36, %v6114_v53  ;;  %v5468_v38 = vpop.f32.mrb[62].mxu1  ;;  %v5591_v30 = vpop.f32.mrb[46].mxu0 }
 0x4f7   :  { %v6205_v58 = vrot.slane %v6204_v26, 2  ;;  %v6233_v61 = vrot.slane %v6232_v50, 2  ;;  %v5909_v48 = vadd.f32 %v5908_v14, %v5907_v29  ;;  %v5951_v49 = vadd.f32 %v5950_v57, %v5949_v42  ;;  %v5469_v8 = vpop.f32.mrb[63].mxu1  ;;  %v5592_v34 = vpop.f32.mrb[47].mxu0 }
 0x4f8   :  { %v6212_v27 = vrot.slane %v6211_v44, 2  ;;  %v6240_v9 = vrot.slane %v6239_v41, 2  ;;  %v6172_v15 = vmul.f32 %v13528_v37, %v13528_v37  ;;  %v6178_v11 = vmul.f32 %v13531_v40, %v13531_v40 }
 0x4f9   :  { %v6206_v52 = vadd.f32 %v6205_v58, %v6204_v26  ;;  %v6234_v35 = vadd.f32 %v6233_v61, %v6232_v50  ;;  %v6109_v36 = vmul.f32 0.5, %v5909_v48  ;;  %v6115_v45 = vmul.f32 0.5, %v5951_v49 }
 0x4fa   :  { %v6213_v16 = vadd.f32 %v6212_v27, %v6211_v44  ;;  %v6241_v53 = vadd.f32 %v6240_v9, %v6239_v41  ;;  %v6216_v38 = vsel %vm5881_vm7, %v6172_v15, 0.0  ;;  %v6258_v29 = vsel %vm5881_vm7, %v6178_v11, 0.0 }
 0x4fb   :  { %v6207_v42 = vrot.slane %v6206_v52, 1  ;;  %v6235_v14 = vrot.slane %v6234_v35, 1  ;;  %v6217_v57 = vrot.slane %v6216_v38, 4  ;;  %v6259_v30 = vrot.slane %v6258_v29, 4 }
 0x4fc   :  { %v6214_v8 = vrot.slane %v6213_v16, 1  ;;  %v6242_v34 = vrot.slane %v6241_v53, 1  ;;  %v13540_v22 = vsub.f32 %v13472_v54, %v6109_v36  ;;  %v13543_v26 = vsub.f32 %v13477_v55, %v6115_v45  ;;  %v13545_v50 = vpop.f32.mrb[64].mxu1  ;;  %v13547_v27 = vpop.f32.mrb[48].mxu0 }
 0x4fd   :  { %v6208_v9 = vadd.f32 %v6207_v42, %v6206_v52  ;;  %v6236_v44 = vadd.f32 %v6235_v14, %v6234_v35  ;;  %v6218_v41 = vadd.f32 %v6217_v57, %v6216_v38  ;;  %v6260_v58 = vadd.f32 %v6259_v30, %v6258_v29  ;;  %v13549_v61 = vpop.f32.mrb[65].mxu1  ;;  %v13551_v48 = vpop.f32.mrb[49].mxu0 }
 0x4fe   :  { %v6215_v49 = vadd.f32 %v6214_v8, %v6213_v16  ;;  %v6243_v15 = vadd.f32 %v6242_v34, %v6241_v53  ;;  %v6173_v54 = vmul.f32 %v13540_v22, %v13540_v22  ;;  %v6179_v55 = vmul.f32 %v13543_v26, %v13543_v26  ;;  %v5550_v11 = vpop.f32.mrb[66].mxu1  ;;  %v5673_v36 = vpop.f32.mrb[50].mxu0 }
 0x4ff   :  { %v6426_v45 = vmul.f32 0.5, %v6208_v9  ;;  %v6430_v33 = vmul.f32 0.5, %v6236_v44  ;;  %v6219_v52 = vrot.slane %v6218_v41, 2  ;;  %v6261_v35 = vrot.slane %v6260_v58, 2  ;;  %v5551_v38 = vpop.f32.mrb[67].mxu1  ;;  %v5674_v29 = vpop.f32.mrb[51].mxu0 }
 0x500   :  { %v6427_v42 = vmul.f32 0.5, %v6215_v49  ;;  %v6431_v14 = vmul.f32 0.5, %v6243_v15  ;;  %v6223_v57 = vsel %vm5881_vm7, %v6173_v54, 0.0  ;;  %v6265_v16 = vsel %vm5881_vm7, %v6179_v55, 0.0 }
 0x501   :  { %v6458_v53 = vadd.f32 1e-05, %v6426_v45  ;;  %v6462_v30 = vadd.f32 1e-05, %v6430_v33  ;;  %v6220_v8 = vadd.f32 %v6219_v52, %v6218_v41  ;;  %v6262_v34 = vadd.f32 %v6261_v35, %v6260_v58 }
 0x502   :  { %v6459_v24 = vadd.f32 1e-05, %v6427_v42  ;;  %v6463_v21 = vadd.f32 1e-05, %v6431_v14  ;;  %v6224_v11 = vrot.slane %v6223_v57, 4  ;;  %v6266_v36 = vrot.slane %v6265_v16, 4 }
 0x503   :  { %11254 = vrsqrt.f32 %v6458_v53  ;;  %v6221_v9 = vrot.slane %v6220_v8, 1  ;;  %v6263_v44 = vrot.slane %v6262_v34, 1  ;;  %v13563_v49 = vadd.f32 %v13487_v32, %v5088_v19 }
 0x504   :  { %11256 = vrsqrt.f32 %v6462_v30  ;;  %v6225_v15 = vadd.f32 %v6224_v11, %v6223_v57  ;;  %v6267_v54 = vadd.f32 %v6266_v36, %v6265_v16  ;;  %v13569_v33 = vadd.f32 %v13489_v31, %v5112_v20  ;;  %v13571_v41 = vpop.f32.mrb[68].mxu1  ;;  %v13573_v58 = vpop.f32.mrb[52].mxu0 }
 0x505   :  { %11258 = vrsqrt.f32 %v6459_v24  ;;  %v6222_v55 = vadd.f32 %v6221_v9, %v6220_v8  ;;  %v6264_v45 = vadd.f32 %v6263_v44, %v6262_v34  ;;  %v5924_v19 = vsel %vm5881_vm7, %v13563_v49, 0.0  ;;  %v13577_v32 = vpop.f32.mrb[69].mxu1  ;;  %v13579_v52 = vpop.f32.mrb[53].mxu0 }
 0x506   :  { %15428 = vst [vmem:[#allocation19_spill] sm:$0xff] %v13577_v32  ;;  %15429 = vst [vmem:[#allocation20_spill] sm:$0xff] %v13579_v52  ;;  %11260 = vrsqrt.f32 %v6463_v21  ;;  %v6226_v35 = vrot.slane %v6225_v15, 2  ;;  %v6268_v38 = vrot.slane %v6267_v54, 2  ;;  %v5925_v29 = vrot.slane %v5924_v19, 4  ;;  %v5632_v20 = vpop.f32.mrb[70].mxu1 }
 0x507   :  { %v5755_v31 = vpop.f32.mrb[54].mxu0  ;;  %v6428_v42 = vmul.f32 0.5, %v6222_v55  ;;  %v6434_v14 = vmul.f32 0.5, %v6264_v45  ;;  %v5966_v24 = vsel %vm5881_vm7, %v13569_v33, 0.0  ;;  %v15430_v57 = vrot.slane %v13313_v0, %v13336_v7  ;;  %v5633_v53 = vpop.f32.mrb[71].mxu1 }
 0x508   :  { %v5756_v30 = vpop.f32.mrb[55].mxu0  ;;  %v6227_v8 = vadd.f32 %v6226_v35, %v6225_v15  ;;  %v6269_v21 = vadd.f32 %v6268_v38, %v6267_v54  ;;  %v5926_v34 = vadd.f32 %v5925_v29, %v5924_v19  ;;  %v5967_v11 = vrot.slane %v5966_v24, 4 }
 0x509   :  { %v13587_v16 = vadd.f32 %v13491_v59, %v15430_v57  ;;  %v6460_v36 = vadd.f32 1e-05, %v6428_v42  ;;  %v6466_v9 = vadd.f32 1e-05, %v6434_v14  ;;  %v15431_v55 = vrot.slane %v13327_v4, %v13319_v2 }
 0x50a   :  { %v6228_v0 = vrot.slane %v6227_v8, 1  ;;  %v6270_v59 = vrot.slane %v6269_v21, 1  ;;  %v5927_v20 = vrot.slane %v5926_v34, 2  ;;  %v5968_v31 = vadd.f32 %v5967_v11, %v5966_v24 }
 0x50b   :  { %v5931_v44 = vsel %vm5881_vm7, %v13587_v16, 0.0  ;;  %v13595_v45 = vadd.f32 %v13493_v60, %v15431_v55  ;;  %11262 = vrsqrt.f32 %v6460_v36  ;;  %v15432_v19 = vrot.slane %v13327_v4, %v13322_v3 }
 0x50c   :  { %v5932_v15 = vrot.slane %v5931_v44, 4  ;;  %11264 = vrsqrt.f32 %v6466_v9  ;;  %v6229_v38 = vadd.f32 %v6228_v0, %v6227_v8  ;;  %v6271_v29 = vadd.f32 %v6270_v59, %v6269_v21  ;;  %v13605_v42 = vpop.f32.mrb[72].mxu1  ;;  %v13607_v14 = vpop.f32.mrb[56].mxu0 }
 0x50d   :  { %v5973_v54 = vsel %vm5881_vm7, %v13595_v45, 0.0  ;;  %v13603_v35 = vadd.f32 %v13519_v18, %v15432_v19  ;;  %v5928_v60 = vadd.f32 %v5927_v20, %v5926_v34  ;;  %15433 = vst [vmem:[#allocation21_spill] sm:$0xff] %v13605_v42  ;;  %15434 = vst [vmem:[#allocation22_spill] sm:$0xff] %v13607_v14  ;;  %v11255_v24 = vpop.eup %11254  ;;  %v5969_v57 = vrot.slane %v5968_v31, 2  ;;  %v13613_v36 = vpop.f32.mrb[73].mxu1 }
 0x50e   :  { %v5933_v53 = vadd.f32 %v5932_v15, %v5931_v44  ;;  %v5974_v30 = vrot.slane %v5973_v54, 4  ;;  %15435 = vst [vmem:[#allocation23_spill] sm:$0xff] %v13613_v36  ;;  %v13615_v18 = vpop.f32.mrb[57].mxu0  ;;  %v11257_v9 = vpop.eup %11256  ;;  %v6522_v8 = vmul.f32 %v11255_v24, %v13496_v43  ;;  %v6429_v21 = vmul.f32 0.5, %v6229_v38 }
 0x50f   :  { %v13611_v11 = vsel %vm5881_vm7, %v13603_v35, 0.0  ;;  %15436 = vst [vmem:[#allocation24_spill] sm:$0xff] %v13615_v18  ;;  %v6435_v34 = vmul.f32 0.5, %v6271_v29  ;;  %v5929_v55 = vrot.slane %v5928_v60, 1  ;;  %v5714_v0 = vpop.f32.mrb[74].mxu1  ;;  %v5837_v59 = vpop.f32.mrb[58].mxu0  ;;  %v6526_v44 = vmul.f32 %v11257_v9, %v13499_v47 }
 0x510   :  { %v11259_v20 = vpop.eup %11258  ;;  %v5970_v15 = vadd.f32 %v5969_v57, %v5968_v31  ;;  %v5934_v19 = vrot.slane %v5933_v53, 2  ;;  %v5975_v14 = vadd.f32 %v5974_v30, %v5973_v54  ;;  %v5715_v42 = vpop.f32.mrb[75].mxu1  ;;  %v15437_v18 = vrot.slane %v13343_v10, %v13305_v62 }
 0x511   :  { %v5838_v52 = vpop.f32.mrb[59].mxu0  ;;  %v11261_v32 = vpop.eup %11260  ;;  %v6523_v43 = vmul.f32 %v11259_v20, %v13502_v46  ;;  %v6461_v38 = vadd.f32 1e-05, %v6429_v21  ;;  %v6467_v29 = vadd.f32 1e-05, %v6435_v34  ;;  %v15438_v24 = vrot.slane %v13343_v10, %v13308_v63 }
 0x512   :  { %v6722_v36 = vmul.f32 %v15437_v18, %v6522_v8  ;;  %v6527_v47 = vmul.f32 %v11261_v32, %v13505_v17  ;;  %v5930_v31 = vadd.f32 %v5929_v55, %v5928_v60  ;;  %v5971_v57 = vrot.slane %v5970_v15, 1 }
 0x513   :  { %v6726_v0 = vmul.f32 %v15438_v24, %v6526_v44  ;;  %v15439_v52 = vrot.slane %v13350_v13, %v13305_v62  ;;  %v15440_v42 = vrot.slane %v13343_v10, %v13316_v1  ;;  %11266 = vrsqrt.f32 %v6461_v38 }
 0x514   :  { %v5935_v46 = vadd.f32 %v5934_v19, %v5933_v53  ;;  %v15441_v18 = vrot.slane %v13350_v13, %v13308_v63  ;;  %v15442_v8 = vrot.slane %v13343_v10, %v13319_v2  ;;  %11268 = vrsqrt.f32 %v6467_v29  ;;  %v13642_v59 = vpop.f32.mrb[76].mxu1 }
 0x515   :  { %v6922_v54 = vadd.f32 %v15439_v52, %v6722_v36  ;;  %v6723_v30 = vmul.f32 %v15440_v42, %v6523_v43  ;;  %v6112_v32 = vmul.f32 0.5, %v5930_v31  ;;  %v15443_v36 = vrot.slane %v13350_v13, %v13316_v1  ;;  %v11263_v53 = vpop.eup %11262  ;;  %v13650_v29 = vpop.f32.mrb[77].mxu1 }
 0x516   :  { %v6926_v9 = vadd.f32 %v15441_v18, %v6726_v0  ;;  %v6727_v17 = vmul.f32 %v15442_v8, %v6527_v47  ;;  %v5972_v34 = vadd.f32 %v5971_v57, %v5970_v15  ;;  %v5936_v55 = vrot.slane %v5935_v46, 1  ;;  %v11265_v24 = vpop.eup %11264  ;;  %v5796_v57 = vpop.f32.mrb[78].mxu1 }
 0x517   :  { %v6954_v60 = vmax.f32 %v6922_v54, 0.0  ;;  %v6923_v21 = vadd.f32 %v15443_v36, %v6723_v30  ;;  %v15444_v44 = vrot.slane %v13350_v13, %v13319_v2  ;;  %v13648_v43 = vsub.f32 %v13563_v49, %v6112_v32  ;;  %v5797_v18 = vpop.f32.mrb[79].mxu1 }
 0x518   :  { %v6958_v20 = vmax.f32 %v6926_v9, 0.0  ;;  %v5976_v38 = vrot.slane %v5975_v14, 2  ;;  %v6524_v47 = vmul.f32 %v11263_v53, %v13528_v37  ;;  %v6118_v15 = vmul.f32 0.5, %v5972_v34 }
 0x519   :  { %v6927_v19 = vadd.f32 %v15444_v44, %v6727_v17  ;;  %v6955_v0 = vmax.f32 %v6923_v21, 0.0  ;;  %v5937_v31 = vadd.f32 %v5936_v55, %v5935_v46  ;;  %v6530_v54 = vmul.f32 %v11265_v24, %v13531_v40 }
 0x51a   :  { %v6176_v42 = vmul.f32 %v13648_v43, %v13648_v43  ;;  %v5977_v30 = vadd.f32 %v5976_v38, %v5975_v14  ;;  %v15445_v9 = vrot.slane %v13343_v10, %v13322_v3  ;;  %v13662_v17 = vsub.f32 %v13569_v33, %v6118_v15 }
 0x51b   :  { %v6959_v52 = vmax.f32 %v6927_v19, 0.0  ;;  %v13656_v49 = vcombine.low %v6954_v60, %v6955_v0  ;;  %v6113_v37 = vmul.f32 0.5, %v5937_v31  ;;  %v15446_v40 = vrot.slane %v13375_v23, %v13305_v62 }
 0x51c   :  { %v6724_v8 = vmul.f32 %v15445_v9, %v6524_v47  ;;  %v6244_v36 = vsel %vm5881_vm7, %v6176_v42, 0.0  ;;  %v5978_v14 = vrot.slane %v5977_v30, 1  ;;  %v15447_v60 = vrot.slane %v13350_v13, %v13322_v3  ;;  %v13687_v57 = vpop.f32.mrb[80].mxu1 }
 0x51d   :  { %v13664_v46 = vcombine.low %v6958_v20, %v6959_v52  ;;  %v6730_v32 = vmul.f32 %v15446_v40, %v6530_v54  ;;  %v6245_v34 = vrot.slane %v6244_v36, 4  ;;  %v6182_v55 = vmul.f32 %v13662_v17, %v13662_v17  ;;  %v11267_v24 = vpop.eup %11266 }
 0x51e   :  { %v6924_v21 = vadd.f32 %v15447_v60, %v6724_v8  ;;  %v7026_v53 = vrot.slane %v13656_v49, %v12450_v39  ;;  %v15448_v20 = vrot.slane %v13380_v25, %v13305_v62  ;;  %v13683_v19 = vsub.f32 %v13587_v16, %v6113_v37  ;;  %v11269_v52 = vpop.eup %11268  ;;  %v13692_v16 = vpop.f32.mrb[81].mxu1 }
 0x51f   :  { %v5979_v38 = vadd.f32 %v5978_v14, %v5977_v30  ;;  %v6246_v47 = vadd.f32 %v6245_v34, %v6244_v36  ;;  %v6286_v15 = vsel %vm5881_vm7, %v6182_v55, 0.0  ;;  %v5953_v31 = vrot.slane %v13611_v11, 4  ;;  %15449 = vst [vmem:[#allocation25_spill] sm:$0xff] %v13692_v16  ;;  %v5878_v40 = vpop.f32.mrb[82].mxu1 }
 0x520   :  { %v6930_v44 = vadd.f32 %v15448_v20, %v6730_v32  ;;  %v6956_v0 = vmax.f32 %v6924_v21, 0.0  ;;  %v6525_v42 = vmul.f32 %v11267_v24, %v13540_v22  ;;  %v6287_v18 = vrot.slane %v6286_v15, 4  ;;  %v5879_v34 = vpop.f32.mrb[83].mxu1 }
 0x521   :  { %v6177_v49 = vmul.f32 %v13683_v19, %v13683_v19  ;;  %v6531_v30 = vmul.f32 %v11269_v52, %v13543_v26  ;;  %v6247_v9 = vrot.slane %v6246_v47, 2  ;;  %v6119_v8 = vmul.f32 0.5, %v5979_v38 }
 0x522   :  { %v6962_v54 = vmax.f32 %v6930_v44, 0.0  ;;  %v5954_v37 = vadd.f32 %v5953_v31, %v13611_v11  ;;  %v15450_v32 = vrot.slane %v13343_v10, %v13330_v5  ;;  %v6288_v14 = vadd.f32 %v6287_v18, %v6286_v15 }
 0x523   :  { %v6251_v22 = vsel %vm5881_vm7, %v6177_v49, 0.0  ;;  %v15451_v60 = vrot.slane %v13389_v12, %v13305_v62  ;;  %v15452_v26 = vrot.slane %v13375_v23, %v13316_v1  ;;  %v6248_v11 = vadd.f32 %v6247_v9, %v6246_v47 }
 0x524   :  { %v6725_v36 = vmul.f32 %v15450_v32, %v6525_v42  ;;  %v6252_v20 = vrot.slane %v6251_v22, 4  ;;  %v13710_v44 = vsub.f32 %v13595_v45, %v6119_v8  ;;  %v15453_v38 = vrot.slane %v13350_v13, %v13330_v5 }
 0x525   :  { %v13704_v21 = vadd.f32 %v13521_v28, %v15451_v60  ;;  %v6731_v55 = vmul.f32 %v15452_v26, %v6531_v30  ;;  %v6289_v15 = vrot.slane %v6288_v14, 2  ;;  %v5955_v31 = vrot.slane %v5954_v37, 2 }
 0x526   :  { %v6925_v24 = vadd.f32 %v15453_v38, %v6725_v36  ;;  %v15454_v52 = vrot.slane %v13380_v25, %v13316_v1  ;;  %v6249_v18 = vrot.slane %v6248_v11, 1  ;;  %v6253_v49 = vadd.f32 %v6252_v20, %v6251_v22 }
 0x527   :  { %v5994_v28 = vsel %vm5881_vm7, %v13704_v21, 0.0  ;;  %v6183_v47 = vmul.f32 %v13710_v44, %v13710_v44  ;;  %v6290_v30 = vadd.f32 %v6289_v15, %v6288_v14  ;;  %v5956_v9 = vadd.f32 %v5955_v31, %v5954_v37 }
 0x528   :  { %v6931_v42 = vadd.f32 %v15454_v52, %v6731_v55  ;;  %v6957_v45 = vmax.f32 %v6925_v24, 0.0  ;;  %v5995_v8 = vrot.slane %v5994_v28, 4  ;;  %v6250_v32 = vadd.f32 %v6249_v18, %v6248_v11 }
 0x529   :  { %v6254_v36 = vrot.slane %v6253_v49, 2  ;;  %v6293_v60 = vsel %vm5881_vm7, %v6183_v47, 0.0  ;;  %v6291_v26 = vrot.slane %v6290_v30, 1  ;;  %v5957_v33 = vrot.slane %v5956_v9, 1 }
 0x52a   :  { %v6963_v40 = vmax.f32 %v6931_v42, 0.0  ;;  %v7019_v34 = vcombine.low %v6956_v0, %v6957_v45  ;;  %v6294_v38 = vrot.slane %v6293_v60, 4  ;;  %v6432_v55 = vmul.f32 0.5, %v6250_v32 }
 0x52b   :  { %v6255_v22 = vadd.f32 %v6254_v36, %v6253_v49  ;;  %v5996_v20 = vadd.f32 %v5995_v8, %v5994_v28  ;;  %v6292_v24 = vadd.f32 %v6291_v26, %v6290_v30  ;;  %v5958_v37 = vadd.f32 %v5957_v33, %v5956_v9 }
 0x52c   :  { %v13723_v16 = vcombine.low %v6962_v54, %v6963_v40  ;;  %v7033_v52 = vrot.slane %v7019_v34, %v12450_v39  ;;  %v6295_v14 = vadd.f32 %v6294_v38, %v6293_v60  ;;  %v6464_v15 = vadd.f32 1e-05, %v6432_v55 }
 0x52d   :  { %v6256_v31 = vrot.slane %v6255_v22, 1  ;;  %v6617_v11 = vrot.slane %v13375_v23, %v13319_v2  ;;  %v5997_v42 = vrot.slane %v5996_v20, 2  ;;  %v6438_v18 = vmul.f32 0.5, %v6292_v24 }
 0x52e   :  { %v7034_v0 = vcombine.low %v7026_v53, %v7033_v52  ;;  %v6296_v47 = vrot.slane %v6295_v14, 2  ;;  %v6116_v45 = vmul.f32 0.5, %v5958_v37  ;;  %11270 = vrsqrt.f32 %v6464_v15 }
 0x52f   :  { %v6257_v54 = vadd.f32 %v6256_v31, %v6255_v22  ;;  %v5998_v40 = vadd.f32 %v5997_v42, %v5996_v20  ;;  %v15455_v28 = vrot.slane %v13327_v4, %v13330_v5  ;;  %v6470_v33 = vadd.f32 1e-05, %v6438_v18 }
 0x530   :  { %7162 = vst [vmem:[#allocation7] sm:$0xff] %v7034_v0  ;;  %v6297_v30 = vadd.f32 %v6296_v47, %v6295_v14  ;;  %v13735_v9 = vsub.f32 %v13603_v35, %v6116_v45  ;;  %v15456_v53 = vrot.slane %v13389_v12, %v13316_v1  ;;  %v6817_v0 = vrot.slane %v13380_v25, %v13319_v2 }
 0x531   :  { %v13732_v49 = vadd.f32 %v13523_v51, %v15455_v28  ;;  %v6433_v32 = vmul.f32 0.5, %v6257_v54  ;;  %v5999_v36 = vrot.slane %v5998_v40, 1  ;;  %v15457_v51 = vrot.slane %v13327_v4, %v13333_v6 }
 0x532   :  { %v13741_v8 = vadd.f32 %v13525_v56, %v15456_v53  ;;  %11272 = vrsqrt.f32 %v6470_v33  ;;  %v6298_v35 = vrot.slane %v6297_v30, 1  ;;  %v6180_v26 = vmul.f32 %v13735_v9, %v13735_v9 }
 0x533   :  { %v5959_v60 = vsel %vm5881_vm7, %v13732_v49, 0.0  ;;  %v13749_v34 = vadd.f32 %v13545_v50, %v15457_v51  ;;  %v6465_v55 = vadd.f32 1e-05, %v6433_v32  ;;  %v6000_v56 = vadd.f32 %v5999_v36, %v5998_v40 }
 0x534   :  { %v5960_v38 = vrot.slane %v5959_v60, 4  ;;  %v6001_v22 = vsel %vm5881_vm7, %v13741_v8, 0.0  ;;  %v6299_v52 = vadd.f32 %v6298_v35, %v6297_v30  ;;  %v6272_v24 = vsel %vm5881_vm7, %v6180_v26, 0.0 }
 0x535   :  { %v5980_v20 = vsel %vm5881_vm7, %v13749_v34, 0.0  ;;  %v6002_v50 = vrot.slane %v6001_v22, 4  ;;  %11274 = vrsqrt.f32 %v6465_v55  ;;  %v6273_v37 = vrot.slane %v6272_v24, 4 }
 0x536   :  { %v5961_v14 = vadd.f32 %v5960_v38, %v5959_v60  ;;  %v6122_v15 = vmul.f32 0.5, %v6000_v56  ;;  %v5981_v31 = vrot.slane %v5980_v20, 4  ;;  %v6439_v42 = vmul.f32 0.5, %v6299_v52 }
 0x537   :  { %v6003_v47 = vadd.f32 %v6002_v50, %v6001_v22  ;;  %v7170_v45 = vld [vmem:[#allocation7] sm:$0x3]  ;;  %v7185_v54 = vld [vmem:[#allocation7 + $0x2] sm:$0x3]  ;;  %v7200_v40 = vld [vmem:[#allocation7 + $0x4] sm:$0x3]  ;;  %v6274_v28 = vadd.f32 %v6273_v37, %v6272_v24  ;;  %v5148_v53 = vrot.slane %v13389_v12, %v13319_v2  ;;  %v15458_v35 = vrot.slane %v13389_v12, %v13308_v63 }
 0x538   :  { %v5962_v18 = vrot.slane %v5961_v14, 2  ;;  %v13761_v33 = vsub.f32 %v13704_v21, %v6122_v15  ;;  %v5982_v30 = vadd.f32 %v5981_v31, %v5980_v20  ;;  %7171 = vst.msk [vmem:[#allocation8] sm:$0x3] %vm1551_vm3, %v7170_v45  ;;  %7186 = vst.msk [vmem:[#allocation8 + $0x4] sm:$0x3] %vm1551_vm3, %v7185_v54  ;;  %v11271_v26 = vpop.eup %11270  ;;  %v6605_v55 = vrot.slane %v13375_v23, %v13322_v3 }
 0x539   :  { %7201 = vst.msk [vmem:[#allocation8 + $0x8] sm:$0x3] %vm1551_vm3, %v7200_v40  ;;  %v7215_v32 = vld [vmem:[#allocation7 + $0x6] sm:$0x3]  ;;  %v6471_v36 = vadd.f32 1e-05, %v6439_v42  ;;  %v13772_v21 = vadd.f32 %v13547_v27, %v15458_v35  ;;  %v6528_v52 = vmul.f32 %v11271_v26, %v13648_v43 }
 0x53a   :  { %v5963_v60 = vadd.f32 %v5962_v18, %v5961_v14  ;;  %v6004_v51 = vrot.slane %v6003_v47, 2  ;;  %7216 = vst.msk [vmem:[#allocation8 + $0xc] sm:$0x3] %vm1551_vm3, %v7215_v32  ;;  %v6275_v38 = vrot.slane %v6274_v28, 2  ;;  %v6186_v56 = vmul.f32 %v13761_v33, %v13761_v33 }
 0x53b   :  { %v5983_v22 = vrot.slane %v5982_v30, 2  ;;  %v10165_v20 = vld.sshfl [vmem:[#allocation7 + $0x4] sm:$0x3 pattern:$0x76325410]  ;;  %11276 = vrsqrt.f32 %v6471_v36  ;;  %v6022_v31 = vsel %vm5881_vm7, %v13772_v21, 0.0  ;;  %v15459_v18 = vrot.slane %v13343_v10, %v13333_v6 }
 0x53c   :  { %v5964_v24 = vrot.slane %v5963_v60, 1  ;;  %v6005_v14 = vadd.f32 %v6004_v51, %v6003_v47  ;;  %7211 = vrot.lane.b32.xlu1 %v10165_v20, %s11352_s22  ;;  %v10163_v27 = vld.sshfl [vmem:[#allocation7] sm:$0x3 pattern:$0x76325410]  ;;  %v6276_v50 = vadd.f32 %v6275_v38, %v6274_v28  ;;  %v6314_v37 = vsel %vm5881_vm7, %v6186_v56, 0.0  ;;  %v11273_v42 = vpop.eup %11272 }
 0x53d   :  { %v5984_v15 = vadd.f32 %v5983_v22, %v5982_v30  ;;  %7181 = vrot.lane.b32.xlu0 %v10163_v27, %s11352_s22  ;;  %v6728_v43 = vmul.f32 %v15459_v18, %v6528_v52  ;;  %v6315_v45 = vrot.slane %v6314_v37, 4  ;;  %v10166_v40 = vld.sshfl [vmem:[#allocation7 + $0x6] sm:$0x3 pattern:$0x76325410]  ;;  %v6534_v32 = vmul.f32 %v11273_v42, %v13662_v17 }
 0x53e   :  { %v5965_v54 = vadd.f32 %v5964_v24, %v5963_v60  ;;  %v6006_v47 = vrot.slane %v6005_v14, 1  ;;  %v6277_v28 = vrot.slane %v6276_v50, 1  ;;  %v6023_v51 = vrot.slane %v6022_v31, 4 }
 0x53f   :  { %v5985_v36 = vrot.slane %v5984_v15, 1  ;;  %v15460_v30 = vrot.slane %v13350_v13, %v13333_v6  ;;  %v6316_v26 = vadd.f32 %v6315_v45, %v6314_v37  ;;  %v10164_v22 = vld.sshfl [vmem:[#allocation7 + $0x2] sm:$0x3 pattern:$0x76325410]  ;;  %v11275_v20 = vpop.eup %11274  ;;  %v15461_v60 = vrot.slane %v13375_v23, %v13308_v63 }
 0x540   :  { %v6117_v38 = vmul.f32 0.5, %v5965_v54  ;;  %v6007_v56 = vadd.f32 %v6006_v47, %v6005_v14  ;;  %7226 = vrot.lane.b32.xlu1 %v10166_v40, %s11352_s22  ;;  %v6278_v24 = vadd.f32 %v6277_v28, %v6276_v50  ;;  %v6024_v27 = vadd.f32 %v6023_v51, %v6022_v31 }
 0x541   :  { %v6928_v35 = vadd.f32 %v15460_v30, %v6728_v43  ;;  %v6734_v52 = vmul.f32 %v15461_v60, %v6534_v32  ;;  %v5986_v17 = vadd.f32 %v5985_v36, %v5984_v15  ;;  %7196 = vrot.lane.b32.xlu0 %v10164_v22, %s11352_s22  ;;  %v7043_v42 = vrot.slane %v13664_v46, %v12450_v39 }
 0x542   :  { %v6529_v37 = vmul.f32 %v11275_v20, %v13683_v19  ;;  %v6317_v18 = vrot.slane %v6316_v26, 2  ;;  %v13801_v14 = vsub.f32 %v13732_v49, %v6117_v38  ;;  %v6436_v45 = vmul.f32 0.5, %v6278_v24 }
 0x543   :  { %v6960_v43 = vmax.f32 %v6928_v35, 0.0  ;;  %v6123_v54 = vmul.f32 0.5, %v6007_v56  ;;  %v6120_v47 = vmul.f32 0.5, %v5986_v17  ;;  %v15462_v50 = vrot.slane %v13343_v10, %v13336_v7 }
 0x544   :  { %v6318_v31 = vadd.f32 %v6317_v18, %v6316_v26  ;;  %v6181_v40 = vmul.f32 %v13801_v14, %v13801_v14  ;;  %v6025_v32 = vrot.slane %v6024_v27, 2  ;;  %v15463_v46 = vrot.slane %v13380_v25, %v13308_v63 }
 0x545   :  { %v6729_v15 = vmul.f32 %v15462_v50, %v6529_v37  ;;  %v6468_v28 = vadd.f32 1e-05, %v6436_v45  ;;  %v13812_v49 = vsub.f32 %v13741_v8, %v6123_v54  ;;  %v13815_v36 = vsub.f32 %v13749_v34, %v6120_v47  ;;  %v11277_v51 = vpop.eup %11276 }
 0x546   :  { %v6934_v19 = vadd.f32 %v15463_v46, %v6734_v52  ;;  %v15464_v10 = vrot.slane %v13350_v13, %v13336_v7  ;;  %v6319_v35 = vrot.slane %v6318_v31, 1  ;;  %v6279_v26 = vsel %vm5881_vm7, %v6181_v40, 0.0 }
 0x547   :  { %v6026_v38 = vadd.f32 %v6025_v32, %v6024_v27  ;;  %v6535_v56 = vmul.f32 %v11277_v51, %v13710_v44  ;;  %11278 = vrsqrt.f32 %v6468_v28  ;;  %v6280_v22 = vrot.slane %v6279_v26, 4 }
 0x548   :  { %v6929_v30 = vadd.f32 %v15464_v10, %v6729_v15  ;;  %v6187_v8 = vmul.f32 %v13812_v49, %v13812_v49  ;;  %v6320_v60 = vadd.f32 %v6319_v35, %v6318_v31  ;;  %v6184_v34 = vmul.f32 %v13815_v36, %v13815_v36  ;;  %v13849_v10 = vld [vmem:[%s15353_s10 + $0x8] sm:$0xff] }
 0x549   :  { %v6027_v52 = vrot.slane %v6026_v38, 1  ;;  %v6966_v24 = vmax.f32 %v6934_v19, 0.0  ;;  %v6735_v13 = vmul.f32 %v6617_v11, %v6535_v56  ;;  %v6281_v17 = vadd.f32 %v6280_v22, %v6279_v26  ;;  %v13844_v19 = vld [vmem:[%s15352_s9 + $0x10] sm:$0xff] }
 0x54a   :  { %v6961_v20 = vmax.f32 %v6929_v30, 0.0  ;;  %v6321_v27 = vsel %vm5881_vm7, %v6187_v8, 0.0  ;;  %v6442_v37 = vmul.f32 0.5, %v6320_v60  ;;  %v6300_v45 = vsel %vm5881_vm7, %v6184_v34, 0.0  ;;  %v13870_v60 = vld [vmem:[%s15351_s8 + $0x18] sm:$0xff] }
 0x54b   :  { %v6322_v18 = vrot.slane %v6321_v27, 4  ;;  %v6935_v54 = vadd.f32 %v6817_v0, %v6735_v13  ;;  %v6282_v47 = vrot.slane %v6281_v17, 2  ;;  %v6301_v50 = vrot.slane %v6300_v45, 4 }
 0x54c   :  { %v7036_v44 = vcombine.low %v6960_v43, %v6961_v20  ;;  %v6028_v15 = vadd.f32 %v6027_v52, %v6026_v38  ;;  %v6474_v40 = vadd.f32 1e-05, %v6442_v37  ;;  %v15465_v11 = vrot.slane %v13327_v4, %v13336_v7  ;;  %v13885_v37 = vld [vmem:[%s15351_s8 + $0x10] sm:$0xff] }
 0x54d   :  { %v6323_v32 = vadd.f32 %v6322_v18, %v6321_v27  ;;  %v6967_v46 = vmax.f32 %v6935_v54, 0.0  ;;  %v6283_v25 = vadd.f32 %v6282_v47, %v6281_v17  ;;  %v6302_v0 = vadd.f32 %v6301_v50, %v6300_v45 }
 0x54e   :  { %v7050_v31 = vrot.slane %v7036_v44, %v12450_v39  ;;  %v13839_v43 = vadd.f32 %v13549_v61, %v15465_v11  ;;  %v6126_v28 = vmul.f32 0.5, %v6028_v15  ;;  %v6805_v4 = vrot.slane %v13849_v10, %v13322_v3  ;;  %v13856_v61 = vld [vmem:[%s15353_s10 + $0x10] sm:$0xff] }
 0x54f   :  { %v6324_v30 = vrot.slane %v6323_v32, 2  ;;  %v13860_v26 = vcombine.low %v6966_v24, %v6967_v46  ;;  %v6303_v38 = vrot.slane %v6302_v0, 2  ;;  %11280 = vrsqrt.f32 %v6474_v40 }
 0x550   :  { %v7051_v51 = vcombine.low %v7043_v42, %v7050_v31  ;;  %v5987_v35 = vsel %vm5881_vm7, %v13839_v43, 0.0  ;;  %v6284_v42 = vrot.slane %v6283_v25, 1  ;;  %v13863_v56 = vsub.f32 %v13772_v21, %v6126_v28 }
 0x551   :  { %v6629_v22 = vrot.slane %v13844_v19, %v13305_v62  ;;  %v6325_v8 = vadd.f32 %v6324_v30, %v6323_v32  ;;  %v5988_v20 = vrot.slane %v5987_v35, 4  ;;  %v11279_v34 = vpop.eup %11278  ;;  %v6829_v52 = vrot.slane %v13856_v61, %v13305_v62 }
 0x552   :  { %7163 = vst [vmem:[#allocation7 + $0x8] sm:$0xff] %v7051_v51  ;;  %v6285_v24 = vadd.f32 %v6284_v42, %v6283_v25  ;;  %v6304_v13 = vadd.f32 %v6303_v38, %v6302_v0  ;;  %v6190_v21 = vmul.f32 %v13863_v56, %v13863_v56  ;;  %v13880_v44 = vadd.f32 %v13551_v48, %v5148_v53 }
 0x553   :  { %v6326_v17 = vrot.slane %v6325_v8, 1  ;;  %v5989_v27 = vadd.f32 %v5988_v20, %v5987_v35  ;;  %v5136_v18 = vrot.slane %v13885_v37, %v13322_v3  ;;  %v5160_v50 = vrot.slane %v13870_v60, %v13305_v62  ;;  %v13902_v35 = vld [vmem:[%s15352_s9 + $0x8] sm:$0xff] }
 0x554   :  { %v6437_v45 = vmul.f32 0.5, %v6285_v24  ;;  %v6305_v54 = vrot.slane %v6304_v13, 1  ;;  %v6342_v47 = vsel %vm5881_vm7, %v6190_v21, 0.0  ;;  %v6532_v12 = vmul.f32 %v11279_v34, %v13735_v9 }
 0x555   :  { %v6327_v15 = vadd.f32 %v6326_v17, %v6325_v8  ;;  %v6343_v48 = vrot.slane %v6342_v47, 4  ;;  %v5990_v53 = vrot.slane %v5989_v27, 2  ;;  %v5140_v32 = vrot.slane %v13885_v37, %v13330_v5 }
 0x556   :  { %v6469_v31 = vadd.f32 1e-05, %v6437_v45  ;;  %v6306_v40 = vadd.f32 %v6305_v54, %v6304_v13  ;;  %v5164_v11 = vrot.slane %v13870_v60, %v13316_v1  ;;  %v6029_v28 = vsel %vm5881_vm7, %v13880_v44, 0.0 }
 0x557   :  { %v6443_v46 = vmul.f32 0.5, %v6327_v15  ;;  %v6344_v25 = vadd.f32 %v6343_v48, %v6342_v47  ;;  %v5991_v0 = vadd.f32 %v5990_v53, %v5989_v27  ;;  %v6609_v42 = vrot.slane %v13902_v35, %v13330_v5 }
 0x558   :  { %11282 = vrsqrt.f32 %v6469_v31  ;;  %v6809_v38 = vrot.slane %v13849_v10, %v13330_v5  ;;  %v13909_v8 = vadd.f32 %v13571_v41, %v5136_v18  ;;  %v6732_v34 = vmul.f32 %v6605_v55, %v6532_v12 }
 0x559   :  { %v7230_v51 = vld [vmem:[#allocation7 + $0x8] sm:$0x3]  ;;  %v7245_v30 = vld [vmem:[#allocation7 + $0xa] sm:$0x3]  ;;  %v7260_v9 = vld [vmem:[#allocation7 + $0xc] sm:$0x3]  ;;  %v6633_v13 = vrot.slane %v13844_v19, %v13316_v1  ;;  %v13920_v21 = vadd.f32 %v13573_v58, %v5160_v50  ;;  %v6833_v41 = vrot.slane %v13856_v61, %v13316_v1  ;;  %v11281_v45 = vpop.eup %11280  ;;  %v7060_v58 = vrot.slane %v13723_v16, %v12450_v39 }
 0x55a   :  { %7231 = vst.msk [vmem:[#allocation8 + $0x10] sm:$0x3] %vm1551_vm3, %v7230_v51  ;;  %7246 = vst.msk [vmem:[#allocation8 + $0x14] sm:$0x3] %vm1551_vm3, %v7245_v30  ;;  %v7275_v20 = vld [vmem:[#allocation7 + $0xe] sm:$0x3]  ;;  %v13934_v48 = vadd.f32 %v6805_v4, %v6732_v34  ;;  %v6538_v51 = vmul.f32 %v11281_v45, %v13761_v33  ;;  %v6825_v16 = vrot.slane %v13849_v10, %v13336_v7 }
 0x55b   :  { %7261 = vst.msk [vmem:[#allocation8 + $0x18] sm:$0x3] %vm1551_vm3, %v7260_v9  ;;  %v6475_v24 = vadd.f32 1e-05, %v6443_v46  ;;  %7276 = vst.msk [vmem:[#allocation8 + $0x1c] sm:$0x3] %vm1551_vm3, %v7275_v20 }
 0x55c   :  { %v6345_v17 = vrot.slane %v6344_v25, 2  ;;  %v5992_v27 = vrot.slane %v5991_v0, 1  ;;  %v6030_v18 = vrot.slane %v6029_v28, 4  ;;  %v6440_v54 = vmul.f32 0.5, %v6306_v40  ;;  %v15466_v20 = vld [vmem:[#allocation19_spill] sm:$0xff] }
 0x55d   :  { %11284 = vrsqrt.f32 %v6475_v24  ;;  %v6008_v23 = vsel %vm5881_vm7, %v13909_v8, 0.0  ;;  %v6050_v55 = vsel %vm5881_vm7, %v13920_v21, 0.0  ;;  %v10168_v15 = vld.sshfl [vmem:[#allocation7 + $0xa] sm:$0x3 pattern:$0x76325410]  ;;  %v13944_v34 = vadd.f32 %v15466_v20, %v5140_v32 }
 0x55e   :  { %v6346_v47 = vadd.f32 %v6345_v17, %v6344_v25  ;;  %v5993_v50 = vadd.f32 %v5992_v27, %v5991_v0  ;;  %v6031_v12 = vadd.f32 %v6030_v18, %v6029_v28  ;;  %v6009_v31 = vrot.slane %v6008_v23, 4  ;;  %7256 = vrot.lane.b32.xlu1 %v10168_v15, %s11352_s22  ;;  %v10167_v46 = vld.sshfl [vmem:[#allocation7 + $0x8] sm:$0x3 pattern:$0x76325410] }
 0x55f   :  { %v6051_v40 = vrot.slane %v6050_v55, 4  ;;  %7241 = vrot.lane.b32.xlu0 %v10167_v46, %s11352_s22  ;;  %v6472_v30 = vadd.f32 1e-05, %v6440_v54  ;;  %v6015_v54 = vsel %vm5881_vm7, %v13944_v34, 0.0 }
 0x560   :  { %v6121_v0 = vmul.f32 0.5, %v5993_v50  ;;  %v6032_v28 = vrot.slane %v6031_v12, 2  ;;  %v6010_v4 = vadd.f32 %v6009_v31, %v6008_v23  ;;  %v10170_v24 = vld.sshfl [vmem:[#allocation7 + $0xe] sm:$0x3 pattern:$0x76325410]  ;;  %v6738_v23 = vmul.f32 %v6629_v22, %v6538_v51 }
 0x561   :  { %v6052_v9 = vadd.f32 %v6051_v40, %v6050_v55  ;;  %v6347_v17 = vrot.slane %v6346_v47, 1  ;;  %v10169_v45 = vld.sshfl [vmem:[#allocation7 + $0xc] sm:$0x3 pattern:$0x76325410]  ;;  %v6964_v50 = vmax.f32 %v13934_v48, 0.0  ;;  %11286 = vrsqrt.f32 %v6472_v30 }
 0x562   :  { %v13949_v33 = vsub.f32 %v13839_v43, %v6121_v0  ;;  %v6033_v18 = vadd.f32 %v6032_v28, %v6031_v12  ;;  %v6011_v15 = vrot.slane %v6010_v4, 2  ;;  %7286 = vrot.lane.b32.xlu1 %v10170_v24, %s11352_s22  ;;  %v11283_v32 = vpop.eup %11282  ;;  %v6016_v12 = vrot.slane %v6015_v54, 4 }
 0x563   :  { %v6053_v46 = vrot.slane %v6052_v9, 2  ;;  %7271 = vrot.lane.b32.xlu0 %v10169_v45, %s11352_s22  ;;  %v6533_v48 = vmul.f32 %v11283_v32, %v13801_v14  ;;  %v6348_v0 = vadd.f32 %v6347_v17, %v6346_v47  ;;  %v6938_v14 = vadd.f32 %v6829_v52, %v6738_v23 }
 0x564   :  { %v6185_v43 = vmul.f32 %v13949_v33, %v13949_v33  ;;  %v6034_v55 = vrot.slane %v6033_v18, 1  ;;  %v6012_v31 = vadd.f32 %v6011_v15, %v6010_v4  ;;  %v6017_v24 = vadd.f32 %v6016_v12, %v6015_v54 }
 0x565   :  { %v6054_v40 = vadd.f32 %v6053_v46, %v6052_v9  ;;  %v6733_v22 = vmul.f32 %v6609_v42, %v6533_v48  ;;  %v6446_v15 = vmul.f32 0.5, %v6348_v0  ;;  %v6970_v23 = vmax.f32 %v6938_v14, 0.0 }
 0x566   :  { %v6307_v28 = vsel %vm5881_vm7, %v6185_v43, 0.0  ;;  %v6035_v20 = vadd.f32 %v6034_v55, %v6033_v18  ;;  %v6013_v25 = vrot.slane %v6012_v31, 1  ;;  %v6018_v47 = vrot.slane %v6017_v24, 2 }
 0x567   :  { %v11285_v27 = vpop.eup %11284  ;;  %v6308_v51 = vrot.slane %v6307_v28, 4  ;;  %v6055_v53 = vrot.slane %v6054_v40, 1  ;;  %v6933_v9 = vadd.f32 %v6809_v38, %v6733_v22  ;;  %v6478_v48 = vadd.f32 1e-05, %v6446_v15 }
 0x568   :  { %v6539_v30 = vmul.f32 %v11285_v27, %v13812_v49  ;;  %v6127_v4 = vmul.f32 0.5, %v6035_v20  ;;  %v6014_v18 = vadd.f32 %v6013_v25, %v6012_v31  ;;  %v6019_v52 = vadd.f32 %v6018_v47, %v6017_v24 }
 0x569   :  { %v6309_v17 = vadd.f32 %v6308_v51, %v6307_v28  ;;  %v6056_v45 = vadd.f32 %v6055_v53, %v6054_v40  ;;  %v6965_v54 = vmax.f32 %v6933_v9, 0.0  ;;  %11288 = vrsqrt.f32 %v6478_v48 }
 0x56a   :  { %v6739_v42 = vmul.f32 %v6633_v13, %v6539_v30  ;;  %v13977_v46 = vsub.f32 %v13880_v44, %v6127_v4  ;;  %v6124_v27 = vmul.f32 0.5, %v6014_v18  ;;  %v6020_v25 = vrot.slane %v6019_v52, 1 }
 0x56b   :  { %v6310_v49 = vrot.slane %v6309_v17, 2  ;;  %v6130_v32 = vmul.f32 0.5, %v6056_v45  ;;  %v7053_v43 = vcombine.low %v6964_v50, %v6965_v54  ;;  %v11287_v0 = vpop.eup %11286  ;;  %v6625_v45 = vrot.slane %v13902_v35, %v13336_v7  ;;  %v15467_v54 = vld [vmem:[#allocation20_spill] sm:$0xff] }
 0x56c   :  { %v6939_v38 = vadd.f32 %v6833_v41, %v6739_v42  ;;  %v6191_v53 = vmul.f32 %v13977_v46, %v13977_v46  ;;  %v13985_v55 = vsub.f32 %v13909_v8, %v6124_v27  ;;  %v6021_v40 = vadd.f32 %v6020_v25, %v6019_v52 }
 0x56d   :  { %v6311_v13 = vadd.f32 %v6310_v49, %v6309_v17  ;;  %v13988_v44 = vsub.f32 %v13920_v21, %v6130_v32  ;;  %v7067_v41 = vrot.slane %v7053_v43, %v12450_v39  ;;  %v6845_v8 = vrot.slane %v13856_v61, %v13308_v63 }
 0x56e   :  { %v6971_v12 = vmax.f32 %v6939_v38, 0.0  ;;  %v6349_v31 = vsel %vm5881_vm7, %v6191_v53, 0.0  ;;  %v6188_v50 = vmul.f32 %v13985_v55, %v13985_v55  ;;  %v6125_v22 = vmul.f32 0.5, %v6021_v40 }
 0x56f   :  { %v6312_v28 = vrot.slane %v6311_v13, 1  ;;  %v6350_v20 = vrot.slane %v6349_v31, 4  ;;  %v6194_v21 = vmul.f32 %v13988_v44, %v13988_v44  ;;  %v7068_v51 = vcombine.low %v7060_v58, %v7067_v41 }
 0x570   :  { %v13994_v24 = vcombine.low %v6970_v23, %v6971_v12  ;;  %v6328_v4 = vsel %vm5881_vm7, %v6188_v50, 0.0  ;;  %v14006_v17 = vsub.f32 %v13944_v34, %v6125_v22  ;;  %v14018_v34 = vadd.f32 %v15467_v54, %v5164_v11 }
 0x571   :  { %v6313_v14 = vadd.f32 %v6312_v28, %v6311_v13  ;;  %v6351_v30 = vadd.f32 %v6350_v20, %v6349_v31  ;;  %v6329_v47 = vrot.slane %v6328_v4, 4  ;;  %v6370_v9 = vsel %vm5881_vm7, %v6194_v21, 0.0  ;;  %7164 = vst [vmem:[#allocation7 + $0x10] sm:$0xff] %v7068_v51 }
 0x572   :  { %v6371_v15 = vrot.slane %v6370_v9, 4  ;;  %v6189_v52 = vmul.f32 %v14006_v17, %v14006_v17  ;;  %v7077_v49 = vrot.slane %v13860_v26, %v12450_v39  ;;  %v6536_v38 = vmul.f32 %v11287_v0, %v13815_v36 }
 0x573   :  { %v6441_v18 = vmul.f32 0.5, %v6313_v14  ;;  %v6352_v42 = vrot.slane %v6351_v30, 2  ;;  %v6330_v58 = vadd.f32 %v6329_v47, %v6328_v4  ;;  %v6057_v43 = vsel %vm5881_vm7, %v14018_v34, 0.0  ;;  %v15469_v47 = vld [vmem:[#allocation21_spill] sm:$0xff]  ;;  %v11289_v54 = vpop.eup %11288 }
 0x574   :  { %v6372_v23 = vadd.f32 %v6371_v15, %v6370_v9  ;;  %v6335_v25 = vsel %vm5881_vm7, %v6189_v52, 0.0  ;;  %v6649_v11 = vrot.slane %v13844_v19, %v13319_v2  ;;  %v6058_v40 = vrot.slane %v6057_v43, 4 }
 0x575   :  { %v6473_v27 = vadd.f32 1e-05, %v6441_v18  ;;  %v6353_v32 = vadd.f32 %v6352_v42, %v6351_v30  ;;  %v6331_v53 = vrot.slane %v6330_v58, 2  ;;  %v6336_v31 = vrot.slane %v6335_v25, 4 }
 0x576   :  { %v6373_v12 = vrot.slane %v6372_v23, 2  ;;  %v5152_v41 = vrot.slane %v13885_v37, %v13333_v6  ;;  %v6849_v36 = vrot.slane %v13856_v61, %v13319_v2  ;;  %v6637_v0 = vrot.slane %v13844_v19, %v13322_v3 }
 0x577   :  { %11290 = vrsqrt.f32 %v6473_v27  ;;  %v6354_v13 = vrot.slane %v6353_v32, 1  ;;  %v6332_v48 = vadd.f32 %v6331_v53, %v6330_v58  ;;  %v15468_v51 = vrot.slane %v13902_v35, %v13333_v6 }
 0x578   :  { %v6374_v20 = vadd.f32 %v6373_v12, %v6372_v23  ;;  %v7290_v50 = vld [vmem:[#allocation7 + $0x10] sm:$0x3]  ;;  %v7305_v21 = vld [vmem:[#allocation7 + $0x12] sm:$0x3]  ;;  %v7320_v22 = vld [vmem:[#allocation7 + $0x14] sm:$0x3]  ;;  %v6337_v30 = vadd.f32 %v6336_v31, %v6335_v25  ;;  %v6059_v4 = vadd.f32 %v6058_v40, %v6057_v43  ;;  %v14038_v9 = vadd.f32 %v15469_v47, %v5152_v41 }
 0x579   :  { %v6355_v28 = vadd.f32 %v6354_v13, %v6353_v32  ;;  %v6736_v14 = vmul.f32 %v15468_v51, %v6536_v38  ;;  %7291 = vst.msk [vmem:[#allocation8 + $0x20] sm:$0x3] %vm1551_vm3, %v7290_v50  ;;  %7306 = vst.msk [vmem:[#allocation8 + $0x24] sm:$0x3] %vm1551_vm3, %v7305_v21  ;;  %v7335_v18 = vld [vmem:[#allocation7 + $0x16] sm:$0x3]  ;;  %v6837_v58 = vrot.slane %v13856_v61, %v13322_v3 }
 0x57a   :  { %7321 = vst.msk [vmem:[#allocation8 + $0x28] sm:$0x3] %vm1551_vm3, %v7320_v22  ;;  %v6333_v15 = vrot.slane %v6332_v48, 1  ;;  %v5176_v52 = vrot.slane %v13870_v60, %v13308_v63  ;;  %7336 = vst.msk [vmem:[#allocation8 + $0x2c] sm:$0x3] %vm1551_vm3, %v7335_v18  ;;  %v6338_v27 = vrot.slane %v6337_v30, 2  ;;  %v6641_v32 = vrot.slane %v13844_v19, %v13330_v5 }
 0x57b   :  { %v6447_v42 = vmul.f32 0.5, %v6355_v28  ;;  %v6060_v23 = vrot.slane %v6059_v4, 2  ;;  %v6036_v38 = vsel %vm5881_vm7, %v14038_v9, 0.0  ;;  %v6375_v43 = vrot.slane %v6374_v20, 1  ;;  %v15471_v28 = vld [vmem:[#allocation22_spill] sm:$0xff] }
 0x57c   :  { %v6334_v25 = vadd.f32 %v6333_v15, %v6332_v48  ;;  %v6037_v13 = vrot.slane %v6036_v38, 4  ;;  %v15470_v12 = vrot.slane %v13849_v10, %v13333_v6  ;;  %v6339_v40 = vadd.f32 %v6338_v27, %v6337_v30  ;;  %v10172_v21 = vld.sshfl [vmem:[#allocation7 + $0x12] sm:$0x3 pattern:$0x76325410] }
 0x57d   :  { %v6479_v53 = vadd.f32 1e-05, %v6447_v42  ;;  %v6061_v41 = vadd.f32 %v6060_v23, %v6059_v4  ;;  %v14056_v50 = vadd.f32 %v15471_v28, %v5176_v52  ;;  %v6542_v22 = vmul.f32 %v11289_v54, %v13863_v56  ;;  %7316 = vrot.lane.b32.xlu1 %v10172_v21, %s11352_s22  ;;  %v10171_v48 = vld.sshfl [vmem:[#allocation7 + $0x10] sm:$0x3 pattern:$0x76325410] }
 0x57e   :  { %v6936_v31 = vadd.f32 %v15470_v12, %v6736_v14  ;;  %v6444_v51 = vmul.f32 0.5, %v6334_v25  ;;  %v6038_v47 = vadd.f32 %v6037_v13, %v6036_v38  ;;  %v6340_v18 = vrot.slane %v6339_v40, 1  ;;  %7301 = vrot.lane.b32.xlu0 %v10171_v48, %s11352_s22  ;;  %v10174_v13 = vld.sshfl [vmem:[#allocation7 + $0x16] sm:$0x3 pattern:$0x76325410] }
 0x57f   :  { %11292 = vrsqrt.f32 %v6479_v53  ;;  %v6062_v42 = vrot.slane %v6061_v41, 1  ;;  %v6078_v15 = vsel %vm5881_vm7, %v14056_v50, 0.0  ;;  %v5156_v14 = vrot.slane %v13885_v37, %v13336_v7  ;;  %v15472_v53 = vld [vmem:[#allocation23_spill] sm:$0xff] }
 0x580   :  { %v6476_v4 = vadd.f32 1e-05, %v6444_v51  ;;  %v6376_v52 = vadd.f32 %v6375_v43, %v6374_v20  ;;  %v6039_v56 = vrot.slane %v6038_v47, 2  ;;  %v6079_v54 = vrot.slane %v6078_v15, 4 }
 0x581   :  { %v11291_v30 = vpop.eup %11290  ;;  %v6341_v23 = vadd.f32 %v6340_v18, %v6339_v40  ;;  %v6063_v38 = vadd.f32 %v6062_v42, %v6061_v41  ;;  %v14067_v25 = vadd.f32 %v15472_v53, %v5156_v14  ;;  %v15473_v12 = vrot.slane %v13844_v19, %v13308_v63  ;;  %7346 = vrot.lane.b32.xlu1 %v10174_v13, %s11352_s22  ;;  %v10173_v20 = vld.sshfl [vmem:[#allocation7 + $0x14] sm:$0x3 pattern:$0x76325410] }
 0x582   :  { %v6537_v27 = vmul.f32 %v11291_v30, %v13949_v33  ;;  %11294 = vrsqrt.f32 %v6476_v4  ;;  %v6040_v37 = vadd.f32 %v6039_v56, %v6038_v47  ;;  %v6080_v21 = vadd.f32 %v6079_v54, %v6078_v15  ;;  %7331 = vrot.lane.b32.xlu0 %v10173_v20, %s11352_s22 }
 0x583   :  { %v6742_v28 = vmul.f32 %v15473_v12, %v6542_v22  ;;  %v6968_v43 = vmax.f32 %v6936_v31, 0.0  ;;  %v6445_v40 = vmul.f32 0.5, %v6341_v23  ;;  %v6131_v41 = vmul.f32 0.5, %v6063_v38 }
 0x584   :  { %v6737_v33 = vmul.f32 %v6625_v45, %v6537_v27  ;;  %v6450_v51 = vmul.f32 0.5, %v6376_v52  ;;  %v6041_v48 = vrot.slane %v6040_v37, 1  ;;  %v6081_v18 = vrot.slane %v6080_v21, 2  ;;  %v15474_v27 = vld [vmem:[#allocation24_spill] sm:$0xff] }
 0x585   :  { %v6043_v22 = vsel %vm5881_vm7, %v14067_v25, 0.0  ;;  %v6477_v42 = vadd.f32 1e-05, %v6445_v40  ;;  %v14083_v31 = vsub.f32 %v14018_v34, %v6131_v41  ;;  %v6942_v45 = vadd.f32 %v6845_v8, %v6742_v28 }
 0x586   :  { %v6937_v47 = vadd.f32 %v6825_v16, %v6737_v33  ;;  %v6044_v35 = vrot.slane %v6043_v22, 4  ;;  %v6042_v15 = vadd.f32 %v6041_v48, %v6040_v37  ;;  %v6082_v14 = vadd.f32 %v6081_v18, %v6080_v21 }
 0x587   :  { %v5180_v30 = vrot.slane %v13870_v60, %v13319_v2  ;;  %11296 = vrsqrt.f32 %v6477_v42  ;;  %v6195_v10 = vmul.f32 %v14083_v31, %v14083_v31  ;;  %v6482_v56 = vadd.f32 1e-05, %v6450_v51 }
 0x588   :  { %v6969_v4 = vmax.f32 %v6937_v47, 0.0  ;;  %v6045_v16 = vadd.f32 %v6044_v35, %v6043_v22  ;;  %v6128_v34 = vmul.f32 0.5, %v6042_v15  ;;  %v6083_v54 = vrot.slane %v6082_v14, 1 }
 0x589   :  { %v11293_v52 = vpop.eup %11292  ;;  %v14093_v23 = vadd.f32 %v15474_v27, %v5180_v30  ;;  %v6377_v53 = vsel %vm5881_vm7, %v6195_v10, 0.0  ;;  %v6974_v20 = vmax.f32 %v6942_v45, 0.0  ;;  %11298 = vrsqrt.f32 %v6482_v56 }
 0x58a   :  { %v7070_v38 = vcombine.low %v6968_v43, %v6969_v4  ;;  %v6543_v8 = vmul.f32 %v11293_v52, %v13977_v46  ;;  %v6046_v13 = vrot.slane %v6045_v16, 2  ;;  %v6378_v12 = vrot.slane %v6377_v53, 4 }
 0x58b   :  { %v14098_v28 = vsub.f32 %v14038_v9, %v6128_v34  ;;  %v6084_v37 = vadd.f32 %v6083_v54, %v6082_v14  ;;  %v6085_v21 = vsel %vm5881_vm7, %v14093_v23, 0.0  ;;  %v5168_v4 = vrot.slane %v13870_v60, %v13322_v3 }
 0x58c   :  { %v7084_v33 = vrot.slane %v7070_v38, %v12450_v39  ;;  %v6743_v43 = vmul.f32 %v6649_v11, %v6543_v8  ;;  %v6047_v40 = vadd.f32 %v6046_v13, %v6045_v16  ;;  %v11295_v46 = vpop.eup %11294  ;;  %v6379_v41 = vadd.f32 %v6378_v12, %v6377_v53  ;;  %v14138_v38 = vld [vmem:[%s15352_s9 + $0x18] sm:$0xff] }
 0x58d   :  { %v6192_v51 = vmul.f32 %v14098_v28, %v14098_v28  ;;  %v6134_v48 = vmul.f32 0.5, %v6084_v37  ;;  %v6086_v9 = vrot.slane %v6085_v21, 4  ;;  %v6540_v47 = vmul.f32 %v11295_v46, %v13985_v55 }
 0x58e   :  { %v7085_v18 = vcombine.low %v7077_v49, %v7084_v33  ;;  %v6943_v22 = vadd.f32 %v6849_v36, %v6743_v43  ;;  %v6048_v42 = vrot.slane %v6047_v40, 1  ;;  %v6380_v11 = vrot.slane %v6379_v41, 2 }
 0x58f   :  { %v6356_v35 = vsel %vm5881_vm7, %v6192_v51, 0.0  ;;  %v14117_v45 = vsub.f32 %v14056_v50, %v6134_v48  ;;  %v6740_v26 = vmul.f32 %v6637_v0, %v6540_v47  ;;  %v6087_v36 = vadd.f32 %v6086_v9, %v6085_v21 }
 0x590   :  { %7165 = vst [vmem:[#allocation7 + $0x18] sm:$0xff] %v7085_v18  ;;  %v6975_v15 = vmax.f32 %v6943_v22, 0.0  ;;  %v6357_v49 = vrot.slane %v6356_v35, 4  ;;  %v6049_v14 = vadd.f32 %v6048_v42, %v6047_v40  ;;  %v6381_v30 = vadd.f32 %v6380_v11, %v6379_v41 }
 0x591   :  { %v6198_v55 = vmul.f32 %v14117_v45, %v14117_v45  ;;  %v11297_v10 = vpop.eup %11296  ;;  %v6940_v50 = vadd.f32 %v6837_v58, %v6740_v26  ;;  %v6841_v34 = vrot.slane %v13856_v61, %v13330_v5  ;;  %v14147_v33 = vadd.f32 %v13642_v59, %v5168_v4 }
 0x592   :  { %v14126_v16 = vcombine.low %v6974_v20, %v6975_v15  ;;  %v6358_v52 = vadd.f32 %v6357_v49, %v6356_v35  ;;  %v6129_v56 = vmul.f32 0.5, %v6049_v14  ;;  %v6541_v0 = vmul.f32 %v11297_v10, %v14006_v17 }
 0x593   :  { %v6382_v54 = vrot.slane %v6381_v30, 1  ;;  %v6398_v27 = vsel %vm5881_vm7, %v6198_v55, 0.0  ;;  %v6972_v13 = vmax.f32 %v6940_v50, 0.0  ;;  %v6088_v20 = vrot.slane %v6087_v36, 2  ;;  %v11299_v22 = vpop.eup %11298 }
 0x594   :  { %v6359_v8 = vrot.slane %v6358_v52, 2  ;;  %v6399_v53 = vrot.slane %v6398_v27, 4  ;;  %v6741_v58 = vmul.f32 %v6641_v32, %v6541_v0  ;;  %v14144_v17 = vsub.f32 %v14067_v25, %v6129_v56 }
 0x595   :  { %v6383_v12 = vadd.f32 %v6382_v54, %v6381_v30  ;;  %v7094_v43 = vrot.slane %v13994_v24, %v12450_v39  ;;  %v6661_v51 = vrot.slane %v14138_v38, %v13305_v62  ;;  %v6089_v18 = vadd.f32 %v6088_v20, %v6087_v36 }
 0x596   :  { %v6360_v37 = vadd.f32 %v6359_v8, %v6358_v52  ;;  %v6400_v21 = vadd.f32 %v6399_v53, %v6398_v27  ;;  %v6941_v32 = vadd.f32 %v6841_v34, %v6741_v58  ;;  %v6193_v25 = vmul.f32 %v14144_v17, %v14144_v17 }
 0x597   :  { %v7350_v40 = vld [vmem:[#allocation7 + $0x18] sm:$0x3]  ;;  %v7365_v46 = vld [vmem:[#allocation7 + $0x1a] sm:$0x3]  ;;  %v7380_v41 = vld [vmem:[#allocation7 + $0x1c] sm:$0x3]  ;;  %v5172_v35 = vrot.slane %v13870_v60, %v13330_v5 }
 0x598   :  { %7351 = vst.msk [vmem:[#allocation8 + $0x30] sm:$0x3] %vm1551_vm3, %v7350_v40  ;;  %7366 = vst.msk [vmem:[#allocation8 + $0x34] sm:$0x3] %vm1551_vm3, %v7365_v46  ;;  %v7395_v59 = vld [vmem:[#allocation7 + $0x1e] sm:$0x3] }
 0x599   :  { %7381 = vst.msk [vmem:[#allocation8 + $0x38] sm:$0x3] %vm1551_vm3, %v7380_v41  ;;  %v6451_v48 = vmul.f32 0.5, %v6383_v12  ;;  %v6361_v9 = vrot.slane %v6360_v37, 1  ;;  %v6401_v24 = vrot.slane %v6400_v21, 2  ;;  %v6973_v47 = vmax.f32 %v6941_v32, 0.0 }
 0x59a   :  { %7396 = vst.msk [vmem:[#allocation8 + $0x3c] sm:$0x3] %vm1551_vm3, %v7395_v59  ;;  %v6363_v42 = vsel %vm5881_vm7, %v6193_v25, 0.0  ;;  %v6064_v11 = vsel %vm5881_vm7, %v14147_v33, 0.0  ;;  %v6090_v55 = vrot.slane %v6089_v18, 1  ;;  %v14165_v36 = vadd.f32 %v13650_v29, %v5172_v35  ;;  %v14175_v29 = vld [vmem:[%s15353_s10 + $0x18] sm:$0xff] }
 0x59b   :  { %v6483_v15 = vadd.f32 1e-05, %v6451_v48  ;;  %v6362_v26 = vadd.f32 %v6361_v9, %v6360_v37  ;;  %v6402_v49 = vadd.f32 %v6401_v24, %v6400_v21  ;;  %v6364_v14 = vrot.slane %v6363_v42, 4 }
 0x59c   :  { %v7087_v30 = vcombine.low %v6972_v13, %v6973_v47  ;;  %v6065_v4 = vrot.slane %v6064_v11, 4  ;;  %v10176_v10 = vld.sshfl [vmem:[#allocation7 + $0x1a] sm:$0x3 pattern:$0x76325410]  ;;  %v6091_v54 = vadd.f32 %v6090_v55, %v6089_v18  ;;  %v6071_v8 = vsel %vm5881_vm7, %v14165_v36, 0.0 }
 0x59d   :  { %11300 = vrsqrt.f32 %v6483_v15  ;;  %v6448_v50 = vmul.f32 0.5, %v6362_v26  ;;  %v6403_v52 = vrot.slane %v6402_v49, 1  ;;  %v6365_v56 = vadd.f32 %v6364_v14, %v6363_v42  ;;  %7376 = vrot.lane.b32.xlu1 %v10176_v10, %s11352_s22  ;;  %v10175_v0 = vld.sshfl [vmem:[#allocation7 + $0x18] sm:$0x3 pattern:$0x76325410] }
 0x59e   :  { %v7101_v34 = vrot.slane %v7087_v30, %v12450_v39  ;;  %v6066_v27 = vadd.f32 %v6065_v4, %v6064_v11  ;;  %7361 = vrot.lane.b32.xlu0 %v10175_v0, %s11352_s22  ;;  %v6072_v12 = vrot.slane %v6071_v8, 4  ;;  %v6546_v37 = vmul.f32 %v11299_v22, %v13988_v44  ;;  %v10178_v46 = vld.sshfl [vmem:[#allocation7 + $0x1e] sm:$0x3 pattern:$0x76325410] }
 0x59f   :  { %v6480_v53 = vadd.f32 1e-05, %v6448_v50  ;;  %v6404_v13 = vadd.f32 %v6403_v52, %v6402_v49  ;;  %v6366_v58 = vrot.slane %v6365_v56, 2  ;;  %v6135_v20 = vmul.f32 0.5, %v6091_v54 }
 0x5a0   :  { %v7102_v21 = vcombine.low %v7094_v43, %v7101_v34  ;;  %v6067_v40 = vrot.slane %v6066_v27, 2  ;;  %v6073_v25 = vadd.f32 %v6072_v12, %v6071_v8  ;;  %v10177_v59 = vld.sshfl [vmem:[#allocation7 + $0x1c] sm:$0x3 pattern:$0x76325410]  ;;  %v5184_v24 = vrot.slane %v13870_v60, %v13333_v6  ;;  %v15475_v34 = vld [vmem:[#allocation25_spill] sm:$0xff] }
 0x5a1   :  { %11302 = vrsqrt.f32 %v6480_v53  ;;  %v6454_v41 = vmul.f32 0.5, %v6404_v13  ;;  %v6367_v32 = vadd.f32 %v6366_v58, %v6365_v56  ;;  %7406 = vrot.lane.b32.xlu1 %v10178_v46, %s11352_s22  ;;  %v14180_v48 = vsub.f32 %v14093_v23, %v6135_v20 }
 0x5a2   :  { %7166 = vst [vmem:[#allocation7 + $0x20] sm:$0xff] %v7102_v21  ;;  %v6068_v9 = vadd.f32 %v6067_v40, %v6066_v27  ;;  %7391 = vrot.lane.b32.xlu0 %v10177_v59, %s11352_s22  ;;  %v6861_v44 = vrot.slane %v14175_v29, %v13305_v62  ;;  %v6665_v43 = vrot.slane %v14138_v38, %v13316_v1  ;;  %v6074_v22 = vrot.slane %v6073_v25, 2 }
 0x5a3   :  { %v6368_v18 = vrot.slane %v6367_v32, 1  ;;  %v6746_v47 = vmul.f32 %v6661_v51, %v6546_v37  ;;  %v6199_v42 = vmul.f32 %v14180_v48, %v14180_v48  ;;  %v14192_v11 = vadd.f32 %v13687_v57, %v5184_v24 }
 0x5a4   :  { %v6069_v23 = vrot.slane %v6068_v9, 1  ;;  %v6486_v35 = vadd.f32 1e-05, %v6454_v41  ;;  %v6075_v26 = vadd.f32 %v6074_v22, %v6073_v25  ;;  %v5188_v49 = vrot.slane %v13870_v60, %v13336_v7 }
 0x5a5   :  { %v6369_v15 = vadd.f32 %v6368_v18, %v6367_v32  ;;  %v6865_v62 = vrot.slane %v14175_v29, %v13316_v1  ;;  %v6405_v14 = vsel %vm5881_vm7, %v6199_v42, 0.0  ;;  %v6092_v51 = vsel %vm5881_vm7, %v14192_v11, 0.0 }
 0x5a6   :  { %v6070_v30 = vadd.f32 %v6069_v23, %v6068_v9  ;;  %v6406_v10 = vrot.slane %v6405_v14, 4  ;;  %v6076_v57 = vrot.slane %v6075_v26, 1  ;;  %v6093_v50 = vrot.slane %v6092_v51, 4 }
 0x5a7   :  { %v11301_v55 = vpop.eup %11300  ;;  %v6449_v4 = vmul.f32 0.5, %v6369_v15  ;;  %v6946_v52 = vadd.f32 %v6861_v44, %v6746_v47  ;;  %v14203_v60 = vadd.f32 %v15475_v34, %v5188_v49  ;;  %11304 = vrsqrt.f32 %v6486_v35 }
 0x5a8   :  { %v6547_v56 = vmul.f32 %v11301_v55, %v14083_v31  ;;  %v6132_v0 = vmul.f32 0.5, %v6070_v30  ;;  %v6407_v8 = vadd.f32 %v6406_v10, %v6405_v14  ;;  %v6077_v53 = vadd.f32 %v6076_v57, %v6075_v26 }
 0x5a9   :  { %v7410_v54 = vld [vmem:[#allocation7 + $0x20] sm:$0x3]  ;;  %v7425_v1 = vld [vmem:[#allocation7 + $0x22] sm:$0x3]  ;;  %v7440_v27 = vld [vmem:[#allocation7 + $0x24] sm:$0x3]  ;;  %v6094_v13 = vadd.f32 %v6093_v50, %v6092_v51  ;;  %v6653_v23 = vrot.slane %v13844_v19, %v13333_v6  ;;  %v6853_v50 = vrot.slane %v13856_v61, %v13333_v6 }
 0x5aa   :  { %7411 = vst.msk [vmem:[#allocation8 + $0x40] sm:$0x3] %vm1551_vm3, %v7410_v54  ;;  %7426 = vst.msk [vmem:[#allocation8 + $0x44] sm:$0x3] %vm1551_vm3, %v7425_v1  ;;  %v7455_v58 = vld [vmem:[#allocation7 + $0x26] sm:$0x3]  ;;  %v6747_v12 = vmul.f32 %v6665_v43, %v6547_v56  ;;  %v14209_v37 = vsub.f32 %v14147_v33, %v6132_v0 }
 0x5ab   :  { %7441 = vst.msk [vmem:[#allocation8 + $0x48] sm:$0x3] %vm1551_vm3, %v7440_v27  ;;  %v6481_v31 = vadd.f32 1e-05, %v6449_v4  ;;  %v6099_v21 = vsel %vm5881_vm7, %v14203_v60, 0.0  ;;  %v11303_v20 = vpop.eup %11302  ;;  %v6408_v40 = vrot.slane %v6407_v8, 2 }
 0x5ac   :  { %7456 = vst.msk [vmem:[#allocation8 + $0x4c] sm:$0x3] %vm1551_vm3, %v7455_v58  ;;  %v6133_v46 = vmul.f32 0.5, %v6077_v53  ;;  %v6095_v41 = vrot.slane %v6094_v13, 2  ;;  %v6100_v32 = vrot.slane %v6099_v21, 4  ;;  %v6978_v25 = vmax.f32 %v6946_v52, 0.0 }
 0x5ad   :  { %v6947_v59 = vadd.f32 %v6865_v62, %v6747_v12  ;;  %11306 = vrsqrt.f32 %v6481_v31  ;;  %v6196_v9 = vmul.f32 %v14209_v37, %v14209_v37  ;;  %v10180_v24 = vld.sshfl [vmem:[#allocation7 + $0x22] sm:$0x3 pattern:$0x76325410]  ;;  %v6409_v44 = vadd.f32 %v6408_v40, %v6407_v8 }
 0x5ae   :  { %v14217_v33 = vsub.f32 %v14165_v36, %v6133_v46  ;;  %v6096_v43 = vadd.f32 %v6095_v41, %v6094_v13  ;;  %v6101_v18 = vadd.f32 %v6100_v32, %v6099_v21  ;;  %7436 = vrot.lane.b32.xlu1 %v10180_v24, %s11352_s22  ;;  %v10179_v22 = vld.sshfl [vmem:[#allocation7 + $0x20] sm:$0x3 pattern:$0x76325410]  ;;  %v6544_v42 = vmul.f32 %v11303_v20, %v14098_v28  ;;  %v7212_v56 = vpop.permute.xlu1 %7211 }
 0x5af   :  { %v6979_v47 = vmax.f32 %v6947_v59, 0.0  ;;  %v6384_v35 = vsel %vm5881_vm7, %v6196_v9, 0.0  ;;  %7421 = vrot.lane.b32.xlu0 %v10179_v22, %s11352_s22  ;;  %v6410_v15 = vrot.slane %v6409_v44, 1  ;;  %7214 = vst.msk [vmem:[#allocation8 + $0xa] sm:$0x3] %vm1551_vm3, %v7212_v56  ;;  %v7182_v8 = vpop.permute.xlu0 %7181  ;;  %v6657_v53 = vrot.slane %v13844_v19, %v13336_v7 }
 0x5b0   :  { %v6385_v26 = vrot.slane %v6384_v35, 4  ;;  %v6197_v36 = vmul.f32 %v14217_v33, %v14217_v33  ;;  %v6097_v49 = vrot.slane %v6096_v43, 1  ;;  %v6102_v14 = vrot.slane %v6101_v18, 2  ;;  %7184 = vst.msk [vmem:[#allocation8 + $0x2] sm:$0x3] %vm1551_vm3, %v7182_v8 }
 0x5b1   :  { %v14227_v62 = vcombine.low %v6978_v25, %v6979_v47  ;;  %v10182_v30 = vld.sshfl [vmem:[#allocation7 + $0x26] sm:$0x3 pattern:$0x76325410]  ;;  %v6411_v51 = vadd.f32 %v6410_v15, %v6409_v44  ;;  %v6744_v57 = vmul.f32 %v6653_v23, %v6544_v42  ;;  %v11305_v0 = vpop.eup %11304  ;;  %v6857_v46 = vrot.slane %v13856_v61, %v13336_v7 }
 0x5b2   :  { %v6386_v55 = vadd.f32 %v6385_v26, %v6384_v35  ;;  %v6391_v28 = vsel %vm5881_vm7, %v6197_v36, 0.0  ;;  %v6098_v4 = vadd.f32 %v6097_v49, %v6096_v43  ;;  %7466 = vrot.lane.b32.xlu1 %v10182_v30, %s11352_s22  ;;  %v10181_v10 = vld.sshfl [vmem:[#allocation7 + $0x24] sm:$0x3 pattern:$0x76325410]  ;;  %v6103_v27 = vadd.f32 %v6102_v14, %v6101_v18  ;;  %v7227_v32 = vpop.permute.xlu1 %7226 }
 0x5b3   :  { %v6392_v52 = vrot.slane %v6391_v28, 4  ;;  %7451 = vrot.lane.b32.xlu0 %v10181_v10, %s11352_s22  ;;  %v6455_v34 = vmul.f32 0.5, %v6411_v51  ;;  %v6944_v40 = vadd.f32 %v6853_v50, %v6744_v57  ;;  %7229 = vst.msk [vmem:[#allocation8 + $0xe] sm:$0x3] %vm1551_vm3, %v7227_v32  ;;  %v7197_v9 = vpop.permute.xlu0 %7196  ;;  %v6677_v44 = vrot.slane %v14138_v38, %v13308_v63 }
 0x5b4   :  { %v6387_v54 = vrot.slane %v6386_v55, 2  ;;  %v6136_v1 = vmul.f32 0.5, %v6098_v4  ;;  %v6104_v21 = vrot.slane %v6103_v27, 1  ;;  %7199 = vst.msk [vmem:[#allocation8 + $0x6] sm:$0x3] %vm1551_vm3, %v7197_v9  ;;  %v6877_v14 = vrot.slane %v14175_v29, %v13308_v63 }
 0x5b5   :  { %v6393_v13 = vadd.f32 %v6392_v52, %v6391_v28  ;;  %v6487_v58 = vadd.f32 1e-05, %v6455_v34  ;;  %v6976_v23 = vmax.f32 %v6944_v40, 0.0  ;;  %v6681_v50 = vrot.slane %v14138_v38, %v13319_v2 }
 0x5b6   :  { %v6388_v12 = vadd.f32 %v6387_v54, %v6386_v55  ;;  %v14239_v31 = vsub.f32 %v14192_v11, %v6136_v1  ;;  %v6105_v24 = vadd.f32 %v6104_v21, %v6103_v27  ;;  %v7111_v54 = vrot.slane %v14126_v16, %v12450_v39 }
 0x5b7   :  { %v11307_v20 = vpop.eup %11306  ;;  %v6394_v41 = vrot.slane %v6393_v13, 2  ;;  %11308 = vrsqrt.f32 %v6487_v58  ;;  %v6881_v27 = vrot.slane %v14175_v29, %v13319_v2  ;;  %v6669_v2 = vrot.slane %v14138_v38, %v13322_v3 }
 0x5b8   :  { %v6545_v25 = vmul.f32 %v11307_v20, %v14144_v17  ;;  %v6389_v19 = vrot.slane %v6388_v12, 1  ;;  %v6200_v59 = vmul.f32 %v14239_v31, %v14239_v31  ;;  %v6550_v17 = vmul.f32 %v11305_v0, %v14117_v45 }
 0x5b9   :  { %v6395_v11 = vadd.f32 %v6394_v41, %v6393_v13  ;;  %v6137_v42 = vmul.f32 0.5, %v6105_v24 }
 0x5ba   :  { %v6745_v61 = vmul.f32 %v6657_v53, %v6545_v25  ;;  %v6390_v43 = vadd.f32 %v6389_v19, %v6388_v12  ;;  %v6412_v18 = vsel %vm5881_vm7, %v6200_v59, 0.0  ;;  %v6750_v55 = vmul.f32 %v6677_v44, %v6550_v17  ;;  %v7651_v10 = vld [vmem:[#allocation8 + $0x8] sm:$0xff] }
 0x5bb   :  { %v6396_v22 = vrot.slane %v6395_v11, 1  ;;  %v6413_v47 = vrot.slane %v6412_v18, 4  ;;  %v14253_v49 = vsub.f32 %v14203_v60, %v6137_v42  ;;  %v7650_v52 = vld [vmem:[#allocation8] sm:$0xff]  ;;  %v6869_v44 = vrot.slane %v14175_v29, %v13322_v3 }
 0x5bc   :  { %v6945_v35 = vadd.f32 %v6857_v46, %v6745_v61  ;;  %v6452_v15 = vmul.f32 0.5, %v6390_v43  ;;  %v14262_v63 = vpack.c.bf16 %v7651_v10, %v7650_v52  ;;  %v6950_v53 = vadd.f32 %v6877_v14, %v6750_v55 }
 0x5bd   :  { %v6397_v26 = vadd.f32 %v6396_v22, %v6395_v11  ;;  %v6414_v36 = vadd.f32 %v6413_v47, %v6412_v18  ;;  %v6201_v45 = vmul.f32 %v14253_v49, %v14253_v49  ;;  %v6673_v61 = vrot.slane %v14138_v38, %v13330_v5 }
 0x5be   :  { %v6977_v30 = vmax.f32 %v6945_v35, 0.0  ;;  %v6484_v51 = vadd.f32 1e-05, %v6452_v15  ;;  %v6982_v41 = vmax.f32 %v6950_v53, 0.0  ;;  %v6873_v3 = vrot.slane %v14175_v29, %v13330_v5 }
 0x5bf   :  { %v6453_v28 = vmul.f32 0.5, %v6397_v26  ;;  %v6415_v4 = vrot.slane %v6414_v36, 2  ;;  %v6419_v0 = vsel %vm5881_vm7, %v6201_v45, 0.0  ;;  %v6685_v52 = vrot.slane %v14138_v38, %v13333_v6 }
 0x5c0   :  { %v7104_v57 = vcombine.low %v6976_v23, %v6977_v30  ;;  %11310 = vrsqrt.f32 %v6484_v51  ;;  %v6420_v8 = vrot.slane %v6419_v0, 4 }
 0x5c1   :  { %v6485_v60 = vadd.f32 1e-05, %v6453_v28  ;;  %v6416_v56 = vadd.f32 %v6415_v4, %v6414_v36  ;;  %v11309_v34 = vpop.eup %11308 }
 0x5c2   :  { %v7118_v1 = vrot.slane %v7104_v57, %v12450_v39  ;;  %v6551_v13 = vmul.f32 %v11309_v34, %v14180_v48  ;;  %v6421_v21 = vadd.f32 %v6420_v8, %v6419_v0 }
 0x5c3   :  { %11312 = vrsqrt.f32 %v6485_v60  ;;  %v6417_v58 = vrot.slane %v6416_v56, 1 }
 0x5c4   :  { %v7119_v12 = vcombine.low %v7111_v54, %v7118_v1  ;;  %v6751_v20 = vmul.f32 %v6681_v50, %v6551_v13  ;;  %v6422_v46 = vrot.slane %v6421_v21, 2 }
 0x5c5   :  { %v6418_v40 = vadd.f32 %v6417_v58, %v6416_v56  ;;  %v7128_v56 = vrot.slane %v14227_v62, %v12450_v39  ;;  %v6889_v62 = vrot.slane %v14175_v29, %v13336_v7 }
 0x5c6   :  { %7167 = vst [vmem:[#allocation7 + $0x28] sm:$0xff] %v7119_v12  ;;  %v6951_v32 = vadd.f32 %v6881_v27, %v6751_v20  ;;  %v6423_v25 = vadd.f32 %v6422_v46, %v6421_v21  ;;  %v6885_v27 = vrot.slane %v14175_v29, %v13333_v6 }
 0x5c7   :  { %v6456_v16 = vmul.f32 0.5, %v6418_v40 }
 0x5c8   :  { %v6983_v19 = vmax.f32 %v6951_v32, 0.0  ;;  %v6424_v11 = vrot.slane %v6423_v25, 1 }
 0x5c9   :  { %v6488_v59 = vadd.f32 1e-05, %v6456_v16 }
 0x5ca   :  { %v11311_v9 = vpop.eup %11310  ;;  %v14272_v48 = vcombine.low %v6982_v41, %v6983_v19  ;;  %v6425_v43 = vadd.f32 %v6424_v11, %v6423_v25 }
 0x5cb   :  { %v6548_v24 = vmul.f32 %v11311_v9, %v14209_v37  ;;  %11314 = vrsqrt.f32 %v6488_v59 }
 0x5cc   :  { %v6457_v35 = vmul.f32 0.5, %v6425_v43  ;;  %v7145_v25 = vrot.slane %v14272_v48, %v12450_v39 }
 0x5cd   :  { %v11313_v18 = vpop.eup %11312  ;;  %v7470_v17 = vld [vmem:[#allocation7 + $0x28] sm:$0x3]  ;;  %v7485_v22 = vld [vmem:[#allocation7 + $0x2a] sm:$0x3]  ;;  %v7500_v47 = vld [vmem:[#allocation7 + $0x2c] sm:$0x3]  ;;  %v6748_v42 = vmul.f32 %v6669_v2, %v6548_v24 }
 0x5ce   :  { %7471 = vst.msk [vmem:[#allocation8 + $0x50] sm:$0x3] %vm1551_vm3, %v7470_v17  ;;  %7486 = vst.msk [vmem:[#allocation8 + $0x54] sm:$0x3] %vm1551_vm3, %v7485_v22  ;;  %v7515_v37 = vld [vmem:[#allocation7 + $0x2e] sm:$0x3]  ;;  %v6549_v23 = vmul.f32 %v11313_v18, %v14217_v33 }
 0x5cf   :  { %7501 = vst.msk [vmem:[#allocation8 + $0x58] sm:$0x3] %vm1551_vm3, %v7500_v47  ;;  %7516 = vst.msk [vmem:[#allocation8 + $0x5c] sm:$0x3] %vm1551_vm3, %v7515_v37  ;;  %v6948_v15 = vadd.f32 %v6869_v44, %v6748_v42  ;;  %v6489_v14 = vadd.f32 1e-05, %v6457_v35 }
 0x5d0   :  { %v10184_v26 = vld.sshfl [vmem:[#allocation7 + $0x2a] sm:$0x3 pattern:$0x76325410]  ;;  %v6749_v36 = vmul.f32 %v6673_v61, %v6549_v23  ;;  %v7257_v33 = vpop.permute.xlu1 %7256 }
 0x5d1   :  { %7496 = vrot.lane.b32.xlu1 %v10184_v26, %s11352_s22  ;;  %v10183_v30 = vld.sshfl [vmem:[#allocation7 + $0x28] sm:$0x3 pattern:$0x76325410]  ;;  %v6980_v51 = vmax.f32 %v6948_v15, 0.0  ;;  %11316 = vrsqrt.f32 %v6489_v14  ;;  %v7242_v45 = vpop.permute.xlu0 %7241 }
 0x5d2   :  { %7481 = vrot.lane.b32.xlu0 %v10183_v30, %s11352_s22  ;;  %v6949_v55 = vadd.f32 %v6873_v3, %v6749_v36  ;;  %v10186_v28 = vld.sshfl [vmem:[#allocation7 + $0x2e] sm:$0x3 pattern:$0x76325410]  ;;  %7259 = vst.msk [vmem:[#allocation8 + $0x16] sm:$0x3] %vm1551_vm3, %v7257_v33 }
 0x5d3   :  { %v10185_v5 = vld.sshfl [vmem:[#allocation7 + $0x2c] sm:$0x3 pattern:$0x76325410]  ;;  %7244 = vst.msk [vmem:[#allocation8 + $0x12] sm:$0x3] %vm1551_vm3, %v7242_v45 }
 0x5d4   :  { %v6981_v4 = vmax.f32 %v6949_v55, 0.0  ;;  %v7287_v60 = vpop.permute.xlu1 %7286 }
 0x5d5   :  { %7526 = vrot.lane.b32.xlu1 %v10186_v28, %s11352_s22  ;;  %v11315_v10 = vpop.eup %11314  ;;  %7289 = vst.msk [vmem:[#allocation8 + $0x1e] sm:$0x3] %vm1551_vm3, %v7287_v60  ;;  %v7272_v34 = vpop.permute.xlu0 %7271 }
 0x5d6   :  { %7511 = vrot.lane.b32.xlu0 %v10185_v5, %s11352_s22  ;;  %v7121_v57 = vcombine.low %v6980_v51, %v6981_v4  ;;  %v6552_v50 = vmul.f32 %v11315_v10, %v14239_v31  ;;  %7274 = vst.msk [vmem:[#allocation8 + $0x1a] sm:$0x3] %vm1551_vm3, %v7272_v34  ;;  %v6689_v31 = vrot.slane %v14138_v38, %v13336_v7 }
 0x5d8   :  { %v7135_v0 = vrot.slane %v7121_v57, %v12450_v39  ;;  %v6752_v1 = vmul.f32 %v6685_v52, %v6552_v50 }
 0x5da   :  { %v7136_v54 = vcombine.low %v7128_v56, %v7135_v0  ;;  %v6952_v13 = vadd.f32 %v6885_v27, %v6752_v1  ;;  %v7652_v12 = vld [vmem:[#allocation8 + $0x10] sm:$0xff] }
 0x5db   :  { %v11317_v8 = vpop.eup %11316 }
 0x5dc   :  { %7168 = vst [vmem:[#allocation7 + $0x30] sm:$0xff] %v7136_v54  ;;  %v6553_v53 = vmul.f32 %v11317_v8, %v14253_v49  ;;  %v6984_v46 = vmax.f32 %v6952_v13, 0.0 }
 0x5dd   :  { %v7653_v21 = vld [vmem:[#allocation8 + $0x18] sm:$0xff] }
 0x5de   :  { %v6753_v58 = vmul.f32 %v6689_v31, %v6553_v53  ;;  %v14307_v40 = vpack.c.bf16 %v7653_v21, %v7652_v12 }
 0x5e0   :  { %v6953_v20 = vadd.f32 %v6889_v62, %v6753_v58 }
 0x5e2   :  { %v6985_v49 = vmax.f32 %v6953_v20, 0.0 }
 0x5e3   :  { %v7530_v41 = vld [vmem:[#allocation7 + $0x30] sm:$0x3]  ;;  %v7545_v6 = vld [vmem:[#allocation7 + $0x32] sm:$0x3]  ;;  %v7560_v32 = vld [vmem:[#allocation7 + $0x34] sm:$0x3] }
 0x5e4   :  { %7531 = vst.msk [vmem:[#allocation8 + $0x60] sm:$0x3] %vm1551_vm3, %v7530_v41  ;;  %7546 = vst.msk [vmem:[#allocation8 + $0x64] sm:$0x3] %vm1551_vm3, %v7545_v6  ;;  %v7575_v38 = vld [vmem:[#allocation7 + $0x36] sm:$0x3]  ;;  %v7138_v29 = vcombine.low %v6984_v46, %v6985_v49 }
 0x5e5   :  { %7561 = vst.msk [vmem:[#allocation8 + $0x68] sm:$0x3] %vm1551_vm3, %v7560_v32  ;;  %7576 = vst.msk [vmem:[#allocation8 + $0x6c] sm:$0x3] %vm1551_vm3, %v7575_v38 }
 0x5e6   :  { %v10188_v7 = vld.sshfl [vmem:[#allocation7 + $0x32] sm:$0x3 pattern:$0x76325410]  ;;  %v7152_v19 = vrot.slane %v7138_v29, %v12450_v39 }
 0x5e7   :  { %7556 = vrot.lane.b32.xlu1 %v10188_v7, %s11352_s22  ;;  %v10187_v16 = vld.sshfl [vmem:[#allocation7 + $0x30] sm:$0x3 pattern:$0x76325410] }
 0x5e8   :  { %7541 = vrot.lane.b32.xlu0 %v10187_v16, %s11352_s22  ;;  %v10190_v2 = vld.sshfl [vmem:[#allocation7 + $0x36] sm:$0x3 pattern:$0x76325410]  ;;  %v7153_v59 = vcombine.low %v7145_v25, %v7152_v19 }
 0x5e9   :  { %v10189_v9 = vld.sshfl [vmem:[#allocation7 + $0x34] sm:$0x3 pattern:$0x76325410] }
 0x5ea   :  { %7169 = vst [vmem:[#allocation7 + $0x38] sm:$0xff] %v7153_v59 }
 0x5eb   :  { %7586 = vrot.lane.b32.xlu1 %v10190_v2, %s11352_s22 }
 0x5ec   :  { %7571 = vrot.lane.b32.xlu0 %v10189_v9, %s11352_s22 }
 0x5ef   :  { %v7317_v61 = vpop.permute.xlu1 %7316 }
 0x5f0   :  { %7319 = vst.msk [vmem:[#allocation8 + $0x26] sm:$0x3] %vm1551_vm3, %v7317_v61  ;;  %v7302_v43 = vpop.permute.xlu0 %7301 }
 0x5f1   :  { %v7590_v11 = vld [vmem:[#allocation7 + $0x38] sm:$0x3]  ;;  %v7605_v24 = vld [vmem:[#allocation7 + $0x3a] sm:$0x3]  ;;  %v7620_v44 = vld [vmem:[#allocation7 + $0x3c] sm:$0x3] }
 0x5f2   :  { %7591 = vst.msk [vmem:[#allocation8 + $0x70] sm:$0x3] %vm1551_vm3, %v7590_v11  ;;  %7606 = vst.msk [vmem:[#allocation8 + $0x74] sm:$0x3] %vm1551_vm3, %v7605_v24  ;;  %v7635_v48 = vld [vmem:[#allocation7 + $0x3e] sm:$0x3] }
 0x5f3   :  { %7621 = vst.msk [vmem:[#allocation8 + $0x78] sm:$0x3] %vm1551_vm3, %v7620_v44  ;;  %v10192_v39 = vld.sshfl [vmem:[#allocation7 + $0x3a] sm:$0x3 pattern:$0x76325410]  ;;  %v7347_v17 = vpop.permute.xlu1 %7346 }
 0x5f4   :  { %7636 = vst.msk [vmem:[#allocation8 + $0x7c] sm:$0x3] %vm1551_vm3, %v7635_v48  ;;  %7616 = vrot.lane.b32.xlu1 %v10192_v39, %s11352_s22  ;;  %v10191_v18 = vld.sshfl [vmem:[#allocation7 + $0x38] sm:$0x3 pattern:$0x76325410]  ;;  %v7332_v47 = vpop.permute.xlu0 %7331 }
 0x5f5   :  { %7304 = vst.msk [vmem:[#allocation8 + $0x22] sm:$0x3] %vm1551_vm3, %v7302_v43  ;;  %7601 = vrot.lane.b32.xlu0 %v10191_v18, %s11352_s22  ;;  %v10194_v22 = vld.sshfl [vmem:[#allocation7 + $0x3e] sm:$0x3 pattern:$0x76325410] }
 0x5f6   :  { %7349 = vst.msk [vmem:[#allocation8 + $0x2e] sm:$0x3] %vm1551_vm3, %v7347_v17  ;;  %v10193_v42 = vld.sshfl [vmem:[#allocation7 + $0x3c] sm:$0x3 pattern:$0x76325410] }
 0x5f7   :  { %7334 = vst.msk [vmem:[#allocation8 + $0x2a] sm:$0x3] %vm1551_vm3, %v7332_v47 }
 0x5f8   :  { %7646 = vrot.lane.b32.xlu1 %v10194_v22, %s11352_s22 }
 0x5f9   :  { %7631 = vrot.lane.b32.xlu0 %v10193_v42, %s11352_s22 }
 0x5fc   :  { %v7654_v37 = vld [vmem:[#allocation8 + $0x20] sm:$0xff] }
 0x5fe   :  { %v7655_v23 = vld [vmem:[#allocation8 + $0x28] sm:$0xff] }
 0x5ff   :  { %v14332_v3 = vpack.c.bf16 %v7655_v23, %v7654_v37 }
 0x60f   :  { %v7377_v35 = vpop.permute.xlu1 %7376 }
 0x610   :  { %7379 = vst.msk [vmem:[#allocation8 + $0x36] sm:$0x3] %vm1551_vm3, %v7377_v35  ;;  %v7362_v15 = vpop.permute.xlu0 %7361 }
 0x611   :  { %7364 = vst.msk [vmem:[#allocation8 + $0x32] sm:$0x3] %vm1551_vm3, %v7362_v15 }
 0x613   :  { %v7407_v26 = vpop.permute.xlu1 %7406 }
 0x614   :  { %7409 = vst.msk [vmem:[#allocation8 + $0x3e] sm:$0x3] %vm1551_vm3, %v7407_v26  ;;  %v7392_v36 = vpop.permute.xlu0 %7391 }
 0x615   :  { %7394 = vst.msk [vmem:[#allocation8 + $0x3a] sm:$0x3] %vm1551_vm3, %v7392_v36 }
 0x618   :  { %v7656_v14 = vld [vmem:[#allocation8 + $0x30] sm:$0xff] }
 0x61c   :  { %v7657_v30 = vld [vmem:[#allocation8 + $0x38] sm:$0xff] }
 0x61d   :  { %v14338_v51 = vpack.c.bf16 %v7657_v30, %v7656_v14 }
 0x620   :  { %v7437_v55 = vpop.permute.xlu1 %7436 }
 0x621   :  { %7439 = vst.msk [vmem:[#allocation8 + $0x46] sm:$0x3] %vm1551_vm3, %v7437_v55  ;;  %v7422_v28 = vpop.permute.xlu0 %7421 }
 0x622   :  { %7424 = vst.msk [vmem:[#allocation8 + $0x42] sm:$0x3] %vm1551_vm3, %v7422_v28 }
 0x624   :  { %v7467_v33 = vpop.permute.xlu1 %7466 }
 0x625   :  { %7469 = vst.msk [vmem:[#allocation8 + $0x4e] sm:$0x3] %vm1551_vm3, %v7467_v33  ;;  %v7452_v4 = vpop.permute.xlu0 %7451 }
 0x626   :  { %7454 = vst.msk [vmem:[#allocation8 + $0x4a] sm:$0x3] %vm1551_vm3, %v7452_v4 }
 0x629   :  { %v7658_v5 = vld [vmem:[#allocation8 + $0x40] sm:$0xff] }
 0x62d   :  { %v7659_v45 = vld [vmem:[#allocation8 + $0x48] sm:$0xff] }
 0x62e   :  { %v14344_v10 = vpack.c.bf16 %v7659_v45, %v7658_v5 }
 0x643   :  { %v7497_v57 = vpop.permute.xlu1 %7496 }
 0x644   :  { %7499 = vst.msk [vmem:[#allocation8 + $0x56] sm:$0x3] %vm1551_vm3, %v7497_v57  ;;  %v7482_v50 = vpop.permute.xlu0 %7481 }
 0x645   :  { %7484 = vst.msk [vmem:[#allocation8 + $0x52] sm:$0x3] %vm1551_vm3, %v7482_v50 }
 0x647   :  { %v7527_v52 = vpop.permute.xlu1 %7526 }
 0x648   :  { %7529 = vst.msk [vmem:[#allocation8 + $0x5e] sm:$0x3] %vm1551_vm3, %v7527_v52  ;;  %v7512_v60 = vpop.permute.xlu0 %7511 }
 0x649   :  { %7514 = vst.msk [vmem:[#allocation8 + $0x5a] sm:$0x3] %vm1551_vm3, %v7512_v60 }
 0x64c   :  { %v7660_v56 = vld [vmem:[#allocation8 + $0x50] sm:$0xff] }
 0x650   :  { %v7661_v0 = vld [vmem:[#allocation8 + $0x58] sm:$0xff] }
 0x651   :  { %v14350_v34 = vpack.c.bf16 %v7661_v0, %v7660_v56 }
 0x659   :  { %v7557_v54 = vpop.permute.xlu1 %7556 }
 0x65a   :  { %7559 = vst.msk [vmem:[#allocation8 + $0x66] sm:$0x3] %vm1551_vm3, %v7557_v54  ;;  %v7542_v1 = vpop.permute.xlu0 %7541 }
 0x65b   :  { %7544 = vst.msk [vmem:[#allocation8 + $0x62] sm:$0x3] %vm1551_vm3, %v7542_v1 }
 0x65d   :  { %v7587_v27 = vpop.permute.xlu1 %7586 }
 0x65e   :  { %7589 = vst.msk [vmem:[#allocation8 + $0x6e] sm:$0x3] %vm1551_vm3, %v7587_v27  ;;  %v7572_v31 = vpop.permute.xlu0 %7571 }
 0x65f   :  { %7574 = vst.msk [vmem:[#allocation8 + $0x6a] sm:$0x3] %vm1551_vm3, %v7572_v31 }
 0x662   :  { %v7662_v8 = vld [vmem:[#allocation8 + $0x60] sm:$0xff] }
 0x666   :  { %v7663_v53 = vld [vmem:[#allocation8 + $0x68] sm:$0xff]  ;;  %v7617_v13 = vpop.permute.xlu1 %7616 }
 0x667   :  { %v14356_v62 = vpack.c.bf16 %v7663_v53, %v7662_v8  ;;  %7619 = vst.msk [vmem:[#allocation8 + $0x76] sm:$0x3] %vm1551_vm3, %v7617_v13  ;;  %v7602_v58 = vpop.permute.xlu0 %7601 }
 0x668   :  { %7604 = vst.msk [vmem:[#allocation8 + $0x72] sm:$0x3] %vm1551_vm3, %v7602_v58 }
 0x669   :  { %15476 = vst [vmem:[#allocation19_spill] sm:$0xff] %v14356_v62 }
 0x66a   :  { %v7647_v12 = vpop.permute.xlu1 %7646 }
 0x66b   :  { %7649 = vst.msk [vmem:[#allocation8 + $0x7e] sm:$0x3] %vm1551_vm3, %v7647_v12  ;;  %v7632_v21 = vpop.permute.xlu0 %7631 }
 0x66c   :  { %7634 = vst.msk [vmem:[#allocation8 + $0x7a] sm:$0x3] %vm1551_vm3, %v7632_v21 }
 0x66f   :  { %v7664_v20 = vld [vmem:[#allocation8 + $0x70] sm:$0xff] }
 0x673   :  { %v7665_v46 = vld [vmem:[#allocation8 + $0x78] sm:$0xff] }
 0x674   :  { %v14362_v41 = vpack.c.bf16 %v7665_v46, %v7664_v20 }
 0x676   :  { %15477 = vst [vmem:[#allocation20_spill] sm:$0xff] %v14362_v41 }
 0x677   :  { %11346 = dma.done.wait [#allocation5 + $0x1], 9216 }
 0x678   :  { %11347 = vsyncadd [#allocation5 + $0x1], 4294958080 }
 0x679   :  { %11348 = dma.done.wait [#allocation5 + $0x2], 576 }
 0x67a   :  { %11349 = vsyncadd [#allocation5 + $0x2], 4294966720  ;;  %v15478_v6 = vmov 0   ;;  %v7684_v32 = vld [vmem:[#allocation3 + $0x8] sm:$0xff]  ;;  %v7683_v38 = vld [vmem:[#allocation3] sm:$0xff] }
 0x67b   :  { %7747 = vmatprep.mubr.bf16.mxu0 %v15478_v6  ;;  %8209 = vmatprep.mubr.bf16.mxu1 %v15478_v6  ;;  %v7686_v49 = vld [vmem:[#allocation3 + $0x18] sm:$0xff]  ;;  %v7685_v7 = vld [vmem:[#allocation3 + $0x10] sm:$0xff]  ;;  %v7688_v29 = vld [vmem:[#allocation3 + $0x28] sm:$0xff] }
 0x67c   :  { %11321 = vset.pattern.permute.xlu0 %v15478_v6  ;;  %7715 = vmatprep.subr.bf16.mxu0 %v7684_v32  ;;  %v7687_v16 = vld [vmem:[#allocation3 + $0x20] sm:$0xff]  ;;  %v7690_v25 = vld [vmem:[#allocation3 + $0x38] sm:$0xff]  ;;  %v7689_v19 = vld [vmem:[#allocation3 + $0x30] sm:$0xff] }
 0x67d   :  { %7716 = vmatpush1.bf16.msra.mxu0 %v7683_v38  ;;  %v7862_v2 = vld [vmem:[#allocation3 + $0x48] sm:$0xff]  ;;  %v7861_v59 = vld [vmem:[#allocation3 + $0x40] sm:$0xff]  ;;  %v7864_v9 = vld [vmem:[#allocation3 + $0x58] sm:$0xff] }
 0x67e   :  { %7717 = vmatprep.subr.bf16.mxu0 %v7686_v49  ;;  %v7863_v11 = vld [vmem:[#allocation3 + $0x50] sm:$0xff]  ;;  %v7866_v24 = vld [vmem:[#allocation3 + $0x68] sm:$0xff]  ;;  %v7865_v44 = vld [vmem:[#allocation3 + $0x60] sm:$0xff] }
 0x67f   :  { %v7868_v61 = vld [vmem:[#allocation3 + $0x78] sm:$0xff]  ;;  %v8170_v48 = vld [vmem:[#allocation3 + $0xc8] sm:$0xff]  ;;  %v8169_v39 = vld [vmem:[#allocation3 + $0xc0] sm:$0xff] }
 0x680   :  { %v7867_v43 = vld [vmem:[#allocation3 + $0x70] sm:$0xff]  ;;  %8177 = vmatprep.subr.bf16.mxu1 %v8170_v48  ;;  %v8016_v18 = vld [vmem:[#allocation3 + $0x88] sm:$0xff]  ;;  %v8172_v17 = vld [vmem:[#allocation3 + $0xd8] sm:$0xff] }
 0x681   :  { %7718 = vmatpush1.bf16.msra.mxu0 %v7685_v7  ;;  %8178 = vmatpush1.bf16.msra.mxu1 %v8169_v39  ;;  %v8171_v22 = vld [vmem:[#allocation3 + $0xd0] sm:$0xff]  ;;  %v8174_v47 = vld [vmem:[#allocation3 + $0xe8] sm:$0xff]  ;;  %v8173_v42 = vld [vmem:[#allocation3 + $0xe0] sm:$0xff] }
 0x682   :  { %7719 = vmatprep.subr.bf16.mxu0 %v7688_v29  ;;  %8179 = vmatprep.subr.bf16.mxu1 %v8172_v17  ;;  %v8176_v37 = vld [vmem:[#allocation3 + $0xf8] sm:$0xff]  ;;  %v8175_v23 = vld [vmem:[#allocation3 + $0xf0] sm:$0xff]  ;;  %v8478_v35 = vld [vmem:[#allocation3 + $0x148] sm:$0xff] }
 0x683   :  { %v8477_v15 = vld [vmem:[#allocation3 + $0x140] sm:$0xff]  ;;  %v8480_v26 = vld [vmem:[#allocation3 + $0x158] sm:$0xff]  ;;  %v8479_v36 = vld [vmem:[#allocation3 + $0x150] sm:$0xff] }
 0x684   :  { %v8015_v14 = vld [vmem:[#allocation3 + $0x80] sm:$0xff]  ;;  %v8018_v30 = vld [vmem:[#allocation3 + $0x98] sm:$0xff]  ;;  %v8482_v55 = vld [vmem:[#allocation3 + $0x168] sm:$0xff] }
 0x685   :  { %7720 = vmatpush1.bf16.msra.mxu0 %v7687_v16  ;;  %8180 = vmatpush1.bf16.msra.mxu1 %v8171_v22  ;;  %v8481_v28 = vld [vmem:[#allocation3 + $0x160] sm:$0xff]  ;;  %v8017_v33 = vld [vmem:[#allocation3 + $0x90] sm:$0xff]  ;;  %v8020_v4 = vld [vmem:[#allocation3 + $0xa8] sm:$0xff] }
 0x686   :  { %7721 = vmatprep.subr.bf16.mxu0 %v7690_v25  ;;  %8181 = vmatprep.subr.bf16.mxu1 %v8174_v47  ;;  %v8019_v5 = vld [vmem:[#allocation3 + $0xa0] sm:$0xff]  ;;  %v8022_v45 = vld [vmem:[#allocation3 + $0xb8] sm:$0xff]  ;;  %v8021_v57 = vld [vmem:[#allocation3 + $0xb0] sm:$0xff] }
 0x687   :  { %v8324_v50 = vld [vmem:[#allocation3 + $0x108] sm:$0xff]  ;;  %v8484_v52 = vld [vmem:[#allocation3 + $0x178] sm:$0xff]  ;;  %v8483_v60 = vld [vmem:[#allocation3 + $0x170] sm:$0xff] }
 0x688   :  { %v8786_v56 = vld [vmem:[#allocation3 + $0x1c8] sm:$0xff]  ;;  %v8785_v0 = vld [vmem:[#allocation3 + $0x1c0] sm:$0xff]  ;;  %v8788_v54 = vld [vmem:[#allocation3 + $0x1d8] sm:$0xff] }
 0x689   :  { %7722 = vmatpush1.bf16.msra.mxu0 %v7689_v19  ;;  %8182 = vmatpush1.bf16.msra.mxu1 %v8173_v42  ;;  %v8787_v1 = vld [vmem:[#allocation3 + $0x1d0] sm:$0xff]  ;;  %v8323_v27 = vld [vmem:[#allocation3 + $0x100] sm:$0xff]  ;;  %v8326_v31 = vld [vmem:[#allocation3 + $0x118] sm:$0xff] }
 0x68a   :  { %7869 = vmatprep.subr.bf16.mxu0 %v7862_v2  ;;  %8183 = vmatprep.subr.bf16.mxu1 %v8176_v37  ;;  %v8790_v8 = vld [vmem:[#allocation3 + $0x1e8] sm:$0xff]  ;;  %v8789_v53 = vld [vmem:[#allocation3 + $0x1e0] sm:$0xff]  ;;  %v8325_v13 = vld [vmem:[#allocation3 + $0x110] sm:$0xff] }
 0x68b   :  { %v8328_v58 = vld [vmem:[#allocation3 + $0x128] sm:$0xff]  ;;  %v8327_v12 = vld [vmem:[#allocation3 + $0x120] sm:$0xff]  ;;  %v8330_v21 = vld [vmem:[#allocation3 + $0x138] sm:$0xff] }
 0x68c   :  { %10195 = vmatmul.mubr.msk.bf16.vlgmr.msra.gmra.mrb[60].mxu0 %vm1533_vm2, %v14262_v63  ;;  %v8329_v20 = vld [vmem:[#allocation3 + $0x130] sm:$0xff]  ;;  %v8632_v46 = vld [vmem:[#allocation3 + $0x188] sm:$0xff]  ;;  %v8792_v32 = vld [vmem:[#allocation3 + $0x1f8] sm:$0xff] }
 0x68d   :  { %7870 = vmatpush1.bf16.msra.mxu0 %v7861_v59  ;;  %7757 = vmatprep.mubr.bf16.mxu0 %v15478_v6  ;;  %v8791_v38 = vld [vmem:[#allocation3 + $0x1f0] sm:$0xff]  ;;  %v8631_v49 = vld [vmem:[#allocation3 + $0x180] sm:$0xff]  ;;  %v8634_v7 = vld [vmem:[#allocation3 + $0x198] sm:$0xff] }
 0x68e   :  { %7871 = vmatprep.subr.bf16.mxu0 %v7864_v9  ;;  %8184 = vmatpush1.bf16.msra.mxu1 %v8175_v23  ;;  %v8633_v29 = vld [vmem:[#allocation3 + $0x190] sm:$0xff]  ;;  %v8636_v16 = vld [vmem:[#allocation3 + $0x1a8] sm:$0xff]  ;;  %v8635_v25 = vld [vmem:[#allocation3 + $0x1a0] sm:$0xff] }
 0x68f   :  { %8485 = vmatprep.subr.bf16.mxu1 %v8478_v35  ;;  %v8638_v19 = vld [vmem:[#allocation3 + $0x1b8] sm:$0xff]  ;;  %v8637_v2 = vld [vmem:[#allocation3 + $0x1b0] sm:$0xff]  ;;  %v8940_v59 = vld [vmem:[#allocation3 + $0x208] sm:$0xff] }
 0x691   :  { %7872 = vmatpush1.bf16.msra.mxu0 %v7863_v11  ;;  %10219 = vmatmul.mubr.msk.bf16.vlgmr.msra.gmra.mrb[84].mxu1 %vm1533_vm2, %v14262_v63 }
 0x692   :  { %7873 = vmatprep.subr.bf16.mxu0 %v7866_v24  ;;  %8219 = vmatprep.mubr.bf16.mxu1 %v15478_v6 }
 0x693   :  { %8486 = vmatpush1.bf16.msra.mxu1 %v8477_v15 }
 0x694   :  { %10196 = vmatmul.mubr.msk.bf16.gmra.mrb[64].mxu0 %vm1533_vm2, %v14307_v40  ;;  %8487 = vmatprep.subr.bf16.mxu1 %v8480_v26 }
 0x695   :  { %7767 = vmatprep.mubr.bf16.mxu0 %v15478_v6  ;;  %7874 = vmatpush1.bf16.msra.mxu0 %v7865_v44 }
 0x696   :  { %7875 = vmatprep.subr.bf16.mxu0 %v7868_v61 }
 0x697   :  { %8488 = vmatpush1.bf16.msra.mxu1 %v8479_v36 }
 0x698   :  { %8489 = vmatprep.subr.bf16.mxu1 %v8482_v55  ;;  %v8946_v55 = vld [vmem:[#allocation3 + $0x238] sm:$0xff] }
 0x699   :  { %7876 = vmatpush1.bf16.msra.mxu0 %v7867_v43  ;;  %10220 = vmatmul.mubr.msk.bf16.gmra.mrb[88].mxu1 %vm1533_vm2, %v14307_v40 }
 0x69a   :  { %8023 = vmatprep.subr.bf16.mxu0 %v8016_v18  ;;  %8229 = vmatprep.mubr.bf16.mxu1 %v15478_v6 }
 0x69b   :  { %8490 = vmatpush1.bf16.msra.mxu1 %v8481_v28 }
 0x69c   :  { %10197 = vmatmul.mubr.msk.bf16.gmra.mrb[68].mxu0 %vm1533_vm2, %v14332_v3  ;;  %8491 = vmatprep.subr.bf16.mxu1 %v8484_v52 }
 0x69d   :  { %7777 = vmatprep.mubr.bf16.mxu0 %v15478_v6 }
 0x69f   :  { %8492 = vmatpush1.bf16.msra.mxu1 %v8483_v60 }
 0x6a0   :  { %8793 = vmatprep.subr.bf16.mxu1 %v8786_v56 }
 0x6a1   :  { %10221 = vmatmul.mubr.msk.bf16.gmra.mrb[92].mxu1 %vm1533_vm2, %v14332_v3 }
 0x6a2   :  { %8239 = vmatprep.mubr.bf16.mxu1 %v15478_v6 }
 0x6a4   :  { %10198 = vmatmul.mubr.msk.bf16.gmra.mrb[72].mxu0 %vm1533_vm2, %v14338_v51 }
 0x6a5   :  { %7787 = vmatprep.mubr.bf16.mxu0 %v15478_v6 }
 0x6a9   :  { %10222 = vmatmul.mubr.msk.bf16.gmra.mrb[96].mxu1 %vm1533_vm2, %v14338_v51 }
 0x6aa   :  { %8249 = vmatprep.mubr.bf16.mxu1 %v15478_v6 }
 0x6ac   :  { %10199 = vmatmul.mubr.msk.bf16.gmra.mrb[76].mxu0 %vm1533_vm2, %v14344_v10 }
 0x6ad   :  { %7797 = vmatprep.mubr.bf16.mxu0 %v15478_v6 }
 0x6b1   :  { %10223 = vmatmul.mubr.msk.bf16.gmra.mrb[100].mxu1 %vm1533_vm2, %v14344_v10 }
 0x6b2   :  { %8259 = vmatprep.mubr.bf16.mxu1 %v15478_v6 }
 0x6b4   :  { %10200 = vmatmul.mubr.msk.bf16.gmra.mrb[80].mxu0 %vm1533_vm2, %v14350_v34 }
 0x6b5   :  { %7807 = vmatprep.mubr.bf16.mxu0 %v15478_v6 }
 0x6b9   :  { %10224 = vmatmul.mubr.msk.bf16.gmra.mrb[104].mxu1 %vm1533_vm2, %v14350_v34 }
 0x6ba   :  { %8269 = vmatprep.mubr.bf16.mxu1 %v15478_v6 }
 0x6bc   :  { %10201 = vmatmul.mubr.msk.bf16.gmra.mrb[84].mxu0 %vm1533_vm2, %v14356_v62 }
 0x6bd   :  { %7817 = vmatprep.mubr.bf16.mxu0 %v15478_v6 }
 0x6c1   :  { %10225 = vmatmul.mubr.msk.bf16.gmra.mrb[108].mxu1 %vm1533_vm2, %v14356_v62 }
 0x6c2   :  { %8279 = vmatprep.mubr.bf16.mxu1 %v15478_v6 }
 0x6c4   :  { %10202 = vmatmul.mubr.msk.bf16.gmra.mrb[88].mxu0 %vm1533_vm2, %v14362_v41 }
 0x6c5   :  { %7901 = vmatprep.mubr.bf16.mxu0 %v15478_v6 }
 0x6c9   :  { %10226 = vmatmul.mubr.msk.bf16.gmra.mrb[112].mxu1 %vm1533_vm2, %v14362_v41 }
 0x6ca   :  { %8517 = vmatprep.mubr.bf16.mxu1 %v15478_v6 }
 0x6cc   :  { %10203 = vmatmul.mubr.msk.bf16.vlgmr.msra.gmra.mrb[92].mxu0 %vm1533_vm2, %v14262_v63 }
 0x6cd   :  { %8024 = vmatpush1.bf16.msra.mxu0 %v8015_v14  ;;  %7911 = vmatprep.mubr.bf16.mxu0 %v15478_v6 }
 0x6ce   :  { %8025 = vmatprep.subr.bf16.mxu0 %v8018_v30 }
 0x6d1   :  { %8026 = vmatpush1.bf16.msra.mxu0 %v8017_v33  ;;  %10235 = vmatmul.mubr.msk.bf16.vlgmr.msra.gmra.mrb[116].mxu1 %vm1533_vm2, %v14262_v63 }
 0x6d2   :  { %8027 = vmatprep.subr.bf16.mxu0 %v8020_v4  ;;  %8527 = vmatprep.mubr.bf16.mxu1 %v15478_v6 }
 0x6d3   :  { %8794 = vmatpush1.bf16.msra.mxu1 %v8785_v0 }
 0x6d4   :  { %10204 = vmatmul.mubr.msk.bf16.gmra.mrb[96].mxu0 %vm1533_vm2, %v14307_v40  ;;  %8795 = vmatprep.subr.bf16.mxu1 %v8788_v54  ;;  %v8943_v54 = vld [vmem:[#allocation3 + $0x220] sm:$0xff] }
 0x6d5   :  { %7921 = vmatprep.mubr.bf16.mxu0 %v15478_v6  ;;  %8028 = vmatpush1.bf16.msra.mxu0 %v8019_v5 }
 0x6d6   :  { %8029 = vmatprep.subr.bf16.mxu0 %v8022_v45 }
 0x6d7   :  { %8796 = vmatpush1.bf16.msra.mxu1 %v8787_v1 }
 0x6d8   :  { %8797 = vmatprep.subr.bf16.mxu1 %v8790_v8 }
 0x6d9   :  { %8030 = vmatpush1.bf16.msra.mxu0 %v8021_v57  ;;  %10236 = vmatmul.mubr.msk.bf16.gmra.mrb[120].mxu1 %vm1533_vm2, %v14307_v40 }
 0x6da   :  { %8331 = vmatprep.subr.bf16.mxu0 %v8324_v50  ;;  %8537 = vmatprep.mubr.bf16.mxu1 %v15478_v6 }
 0x6db   :  { %8798 = vmatpush1.bf16.msra.mxu1 %v8789_v53 }
 0x6dc   :  { %10205 = vmatmul.mubr.msk.bf16.gmra.mrb[100].mxu0 %vm1533_vm2, %v14332_v3  ;;  %8799 = vmatprep.subr.bf16.mxu1 %v8792_v32  ;;  %v8945_v32 = vld [vmem:[#allocation3 + $0x230] sm:$0xff] }
 0x6dd   :  { %7931 = vmatprep.mubr.bf16.mxu0 %v15478_v6 }
 0x6df   :  { %8800 = vmatpush1.bf16.msra.mxu1 %v8791_v38 }
 0x6e1   :  { %10237 = vmatmul.mubr.msk.bf16.gmra.mrb[124].mxu1 %vm1533_vm2, %v14332_v3 }
 0x6e2   :  { %8547 = vmatprep.mubr.bf16.mxu1 %v15478_v6 }
 0x6e4   :  { %10206 = vmatmul.mubr.msk.bf16.gmra.mrb[104].mxu0 %vm1533_vm2, %v14338_v51 }
 0x6e5   :  { %7941 = vmatprep.mubr.bf16.mxu0 %v15478_v6 }
 0x6e9   :  { %10238 = vmatmul.mubr.msk.bf16.gmra.mrb[128].mxu1 %vm1533_vm2, %v14338_v51 }
 0x6ea   :  { %8557 = vmatprep.mubr.bf16.mxu1 %v15478_v6 }
 0x6ec   :  { %10207 = vmatmul.mubr.msk.bf16.gmra.mrb[108].mxu0 %vm1533_vm2, %v14344_v10 }
 0x6ed   :  { %7951 = vmatprep.mubr.bf16.mxu0 %v15478_v6 }
 0x6f1   :  { %10239 = vmatmul.mubr.msk.bf16.gmra.mrb[132].mxu1 %vm1533_vm2, %v14344_v10 }
 0x6f2   :  { %8567 = vmatprep.mubr.bf16.mxu1 %v15478_v6 }
 0x6f4   :  { %10208 = vmatmul.mubr.msk.bf16.gmra.mrb[112].mxu0 %vm1533_vm2, %v14350_v34 }
 0x6f5   :  { %7961 = vmatprep.mubr.bf16.mxu0 %v15478_v6 }
 0x6f9   :  { %10240 = vmatmul.mubr.msk.bf16.gmra.mrb[136].mxu1 %vm1533_vm2, %v14350_v34 }
 0x6fa   :  { %8577 = vmatprep.mubr.bf16.mxu1 %v15478_v6 }
 0x6fc   :  { %10209 = vmatmul.mubr.msk.bf16.gmra.mrb[116].mxu0 %vm1533_vm2, %v14356_v62 }
 0x6fd   :  { %7971 = vmatprep.mubr.bf16.mxu0 %v15478_v6 }
 0x701   :  { %10241 = vmatmul.mubr.msk.bf16.gmra.mrb[140].mxu1 %vm1533_vm2, %v14356_v62 }
 0x702   :  { %8587 = vmatprep.mubr.bf16.mxu1 %v15478_v6 }
 0x704   :  { %10210 = vmatmul.mubr.msk.bf16.gmra.mrb[120].mxu0 %vm1533_vm2, %v14362_v41 }
 0x705   :  { %8055 = vmatprep.mubr.bf16.mxu0 %v15478_v6 }
 0x709   :  { %10242 = vmatmul.mubr.msk.bf16.gmra.mrb[144].mxu1 %vm1533_vm2, %v14362_v41 }
 0x70a   :  { %8825 = vmatprep.mubr.bf16.mxu1 %v15478_v6 }
 0x70c   :  { %10211 = vmatmul.mubr.msk.bf16.vlgmr.msra.gmra.mrb[124].mxu0 %vm1533_vm2, %v14262_v63 }
 0x70d   :  { %8332 = vmatpush1.bf16.msra.mxu0 %v8323_v27  ;;  %8065 = vmatprep.mubr.bf16.mxu0 %v15478_v6 }
 0x70e   :  { %8333 = vmatprep.subr.bf16.mxu0 %v8326_v31 }
 0x711   :  { %8334 = vmatpush1.bf16.msra.mxu0 %v8325_v13  ;;  %10251 = vmatmul.mubr.msk.bf16.vlgmr.msra.gmra.mrb[148].mxu1 %vm1533_vm2, %v14262_v63 }
 0x712   :  { %8335 = vmatprep.subr.bf16.mxu0 %v8328_v58  ;;  %8835 = vmatprep.mubr.bf16.mxu1 %v15478_v6 }
 0x714   :  { %10212 = vmatmul.mubr.msk.bf16.gmra.mrb[128].mxu0 %vm1533_vm2, %v14307_v40 }
 0x715   :  { %8075 = vmatprep.mubr.bf16.mxu0 %v15478_v6  ;;  %8336 = vmatpush1.bf16.msra.mxu0 %v8327_v12 }
 0x716   :  { %8337 = vmatprep.subr.bf16.mxu0 %v8330_v21 }
 0x719   :  { %8338 = vmatpush1.bf16.msra.mxu0 %v8329_v20  ;;  %10252 = vmatmul.mubr.msk.bf16.gmra.mrb[152].mxu1 %vm1533_vm2, %v14307_v40 }
 0x71a   :  { %8639 = vmatprep.subr.bf16.mxu0 %v8632_v46  ;;  %8845 = vmatprep.mubr.bf16.mxu1 %v15478_v6 }
 0x71c   :  { %10213 = vmatmul.mubr.msk.bf16.gmra.mrb[132].mxu0 %vm1533_vm2, %v14332_v3 }
 0x71d   :  { %8085 = vmatprep.mubr.bf16.mxu0 %v15478_v6 }
 0x721   :  { %10253 = vmatmul.mubr.msk.bf16.gmra.mrb[156].mxu1 %vm1533_vm2, %v14332_v3 }
 0x722   :  { %8855 = vmatprep.mubr.bf16.mxu1 %v15478_v6 }
 0x724   :  { %10214 = vmatmul.mubr.msk.bf16.gmra.mrb[136].mxu0 %vm1533_vm2, %v14338_v51 }
 0x725   :  { %8095 = vmatprep.mubr.bf16.mxu0 %v15478_v6 }
 0x729   :  { %10254 = vmatmul.mubr.msk.bf16.gmra.mrb[160].mxu1 %vm1533_vm2, %v14338_v51 }
 0x72a   :  { %8865 = vmatprep.mubr.bf16.mxu1 %v15478_v6 }
 0x72c   :  { %10215 = vmatmul.mubr.msk.bf16.gmra.mrb[140].mxu0 %vm1533_vm2, %v14344_v10 }
 0x72d   :  { %8105 = vmatprep.mubr.bf16.mxu0 %v15478_v6 }
 0x731   :  { %10255 = vmatmul.mubr.msk.bf16.gmra.mrb[164].mxu1 %vm1533_vm2, %v14344_v10 }
 0x732   :  { %8875 = vmatprep.mubr.bf16.mxu1 %v15478_v6 }
 0x734   :  { %10216 = vmatmul.mubr.msk.bf16.gmra.mrb[144].mxu0 %vm1533_vm2, %v14350_v34 }
 0x735   :  { %8115 = vmatprep.mubr.bf16.mxu0 %v15478_v6 }
 0x739   :  { %10256 = vmatmul.mubr.msk.bf16.gmra.mrb[168].mxu1 %vm1533_vm2, %v14350_v34 }
 0x73a   :  { %8885 = vmatprep.mubr.bf16.mxu1 %v15478_v6 }
 0x73c   :  { %10217 = vmatmul.mubr.msk.bf16.gmra.mrb[148].mxu0 %vm1533_vm2, %v14356_v62 }
 0x73d   :  { %8125 = vmatprep.mubr.bf16.mxu0 %v15478_v6 }
 0x741   :  { %10257 = vmatmul.mubr.msk.bf16.gmra.mrb[172].mxu1 %vm1533_vm2, %v14356_v62 }
 0x742   :  { %8895 = vmatprep.mubr.bf16.mxu1 %v15478_v6 }
 0x744   :  { %10218 = vmatmul.mubr.msk.bf16.gmra.mrb[152].mxu0 %vm1533_vm2, %v14362_v41 }
 0x745   :  { %8363 = vmatprep.mubr.bf16.mxu0 %v15478_v6 }
 0x749   :  { %10258 = vmatmul.mubr.msk.bf16.gmra.mrb[176].mxu1 %vm1533_vm2, %v14362_v41 }
 0x74c   :  { %10227 = vmatmul.mubr.msk.bf16.vlgmr.msra.gmra.mrb[156].mxu0 %vm1533_vm2, %v14262_v63 }
 0x74d   :  { %8640 = vmatpush1.bf16.msra.mxu0 %v8631_v49  ;;  %8373 = vmatprep.mubr.bf16.mxu0 %v15478_v6  ;;  %v8939_v49 = vld [vmem:[#allocation3 + $0x200] sm:$0xff] }
 0x74e   :  { %8641 = vmatprep.subr.bf16.mxu0 %v8634_v7 }
 0x751   :  { %8642 = vmatpush1.bf16.msra.mxu0 %v8633_v29  ;;  %v8942_v29 = vld [vmem:[#allocation3 + $0x218] sm:$0xff] }
 0x752   :  { %8643 = vmatprep.subr.bf16.mxu0 %v8636_v16 }
 0x754   :  { %10228 = vmatmul.mubr.msk.bf16.gmra.mrb[160].mxu0 %vm1533_vm2, %v14307_v40 }
 0x755   :  { %8383 = vmatprep.mubr.bf16.mxu0 %v15478_v6  ;;  %8644 = vmatpush1.bf16.msra.mxu0 %v8635_v25 }
 0x756   :  { %8645 = vmatprep.subr.bf16.mxu0 %v8638_v19  ;;  %v8941_v19 = vld [vmem:[#allocation3 + $0x210] sm:$0xff] }
 0x759   :  { %8646 = vmatpush1.bf16.msra.mxu0 %v8637_v2 }
 0x75a   :  { %8947 = vmatprep.subr.bf16.mxu0 %v8940_v59  ;;  %v8944_v59 = vld [vmem:[#allocation3 + $0x228] sm:$0xff] }
 0x75c   :  { %10229 = vmatmul.mubr.msk.bf16.gmra.mrb[164].mxu0 %vm1533_vm2, %v14332_v3 }
 0x75d   :  { %8393 = vmatprep.mubr.bf16.mxu0 %v15478_v6 }
 0x75f   :  { %v14517_v9 = vpop.f32.mrb[60].mxu0 }
 0x760   :  { %v14519_v11 = vpop.f32.mrb[61].mxu0 }
 0x761   :  { %v14521_v24 = vpop.f32.mrb[62].mxu0 }
 0x762   :  { %v14527_v61 = vpop.f32.mrb[63].mxu0 }
 0x763   :  { %v10685_v48 = vpack.c.bf16 %v14527_v61, %v14519_v11 }
 0x764   :  { %10230 = vmatmul.mubr.msk.bf16.gmra.mrb[168].mxu0 %vm1533_vm2, %v14338_v51  ;;  %v14579_v4 = vpop.f32.mrb[84].mxu1 }
 0x765   :  { %8403 = vmatprep.mubr.bf16.mxu0 %v15478_v6  ;;  %15479 = vst [vmem:[#allocation21_spill] sm:$0xff] %v14579_v4  ;;  %v14581_v5 = vpop.f32.mrb[85].mxu1 }
 0x766   :  { %15480 = vst [vmem:[#allocation22_spill] sm:$0xff] %v14581_v5  ;;  %v14585_v57 = vpop.f32.mrb[86].mxu1 }
 0x767   :  { %v14534_v39 = vpop.f32.mrb[64].mxu0  ;;  %15481 = vst [vmem:[#allocation23_spill] sm:$0xff] %v14585_v57  ;;  %v14591_v60 = vpop.f32.mrb[87].mxu1 }
 0x768   :  { %v14536_v43 = vpop.f32.mrb[65].mxu0  ;;  %15482 = vst [vmem:[#allocation24_spill] sm:$0xff] %v14591_v60 }
 0x769   :  { %v14538_v18 = vpop.f32.mrb[66].mxu0 }
 0x76a   :  { %v14542_v22 = vpop.f32.mrb[67].mxu0 }
 0x76c   :  { %10231 = vmatmul.mubr.msk.bf16.gmra.mrb[172].mxu0 %vm1533_vm2, %v14344_v10  ;;  %v14606_v31 = vpop.f32.mrb[88].mxu1 }
 0x76d   :  { %8413 = vmatprep.mubr.bf16.mxu0 %v15478_v6  ;;  %15483 = vst [vmem:[#allocation25_spill] sm:$0xff] %v14606_v31  ;;  %v14608_v8 = vpop.f32.mrb[89].mxu1 }
 0x76e   :  { %15484 = vst [vmem:[#allocation26_spill] sm:$0xff] %v14608_v8  ;;  %v14612_v13 = vpop.f32.mrb[90].mxu1 }
 0x76f   :  { %v14549_v42 = vpop.f32.mrb[68].mxu0  ;;  %15485 = vst [vmem:[#allocation27_spill] sm:$0xff] %v14612_v13  ;;  %v14618_v21 = vpop.f32.mrb[91].mxu1 }
 0x770   :  { %v14551_v37 = vpop.f32.mrb[69].mxu0  ;;  %15486 = vst [vmem:[#allocation28_spill] sm:$0xff] %v14618_v21 }
 0x771   :  { %v14553_v23 = vpop.f32.mrb[70].mxu0 }
 0x772   :  { %v14557_v15 = vpop.f32.mrb[71].mxu0 }
 0x774   :  { %10232 = vmatmul.mubr.msk.bf16.gmra.mrb[176].mxu0 %vm1533_vm2, %v14350_v34  ;;  %v14632_v16 = vpop.f32.mrb[92].mxu1 }
 0x775   :  { %8423 = vmatprep.mubr.bf16.mxu0 %v15478_v6  ;;  %15487 = vst [vmem:[#allocation29_spill] sm:$0xff] %v14632_v16  ;;  %v14635_v25 = vpop.f32.mrb[93].mxu1 }
 0x776   :  { %15488 = vst [vmem:[#allocation30_spill] sm:$0xff] %v14635_v25  ;;  %v14639_v12 = vpop.f32.mrb[94].mxu1 }
 0x777   :  { %v14564_v36 = vpop.f32.mrb[72].mxu0  ;;  %15489 = vst [vmem:[#allocation31_spill] sm:$0xff] %v14639_v12  ;;  %v14645_v0 = vpop.f32.mrb[95].mxu1 }
 0x778   :  { %v14566_v14 = vpop.f32.mrb[73].mxu0  ;;  %15490 = vst [vmem:[#allocation32_spill] sm:$0xff] %v14645_v0 }
 0x779   :  { %v14568_v30 = vpop.f32.mrb[74].mxu0 }
 0x77a   :  { %v14572_v28 = vpop.f32.mrb[75].mxu0 }
 0x77c   :  { %10233 = vmatmul.mubr.msk.bf16.gmra.mrb[180].mxu0 %vm1533_vm2, %v14356_v62 }
 0x77d   :  { %8433 = vmatprep.mubr.bf16.mxu0 %v15478_v6 }
 0x77f   :  { %v14583_v45 = vpop.f32.mrb[76].mxu0 }
 0x780   :  { %v14587_v50 = vpop.f32.mrb[77].mxu0 }
 0x781   :  { %v14593_v56 = vpop.f32.mrb[78].mxu0 }
 0x782   :  { %v14599_v1 = vpop.f32.mrb[79].mxu0 }
 0x784   :  { %10234 = vmatmul.mubr.msk.bf16.gmra.mrb[184].mxu0 %vm1533_vm2, %v14362_v41 }
 0x785   :  { %8671 = vmatprep.mubr.bf16.mxu0 %v15478_v6 }
 0x787   :  { %v14610_v53 = vpop.f32.mrb[80].mxu0 }
 0x788   :  { %v14614_v58 = vpop.f32.mrb[81].mxu0 }
 0x789   :  { %v14620_v20 = vpop.f32.mrb[82].mxu0 }
 0x78a   :  { %v14626_v38 = vpop.f32.mrb[83].mxu0 }
 0x78c   :  { %10243 = vmatmul.mubr.msk.bf16.vlgmr.msra.gmra.mrb[188].mxu0 %vm1533_vm2, %v14262_v63 }
 0x78d   :  { %8948 = vmatpush1.bf16.msra.mxu0 %v8939_v49  ;;  %8681 = vmatprep.mubr.bf16.mxu0 %v15478_v6 }
 0x78e   :  { %8949 = vmatprep.subr.bf16.mxu0 %v8942_v29 }
 0x78f   :  { %v14637_v2 = vpop.f32.mrb[84].mxu0 }
 0x790   :  { %v14641_v46 = vpop.f32.mrb[85].mxu0 }
 0x791   :  { %8950 = vmatpush1.bf16.msra.mxu0 %v8941_v19  ;;  %v14647_v49 = vpop.f32.mrb[86].mxu0  ;;  %v14659_v19 = vpop.f32.mrb[96].mxu1 }
 0x792   :  { %v14653_v7 = vpop.f32.mrb[87].mxu0  ;;  %8951 = vmatprep.subr.bf16.mxu0 %v8944_v59  ;;  %15491 = vst [vmem:[#allocation33_spill] sm:$0xff] %v14659_v19  ;;  %v14662_v52 = vpop.f32.mrb[97].mxu1 }
 0x793   :  { %15492 = vst [vmem:[#allocation34_spill] sm:$0xff] %v14662_v52  ;;  %v14666_v59 = vpop.f32.mrb[98].mxu1 }
 0x794   :  { %10244 = vmatmul.mubr.msk.bf16.gmra.mrb[192].mxu0 %vm1533_vm2, %v14307_v40  ;;  %15493 = vst [vmem:[#allocation35_spill] sm:$0xff] %v14666_v59  ;;  %v14672_v35 = vpop.f32.mrb[99].mxu1 }
 0x795   :  { %8952 = vmatpush1.bf16.msra.mxu0 %v8943_v54  ;;  %8691 = vmatprep.mubr.bf16.mxu0 %v15478_v6  ;;  %15494 = vst [vmem:[#allocation36_spill] sm:$0xff] %v14672_v35 }
 0x796   :  { %8953 = vmatprep.subr.bf16.mxu0 %v8946_v55 }
 0x797   :  { %v14664_v29 = vpop.f32.mrb[88].mxu0 }
 0x798   :  { %v14668_v33 = vpop.f32.mrb[89].mxu0 }
 0x799   :  { %8954 = vmatpush1.bf16.msra.mxu0 %v8945_v32  ;;  %v14674_v26 = vpop.f32.mrb[90].mxu0  ;;  %v14689_v32 = vpop.f32.mrb[100].mxu1 }
 0x79a   :  { %10686 = vmatprep.subr.bf16.mxu0 %v10685_v48  ;;  %v14683_v17 = vpop.f32.mrb[91].mxu0  ;;  %15495 = vst [vmem:[#allocation37_spill] sm:$0xff] %v14689_v32  ;;  %v14692_v54 = vpop.f32.mrb[101].mxu1 }
 0x79b   :  { %15496 = vst [vmem:[#allocation38_spill] sm:$0xff] %v14692_v54  ;;  %v14694_v47 = vpop.f32.mrb[102].mxu1 }
 0x79c   :  { %10245 = vmatmul.mubr.msk.bf16.gmra.mrb[196].mxu0 %vm1533_vm2, %v14332_v3  ;;  %15497 = vst [vmem:[#allocation39_spill] sm:$0xff] %v14694_v47  ;;  %v14700_v61 = vpop.f32.mrb[103].mxu1 }
 0x79d   :  { %8701 = vmatprep.mubr.bf16.mxu0 %v15478_v6  ;;  %15498 = vst [vmem:[#allocation40_spill] sm:$0xff] %v14700_v61  ;;  %v14716_v11 = vpop.f32.mrb[104].mxu1 }
 0x79e   :  { %15499 = vst [vmem:[#allocation41_spill] sm:$0xff] %v14716_v11  ;;  %v14719_v32 = vpop.f32.mrb[105].mxu1 }
 0x79f   :  { %v14696_v55 = vpop.f32.mrb[92].mxu0  ;;  %15500 = vst [vmem:[#allocation42_spill] sm:$0xff] %v14719_v32  ;;  %v14721_v27 = vpop.f32.mrb[106].mxu1 }
 0x7a0   :  { %v14702_v48 = vpop.f32.mrb[93].mxu0  ;;  %15501 = vst [vmem:[#allocation43_spill] sm:$0xff] %v14721_v27  ;;  %v14727_v54 = vpop.f32.mrb[107].mxu1 }
 0x7a1   :  { %v14706_v44 = vpop.f32.mrb[94].mxu0  ;;  %15502 = vst [vmem:[#allocation44_spill] sm:$0xff] %v14727_v54  ;;  %v14743_v19 = vpop.f32.mrb[108].mxu1 }
 0x7a2   :  { %v14710_v59 = vpop.f32.mrb[95].mxu0  ;;  %15503 = vst [vmem:[#allocation45_spill] sm:$0xff] %v14743_v19  ;;  %v14746_v11 = vpop.f32.mrb[109].mxu1 }
 0x7a3   :  { %15504 = vst [vmem:[#allocation46_spill] sm:$0xff] %v14746_v11  ;;  %v14748_v52 = vpop.f32.mrb[110].mxu1 }
 0x7a4   :  { %10246 = vmatmul.mubr.msk.bf16.gmra.mrb[200].mxu0 %vm1533_vm2, %v14338_v51  ;;  %15505 = vst [vmem:[#allocation47_spill] sm:$0xff] %v14748_v52  ;;  %v14754_v32 = vpop.f32.mrb[111].mxu1 }
 0x7a5   :  { %8711 = vmatprep.mubr.bf16.mxu0 %v15478_v6  ;;  %15506 = vst [vmem:[#allocation48_spill] sm:$0xff] %v14754_v32  ;;  %v14770_v16 = vpop.f32.mrb[112].mxu1 }
 0x7a6   :  { %15507 = vst [vmem:[#allocation49_spill] sm:$0xff] %v14770_v16  ;;  %v14773_v19 = vpop.f32.mrb[113].mxu1 }
 0x7a7   :  { %v14723_v47 = vpop.f32.mrb[96].mxu0  ;;  %15508 = vst [vmem:[#allocation50_spill] sm:$0xff] %v14773_v19  ;;  %v14775_v25 = vpop.f32.mrb[114].mxu1  ;;  %v14806_v19 = vld [vmem:[#allocation4 + $0x8] sm:$0xff] }
 0x7a8   :  { %v14729_v61 = vpop.f32.mrb[97].mxu0  ;;  %15509 = vst [vmem:[#allocation51_spill] sm:$0xff] %v14775_v25  ;;  %v14781_v11 = vpop.f32.mrb[115].mxu1  ;;  %15519 = vst [vmem:[#allocation61_spill] sm:$0xff] %v14806_v19  ;;  %v9100_v60 = vunpack.c.h.bf16 %v14806_v19  ;;  %v15526_v19 = vpack.c.bf16 %v14542_v22, %v14536_v43 }
 0x7a9   :  { %v14733_v35 = vpop.f32.mrb[98].mxu0  ;;  %15511 = vst [vmem:[#allocation53_spill] sm:$0xff] %v14781_v11  ;;  %v14797_v31 = vpop.f32.mrb[116].mxu1 }
 0x7aa   :  { %v14737_v12 = vpop.f32.mrb[99].mxu0  ;;  %15515 = vst [vmem:[#allocation57_spill] sm:$0xff] %v14797_v31  ;;  %v14800_v16 = vpop.f32.mrb[117].mxu1  ;;  %9535 = vmatprep.mubr.f32.mxu1 %v9100_v60  ;;  %v15525_v60 = vpack.c.bf16 %v14521_v24, %v14517_v9  ;;  %v15527_v9 = vpack.c.bf16 %v14538_v18, %v14534_v39  ;;  %v15529_v18 = vpack.c.bf16 %v14553_v23, %v14549_v42 }
 0x7ab   :  { %15516 = vst [vmem:[#allocation58_spill] sm:$0xff] %v14800_v16  ;;  %v14804_v25 = vpop.f32.mrb[118].mxu1  ;;  %v15531_v42 = vpack.c.bf16 %v14568_v30, %v14564_v36  ;;  %v15533_v30 = vpack.c.bf16 %v14593_v56, %v14583_v45  ;;  %v15535_v56 = vpack.c.bf16 %v14620_v20, %v14610_v53  ;;  %v15537_v45 = vpack.c.bf16 %v14647_v49, %v14637_v2 }
 0x7ac   :  { %10247 = vmatmul.mubr.msk.bf16.gmra.mrb[204].mxu0 %vm1533_vm2, %v14344_v10  ;;  %15518 = vst [vmem:[#allocation60_spill] sm:$0xff] %v14804_v25  ;;  %v14812_v11 = vpop.f32.mrb[119].mxu1  ;;  %v15538_v20 = vpack.c.bf16 %v14683_v17, %v14668_v33 }
 0x7ad   :  { %8721 = vmatprep.mubr.bf16.mxu0 %v15478_v6  ;;  %15520 = vst [vmem:[#allocation62_spill] sm:$0xff] %v14812_v11  ;;  %v14827_v5 = vpop.f32.mrb[120].mxu1 }
 0x7ae   :  { %15522 = vst [vmem:[#allocation64_spill] sm:$0xff] %v14827_v5  ;;  %v14830_v31 = vpop.f32.mrb[121].mxu1 }
 0x7af   :  { %v14750_v27 = vpop.f32.mrb[100].mxu0  ;;  %15523 = vst [vmem:[#allocation65_spill] sm:$0xff] %v14830_v31 }
 0x7b0   :  { %v14756_v54 = vpop.f32.mrb[101].mxu0 }
 0x7b1   :  { %v14760_v0 = vpop.f32.mrb[102].mxu0 }
 0x7b2   :  { %v14764_v13 = vpop.f32.mrb[103].mxu0 }
 0x7b4   :  { %10248 = vmatmul.mubr.msk.bf16.gmra.mrb[208].mxu0 %vm1533_vm2, %v14350_v34 }
 0x7b5   :  { %8731 = vmatprep.mubr.bf16.mxu0 %v15478_v6 }
 0x7b7   :  { %v14777_v52 = vpop.f32.mrb[104].mxu0 }
 0x7b8   :  { %15510 = vst [vmem:[#allocation52_spill] sm:$0xff] %v14777_v52  ;;  %v14783_v32 = vpop.f32.mrb[105].mxu0  ;;  %v14834_v52 = vpop.f32.mrb[122].mxu1 }
 0x7b9   :  { %15512 = vst [vmem:[#allocation54_spill] sm:$0xff] %v14783_v32  ;;  %v14787_v21 = vpop.f32.mrb[106].mxu0  ;;  %15524 = vst [vmem:[#allocation66_spill] sm:$0xff] %v14834_v52  ;;  %v14840_v16 = vpop.f32.mrb[123].mxu1 }
 0x7ba   :  { %15513 = vst [vmem:[#allocation55_spill] sm:$0xff] %v14787_v21  ;;  %v14791_v57 = vpop.f32.mrb[107].mxu0 }
 0x7bb   :  { %15514 = vst [vmem:[#allocation56_spill] sm:$0xff] %v14791_v57 }
 0x7bc   :  { %10249 = vmatmul.mubr.msk.bf16.gmra.mrb[212].mxu0 %vm1533_vm2, %v14356_v62 }
 0x7bd   :  { %8741 = vmatprep.mubr.bf16.mxu0 %v15478_v6 }
 0x7bf   :  { %v14802_v8 = vpop.f32.mrb[108].mxu0 }
 0x7c0   :  { %15517 = vst [vmem:[#allocation59_spill] sm:$0xff] %v14802_v8  ;;  %v14808_v4 = vpop.f32.mrb[109].mxu0 }
 0x7c1   :  { %v14815_v62 = vpop.f32.mrb[110].mxu0 }
 0x7c2   :  { %15521 = vst [vmem:[#allocation63_spill] sm:$0xff] %v14815_v62  ;;  %v14821_v32 = vpop.f32.mrb[111].mxu0  ;;  %v14854_v62 = vpop.f32.mrb[124].mxu1 }
 0x7c3   :  { %v14860_v11 = vpop.f32.mrb[125].mxu1 }
 0x7c4   :  { %10250 = vmatmul.mubr.msk.bf16.gmra.mrb[216].mxu0 %vm1533_vm2, %v14362_v41  ;;  %v14867_v8 = vpop.f32.mrb[126].mxu1 }
 0x7c5   :  { %8979 = vmatprep.mubr.bf16.mxu0 %v15478_v6  ;;  %v14873_v31 = vpop.f32.mrb[127].mxu1 }
 0x7c6   :  { %v14893_v39 = vpop.f32.mrb[128].mxu1 }
 0x7c7   :  { %v14832_v25 = vpop.f32.mrb[112].mxu0 }
 0x7c8   :  { %v14836_v21 = vpop.f32.mrb[113].mxu0 }
 0x7c9   :  { %v14842_v57 = vpop.f32.mrb[114].mxu0 }
 0x7ca   :  { %v14848_v41 = vpop.f32.mrb[115].mxu0 }
 0x7cc   :  { %10259 = vmatmul.mubr.msk.bf16.vlgmr.msra.gmra.mrb[220].mxu0 %vm1533_vm2, %v14262_v63 }
 0x7cd   :  { %10688 = vmatpush1.bf16.msra.mxu0 %v15525_v60  ;;  %8989 = vmatprep.mubr.bf16.mxu0 %v15478_v6 }
 0x7ce   :  { %10690 = vmatprep.subr.bf16.mxu0 %v15526_v19  ;;  %v15528_v19 = vpack.c.bf16 %v14557_v15, %v14551_v37  ;;  %v15530_v37 = vpack.c.bf16 %v14572_v28, %v14566_v14 }
 0x7cf   :  { %v14865_v5 = vpop.f32.mrb[116].mxu0 }
 0x7d0   :  { %v14869_v52 = vpop.f32.mrb[117].mxu0 }
 0x7d1   :  { %10692 = vmatpush1.bf16.msra.mxu0 %v15527_v9  ;;  %v14878_v24 = vpop.f32.mrb[118].mxu0  ;;  %v14899_v9 = vpop.f32.mrb[129].mxu1 }
 0x7d2   :  { %10694 = vmatprep.subr.bf16.mxu0 %v15528_v19  ;;  %v14887_v60 = vpop.f32.mrb[119].mxu0  ;;  %v14906_v19 = vpop.f32.mrb[130].mxu1 }
 0x7d3   :  { %v10741_v63 = vpack.c.bf16 %v14887_v60, %v14869_v52  ;;  %v14912_v22 = vpop.f32.mrb[131].mxu1 }
 0x7d4   :  { %10260 = vmatmul.mubr.msk.bf16.gmra.mrb[224].mxu0 %vm1533_vm2, %v14307_v40  ;;  %v14932_v36 = vpop.f32.mrb[132].mxu1 }
 0x7d5   :  { %10696 = vmatpush1.bf16.msra.mxu0 %v15529_v18  ;;  %8999 = vmatprep.mubr.bf16.mxu0 %v15478_v6  ;;  %v15532_v18 = vpack.c.bf16 %v14599_v1, %v14587_v50  ;;  %v15534_v50 = vpack.c.bf16 %v14626_v38, %v14614_v58  ;;  %v15536_v58 = vpack.c.bf16 %v14653_v7, %v14641_v46 }
 0x7d6   :  { %10698 = vmatprep.subr.bf16.mxu0 %v15530_v37 }
 0x7d7   :  { %v14904_v15 = vpop.f32.mrb[120].mxu0 }
 0x7d8   :  { %v14908_v43 = vpop.f32.mrb[121].mxu0 }
 0x7d9   :  { %10700 = vmatpush1.bf16.msra.mxu0 %v15531_v42  ;;  %v14917_v23 = vpop.f32.mrb[122].mxu0  ;;  %v14938_v42 = vpop.f32.mrb[133].mxu1 }
 0x7da   :  { %10702 = vmatprep.subr.bf16.mxu0 %v15532_v18  ;;  %v14926_v37 = vpop.f32.mrb[123].mxu0  ;;  %v14943_v1 = vpop.f32.mrb[134].mxu1 }
 0x7db   :  { %v14947_v14 = vpop.f32.mrb[135].mxu1 }
 0x7dc   :  { %10261 = vmatmul.mubr.msk.bf16.gmra.mrb[228].mxu0 %vm1533_vm2, %v14332_v3  ;;  %v14959_v3 = vpop.f32.mrb[136].mxu1 }
 0x7dd   :  { %10704 = vmatpush1.bf16.msra.mxu0 %v15533_v30  ;;  %9009 = vmatprep.mubr.bf16.mxu0 %v15478_v6  ;;  %v14964_v53 = vpop.f32.mrb[137].mxu1 }
 0x7de   :  { %10706 = vmatprep.subr.bf16.mxu0 %v15534_v50  ;;  %v14969_v46 = vpop.f32.mrb[138].mxu1 }
 0x7df   :  { %v8057_v18 = vpop.f32.mrb[124].mxu0 }
 0x7e0   :  { %v8059_v28 = vpop.f32.mrb[125].mxu0 }
 0x7e1   :  { %10708 = vmatpush1.bf16.msra.mxu0 %v15535_v56  ;;  %v8061_v30 = vpop.f32.mrb[126].mxu0 }
 0x7e2   :  { %v10751_v40 = vpack.c.bf16 %v8061_v30, %v8057_v18  ;;  %10710 = vmatprep.subr.bf16.mxu0 %v15536_v58  ;;  %v8063_v38 = vpop.f32.mrb[127].mxu0  ;;  %v15539_v18 = vpack.c.bf16 %v14674_v26, %v14664_v29  ;;  %v15541_v58 = vpack.c.bf16 %v14706_v44, %v14696_v55  ;;  %v15542_v29 = vpack.c.bf16 %v14737_v12, %v14729_v61 }
 0x7e3   :  { %v10749_v50 = vpack.c.bf16 %v8063_v38, %v8059_v28  ;;  %v14974_v28 = vpop.f32.mrb[139].mxu1 }
 0x7e4   :  { %10262 = vmatmul.mubr.msk.bf16.gmra.mrb[232].mxu0 %vm1533_vm2, %v14338_v51  ;;  %v14986_v30 = vpop.f32.mrb[140].mxu1 }
 0x7e5   :  { %10712 = vmatpush1.bf16.msra.mxu0 %v15537_v45  ;;  %10750 = vmatprep.subr.bf16.mxu1 %v10749_v50  ;;  %v14991_v26 = vpop.f32.mrb[141].mxu1  ;;  %v15543_v50 = vpack.c.bf16 %v14733_v35, %v14723_v47  ;;  %v15546_v35 = vld [vmem:[#allocation56_spill] sm:$0xff] }
 0x7e6   :  { %10714 = vmatprep.subr.bf16.mxu0 %v15538_v20  ;;  %10752 = vmatpush1.bf16.msra.mxu1 %v10751_v40  ;;  %v15540_v40 = vpack.c.bf16 %v14710_v59, %v14702_v48  ;;  %v14996_v59 = vpop.f32.mrb[142].mxu1  ;;  %v15544_v20 = vpack.c.bf16 %v14764_v13, %v14756_v54 }
 0x7e7   :  { %v8067_v7 = vpop.f32.mrb[128].mxu0  ;;  %9019 = vmatprep.mubr.bf16.mxu0 %v15478_v6  ;;  %v15001_v38 = vpop.f32.mrb[143].mxu1 }
 0x7e8   :  { %v8069_v2 = vpop.f32.mrb[129].mxu0 }
 0x7e9   :  { %10716 = vmatpush1.bf16.msra.mxu0 %v15539_v18  ;;  %v8071_v17 = vpop.f32.mrb[130].mxu0  ;;  %v15013_v18 = vpop.f32.mrb[144].mxu1 }
 0x7ea   :  { %v10755_v33 = vpack.c.bf16 %v8071_v17, %v8067_v7  ;;  %10718 = vmatprep.subr.bf16.mxu0 %v15540_v40  ;;  %v8073_v45 = vpop.f32.mrb[131].mxu0  ;;  %v15545_v17 = vpack.c.bf16 %v14760_v0, %v14750_v27  ;;  %v15018_v47 = vpop.f32.mrb[145].mxu1 }
 0x7eb   :  { %v10753_v56 = vpack.c.bf16 %v8073_v45, %v8069_v2  ;;  %v15023_v13 = vpop.f32.mrb[146].mxu1 }
 0x7ec   :  { %10263 = vmatmul.mubr.msk.bf16.gmra.mrb[236].mxu0 %vm1533_vm2, %v14344_v10  ;;  %v15028_v45 = vpop.f32.mrb[147].mxu1  ;;  %v15584_v10 = vld [vmem:[#allocation25_spill] sm:$0xff] }
 0x7ed   :  { %10720 = vmatpush1.bf16.msra.mxu0 %v15541_v58  ;;  %10754 = vmatprep.subr.bf16.mxu1 %v10753_v56  ;;  %v15549_v56 = vld [vmem:[#allocation55_spill] sm:$0xff]  ;;  %v15550_v58 = vld [vmem:[#allocation52_spill] sm:$0xff] }
 0x7ee   :  { %10722 = vmatprep.subr.bf16.mxu0 %v15542_v29  ;;  %10756 = vmatpush1.bf16.msra.mxu1 %v10755_v33  ;;  %v15547_v33 = vld [vmem:[#allocation54_spill] sm:$0xff]  ;;  %v15551_v29 = vpack.c.bf16 %v15549_v56, %v15550_v58  ;;  %v15558_v58 = vpack.c.bf16 %v14842_v57, %v14832_v25  ;;  %v15560_v57 = vpack.c.bf16 %v14878_v24, %v14865_v5 }
 0x7ef   :  { %v8077_v48 = vpop.f32.mrb[132].mxu0  ;;  %9029 = vmatprep.mubr.bf16.mxu0 %v15478_v6  ;;  %v15548_v40 = vpack.c.bf16 %v15546_v35, %v15547_v33  ;;  %v15562_v5 = vpack.c.bf16 %v14917_v23, %v14904_v15 }
 0x7f0   :  { %v8079_v44 = vpop.f32.mrb[133].mxu0 }
 0x7f1   :  { %10724 = vmatpush1.bf16.msra.mxu0 %v15543_v50  ;;  %v8081_v12 = vpop.f32.mrb[134].mxu0  ;;  %v15552_v50 = vpack.c.bf16 %v14821_v32, %v14808_v4 }
 0x7f2   :  { %v10759_v61 = vpack.c.bf16 %v8081_v12, %v8077_v48  ;;  %10726 = vmatprep.subr.bf16.mxu0 %v15544_v20  ;;  %v8083_v7 = vpop.f32.mrb[135].mxu0  ;;  %v15553_v20 = vld [vmem:[#allocation19_spill] sm:$0xff] }
 0x7f3   :  { %v10757_v2 = vpack.c.bf16 %v8083_v7, %v8079_v44  ;;  %v15040_v7 = vpop.f32.mrb[148].mxu1 }
 0x7f4   :  { %10264 = vmatmul.mubr.msk.bf16.gmra.mrb[240].mxu0 %vm1533_vm2, %v14350_v34  ;;  %v15045_v33 = vpop.f32.mrb[149].mxu1 }
 0x7f5   :  { %10728 = vmatpush1.bf16.msra.mxu0 %v15545_v17  ;;  %10758 = vmatprep.subr.bf16.mxu1 %v10757_v2  ;;  %v15554_v2 = vld [vmem:[#allocation63_spill] sm:$0xff]  ;;  %v15051_v32 = vpop.f32.mrb[150].mxu1 }
 0x7f6   :  { %10730 = vmatprep.subr.bf16.mxu0 %v15548_v40  ;;  %10760 = vmatpush1.bf16.msra.mxu1 %v10759_v61  ;;  %v15555_v17 = vld [vmem:[#allocation59_spill] sm:$0xff]  ;;  %v15557_v40 = vpack.c.bf16 %v14848_v41, %v14836_v21  ;;  %v15055_v56 = vpop.f32.mrb[151].mxu1 }
 0x7f7   :  { %v8087_v54 = vpop.f32.mrb[136].mxu0  ;;  %9039 = vmatprep.mubr.bf16.mxu0 %v15478_v6  ;;  %v15556_v35 = vpack.c.bf16 %v15554_v2, %v15555_v17  ;;  %v15575_v2 = vld [vmem:[#allocation23_spill] sm:$0xff] }
 0x7f8   :  { %v8089_v0 = vpop.f32.mrb[137].mxu0 }
 0x7f9   :  { %10732 = vmatpush1.bf16.msra.mxu0 %v15551_v29  ;;  %v8091_v48 = vpop.f32.mrb[138].mxu0 }
 0x7fa   :  { %v10763_v44 = vpack.c.bf16 %v8091_v48, %v8087_v54  ;;  %10734 = vmatprep.subr.bf16.mxu0 %v15552_v50  ;;  %v8093_v12 = vpop.f32.mrb[139].mxu0  ;;  %v15067_v50 = vpop.f32.mrb[152].mxu1 }
 0x7fb   :  { %v10761_v61 = vpack.c.bf16 %v8093_v12, %v8089_v0  ;;  %v15072_v25 = vpop.f32.mrb[153].mxu1  ;;  %v15561_v12 = vpack.c.bf16 %v14926_v37, %v14908_v43  ;;  %v15576_v0 = vld [vmem:[#allocation21_spill] sm:$0xff] }
 0x7fc   :  { %10265 = vmatmul.mubr.msk.bf16.gmra.mrb[244].mxu0 %vm1533_vm2, %v15553_v20  ;;  %v15577_v41 = vpack.c.bf16 %v15575_v2, %v15576_v0 }
 0x7fd   :  { %10736 = vmatpush1.bf16.msra.mxu0 %v15556_v35  ;;  %10762 = vmatprep.subr.bf16.mxu1 %v10761_v61 }
 0x7fe   :  { %10738 = vmatprep.subr.bf16.mxu0 %v15557_v40  ;;  %10764 = vmatpush1.bf16.msra.mxu1 %v10763_v44  ;;  %v15559_v44 = vld [vmem:[#allocation20_spill] sm:$0xff] }
 0x7ff   :  { %v8097_v4 = vpop.f32.mrb[140].mxu0  ;;  %9049 = vmatprep.mubr.bf16.mxu0 %v15478_v6 }
 0x800   :  { %v8099_v54 = vpop.f32.mrb[141].mxu0 }
 0x801   :  { %10740 = vmatpush1.bf16.msra.mxu0 %v15558_v58  ;;  %v8101_v29 = vpop.f32.mrb[142].mxu0 }
 0x802   :  { %v10767_v21 = vpack.c.bf16 %v8101_v29, %v8097_v4  ;;  %10742 = vmatprep.subr.bf16.mxu0 %v10741_v63  ;;  %v8103_v6 = vpop.f32.mrb[143].mxu0  ;;  %v15077_v63 = vpop.f32.mrb[154].mxu1 }
 0x803   :  { %v10765_v48 = vpack.c.bf16 %v8103_v6, %v8099_v54  ;;  %v15081_v20 = vpop.f32.mrb[155].mxu1 }
 0x804   :  { %10266 = vmatmul.mubr.msk.bf16.gmra.mrb[248].mxu0 %vm1533_vm2, %v15559_v44  ;;  %v15088_v35 = vpop.f32.mrb[156].mxu1 }
 0x805   :  { %10744 = vmatpush1.bf16.msra.mxu0 %v15560_v57  ;;  %10766 = vmatprep.subr.bf16.mxu1 %v10765_v48  ;;  %15563 = vst [vmem:[#allocation56_spill] sm:$0xff] %v15088_v35  ;;  %v15090_v40 = vpop.f32.mrb[157].mxu1 }
 0x806   :  { %10746 = vmatprep.subr.bf16.mxu0 %v15561_v12  ;;  %10768 = vmatpush1.bf16.msra.mxu1 %v10767_v21  ;;  %v15092_v54 = vpop.f32.mrb[158].mxu1  ;;  %v15572_v21 = vld [vmem:[#allocation22_spill] sm:$0xff] }
 0x807   :  { %v8107_v52 = vpop.f32.mrb[144].mxu0  ;;  %v15096_v23 = vpop.f32.mrb[159].mxu1 }
 0x808   :  { %v8109_v60 = vpop.f32.mrb[145].mxu0  ;;  %v15100_v57 = vpop.f32.mrb[160].mxu1 }
 0x809   :  { %10748 = vmatpush1.bf16.msra.mxu0 %v15562_v5  ;;  %v8111_v24 = vpop.f32.mrb[146].mxu0  ;;  %15564 = vst [vmem:[#allocation54_spill] sm:$0xff] %v15100_v57  ;;  %v15102_v12 = vpop.f32.mrb[161].mxu1  ;;  %v15610_v57 = vld [vmem:[#allocation44_spill] sm:$0xff] }
 0x80a   :  { %v10771_v43 = vpack.c.bf16 %v8111_v24, %v8107_v52  ;;  %v8113_v37 = vpop.f32.mrb[147].mxu0  ;;  %15565 = vst [vmem:[#allocation55_spill] sm:$0xff] %v15102_v12  ;;  %v15571_v24 = vld [vmem:[#allocation24_spill] sm:$0xff]  ;;  %v15624_v12 = vld [vmem:[#allocation53_spill] sm:$0xff] }
 0x80b   :  { %v10769_v17 = vpack.c.bf16 %v8113_v37, %v8109_v60  ;;  %v15104_v60 = vpop.f32.mrb[162].mxu1  ;;  %v15573_v61 = vpack.c.bf16 %v15571_v24, %v15572_v21  ;;  %v15578_v21 = vld [vmem:[#allocation28_spill] sm:$0xff]  ;;  %v15579_v24 = vld [vmem:[#allocation26_spill] sm:$0xff] }
 0x80c   :  { %15566 = vst [vmem:[#allocation52_spill] sm:$0xff] %v15104_v60 }
 0x80d   :  { %10770 = vmatprep.subr.bf16.mxu1 %v10769_v17  ;;  %v15580_v17 = vpack.c.bf16 %v15578_v21, %v15579_v24 }
 0x80e   :  { %10772 = vmatpush1.bf16.msra.mxu1 %v10771_v43  ;;  %v15108_v43 = vpop.f32.mrb[163].mxu1 }
 0x80f   :  { %v8117_v4 = vpop.f32.mrb[148].mxu0  ;;  %15567 = vst [vmem:[#allocation19_spill] sm:$0xff] %v15108_v43  ;;  %v15629_v43 = vld [vmem:[#allocation49_spill] sm:$0xff] }
 0x810   :  { %v8119_v58 = vpop.f32.mrb[149].mxu0 }
 0x811   :  { %v8121_v29 = vpop.f32.mrb[150].mxu0 }
 0x812   :  { %v10775_v6 = vpack.c.bf16 %v8121_v29, %v8117_v4  ;;  %v8123_v48 = vpop.f32.mrb[151].mxu0 }
 0x813   :  { %v10773_v44 = vpack.c.bf16 %v8123_v48, %v8119_v58  ;;  %v15112_v48 = vpop.f32.mrb[164].mxu1 }
 0x814   :  { %15568 = vst [vmem:[#allocation63_spill] sm:$0xff] %v15112_v48  ;;  %v15588_v48 = vld [vmem:[#allocation30_spill] sm:$0xff] }
 0x815   :  { %10774 = vmatprep.subr.bf16.mxu1 %v10773_v44 }
 0x816   :  { %10776 = vmatpush1.bf16.msra.mxu1 %v10775_v6  ;;  %v15114_v6 = vpop.f32.mrb[165].mxu1 }
 0x817   :  { %v8127_v52 = vpop.f32.mrb[152].mxu0  ;;  %15569 = vst [vmem:[#allocation59_spill] sm:$0xff] %v15114_v6  ;;  %v15116_v44 = vpop.f32.mrb[166].mxu1  ;;  %v15594_v6 = vld [vmem:[#allocation36_spill] sm:$0xff] }
 0x818   :  { %v8129_v5 = vpop.f32.mrb[153].mxu0  ;;  %15570 = vst [vmem:[#allocation20_spill] sm:$0xff] %v15116_v44 }
 0x819   :  { %v8131_v37 = vpop.f32.mrb[154].mxu0 }
 0x81a   :  { %v10779_v4 = vpack.c.bf16 %v8131_v37, %v8127_v52  ;;  %v8133_v58 = vpop.f32.mrb[155].mxu0  ;;  %v15125_v52 = vpop.f32.mrb[167].mxu1  ;;  %v15583_v37 = vld [vmem:[#allocation27_spill] sm:$0xff] }
 0x81b   :  { %v10777_v29 = vpack.c.bf16 %v8133_v58, %v8129_v5  ;;  %15574 = vst [vmem:[#allocation24_spill] sm:$0xff] %v15125_v52  ;;  %v15139_v34 = vpop.f32.mrb[168].mxu1  ;;  %v15585_v55 = vpack.c.bf16 %v15583_v37, %v15584_v10  ;;  %v15592_v37 = vld [vmem:[#allocation29_spill] sm:$0xff] }
 0x81c   :  { %15581 = vst [vmem:[#allocation22_spill] sm:$0xff] %v15139_v34  ;;  %v15141_v27 = vpop.f32.mrb[169].mxu1  ;;  %v15599_v34 = vld [vmem:[#allocation35_spill] sm:$0xff] }
 0x81d   :  { %10778 = vmatprep.subr.bf16.mxu1 %v10777_v29  ;;  %15582 = vst [vmem:[#allocation23_spill] sm:$0xff] %v15141_v27  ;;  %v15146_v51 = vpop.f32.mrb[170].mxu1  ;;  %v15604_v27 = vld [vmem:[#allocation38_spill] sm:$0xff] }
 0x81e   :  { %10780 = vmatpush1.bf16.msra.mxu1 %v10779_v4  ;;  %15586 = vst [vmem:[#allocation21_spill] sm:$0xff] %v15146_v51  ;;  %v15587_v4 = vld [vmem:[#allocation32_spill] sm:$0xff]  ;;  %v15153_v2 = vpop.f32.mrb[171].mxu1  ;;  %v15600_v51 = vld [vmem:[#allocation33_spill] sm:$0xff] }
 0x81f   :  { %v15118_v15 = vpop.f32.mrb[156].mxu0  ;;  %10782 = vmatprep.subr.bf16.mxu1 %v15573_v61  ;;  %v15589_v0 = vpack.c.bf16 %v15587_v4, %v15588_v48  ;;  %15590 = vst [vmem:[#allocation28_spill] sm:$0xff] %v15153_v2  ;;  %v15595_v48 = vld [vmem:[#allocation34_spill] sm:$0xff]  ;;  %v15601_v52 = vpack.c.bf16 %v15599_v34, %v15600_v51  ;;  %v15607_v34 = vld [vmem:[#allocation39_spill] sm:$0xff] }
 0x820   :  { %v8367_v5 = vpop.f32.mrb[157].mxu0  ;;  %v15596_v4 = vpack.c.bf16 %v15594_v6, %v15595_v48 }
 0x821   :  { %v15129_v58 = vpop.f32.mrb[158].mxu0 }
 0x822   :  { %v8371_v29 = vpop.f32.mrb[159].mxu0  ;;  %10784 = vmatpush1.bf16.msra.mxu1 %v15577_v41 }
 0x823   :  { %v10813_v61 = vpack.c.bf16 %v8371_v29, %v8367_v5  ;;  %10786 = vmatprep.subr.bf16.mxu1 %v15580_v17 }
 0x826   :  { %10788 = vmatpush1.bf16.msra.mxu1 %v15585_v55  ;;  %v15591_v55 = vld [vmem:[#allocation31_spill] sm:$0xff] }
 0x827   :  { %v8375_v49 = vpop.f32.mrb[160].mxu0  ;;  %10790 = vmatprep.subr.bf16.mxu1 %v15589_v0  ;;  %v15593_v24 = vpack.c.bf16 %v15591_v55, %v15592_v37  ;;  %v15163_v0 = vpop.f32.mrb[172].mxu1 }
 0x828   :  { %v8377_v17 = vpop.f32.mrb[161].mxu0  ;;  %15597 = vst [vmem:[#allocation26_spill] sm:$0xff] %v15163_v0  ;;  %v15165_v41 = vpop.f32.mrb[173].mxu1  ;;  %v15614_v0 = vld [vmem:[#allocation43_spill] sm:$0xff] }
 0x829   :  { %v8379_v29 = vpop.f32.mrb[162].mxu0  ;;  %15598 = vst [vmem:[#allocation27_spill] sm:$0xff] %v15165_v41  ;;  %v15170_v5 = vpop.f32.mrb[174].mxu1  ;;  %v15619_v41 = vld [vmem:[#allocation46_spill] sm:$0xff] }
 0x82a   :  { %v10819_v21 = vpack.c.bf16 %v8379_v29, %v8375_v49  ;;  %v8381_v10 = vpop.f32.mrb[163].mxu0  ;;  %10792 = vmatpush1.bf16.msra.mxu1 %v15593_v24  ;;  %15602 = vst [vmem:[#allocation25_spill] sm:$0xff] %v15170_v5  ;;  %v15603_v29 = vld [vmem:[#allocation40_spill] sm:$0xff]  ;;  %v15177_v6 = vpop.f32.mrb[175].mxu1  ;;  %v15615_v5 = vld [vmem:[#allocation41_spill] sm:$0xff] }
 0x82b   :  { %v10817_v44 = vpack.c.bf16 %v8381_v10, %v8377_v17  ;;  %10794 = vmatprep.subr.bf16.mxu1 %v15596_v4  ;;  %v15605_v55 = vpack.c.bf16 %v15603_v29, %v15604_v27  ;;  %15606 = vst [vmem:[#allocation32_spill] sm:$0xff] %v15177_v6  ;;  %v15611_v27 = vld [vmem:[#allocation42_spill] sm:$0xff]  ;;  %v15616_v60 = vpack.c.bf16 %v15614_v0, %v15615_v5  ;;  %v15622_v0 = vld [vmem:[#allocation45_spill] sm:$0xff] }
 0x82c   :  { %v15612_v29 = vpack.c.bf16 %v15610_v57, %v15611_v27 }
 0x82e   :  { %10796 = vmatpush1.bf16.msra.mxu1 %v15601_v52  ;;  %v15608_v52 = vld [vmem:[#allocation37_spill] sm:$0xff] }
 0x82f   :  { %v8385_v49 = vpop.f32.mrb[164].mxu0  ;;  %10798 = vmatprep.subr.bf16.mxu1 %v15605_v55  ;;  %v15609_v4 = vpack.c.bf16 %v15607_v34, %v15608_v52  ;;  %v15187_v55 = vpop.f32.mrb[176].mxu1 }
 0x830   :  { %v8387_v10 = vpop.f32.mrb[165].mxu0  ;;  %15613 = vst [vmem:[#allocation30_spill] sm:$0xff] %v15187_v55  ;;  %v15189_v17 = vpop.f32.mrb[177].mxu1 }
 0x831   :  { %v8389_v24 = vpop.f32.mrb[166].mxu0  ;;  %v15194_v37 = vpop.f32.mrb[178].mxu1 }
 0x832   :  { %v10823_v48 = vpack.c.bf16 %v8389_v24, %v8385_v49  ;;  %v8391_v51 = vpop.f32.mrb[167].mxu0  ;;  %10800 = vmatpush1.bf16.msra.mxu1 %v15609_v4  ;;  %15617 = vst [vmem:[#allocation31_spill] sm:$0xff] %v15194_v37  ;;  %v15618_v24 = vld [vmem:[#allocation48_spill] sm:$0xff]  ;;  %v15201_v57 = vpop.f32.mrb[179].mxu1  ;;  %v15628_v37 = vld [vmem:[#allocation51_spill] sm:$0xff] }
 0x833   :  { %v10821_v2 = vpack.c.bf16 %v8391_v51, %v8387_v10  ;;  %10802 = vmatprep.subr.bf16.mxu1 %v15612_v29  ;;  %v15620_v34 = vpack.c.bf16 %v15618_v24, %v15619_v41  ;;  %v15625_v41 = vld [vmem:[#allocation50_spill] sm:$0xff]  ;;  %v15627_v10 = vld [vmem:[#allocation61_spill] sm:$0xff]  ;;  %v15630_v35 = vpack.c.bf16 %v15628_v37, %v15629_v43 }
 0x834   :  { %v15626_v24 = vpack.c.bf16 %v15624_v12, %v15625_v41  ;;  %v9099_v55 = vunpack.c.l.bf16 %v15627_v10  ;;  %v15631_v12 = vpack.c.bf16 %v15129_v58, %v15118_v15 }
 0x836   :  { %10804 = vmatpush1.bf16.msra.mxu1 %v15616_v60  ;;  %v15621_v60 = vld [vmem:[#allocation47_spill] sm:$0xff] }
 0x837   :  { %v8395_v49 = vpop.f32.mrb[168].mxu0  ;;  %10806 = vmatprep.subr.bf16.mxu1 %v15620_v34  ;;  %v15623_v29 = vpack.c.bf16 %v15621_v60, %v15622_v0  ;;  %v15211_v34 = vld [vmem:[#allocation4 + $0x10] sm:$0xff] }
 0x838   :  { %v8397_v51 = vpop.f32.mrb[169].mxu0 }
 0x839   :  { %v8399_v4 = vpop.f32.mrb[170].mxu0 }
 0x83a   :  { %v10827_v27 = vpack.c.bf16 %v8399_v4, %v8395_v49  ;;  %v8401_v5 = vpop.f32.mrb[171].mxu0  ;;  %10808 = vmatpush1.bf16.msra.mxu1 %v15623_v29  ;;  %v9102_v49 = vunpack.c.h.bf16 %v15211_v34 }
 0x83b   :  { %v10825_v6 = vpack.c.bf16 %v8401_v5, %v8397_v51  ;;  %10810 = vmatprep.subr.bf16.mxu1 %v15626_v24 }
 0x83e   :  { %10812 = vmatpush1.bf16.msra.mxu1 %v15630_v35 }
 0x83f   :  { %v8405_v4 = vpop.f32.mrb[172].mxu0  ;;  %10814 = vmatprep.subr.bf16.mxu1 %v10813_v61 }
 0x840   :  { %v8407_v52 = vpop.f32.mrb[173].mxu0 }
 0x841   :  { %v8409_v60 = vpop.f32.mrb[174].mxu0  ;;  %9536 = vmatmul.mubr.f32.vlgmr.msra.gmra.mrb[180].mxu1 %v9099_v55 }
 0x842   :  { %v10831_v51 = vpack.c.bf16 %v8409_v60, %v8405_v4  ;;  %v8411_v5 = vpop.f32.mrb[175].mxu0  ;;  %10816 = vmatpush1.bf16.msra.mxu1 %v15631_v12  ;;  %9606 = vmatprep.mubr.f32.mxu1 %v9102_v49  ;;  %v15632_v12 = vld [vmem:[#allocation62_spill] sm:$0xff] }
 0x843   :  { %v10829_v0 = vpack.c.bf16 %v8411_v5, %v8407_v52  ;;  %10818 = vmatprep.subr.bf16.mxu1 %v10817_v44 }
 0x846   :  { %10820 = vmatpush1.bf16.msra.mxu1 %v10819_v21 }
 0x847   :  { %v8415_v10 = vpop.f32.mrb[176].mxu0  ;;  %10822 = vmatprep.subr.bf16.mxu1 %v10821_v2 }
 0x848   :  { %v8417_v35 = vpop.f32.mrb[177].mxu0 }
 0x849   :  { %v8419_v43 = vpop.f32.mrb[178].mxu0 }
 0x84a   :  { %v10835_v37 = vpack.c.bf16 %v8419_v43, %v8415_v10  ;;  %v8421_v29 = vpop.f32.mrb[179].mxu0  ;;  %10824 = vmatpush1.bf16.msra.mxu1 %v10823_v48  ;;  %v9394_v43 = vld [vmem:[%s15356_s13] sm:$0xff]  ;;  %s11356_s13 = smov [#allocation10]  }
 0x84b   :  { %v10833_v61 = vpack.c.bf16 %v8421_v29, %v8417_v35  ;;  %10826 = vmatprep.subr.bf16.mxu1 %v10825_v6  ;;  %v9092_v6 = vld [vmem:[#allocation4] sm:$0xff]  ;;  %9397 = vperm.xlu0 %11321, %v9394_v43   ;;  %s9765_s23 = sshll.u32 %s11356_s13, 4  ;;  %s9766_s23 = int_to_ptr.vmem [resolvable:$true] %s9765_s23 }
 0x84c   :  { %v9097_v60 = vunpack.c.l.bf16 %v9092_v6  ;;  %s11322_s24 = scalar_lea.vmem %s9766_s23, 32  ;;  %p11327_p1 = scmp.lt.s32.totalorder %s9766_s23, %s9766_s23 }
 0x84d   :  { %p11323_p0 = scmp.ne.s32.totalorder %s9766_s23, %s11322_s24  ;;  %p11328_p2 = scmp.lt.s32.totalorder %s11322_s24, %s11322_s24 }
 0x84e   :  { %10828 = vmatpush1.bf16.msra.mxu1 %v10827_v27  ;;  %v9098_v27 = vunpack.c.h.bf16 %v9092_v6 }
 0x84f   :  { %v8425_v55 = vpop.f32.mrb[180].mxu0  ;;  %10830 = vmatprep.subr.bf16.mxu1 %v10829_v0  ;;  %p11329_p3 = por %p11328_p2, %p11327_p1 }
 0x850   :  { %v8427_v41 = vpop.f32.mrb[181].mxu0  ;;  %9464 = vmatprep.mubr.f32.mxu0 %v9098_v27 }
 0x851   :  { %v8429_v24 = vpop.f32.mrb[182].mxu0  ;;  %9465 = vmatmul.mubr.f32.vlgmr.msra.gmra.mrb[252].mxu0 %v9097_v60  ;;  %v15644_v60 = vpack.c.bf16 %v14867_v8, %v14854_v62  ;;  %v15648_v62 = vpack.c.bf16 %v14943_v1, %v14932_v36  ;;  %v15652_v36 = vpack.c.bf16 %v14996_v59, %v14986_v30  ;;  %p11330_p4 = pnand %p11329_p3, %p11323_p0 }
 0x852   :  { %v10839_v15 = vpack.c.bf16 %v8429_v24, %v8425_v55  ;;  %v8431_v58 = vpop.f32.mrb[183].mxu0  ;;  %10832 = vmatpush1.bf16.msra.mxu1 %v10831_v51  ;;  %v15633_v51 = vld [vmem:[#allocation58_spill] sm:$0xff]  ;;  %v15636_v55 = vld [vmem:[#allocation57_spill] sm:$0xff] }
 0x853   :  { %v10837_v52 = vpack.c.bf16 %v8431_v58, %v8427_v41  ;;  %10834 = vmatprep.subr.bf16.mxu1 %v10833_v61  ;;  %v15634_v0 = vpack.c.bf16 %v15632_v12, %v15633_v51  ;;  %v15635_v61 = vld [vmem:[#allocation60_spill] sm:$0xff]  ;;  %v15646_v12 = vpack.c.bf16 %v14906_v19, %v14893_v39  ;;  %v15650_v39 = vpack.c.bf16 %v14969_v46, %v14959_v3  ;;  %v15269_v3 = vld [vmem:[#allocation4 + $0x18] sm:$0xff] }
 0x854   :  { %v15637_v41 = vpack.c.bf16 %v15635_v61, %v15636_v55  ;;  %v15651_v19 = vpack.c.bf16 %v15001_v38, %v14991_v26  ;;  %v9101_v46 = vunpack.c.l.bf16 %v15211_v34  ;;  %v9104_v26 = vunpack.c.h.bf16 %v15269_v3 }
 0x856   :  { %10836 = vmatpush1.bf16.msra.mxu1 %v10835_v37 }
 0x857   :  { %v8435_v44 = vpop.f32.mrb[184].mxu0  ;;  %10838 = vmatprep.subr.bf16.mxu1 %v10837_v52  ;;  %v15640_v52 = vld [vmem:[#allocation66_spill] sm:$0xff] }
 0x858   :  { %v8437_v2 = vpop.f32.mrb[185].mxu0 }
 0x859   :  { %v8439_v21 = vpop.f32.mrb[186].mxu0 }
 0x85a   :  { %v10843_v49 = vpack.c.bf16 %v8439_v21, %v8435_v44  ;;  %v8441_v4 = vpop.f32.mrb[187].mxu0  ;;  %10840 = vmatpush1.bf16.msra.mxu1 %v10839_v15  ;;  %v15638_v15 = vld [vmem:[#allocation65_spill] sm:$0xff]  ;;  %v15641_v44 = vld [vmem:[#allocation64_spill] sm:$0xff] }
 0x85b   :  { %v10841_v48 = vpack.c.bf16 %v8441_v4, %v8437_v2  ;;  %v15639_v58 = vpack.c.bf16 %v14840_v16, %v15638_v15  ;;  %v15642_v2 = vpack.c.bf16 %v15640_v52, %v15641_v44  ;;  %v15645_v16 = vpack.c.bf16 %v14912_v22, %v14899_v9 }
 0x85c   :  { %v15649_v22 = vpack.c.bf16 %v14974_v28, %v14964_v53  ;;  %v15653_v53 = vpack.c.bf16 %v15028_v45, %v15018_v47  ;;  %v15654_v28 = vpack.c.bf16 %v15023_v13, %v15013_v18 }
 0x85d   :  { %10842 = vmatprep.subr.bf16.mxu1 %v10841_v48 }
 0x85e   :  { %10844 = vmatpush1.bf16.msra.mxu1 %v10843_v49  ;;  %v15643_v49 = vpack.c.bf16 %v14873_v31, %v14860_v11  ;;  %v15647_v31 = vpack.c.bf16 %v14947_v14, %v14938_v42 }
 0x85f   :  { %v8673_v5 = vpop.f32.mrb[188].mxu0  ;;  %10846 = vmatprep.subr.bf16.mxu1 %v15634_v0 }
 0x860   :  { %v8675_v10 = vpop.f32.mrb[189].mxu0 }
 0x861   :  { %v8677_v35 = vpop.f32.mrb[190].mxu0 }
 0x862   :  { %v10879_v37 = vpack.c.bf16 %v8677_v35, %v8673_v5  ;;  %v8679_v29 = vpop.f32.mrb[191].mxu0  ;;  %10848 = vmatpush1.bf16.msra.mxu1 %v15637_v41 }
 0x863   :  { %v10877_v24 = vpack.c.bf16 %v8679_v29, %v8675_v10  ;;  %10850 = vmatprep.subr.bf16.mxu1 %v15639_v58 }
 0x866   :  { %10852 = vmatpush1.bf16.msra.mxu1 %v15642_v2 }
 0x867   :  { %v8683_v21 = vpop.f32.mrb[192].mxu0  ;;  %10854 = vmatprep.subr.bf16.mxu1 %v15643_v49 }
 0x868   :  { %v8685_v4 = vpop.f32.mrb[193].mxu0 }
 0x869   :  { %v8687_v48 = vpop.f32.mrb[194].mxu0 }
 0x86a   :  { %v10883_v6 = vpack.c.bf16 %v8687_v48, %v8683_v21  ;;  %v8689_v27 = vpop.f32.mrb[195].mxu0  ;;  %10856 = vmatpush1.bf16.msra.mxu1 %v15644_v60 }
 0x86b   :  { %v10881_v5 = vpack.c.bf16 %v8689_v27, %v8685_v4  ;;  %10858 = vmatprep.subr.bf16.mxu1 %v15645_v16 }
 0x86e   :  { %10860 = vmatpush1.bf16.msra.mxu1 %v15646_v12 }
 0x86f   :  { %v8693_v51 = vpop.f32.mrb[196].mxu0  ;;  %10862 = vmatprep.subr.bf16.mxu1 %v15647_v31 }
 0x870   :  { %v8695_v11 = vpop.f32.mrb[197].mxu0 }
 0x871   :  { %v8697_v0 = vpop.f32.mrb[198].mxu0 }
 0x872   :  { %v10887_v10 = vpack.c.bf16 %v8697_v0, %v8693_v51  ;;  %v8699_v35 = vpop.f32.mrb[199].mxu0  ;;  %10864 = vmatpush1.bf16.msra.mxu1 %v15648_v62 }
 0x873   :  { %v10885_v8 = vpack.c.bf16 %v8699_v35, %v8695_v11  ;;  %10866 = vmatprep.subr.bf16.mxu1 %v15649_v22  ;;  %v15656_v11 = vpack.c.bf16 %v15051_v32, %v15040_v7  ;;  %v15658_v35 = vpack.c.bf16 %v15077_v63, %v15067_v50  ;;  %v15660_v7 = vld [vmem:[#allocation56_spill] sm:$0xff]  ;;  %v15666_v63 = vld [vmem:[#allocation54_spill] sm:$0xff] }
 0x874   :  { %v15661_v32 = vpack.c.bf16 %v15092_v54, %v15660_v7  ;;  %v15665_v50 = vld [vmem:[#allocation52_spill] sm:$0xff] }
 0x875   :  { %v15671_v54 = vld [vmem:[#allocation20_spill] sm:$0xff] }
 0x876   :  { %10868 = vmatpush1.bf16.msra.mxu1 %v15650_v39 }
 0x877   :  { %v8703_v9 = vpop.f32.mrb[200].mxu0  ;;  %10870 = vmatprep.subr.bf16.mxu1 %v15651_v19 }
 0x878   :  { %v8705_v14 = vpop.f32.mrb[201].mxu0 }
 0x879   :  { %v8707_v42 = vpop.f32.mrb[202].mxu0 }
 0x87a   :  { %v10891_v43 = vpack.c.bf16 %v8707_v42, %v8703_v9  ;;  %v8709_v29 = vpop.f32.mrb[203].mxu0  ;;  %10872 = vmatpush1.bf16.msra.mxu1 %v15652_v36 }
 0x87b   :  { %v10889_v1 = vpack.c.bf16 %v8709_v29, %v8705_v14  ;;  %10874 = vmatprep.subr.bf16.mxu1 %v15653_v53  ;;  %v15667_v14 = vpack.c.bf16 %v15665_v50, %v15666_v63 }
 0x87e   :  { %10876 = vmatpush1.bf16.msra.mxu1 %v15654_v28 }
 0x87f   :  { %v8713_v38 = vpop.f32.mrb[204].mxu0  ;;  %10878 = vmatprep.subr.bf16.mxu1 %v10877_v24 }
 0x880   :  { %v8715_v61 = vpop.f32.mrb[205].mxu0 }
 0x881   :  { %v8717_v30 = vpop.f32.mrb[206].mxu0  ;;  %9607 = vmatmul.mubr.f32.vlgmr.msra.gmra.mrb[180].mxu1 %v9101_v46  ;;  %v15672_v46 = vld [vmem:[#allocation63_spill] sm:$0xff] }
 0x882   :  { %v10895_v59 = vpack.c.bf16 %v8717_v30, %v8713_v38  ;;  %v8719_v55 = vpop.f32.mrb[207].mxu0  ;;  %10880 = vmatpush1.bf16.msra.mxu1 %v10879_v37  ;;  %9677 = vmatprep.mubr.f32.mxu1 %v9104_v26  ;;  %v15673_v28 = vpack.c.bf16 %v15671_v54, %v15672_v46  ;;  %v15674_v38 = vld [vmem:[#allocation28_spill] sm:$0xff] }
 0x883   :  { %v10893_v47 = vpack.c.bf16 %v8719_v55, %v8715_v61  ;;  %10882 = vmatprep.subr.bf16.mxu1 %v10881_v5  ;;  %v15655_v5 = vpack.c.bf16 %v15055_v56, %v15045_v33  ;;  %v15659_v33 = vpack.c.bf16 %v15096_v23, %v15090_v40  ;;  %v15668_v40 = vld [vmem:[#allocation24_spill] sm:$0xff]  ;;  %v15669_v23 = vld [vmem:[#allocation59_spill] sm:$0xff]  ;;  %v15678_v55 = vld [vmem:[#allocation22_spill] sm:$0xff] }
 0x884   :  { %v15675_v61 = vld [vmem:[#allocation23_spill] sm:$0xff] }
 0x885   :  { %v15676_v30 = vpack.c.bf16 %v15674_v38, %v15675_v61 }
 0x886   :  { %10884 = vmatpush1.bf16.msra.mxu1 %v10883_v6 }
 0x887   :  { %v8723_v45 = vpop.f32.mrb[208].mxu0  ;;  %10886 = vmatprep.subr.bf16.mxu1 %v10885_v8 }
 0x888   :  { %v8725_v34 = vpop.f32.mrb[209].mxu0 }
 0x889   :  { %v8727_v41 = vpop.f32.mrb[210].mxu0 }
 0x88a   :  { %v10899_v18 = vpack.c.bf16 %v8727_v41, %v8723_v45  ;;  %v8729_v13 = vpop.f32.mrb[211].mxu0  ;;  %10888 = vmatpush1.bf16.msra.mxu1 %v10887_v10  ;;  %v15657_v10 = vpack.c.bf16 %v15081_v20, %v15072_v25  ;;  %v15662_v25 = vld [vmem:[#allocation19_spill] sm:$0xff] }
 0x88b   :  { %v10897_v15 = vpack.c.bf16 %v8729_v13, %v8725_v34  ;;  %10890 = vmatprep.subr.bf16.mxu1 %v10889_v1  ;;  %v15663_v20 = vld [vmem:[#allocation55_spill] sm:$0xff]  ;;  %v15680_v34 = vld [vmem:[#allocation32_spill] sm:$0xff] }
 0x88c   :  { %v15664_v19 = vpack.c.bf16 %v15662_v25, %v15663_v20  ;;  %v15681_v41 = vld [vmem:[#allocation27_spill] sm:$0xff]  ;;  %v9096_v20 = vld [vmem:[#allocation4 + $0x20] sm:$0xf] }
 0x88d   :  { %v9105_v50 = vunpack.c.l.bf16 %v9096_v20 }
 0x88e   :  { %10892 = vmatpush1.bf16.msra.mxu1 %v10891_v43  ;;  %v15670_v43 = vpack.c.bf16 %v15668_v40, %v15669_v23 }
 0x88f   :  { %v8733_v24 = vpop.f32.mrb[212].mxu0  ;;  %10894 = vmatprep.subr.bf16.mxu1 %v10893_v47 }
 0x890   :  { %v8735_v58 = vpop.f32.mrb[213].mxu0 }
 0x891   :  { %v8737_v52 = vpop.f32.mrb[214].mxu0 }
 0x892   :  { %v10903_v44 = vpack.c.bf16 %v8737_v52, %v8733_v24  ;;  %v8739_v37 = vpop.f32.mrb[215].mxu0  ;;  %10896 = vmatpush1.bf16.msra.mxu1 %v10895_v59  ;;  %v15677_v59 = vld [vmem:[#allocation21_spill] sm:$0xff] }
 0x893   :  { %v10901_v2 = vpack.c.bf16 %v8739_v37, %v8735_v58  ;;  %10898 = vmatprep.subr.bf16.mxu1 %v10897_v15  ;;  %v15679_v47 = vpack.c.bf16 %v15677_v59, %v15678_v55  ;;  %v15683_v52 = vld [vmem:[#allocation25_spill] sm:$0xff] }
 0x896   :  { %10900 = vmatpush1.bf16.msra.mxu1 %v10899_v18  ;;  %v15682_v18 = vpack.c.bf16 %v15680_v34, %v15681_v41 }
 0x897   :  { %v8743_v21 = vpop.f32.mrb[216].mxu0  ;;  %10902 = vmatprep.subr.bf16.mxu1 %v10901_v2 }
 0x898   :  { %v8745_v49 = vpop.f32.mrb[217].mxu0 }
 0x899   :  { %v8747_v4 = vpop.f32.mrb[218].mxu0 }
 0x89a   :  { %v10907_v48 = vpack.c.bf16 %v8747_v4, %v8743_v21  ;;  %v8749_v6 = vpop.f32.mrb[219].mxu0  ;;  %10904 = vmatpush1.bf16.msra.mxu1 %v10903_v44  ;;  %v15684_v44 = vld [vmem:[#allocation26_spill] sm:$0xff]  ;;  %v15686_v21 = vpack.c.bf16 %v15201_v57, %v15189_v17  ;;  %v15687_v4 = vld [vmem:[#allocation31_spill] sm:$0xff] }
 0x89b   :  { %v10905_v27 = vpack.c.bf16 %v8749_v6, %v8745_v49  ;;  %v15685_v37 = vpack.c.bf16 %v15683_v52, %v15684_v44  ;;  %v9103_v49 = vunpack.c.l.bf16 %v15269_v3 }
 0x89d   :  { %10906 = vmatprep.subr.bf16.mxu1 %v10905_v27 }
 0x89e   :  { %10908 = vmatpush1.bf16.msra.mxu1 %v10907_v48  ;;  %v15688_v48 = vld [vmem:[#allocation30_spill] sm:$0xff] }
 0x89f   :  { %v8981_v60 = vpop.f32.mrb[220].mxu0  ;;  %10910 = vmatprep.subr.bf16.mxu1 %v15655_v5  ;;  %v15689_v6 = vpack.c.bf16 %v15687_v4, %v15688_v48 }
 0x8a0   :  { %v8983_v16 = vpop.f32.mrb[221].mxu0 }
 0x8a1   :  { %v8985_v12 = vpop.f32.mrb[222].mxu0 }
 0x8a2   :  { %v10943_v51 = vpack.c.bf16 %v8985_v12, %v8981_v60  ;;  %v8987_v31 = vpop.f32.mrb[223].mxu0  ;;  %10912 = vmatpush1.bf16.msra.mxu1 %v15656_v11 }
 0x8a3   :  { %v10941_v0 = vpack.c.bf16 %v8987_v31, %v8983_v16  ;;  %10914 = vmatprep.subr.bf16.mxu1 %v15657_v10  ;;  %v11355_v31 = vmov 0.0  }
 0x8a6   :  { %10916 = vmatpush1.bf16.msra.mxu1 %v15658_v35 }
 0x8a7   :  { %v8991_v62 = vpop.f32.mrb[224].mxu0  ;;  %10918 = vmatprep.subr.bf16.mxu1 %v15659_v33 }
 0x8a8   :  { %v8993_v56 = vpop.f32.mrb[225].mxu0 }
 0x8a9   :  { %v8995_v8 = vpop.f32.mrb[226].mxu0 }
 0x8aa   :  { %v10947_v22 = vpack.c.bf16 %v8995_v8, %v8991_v62  ;;  %v8997_v39 = vpop.f32.mrb[227].mxu0  ;;  %10920 = vmatpush1.bf16.msra.mxu1 %v15661_v32 }
 0x8ab   :  { %v10945_v9 = vpack.c.bf16 %v8997_v39, %v8993_v56  ;;  %10922 = vmatprep.subr.bf16.mxu1 %v15664_v19 }
 0x8ae   :  { %10924 = vmatpush1.bf16.msra.mxu1 %v15667_v14 }
 0x8af   :  { %v9001_v42 = vpop.f32.mrb[228].mxu0  ;;  %10926 = vmatprep.subr.bf16.mxu1 %v15670_v43 }
 0x8b0   :  { %v9003_v29 = vpop.f32.mrb[229].mxu0 }
 0x8b1   :  { %v9005_v36 = vpop.f32.mrb[230].mxu0 }
 0x8b2   :  { %v10951_v1 = vpack.c.bf16 %v9005_v36, %v9001_v42  ;;  %v9007_v53 = vpop.f32.mrb[231].mxu0  ;;  %10928 = vmatpush1.bf16.msra.mxu1 %v15673_v28 }
 0x8b3   :  { %v10949_v26 = vpack.c.bf16 %v9007_v53, %v9003_v29  ;;  %10930 = vmatprep.subr.bf16.mxu1 %v15676_v30 }
 0x8b6   :  { %10932 = vmatpush1.bf16.msra.mxu1 %v15679_v47 }
 0x8b7   :  { %v9011_v45 = vpop.f32.mrb[232].mxu0  ;;  %10934 = vmatprep.subr.bf16.mxu1 %v15682_v18 }
 0x8b8   :  { %v9013_v13 = vpop.f32.mrb[233].mxu0 }
 0x8b9   :  { %v9015_v15 = vpop.f32.mrb[234].mxu0 }
 0x8ba   :  { %v10955_v24 = vpack.c.bf16 %v9015_v15, %v9011_v45  ;;  %v9017_v58 = vpop.f32.mrb[235].mxu0  ;;  %10936 = vmatpush1.bf16.msra.mxu1 %v15685_v37 }
 0x8bb   :  { %v10953_v2 = vpack.c.bf16 %v9017_v58, %v9013_v13  ;;  %10938 = vmatprep.subr.bf16.mxu1 %v15686_v21 }
 0x8be   :  { %10940 = vmatpush1.bf16.msra.mxu1 %v15689_v6 }
 0x8bf   :  { %v9021_v27 = vpop.f32.mrb[236].mxu0  ;;  %10942 = vmatprep.subr.bf16.mxu1 %v10941_v0 }
 0x8c0   :  { %v9023_v60 = vpop.f32.mrb[237].mxu0 }
 0x8c1   :  { %v9025_v5 = vpop.f32.mrb[238].mxu0  ;;  %9678 = vmatmul.mubr.f32.vlgmr.msra.gmra.mrb[180].mxu1 %v9103_v49 }
 0x8c2   :  { %v10959_v16 = vpack.c.bf16 %v9025_v5, %v9021_v27  ;;  %v9027_v12 = vpop.f32.mrb[239].mxu0  ;;  %10944 = vmatpush1.bf16.msra.mxu1 %v10943_v51  ;;  %9748 = vmatprep.mubr.f32.mxu1 %v11355_v31 }
 0x8c3   :  { %v10957_v11 = vpack.c.bf16 %v9027_v12, %v9023_v60  ;;  %10946 = vmatprep.subr.bf16.mxu1 %v10945_v9 }
 0x8c6   :  { %10948 = vmatpush1.bf16.msra.mxu1 %v10947_v22 }
 0x8c7   :  { %v9031_v17 = vpop.f32.mrb[240].mxu0  ;;  %10950 = vmatprep.subr.bf16.mxu1 %v10949_v26 }
 0x8c8   :  { %v9033_v57 = vpop.f32.mrb[241].mxu0 }
 0x8c9   :  { %v9035_v3 = vpop.f32.mrb[242].mxu0 }
 0x8ca   :  { %v10963_v10 = vpack.c.bf16 %v9035_v3, %v9031_v17  ;;  %v9037_v35 = vpop.f32.mrb[243].mxu0  ;;  %10952 = vmatpush1.bf16.msra.mxu1 %v10951_v1 }
 0x8cb   :  { %v10961_v62 = vpack.c.bf16 %v9037_v35, %v9033_v57  ;;  %10954 = vmatprep.subr.bf16.mxu1 %v10953_v2 }
 0x8ce   :  { %10956 = vmatpush1.bf16.msra.mxu1 %v10955_v24 }
 0x8cf   :  { %v9041_v0 = vpop.f32.mrb[244].mxu0  ;;  %10958 = vmatprep.subr.bf16.mxu1 %v10957_v11 }
 0x8d0   :  { %v9043_v33 = vpop.f32.mrb[245].mxu0 }
 0x8d1   :  { %v9045_v56 = vpop.f32.mrb[246].mxu0 }
 0x8d2   :  { %v10967_v51 = vpack.c.bf16 %v9045_v56, %v9041_v0  ;;  %v9047_v8 = vpop.f32.mrb[247].mxu0  ;;  %10960 = vmatpush1.bf16.msra.mxu1 %v10959_v16 }
 0x8d3   :  { %v10965_v39 = vpack.c.bf16 %v9047_v8, %v9043_v33  ;;  %10962 = vmatprep.subr.bf16.mxu1 %v10961_v62 }
 0x8d6   :  { %10964 = vmatpush1.bf16.msra.mxu1 %v10963_v10 }
 0x8d7   :  { %v9051_v22 = vpop.f32.mrb[248].mxu0  ;;  %10966 = vmatprep.subr.bf16.mxu1 %v10965_v39 }
 0x8d8   :  { %v9053_v7 = vpop.f32.mrb[249].mxu0 }
 0x8d9   :  { %v9055_v32 = vpop.f32.mrb[250].mxu0 }
 0x8da   :  { %v10971_v9 = vpack.c.bf16 %v9055_v32, %v9051_v22  ;;  %v9057_v25 = vpop.f32.mrb[251].mxu0  ;;  %10968 = vmatpush1.bf16.msra.mxu1 %v10967_v51 }
 0x8db   :  { %v10969_v19 = vpack.c.bf16 %v9057_v25, %v9053_v7 }
 0x8dd   :  { %10970 = vmatprep.subr.bf16.mxu1 %v10969_v19 }
 0x8de   :  { %10972 = vmatpush1.bf16.msra.mxu1 %v10971_v9 }
 0x8e1   :  { %9749 = vmatmul.mubr.f32.vlgmr.msra.gmra.mrb[180].mxu1 %v9105_v50 }
 0x924   :  { %v9466_v63 = vpop.f32.mrb[252].mxu0 }
 0x925   :  { %v9468_v14 = vpop.f32.mrb[253].mxu0 }
 0x926   :  { %11333 = shalt.err (!%p11330_p4)
}
 0x927   :  { %s11334_s11 = scalar_lea.hbm %s15358_s15, 32 }
 0x928   :  { %p11335_p5 = scmp.ne.s32.totalorder %s15358_s15, %s11334_s11  ;;  %p11338_p6 = scmp.lt.u32.totalorder %s11334_s11, %s15358_s15 }
 0x92a   :  { %p11340_p7 = pnand %p11338_p6, %p11335_p5 }
 0x92c   :  { %11343 = shalt.err (!%p11340_p7)
}
 0x92d   :  { %9768 = dma.vmem_to_hbm [thread:$0]  %s9766_s23, 32, %s15358_s15, [#allocation11]   ;;  %v9398_v42 = vpop.permute.xlu0 %9397 }
 0x92e   :  { %v9467_v40 = vadd.f32 %v9466_v63, %v9398_v42  ;;  %v9469_v23 = vadd.f32 %v9468_v14, %v9398_v42 }
 0x9b4   :  { %v9750_v43 = vpop.f32.mrb[180].mxu1 }
 0x9b5   :  { %v10974_v29 = vadd.f32 %v9750_v43, %v9467_v40  ;;  %v9752_v36 = vpop.f32.mrb[181].mxu1 }
 0x9b6   :  { %v10976_v1 = vadd.f32 %v9752_v36, %v9469_v23 }
 0x9b7   :  { %9755 = vst [vmem:[%s15357_s14] sm:$0xff] %v10974_v29 }
 0x9b8   :  { %9756 = vst [vmem:[%s15357_s14 + $0x8] sm:$0xff] %v10976_v1 }
 0x9b9   :  { %11350 = dma.done.wait [#allocation11], 32  }
 0x9ba   :  { %11351 = vsyncadd [#allocation11], 4294967264 }
 0x9bb   :  { %9774 = vsyncpa [#allocation11], 1 }
 0x9bc   :  { %9775 = vsyncmov [#allocation5] }
 0x9bf   :  { %s9776_s15 = vpop.sfrf %9775 }
 0x9c0   :  { %p10267_p8 = scmp.ne.s32.totalorder %s9776_s15, 0 }
 0x9c2   :  { %9780 = shalt.err (%p10267_p8)  }
 0x9c3   :  { %9782 = vsyncmov [#allocation5 + $0x1] }
 0x9c6   :  { %s9783_s12 = vpop.sfrf %9782 }
 0x9c7   :  { %p10268_p9 = scmp.ne.s32.totalorder %s9783_s12, 0 }
 0x9c9   :  { %9787 = shalt.err (%p10268_p9)  }
 0x9ca   :  { %9789 = vsyncmov [#allocation5 + $0x2] }
 0x9cd   :  { %s9790_s3 = vpop.sfrf %9789 }
 0x9ce   :  { %p10269_p10 = scmp.ne.s32.totalorder %s9790_s3, 0 }
 0x9d0   :  { %9794 = shalt.err (%p10269_p10)  }

</bundles_post_ra>
